<compile_context>
chip_gen: v6e
topology: v6e:2x2x1
jax: 0.10.0
libtpu: 0.0.40
codegen_flags: <defaults>
</compile_context>

<pallas_src>
import functools

import jax
import jax.numpy as jnp
from jax.experimental import pallas as pl
from jax.experimental.pallas import tpu as pltpu

_LN_EPS = 1e-5
_INV_SQRT2 = 0.7071067811865475
_BF16 = jnp.bfloat16


# ----------------------------- in-kernel helpers -----------------------------

def _gelu(x):
    # exact (erf-based) GELU, matching torch.nn.GELU() default
    return 0.5 * x * (1.0 + jax.lax.erf(x * _INV_SQRT2))


def _layernorm(x, w, b):
    mu = jnp.mean(x, axis=-1, keepdims=True)
    var = jnp.mean((x - mu) ** 2, axis=-1, keepdims=True)
    return (x - mu) * jax.lax.rsqrt(var + _LN_EPS) * w + b


def _mm(a, b):
    # bf16 MXU operands, f32 accumulation.
    return jnp.dot(a.astype(_BF16), b.astype(_BF16), preferred_element_type=jnp.float32)


def _mlp(x, w1, b1, w2, b2):
    return _mm(_gelu(_mm(x, w1) + b1), w2) + b2


def _emb2(x2, p):
    # MLP with 2 input channels: first layer as two rank-1 VPU broadcast-MACs
    # (no K-padded matmul, no host-side input padding).
    w1 = p["w1"]
    h = _gelu(x2[:, 0:1] * w1[0:1, :] + x2[:, 1:2] * w1[1:2, :] + p["b1"])
    return _mm(h, p["w2"]) + p["b2"]


def _emb1(x1, p):
    # MLP with 1 input channel: first layer as a rank-1 VPU broadcast-MAC.
    h = _gelu(x1 * p["w1"] + p["b1"])
    return _mm(h, p["w2"]) + p["b2"]


def _mlp_split(a, b, p):
    # MLP(concat(a, b)) with the first-layer weight pre-split -> no concat needed.
    h = _gelu(_mm(a, p["w1a"]) + _mm(b, p["w1b"]) + p["b1"])
    return _mm(h, p["w2"]) + p["b2"]


def _attn_block(q, kv, w, num_heads):
    """Pre-norm MHA + MLP residual block (AttentionLayer.forward), one batch element.

    q   : [N, C] f32        kv : [M, C] f32
    w["wq"]  : [C, C]  bf16 (softmax scale folded in)
    w["wkv"] : [C, 2C] bf16 (k columns first, then v, per-head contiguous)
    w["wp"]  : [C, C]  bf16 (output projection)
    w["vec"] : [8, C]  f32 rows = (n1w, n1b, proj_b, gamma1, gamma2, n2w, n2b, mlp_b2)
    w["mw1"] : [C, 2C] bf16   w["mb1"]: [1, 2C] f32   w["mw2"]: [2C, C] bf16
    """
    C = q.shape[-1]
    dh = C // num_heads
    vec = w["vec"]
    n1w, n1b, bp = vec[0:1], vec[1:2], vec[2:3]
    g1, g2 = vec[3:4], vec[4:5]
    n2w, n2b, mb2 = vec[5:6], vec[6:7], vec[7:8]

    qn = _layernorm(q, n1w, n1b).astype(_BF16)
    kvn = _layernorm(kv, n1w, n1b).astype(_BF16)

    # lane-dense projections (one push each, full-width MXU output)
    qp = jnp.dot(qn, w["wq"], preferred_element_type=jnp.float32)      # [N, C]
    kvp = jnp.dot(kvn, w["wkv"], preferred_element_type=jnp.float32)   # [M, 2C]
    kpj, vpj = kvp[:, :C], kvp[:, C:]

    # heads split only for the small score / attn@V matmuls (static lane slices)
    heads = []
    for h in range(num_heads):
        sl = slice(h * dh, (h + 1) * dh)
        s = jnp.einsum("nd,md->nm",
                       qp[:, sl].astype(_BF16), kpj[:, sl].astype(_BF16),
                       preferred_element_type=jnp.float32)             # [N, M]
        s = s - jnp.max(s, axis=-1, keepdims=True)
        e = jnp.exp(s)
        p = e / jnp.sum(e, axis=-1, keepdims=True)                     # exact softmax
        heads.append(jnp.dot(p.astype(_BF16), vpj[:, sl].astype(_BF16),
                             preferred_element_type=jnp.float32))      # [N, dh]
    o = heads[0] if num_heads == 1 else jnp.concatenate(heads, axis=-1)  # [N, C]

    x = _mm(o, w["wp"]) + bp                                           # lane-dense out-proj
    x1 = q + g1 * x                                                    # residual + gamma1
    xn = _layernorm(x1, n2w, n2b)
    m = _mm(_gelu(_mm(xn, w["mw1"]) + w["mb1"]), w["mw2"]) + mb2
    return x1 + g2 * m                                                 # residual + gamma2


# --------------------------------- fused kernel -------------------------------

_N_BATCH_ARGS = 7  # obs_p2, obs_dz, kp_in, kpts2d_feat, obs_feats, mean, std


def fused_kernel(*refs, net_treedef, nhead):
    (p2_ref, dz_ref, kp_in_ref, kfeat_ref, ofeat_ref,
     mean_ref, std_ref) = refs[:_N_BATCH_ARGS]
    out_ref = refs[-1]
    net = jax.tree_util.tree_unflatten(net_treedef, refs[_N_BATCH_ARGS:-1])

    load = lambda d: {k: v[...] for k, v in d.items()}
    layer = lambda d, l: {k: v[l] for k, v in d.items()}

    pe, de = load(net["pts2d_emb"]), load(net["depth_emb"])

    # ---- observation path: pts2d_emb + depth_emb + depth_enc + pts3d_emb ----
    opts2d = _emb2(p2_ref[0], pe)                                      # [No, dp]
    odepth = _emb1(dz_ref[0], de)                                      # [No, dp]
    odepth = _attn_block(odepth, odepth, load(net["depth_enc"]), nhead)
    # pts3d_emb: bias-free linear on concat(opts2d, odepth), weight pre-split.
    opts3d = _mm(opts2d, net["pts3d_emb_a"][...]) + _mm(odepth, net["pts3d_emb_b"][...])

    # ---- propagation: kpt embedding + propa attention stack (in-kernel loop) ----
    kp = _emb2(kp_in_ref[0], pe)                                       # [Nk, dp]
    n_propa = net["propa_stack"]["wq"].shape[0]
    for l in range(n_propa):
        kp = _attn_block(kp, opts3d, layer(net["propa_stack"], l), nhead)

    # ---- merge2d / merge3d + interleaved infer stack ----
    kf = _mlp_split(kp, kfeat_ref[0], load(net["merge2d"]))            # [Nk, dm]
    of = _mlp_split(opts3d, ofeat_ref[0], load(net["merge3d"]))        # [No, dm]
    n_infer = net["infer_even"]["wq"].shape[0]
    for l in range(n_infer):
        of = _attn_block(of, of, layer(net["infer_even"], l), nhead)
        kf = _attn_block(kf, of, layer(net["infer_odd"], l), nhead)

    # ---- output heads (fused; intermediates never leave VMEM) ----
    mean, std = mean_ref[0], std_ref[0]                                # [1, 1]

    oc = load(net["out_coords"])
    x = _mlp(kf, oc["w1"], oc["b1"], oc["w2"], oc["b2"])
    x = _layernorm(x, oc["lnw"], oc["lnb"])
    rel = _mlp(x, oc["w3"], oc["b3"], oc["w4"], oc["b4"])              # [Nk, 1]
    depth = rel * std + mean

    # out_conf on concat(kpts_feat, depth/std): the single depth channel is a
    # rank-1 VPU broadcast instead of a K=1 matmul.
    cf = load(net["out_conf"])
    dn = depth / std
    h = _gelu(_mm(kf, cf["w1a"]) + dn * cf["w1b"] + cf["b1"])
    c = _mm(h, cf["w2"]) + cf["b2"]
    c = _layernorm(c, cf["lnw"], cf["lnb"])
    y = _mm(_gelu(_mm(c, cf["w3"]) + cf["b3"]), cf["w4"]) + cf["b4"]
    conf = 1.0 / (1.0 + jnp.exp(-y))                                   # exact sigmoid

    out_ref[0] = jnp.concatenate([depth, conf], axis=-1)               # [Nk, 2]


def fused_apply(net, obs_p2, obs_dz, kp_in, kpts2d_feat, obs_feats,
                mean_depth, std_depth, nhead):
    B, _, _ = obs_p2.shape
    Nk = kp_in.shape[1]
    leaves, net_treedef = jax.tree_util.tree_flatten(net)

    batch_args = (obs_p2, obs_dz, kp_in, kpts2d_feat, obs_feats, mean_depth, std_depth)
    assert len(batch_args) == _N_BATCH_ARGS

    in_specs = [pl.BlockSpec((1,) + a.shape[1:],
                             lambda b, _n=a.ndim - 1: (b,) + (0,) * _n)
                for a in batch_args]
    # grid-invariant weights: constant index_map -> DMA'd once, not per grid step
    in_specs += [pl.BlockSpec(a.shape, lambda b, _n=a.ndim: (0,) * _n) for a in leaves]

    # TODO(synk): for v7x with B == 1, split the keypoint axis into >=2 parallel
    # blocks (recomputing / staging the obs path) so both TensorCores are busy.
    return pl.pallas_call(
        functools.partial(fused_kernel, net_treedef=net_treedef, nhead=nhead),
        grid=(B,),
        in_specs=in_specs,
        out_specs=pl.BlockSpec((1, Nk, 2), lambda b: (b, 0, 0)),
        out_shape=jax.ShapeDtypeStruct((B, Nk, 2), jnp.float32),
        compiler_params=pltpu.CompilerParams(
            dimension_semantics=("parallel",),
            vmem_limit_bytes=48 * 1024 * 1024),
    )(*batch_args, *leaves)


# ---------------------------- parameter construction --------------------------

class _KeyGen:
    def __init__(self, key):
        self._key = key

    def __call__(self):
        self._key, sub = jax.random.split(self._key)
        return sub


def _init_emb(kg, din, dmid, dout, scale=0.1):
    # first layer kept f32 (VPU broadcast-MAC path), second layer bf16 (MXU)
    return dict(
        w1=scale * jax.random.normal(kg(), (din, dmid), jnp.float32),
        b1=0.01 * jax.random.normal(kg(), (1, dmid), jnp.float32),
        w2=(scale * jax.random.normal(kg(), (dmid, dout), jnp.float32)).astype(_BF16),
        b2=0.01 * jax.random.normal(kg(), (1, dout), jnp.float32),
    )


def _init_mlp_split(kg, din_a, din_b, dmid, dout, scale=0.1):
    return dict(
        w1a=(scale * jax.random.normal(kg(), (din_a, dmid), jnp.float32)).astype(_BF16),
        w1b=(scale * jax.random.normal(kg(), (din_b, dmid), jnp.float32)).astype(_BF16),
        b1=0.01 * jax.random.normal(kg(), (1, dmid), jnp.float32),
        w2=(scale * jax.random.normal(kg(), (dmid, dout), jnp.float32)).astype(_BF16),
        b2=0.01 * jax.random.normal(kg(), (1, dout), jnp.float32),
    )


def _init_attn(kg, dim, nhead, scale=0.1):
    dh = dim // nhead
    # lane-dense layouts: wq [C,C] (softmax scale folded in), wkv [C,2C], wp [C,C]
    wq = scale * jax.random.normal(kg(), (dim, dim), jnp.float32) * (dh ** -0.5)
    wkv = scale * jax.random.normal(kg(), (dim, 2 * dim), jnp.float32)
    wp = scale * jax.random.normal(kg(), (dim, dim), jnp.float32)
    vec = jnp.stack([
        jnp.ones((dim,), jnp.float32),                         # norm1 weight
        jnp.zeros((dim,), jnp.float32),                        # norm1 bias
        0.01 * jax.random.normal(kg(), (dim,), jnp.float32),   # proj bias
        jnp.ones((dim,), jnp.float32),                         # gamma1 (layer_scale=1.0)
        jnp.ones((dim,), jnp.float32),                         # gamma2
        jnp.ones((dim,), jnp.float32),                         # norm2 weight
        jnp.zeros((dim,), jnp.float32),                        # norm2 bias
        0.01 * jax.random.normal(kg(), (dim,), jnp.float32),   # mlp second bias
    ], axis=0)                                                  # [8, C]
    return dict(
        wq=wq.astype(_BF16), wkv=wkv.astype(_BF16), wp=wp.astype(_BF16), vec=vec,
        mw1=(scale * jax.random.normal(kg(), (dim, 2 * dim), jnp.float32)).astype(_BF16),
        mb1=0.01 * jax.random.normal(kg(), (1, 2 * dim), jnp.float32),
        mw2=(scale * jax.random.normal(kg(), (2 * dim, dim), jnp.float32)).astype(_BF16),
    )


def _init_head(kg, dm, scale=0.1):
    # MLP(dm,dm,dm) -> LayerNorm -> MLP(dm,dm,1)
    return dict(
        w1=(scale * jax.random.normal(kg(), (dm, dm), jnp.float32)).astype(_BF16),
        b1=0.01 * jax.random.normal(kg(), (1, dm), jnp.float32),
        w2=(scale * jax.random.normal(kg(), (dm, dm), jnp.float32)).astype(_BF16),
        b2=0.01 * jax.random.normal(kg(), (1, dm), jnp.float32),
        lnw=jnp.ones((1, dm), jnp.float32),
        lnb=jnp.zeros((1, dm), jnp.float32),
        w3=(scale * jax.random.normal(kg(), (dm, dm), jnp.float32)).astype(_BF16),
        b3=0.01 * jax.random.normal(kg(), (1, dm), jnp.float32),
        w4=(scale * jax.random.normal(kg(), (dm, 1), jnp.float32)).astype(_BF16),
        b4=0.01 * jax.random.normal(kg(), (1, 1), jnp.float32),
    )


def _init_conf_head(kg, dm, scale=0.1):
    # MLP(dm+1, 2dm, dm) -> LayerNorm -> MLP(dm, dm, 1) -> Sigmoid, first-layer split
    h = _init_head(kg, dm)
    return dict(
        w1a=(scale * jax.random.normal(kg(), (dm, 2 * dm), jnp.float32)).astype(_BF16),
        w1b=scale * jax.random.normal(kg(), (1, 2 * dm), jnp.float32),   # depth channel (VPU)
        b1=0.01 * jax.random.normal(kg(), (1, 2 * dm), jnp.float32),
        w2=(scale * jax.random.normal(kg(), (2 * dm, dm), jnp.float32)).astype(_BF16),
        b2=0.01 * jax.random.normal(kg(), (1, dm), jnp.float32),
        lnw=h["lnw"], lnb=h["lnb"],
        w3=h["w3"], b3=h["b3"], w4=h["w4"], b4=h["b4"],
    )


def _stack(layers):
    return jax.tree_util.tree_map(lambda *xs: jnp.stack(xs, axis=0), *layers)


def init_params(cfg, dim_feat, key):
    kg = _KeyGen(key)
    dp, dm, nh = cfg["dim_point"], cfg["dim_model"], cfg["nhead"]
    assert cfg["n_propa_layers"] >= 1 and cfg["n_infer_layers"] >= 1

    net = dict(
        pts2d_emb=_init_emb(kg, 2, dp, dp),
        depth_emb=_init_emb(kg, 1, dp, dp),
        pts3d_emb_a=(0.1 * jax.random.normal(kg(), (dp, dp), jnp.float32)).astype(_BF16),
        pts3d_emb_b=(0.1 * jax.random.normal(kg(), (dp, dp), jnp.float32)).astype(_BF16),
        depth_enc=_init_attn(kg, dp, nh),
        propa_stack=_stack([_init_attn(kg, dp, nh) for _ in range(cfg["n_propa_layers"])]),
        merge2d=_init_mlp_split(kg, dp, dim_feat, dm, dm),
        merge3d=_init_mlp_split(kg, dp, dim_feat, dm, dm),
        infer_even=_stack([_init_attn(kg, dm, nh) for _ in range(cfg["n_infer_layers"])]),
        infer_odd=_stack([_init_attn(kg, dm, nh) for _ in range(cfg["n_infer_layers"])]),
        out_coords=_init_head(kg, dm),
        out_conf=_init_conf_head(kg, dm),
    )
    return dict(
        pts2d_scale=10.0 * jnp.ones((1, 1, 2), jnp.float32),
        depth_scale=10.0 * jnp.ones((1, 1, 1), jnp.float32),
        net=net,
    )


# --------------------------------- geometry glue ------------------------------

def pts_world2cam(pts, T):
    R, t = T[:, :3, :3], T[:, :3, 3]
    return jnp.einsum("bij,bnj->bni", R, pts) + t[:, None, :]


def pts_cam2world(pts, T):
    R, t = T[:, :3, :3], T[:, :3, 3]
    return jnp.einsum("bji,bnj->bni", R, pts - t[:, None, :])


# ---------------------------------- forward -----------------------------------

def pts3d_infer_forward(params, cfg, obs_pts3d, obs_feats, kpts2d, kpts2d_feat, cam_params):
    K, T, dist_coeffs = cam_params
    # TODO(synk): undistort_points (dist_coeffs path) not implemented; dist_coeffs must be None.
    nhead = cfg["nhead"]

    # geometry glue: tiny per-batch 3x3 algebra + reductions, plain JAX
    obs_pts3d_cam = pts_world2cam(obs_pts3d, T)
    z = obs_pts3d_cam[..., 2]
    min_z = jnp.min(z, axis=1, keepdims=True)[..., None]                 # [B,1,1]
    max_z = jnp.max(z, axis=1, keepdims=True)[..., None]                 # [B,1,1]
    mean_depth = min_z                                                    # reference uses min
    std_depth = max_z - min_z + 1e-8

    Kinv = jnp.linalg.inv(K)
    kpts2d_homo = jnp.concatenate([kpts2d, jnp.ones_like(kpts2d[..., :1])], axis=-1)
    kpts2d_homo = jnp.einsum("bnj,bij->bni", kpts2d_homo, Kinv)

    kp_in = kpts2d_homo[..., :2] * params["pts2d_scale"]                  # [B,Nk,2]
    obs_p2 = (obs_pts3d_cam[..., :2] / (obs_pts3d_cam[..., 2:3] + 1e-8)
              * params["pts2d_scale"])                                    # [B,No,2]
    obs_dz = ((obs_pts3d_cam[..., 2:3] - mean_depth) / std_depth
              * params["depth_scale"])                                    # [B,No,1]

    # single fused Pallas kernel: embeddings, attention stacks, merges, heads
    out = fused_apply(params["net"], obs_p2, obs_dz, kp_in, kpts2d_feat, obs_feats,
                      mean_depth, std_depth, nhead)
    kpts_depth = out[..., 0:1]
    kpts3d_conf = out[..., 1:2]

    kpts3d = pts_cam2world(kpts2d_homo * kpts_depth, T)
    return kpts3d, kpts3d_conf


# ------------------------------------ main -------------------------------------

if __name__ == "__main__":
    cfg = dict(dim_point=32, nhead=4, n_pts2d_layers=1, n_pts3d_layers=1,
               n_propa_layers=1, dim_model=32, n_infer_layers=1)
    dim_feat = 32
    B, Np3d, Nk2d = 2, 8, 8

    key = jax.random.PRNGKey(0)
    k_param, k_p3a, k_p3b, k_of, k_k2, k_kf = jax.random.split(key, 6)
    params = init_params(cfg, dim_feat, k_param)

    # world points with positive camera depth; camera = rotation about z + small translation
    obs_pts3d = jnp.concatenate(
        [2.0 * jax.random.uniform(k_p3a, (B, Np3d, 2), jnp.float32) - 1.0,
         2.0 + 4.0 * jax.random.uniform(k_p3b, (B, Np3d, 1), jnp.float32)], axis=-1)
    obs_feats = jax.random.normal(k_of, (B, Np3d, dim_feat), jnp.float32)
    kpts2d = 128.0 * jax.random.uniform(k_k2, (B, Nk2d, 2), jnp.float32)
    kpts2d_feat = jax.random.normal(k_kf, (B, Nk2d, dim_feat), jnp.float32)

    angles = jnp.array([0.1, -0.2], jnp.float32)
    ca, sa = jnp.cos(angles), jnp.sin(angles)
    zo, on = jnp.zeros_like(ca), jnp.ones_like(ca)
    R = jnp.stack([jnp.stack([ca, -sa, zo], -1),
                   jnp.stack([sa, ca, zo], -1),
                   jnp.stack([zo, zo, on], -1)], axis=1)                    # [B,3,3]
    t = jnp.array([[0.1, -0.05, 0.2], [-0.1, 0.05, -0.1]], jnp.float32)
    T = (jnp.zeros((B, 4, 4), jnp.float32)
         .at[:, :3, :3].set(R).at[:, :3, 3].set(t).at[:, 3, 3].set(1.0))
    K = jnp.broadcast_to(jnp.array([[100.0, 0.0, 64.0],
                                    [0.0, 100.0, 64.0],
                                    [0.0, 0.0, 1.0]], jnp.float32), (B, 3, 3))

    fwd = jax.jit(lambda p, a, b, c, d, cam: pts3d_infer_forward(p, cfg, a, b, c, d, cam))
    kpts3d, kpts3d_conf = fwd(params, obs_pts3d, obs_feats, kpts2d, kpts2d_feat, (K, T, None))
    jax.block_until_ready((kpts3d, kpts3d_conf))

    assert kpts3d.shape == (B, Nk2d, 3) and kpts3d_conf.shape == (B, Nk2d, 1)
    assert bool(jnp.all(jnp.isfinite(kpts3d))) and bool(jnp.all(jnp.isfinite(kpts3d_conf)))
    assert bool(jnp.all(kpts3d_conf >= 0.0)) and bool(jnp.all(kpts3d_conf <= 1.0))
    print("KERNEL_OK")
</pallas_src>

<mosaic_0001>
module attributes {stable_mosaic.version = 11 : i64} {
  func.func @fused_kernel(%arg0: i32, %arg1: memref<1x8x2xf32, #tpu.memory_space<vmem>>, %arg2: memref<1x8x1xf32, #tpu.memory_space<vmem>>, %arg3: memref<1x8x2xf32, #tpu.memory_space<vmem>>, %arg4: memref<1x8x32xf32, #tpu.memory_space<vmem>>, %arg5: memref<1x8x32xf32, #tpu.memory_space<vmem>>, %arg6: memref<1x1x1xf32, #tpu.memory_space<vmem>>, %arg7: memref<1x1x1xf32, #tpu.memory_space<vmem>>, %arg8: memref<1x32xf32, #tpu.memory_space<vmem>>, %arg9: memref<1x32xf32, #tpu.memory_space<vmem>>, %arg10: memref<1x32xf32, #tpu.memory_space<vmem>>, %arg11: memref<32x32xbf16, #tpu.memory_space<vmem>>, %arg12: memref<1x64xf32, #tpu.memory_space<vmem>>, %arg13: memref<32x64xbf16, #tpu.memory_space<vmem>>, %arg14: memref<64x32xbf16, #tpu.memory_space<vmem>>, %arg15: memref<8x32xf32, #tpu.memory_space<vmem>>, %arg16: memref<32x64xbf16, #tpu.memory_space<vmem>>, %arg17: memref<32x32xbf16, #tpu.memory_space<vmem>>, %arg18: memref<32x32xbf16, #tpu.memory_space<vmem>>, %arg19: memref<1x1x64xf32, #tpu.memory_space<vmem>>, %arg20: memref<1x32x64xbf16, #tpu.memory_space<vmem>>, %arg21: memref<1x64x32xbf16, #tpu.memory_space<vmem>>, %arg22: memref<1x8x32xf32, #tpu.memory_space<vmem>>, %arg23: memref<1x32x64xbf16, #tpu.memory_space<vmem>>, %arg24: memref<1x32x32xbf16, #tpu.memory_space<vmem>>, %arg25: memref<1x32x32xbf16, #tpu.memory_space<vmem>>, %arg26: memref<1x1x64xf32, #tpu.memory_space<vmem>>, %arg27: memref<1x32x64xbf16, #tpu.memory_space<vmem>>, %arg28: memref<1x64x32xbf16, #tpu.memory_space<vmem>>, %arg29: memref<1x8x32xf32, #tpu.memory_space<vmem>>, %arg30: memref<1x32x64xbf16, #tpu.memory_space<vmem>>, %arg31: memref<1x32x32xbf16, #tpu.memory_space<vmem>>, %arg32: memref<1x32x32xbf16, #tpu.memory_space<vmem>>, %arg33: memref<1x32xf32, #tpu.memory_space<vmem>>, %arg34: memref<1x32xf32, #tpu.memory_space<vmem>>, %arg35: memref<32x32xbf16, #tpu.memory_space<vmem>>, %arg36: memref<32x32xbf16, #tpu.memory_space<vmem>>, %arg37: memref<32x32xbf16, #tpu.memory_space<vmem>>, %arg38: memref<1x32xf32, #tpu.memory_space<vmem>>, %arg39: memref<1x32xf32, #tpu.memory_space<vmem>>, %arg40: memref<32x32xbf16, #tpu.memory_space<vmem>>, %arg41: memref<32x32xbf16, #tpu.memory_space<vmem>>, %arg42: memref<32x32xbf16, #tpu.memory_space<vmem>>, %arg43: memref<1x64xf32, #tpu.memory_space<vmem>>, %arg44: memref<1x32xf32, #tpu.memory_space<vmem>>, %arg45: memref<1x32xf32, #tpu.memory_space<vmem>>, %arg46: memref<1x1xf32, #tpu.memory_space<vmem>>, %arg47: memref<1x32xf32, #tpu.memory_space<vmem>>, %arg48: memref<1x32xf32, #tpu.memory_space<vmem>>, %arg49: memref<32x64xbf16, #tpu.memory_space<vmem>>, %arg50: memref<1x64xf32, #tpu.memory_space<vmem>>, %arg51: memref<64x32xbf16, #tpu.memory_space<vmem>>, %arg52: memref<32x32xbf16, #tpu.memory_space<vmem>>, %arg53: memref<32x1xbf16, #tpu.memory_space<vmem>>, %arg54: memref<1x32xf32, #tpu.memory_space<vmem>>, %arg55: memref<1x32xf32, #tpu.memory_space<vmem>>, %arg56: memref<1x32xf32, #tpu.memory_space<vmem>>, %arg57: memref<1x1xf32, #tpu.memory_space<vmem>>, %arg58: memref<1x32xf32, #tpu.memory_space<vmem>>, %arg59: memref<1x32xf32, #tpu.memory_space<vmem>>, %arg60: memref<32x32xbf16, #tpu.memory_space<vmem>>, %arg61: memref<32x32xbf16, #tpu.memory_space<vmem>>, %arg62: memref<32x32xbf16, #tpu.memory_space<vmem>>, %arg63: memref<32x1xbf16, #tpu.memory_space<vmem>>, %arg64: memref<1x1x64xf32, #tpu.memory_space<vmem>>, %arg65: memref<1x32x64xbf16, #tpu.memory_space<vmem>>, %arg66: memref<1x64x32xbf16, #tpu.memory_space<vmem>>, %arg67: memref<1x8x32xf32, #tpu.memory_space<vmem>>, %arg68: memref<1x32x64xbf16, #tpu.memory_space<vmem>>, %arg69: memref<1x32x32xbf16, #tpu.memory_space<vmem>>, %arg70: memref<1x32x32xbf16, #tpu.memory_space<vmem>>, %arg71: memref<1x32xf32, #tpu.memory_space<vmem>>, %arg72: memref<1x32xf32, #tpu.memory_space<vmem>>, %arg73: memref<2x32xf32, #tpu.memory_space<vmem>>, %arg74: memref<32x32xbf16, #tpu.memory_space<vmem>>, %arg75: memref<32x32xbf16, #tpu.memory_space<vmem>>, %arg76: memref<32x32xbf16, #tpu.memory_space<vmem>>, %arg77: memref<1x8x2xf32, #tpu.memory_space<vmem>>) attributes {dimension_semantics = [#tpu.dimension_semantics<parallel>], iteration_bounds = array<i64: 2>, scalar_prefetch = 0 : i64, scratch_operands = 0 : i64, tpu.core_type = #tpu.core_type<tc>, window_params = [{transform_indices = @transform_0, window_bounds = array<i64: 1, 8, 2>}, {transform_indices = @transform_1, window_bounds = array<i64: 1, 8, 1>}, {transform_indices = @transform_2, window_bounds = array<i64: 1, 8, 2>}, {transform_indices = @transform_3, window_bounds = array<i64: 1, 8, 32>}, {transform_indices = @transform_4, window_bounds = array<i64: 1, 8, 32>}, {transform_indices = @transform_5, window_bounds = array<i64: 1, 1, 1>}, {transform_indices = @transform_6, window_bounds = array<i64: 1, 1, 1>}, {pipeline_mode = #tpu.pipeline_mode<synchronous>, transform_indices = @transform_7, window_bounds = array<i64: 1, 32>}, {pipeline_mode = #tpu.pipeline_mode<synchronous>, transform_indices = @transform_8, window_bounds = array<i64: 1, 32>}, {pipeline_mode = #tpu.pipeline_mode<synchronous>, transform_indices = @transform_9, window_bounds = array<i64: 1, 32>}, {pipeline_mode = #tpu.pipeline_mode<synchronous>, transform_indices = @transform_10, window_bounds = array<i64: 32, 32>}, {pipeline_mode = #tpu.pipeline_mode<synchronous>, transform_indices = @transform_11, window_bounds = array<i64: 1, 64>}, {pipeline_mode = #tpu.pipeline_mode<synchronous>, transform_indices = @transform_12, window_bounds = array<i64: 32, 64>}, {pipeline_mode = #tpu.pipeline_mode<synchronous>, transform_indices = @transform_13, window_bounds = array<i64: 64, 32>}, {pipeline_mode = #tpu.pipeline_mode<synchronous>, transform_indices = @transform_14, window_bounds = array<i64: 8, 32>}, {pipeline_mode = #tpu.pipeline_mode<synchronous>, transform_indices = @transform_15, window_bounds = array<i64: 32, 64>}, {pipeline_mode = #tpu.pipeline_mode<synchronous>, transform_indices = @transform_16, window_bounds = array<i64: 32, 32>}, {pipeline_mode = #tpu.pipeline_mode<synchronous>, transform_indices = @transform_17, window_bounds = array<i64: 32, 32>}, {pipeline_mode = #tpu.pipeline_mode<synchronous>, transform_indices = @transform_18, window_bounds = array<i64: 1, 1, 64>}, {pipeline_mode = #tpu.pipeline_mode<synchronous>, transform_indices = @transform_19, window_bounds = array<i64: 1, 32, 64>}, {pipeline_mode = #tpu.pipeline_mode<synchronous>, transform_indices = @transform_20, window_bounds = array<i64: 1, 64, 32>}, {pipeline_mode = #tpu.pipeline_mode<synchronous>, transform_indices = @transform_21, window_bounds = array<i64: 1, 8, 32>}, {pipeline_mode = #tpu.pipeline_mode<synchronous>, transform_indices = @transform_22, window_bounds = array<i64: 1, 32, 64>}, {pipeline_mode = #tpu.pipeline_mode<synchronous>, transform_indices = @transform_23, window_bounds = array<i64: 1, 32, 32>}, {pipeline_mode = #tpu.pipeline_mode<synchronous>, transform_indices = @transform_24, window_bounds = array<i64: 1, 32, 32>}, {pipeline_mode = #tpu.pipeline_mode<synchronous>, transform_indices = @transform_25, window_bounds = array<i64: 1, 1, 64>}, {pipeline_mode = #tpu.pipeline_mode<synchronous>, transform_indices = @transform_26, window_bounds = array<i64: 1, 32, 64>}, {pipeline_mode = #tpu.pipeline_mode<synchronous>, transform_indices = @transform_27, window_bounds = array<i64: 1, 64, 32>}, {pipeline_mode = #tpu.pipeline_mode<synchronous>, transform_indices = @transform_28, window_bounds = array<i64: 1, 8, 32>}, {pipeline_mode = #tpu.pipeline_mode<synchronous>, transform_indices = @transform_29, window_bounds = array<i64: 1, 32, 64>}, {pipeline_mode = #tpu.pipeline_mode<synchronous>, transform_indices = @transform_30, window_bounds = array<i64: 1, 32, 32>}, {pipeline_mode = #tpu.pipeline_mode<synchronous>, transform_indices = @transform_31, window_bounds = array<i64: 1, 32, 32>}, {pipeline_mode = #tpu.pipeline_mode<synchronous>, transform_indices = @transform_32, window_bounds = array<i64: 1, 32>}, {pipeline_mode = #tpu.pipeline_mode<synchronous>, transform_indices = @transform_33, window_bounds = array<i64: 1, 32>}, {pipeline_mode = #tpu.pipeline_mode<synchronous>, transform_indices = @transform_34, window_bounds = array<i64: 32, 32>}, {pipeline_mode = #tpu.pipeline_mode<synchronous>, transform_indices = @transform_35, window_bounds = array<i64: 32, 32>}, {pipeline_mode = #tpu.pipeline_mode<synchronous>, transform_indices = @transform_36, window_bounds = array<i64: 32, 32>}, {pipeline_mode = #tpu.pipeline_mode<synchronous>, transform_indices = @transform_37, window_bounds = array<i64: 1, 32>}, {pipeline_mode = #tpu.pipeline_mode<synchronous>, transform_indices = @transform_38, window_bounds = array<i64: 1, 32>}, {pipeline_mode = #tpu.pipeline_mode<synchronous>, transform_indices = @transform_39, window_bounds = array<i64: 32, 32>}, {pipeline_mode = #tpu.pipeline_mode<synchronous>, transform_indices = @transform_40, window_bounds = array<i64: 32, 32>}, {pipeline_mode = #tpu.pipeline_mode<synchronous>, transform_indices = @transform_41, window_bounds = array<i64: 32, 32>}, {pipeline_mode = #tpu.pipeline_mode<synchronous>, transform_indices = @transform_42, window_bounds = array<i64: 1, 64>}, {pipeline_mode = #tpu.pipeline_mode<synchronous>, transform_indices = @transform_43, window_bounds = array<i64: 1, 32>}, {pipeline_mode = #tpu.pipeline_mode<synchronous>, transform_indices = @transform_44, window_bounds = array<i64: 1, 32>}, {pipeline_mode = #tpu.pipeline_mode<synchronous>, transform_indices = @transform_45, window_bounds = array<i64: 1, 1>}, {pipeline_mode = #tpu.pipeline_mode<synchronous>, transform_indices = @transform_46, window_bounds = array<i64: 1, 32>}, {pipeline_mode = #tpu.pipeline_mode<synchronous>, transform_indices = @transform_47, window_bounds = array<i64: 1, 32>}, {pipeline_mode = #tpu.pipeline_mode<synchronous>, transform_indices = @transform_48, window_bounds = array<i64: 32, 64>}, {pipeline_mode = #tpu.pipeline_mode<synchronous>, transform_indices = @transform_49, window_bounds = array<i64: 1, 64>}, {pipeline_mode = #tpu.pipeline_mode<synchronous>, transform_indices = @transform_50, window_bounds = array<i64: 64, 32>}, {pipeline_mode = #tpu.pipeline_mode<synchronous>, transform_indices = @transform_51, window_bounds = array<i64: 32, 32>}, {pipeline_mode = #tpu.pipeline_mode<synchronous>, transform_indices = @transform_52, window_bounds = array<i64: 32, 1>}, {pipeline_mode = #tpu.pipeline_mode<synchronous>, transform_indices = @transform_53, window_bounds = array<i64: 1, 32>}, {pipeline_mode = #tpu.pipeline_mode<synchronous>, transform_indices = @transform_54, window_bounds = array<i64: 1, 32>}, {pipeline_mode = #tpu.pipeline_mode<synchronous>, transform_indices = @transform_55, window_bounds = array<i64: 1, 32>}, {pipeline_mode = #tpu.pipeline_mode<synchronous>, transform_indices = @transform_56, window_bounds = array<i64: 1, 1>}, {pipeline_mode = #tpu.pipeline_mode<synchronous>, transform_indices = @transform_57, window_bounds = array<i64: 1, 32>}, {pipeline_mode = #tpu.pipeline_mode<synchronous>, transform_indices = @transform_58, window_bounds = array<i64: 1, 32>}, {pipeline_mode = #tpu.pipeline_mode<synchronous>, transform_indices = @transform_59, window_bounds = array<i64: 32, 32>}, {pipeline_mode = #tpu.pipeline_mode<synchronous>, transform_indices = @transform_60, window_bounds = array<i64: 32, 32>}, {pipeline_mode = #tpu.pipeline_mode<synchronous>, transform_indices = @transform_61, window_bounds = array<i64: 32, 32>}, {pipeline_mode = #tpu.pipeline_mode<synchronous>, transform_indices = @transform_62, window_bounds = array<i64: 32, 1>}, {pipeline_mode = #tpu.pipeline_mode<synchronous>, transform_indices = @transform_63, window_bounds = array<i64: 1, 1, 64>}, {pipeline_mode = #tpu.pipeline_mode<synchronous>, transform_indices = @transform_64, window_bounds = array<i64: 1, 32, 64>}, {pipeline_mode = #tpu.pipeline_mode<synchronous>, transform_indices = @transform_65, window_bounds = array<i64: 1, 64, 32>}, {pipeline_mode = #tpu.pipeline_mode<synchronous>, transform_indices = @transform_66, window_bounds = array<i64: 1, 8, 32>}, {pipeline_mode = #tpu.pipeline_mode<synchronous>, transform_indices = @transform_67, window_bounds = array<i64: 1, 32, 64>}, {pipeline_mode = #tpu.pipeline_mode<synchronous>, transform_indices = @transform_68, window_bounds = array<i64: 1, 32, 32>}, {pipeline_mode = #tpu.pipeline_mode<synchronous>, transform_indices = @transform_69, window_bounds = array<i64: 1, 32, 32>}, {pipeline_mode = #tpu.pipeline_mode<synchronous>, transform_indices = @transform_70, window_bounds = array<i64: 1, 32>}, {pipeline_mode = #tpu.pipeline_mode<synchronous>, transform_indices = @transform_71, window_bounds = array<i64: 1, 32>}, {pipeline_mode = #tpu.pipeline_mode<synchronous>, transform_indices = @transform_72, window_bounds = array<i64: 2, 32>}, {pipeline_mode = #tpu.pipeline_mode<synchronous>, transform_indices = @transform_73, window_bounds = array<i64: 32, 32>}, {pipeline_mode = #tpu.pipeline_mode<synchronous>, transform_indices = @transform_74, window_bounds = array<i64: 32, 32>}, {pipeline_mode = #tpu.pipeline_mode<synchronous>, transform_indices = @transform_75, window_bounds = array<i64: 32, 32>}, {transform_indices = @transform_76, window_bounds = array<i64: 1, 8, 2>}]} {
    %c0 = arith.constant 0 : index
    %c0_0 = arith.constant 0 : index
    %0 = vector.load %arg71[%c0, %c0_0] : memref<1x32xf32, #tpu.memory_space<vmem>>, vector<1x32xf32>
    %c0_1 = arith.constant 0 : index
    %c0_2 = arith.constant 0 : index
    %1 = vector.load %arg72[%c0_1, %c0_2] : memref<1x32xf32, #tpu.memory_space<vmem>>, vector<1x32xf32>
    %c0_3 = arith.constant 0 : index
    %c0_4 = arith.constant 0 : index
    %2 = vector.load %arg73[%c0_3, %c0_4] : memref<2x32xf32, #tpu.memory_space<vmem>>, vector<2x32xf32>
    %c0_5 = arith.constant 0 : index
    %c0_6 = arith.constant 0 : index
    %3 = vector.load %arg74[%c0_5, %c0_6] : memref<32x32xbf16, #tpu.memory_space<vmem>>, vector<32x32xbf16>
    %c0_7 = arith.constant 0 : index
    %c0_8 = arith.constant 0 : index
    %4 = vector.load %arg8[%c0_7, %c0_8] : memref<1x32xf32, #tpu.memory_space<vmem>>, vector<1x32xf32>
    %c0_9 = arith.constant 0 : index
    %c0_10 = arith.constant 0 : index
    %5 = vector.load %arg9[%c0_9, %c0_10] : memref<1x32xf32, #tpu.memory_space<vmem>>, vector<1x32xf32>
    %c0_11 = arith.constant 0 : index
    %c0_12 = arith.constant 0 : index
    %6 = vector.load %arg10[%c0_11, %c0_12] : memref<1x32xf32, #tpu.memory_space<vmem>>, vector<1x32xf32>
    %c0_13 = arith.constant 0 : index
    %c0_14 = arith.constant 0 : index
    %7 = vector.load %arg11[%c0_13, %c0_14] : memref<32x32xbf16, #tpu.memory_space<vmem>>, vector<32x32xbf16>
    %c0_15 = arith.constant 0 : index
    %c0_16 = arith.constant 0 : index
    %c0_17 = arith.constant 0 : index
    %8 = vector.load %arg1[%c0_15, %c0_16, %c0_17] : memref<1x8x2xf32, #tpu.memory_space<vmem>>, vector<1x8x2xf32>
    %9 = vector.shape_cast %8 : vector<1x8x2xf32> to vector<8x2xf32>
    %10 = vector.extract_strided_slice %9 {offsets = [0, 0], sizes = [8, 1], strides = [1, 1]} : vector<8x2xf32> to vector<8x1xf32>
    %11 = vector.extract_strided_slice %2 {offsets = [0, 0], sizes = [1, 32], strides = [1, 1]} : vector<2x32xf32> to vector<1x32xf32>
    %12 = vector.broadcast %10 : vector<8x1xf32> to vector<8x32xf32>
    %13 = vector.broadcast %11 : vector<1x32xf32> to vector<8x32xf32>
    %14 = arith.mulf %12, %13 : vector<8x32xf32>
    %15 = vector.extract_strided_slice %9 {offsets = [0, 1], sizes = [8, 1], strides = [1, 1]} : vector<8x2xf32> to vector<8x1xf32>
    %16 = vector.extract_strided_slice %2 {offsets = [1, 0], sizes = [1, 32], strides = [1, 1]} : vector<2x32xf32> to vector<1x32xf32>
    %17 = vector.broadcast %15 : vector<8x1xf32> to vector<8x32xf32>
    %18 = vector.broadcast %16 : vector<1x32xf32> to vector<8x32xf32>
    %19 = arith.mulf %17, %18 : vector<8x32xf32>
    %20 = arith.addf %14, %19 : vector<8x32xf32>
    %21 = vector.broadcast %0 : vector<1x32xf32> to vector<8x32xf32>
    %22 = arith.addf %20, %21 : vector<8x32xf32>
    %cst = arith.constant 5.000000e-01 : f32
    %23 = vector.broadcast %cst : f32 to vector<8x32xf32>
    %24 = arith.mulf %23, %22 : vector<8x32xf32>
    %cst_18 = arith.constant 0.707106769 : f32
    %25 = vector.broadcast %cst_18 : f32 to vector<8x32xf32>
    %26 = arith.mulf %22, %25 : vector<8x32xf32>
    %27 = math.erf %26 : vector<8x32xf32>
    %cst_19 = arith.constant 1.000000e+00 : f32
    %28 = vector.broadcast %cst_19 : f32 to vector<8x32xf32>
    %29 = arith.addf %28, %27 : vector<8x32xf32>
    %30 = arith.mulf %24, %29 : vector<8x32xf32>
    %31 = arith.truncf %30 : vector<8x32xf32> to vector<8x32xbf16>
    %cst_20 = arith.constant dense<0.000000e+00> : vector<8x32xf32>
    %32 = tpu.matmul %31, %3, %cst_20 {dimension_numbers = #tpu.dot_dimension_numbers<[1], [0], [0], [1], [0, 0, 1, 1], [], []>} : vector<8x32xbf16>, vector<32x32xbf16>, vector<8x32xf32> -> vector<8x32xf32>
    %33 = vector.broadcast %1 : vector<1x32xf32> to vector<8x32xf32>
    %34 = arith.addf %32, %33 : vector<8x32xf32>
    %c0_21 = arith.constant 0 : index
    %c0_22 = arith.constant 0 : index
    %c0_23 = arith.constant 0 : index
    %35 = vector.load %arg2[%c0_21, %c0_22, %c0_23] : memref<1x8x1xf32, #tpu.memory_space<vmem>>, vector<1x8x1xf32>
    %36 = vector.shape_cast %35 : vector<1x8x1xf32> to vector<8x1xf32>
    %37 = vector.broadcast %36 : vector<8x1xf32> to vector<8x32xf32>
    %38 = vector.broadcast %6 : vector<1x32xf32> to vector<8x32xf32>
    %39 = arith.mulf %37, %38 : vector<8x32xf32>
    %40 = vector.broadcast %4 : vector<1x32xf32> to vector<8x32xf32>
    %41 = arith.addf %39, %40 : vector<8x32xf32>
    %cst_24 = arith.constant 5.000000e-01 : f32
    %42 = vector.broadcast %cst_24 : f32 to vector<8x32xf32>
    %43 = arith.mulf %42, %41 : vector<8x32xf32>
    %cst_25 = arith.constant 0.707106769 : f32
    %44 = vector.broadcast %cst_25 : f32 to vector<8x32xf32>
    %45 = arith.mulf %41, %44 : vector<8x32xf32>
    %46 = math.erf %45 : vector<8x32xf32>
    %cst_26 = arith.constant 1.000000e+00 : f32
    %47 = vector.broadcast %cst_26 : f32 to vector<8x32xf32>
    %48 = arith.addf %47, %46 : vector<8x32xf32>
    %49 = arith.mulf %43, %48 : vector<8x32xf32>
    %50 = arith.truncf %49 : vector<8x32xf32> to vector<8x32xbf16>
    %cst_27 = arith.constant dense<0.000000e+00> : vector<8x32xf32>
    %51 = tpu.matmul %50, %7, %cst_27 {dimension_numbers = #tpu.dot_dimension_numbers<[1], [0], [0], [1], [0, 0, 1, 1], [], []>} : vector<8x32xbf16>, vector<32x32xbf16>, vector<8x32xf32> -> vector<8x32xf32>
    %52 = vector.broadcast %5 : vector<1x32xf32> to vector<8x32xf32>
    %53 = arith.addf %51, %52 : vector<8x32xf32>
    %c0_28 = arith.constant 0 : index
    %c0_29 = arith.constant 0 : index
    %54 = vector.load %arg12[%c0_28, %c0_29] : memref<1x64xf32, #tpu.memory_space<vmem>>, vector<1x64xf32>
    %c0_30 = arith.constant 0 : index
    %c0_31 = arith.constant 0 : index
    %55 = vector.load %arg13[%c0_30, %c0_31] : memref<32x64xbf16, #tpu.memory_space<vmem>>, vector<32x64xbf16>
    %c0_32 = arith.constant 0 : index
    %c0_33 = arith.constant 0 : index
    %56 = vector.load %arg14[%c0_32, %c0_33] : memref<64x32xbf16, #tpu.memory_space<vmem>>, vector<64x32xbf16>
    %c0_34 = arith.constant 0 : index
    %c0_35 = arith.constant 0 : index
    %57 = vector.load %arg15[%c0_34, %c0_35] : memref<8x32xf32, #tpu.memory_space<vmem>>, vector<8x32xf32>
    %c0_36 = arith.constant 0 : index
    %c0_37 = arith.constant 0 : index
    %58 = vector.load %arg16[%c0_36, %c0_37] : memref<32x64xbf16, #tpu.memory_space<vmem>>, vector<32x64xbf16>
    %c0_38 = arith.constant 0 : index
    %c0_39 = arith.constant 0 : index
    %59 = vector.load %arg17[%c0_38, %c0_39] : memref<32x32xbf16, #tpu.memory_space<vmem>>, vector<32x32xbf16>
    %c0_40 = arith.constant 0 : index
    %c0_41 = arith.constant 0 : index
    %60 = vector.load %arg18[%c0_40, %c0_41] : memref<32x32xbf16, #tpu.memory_space<vmem>>, vector<32x32xbf16>
    %61 = vector.extract_strided_slice %57 {offsets = [0, 0], sizes = [1, 32], strides = [1, 1]} : vector<8x32xf32> to vector<1x32xf32>
    %62 = vector.extract_strided_slice %57 {offsets = [1, 0], sizes = [1, 32], strides = [1, 1]} : vector<8x32xf32> to vector<1x32xf32>
    %63 = vector.extract_strided_slice %57 {offsets = [2, 0], sizes = [1, 32], strides = [1, 1]} : vector<8x32xf32> to vector<1x32xf32>
    %64 = vector.extract_strided_slice %57 {offsets = [3, 0], sizes = [1, 32], strides = [1, 1]} : vector<8x32xf32> to vector<1x32xf32>
    %65 = vector.extract_strided_slice %57 {offsets = [4, 0], sizes = [1, 32], strides = [1, 1]} : vector<8x32xf32> to vector<1x32xf32>
    %66 = vector.extract_strided_slice %57 {offsets = [5, 0], sizes = [1, 32], strides = [1, 1]} : vector<8x32xf32> to vector<1x32xf32>
    %67 = vector.extract_strided_slice %57 {offsets = [6, 0], sizes = [1, 32], strides = [1, 1]} : vector<8x32xf32> to vector<1x32xf32>
    %68 = vector.extract_strided_slice %57 {offsets = [7, 0], sizes = [1, 32], strides = [1, 1]} : vector<8x32xf32> to vector<1x32xf32>
    %cst_42 = arith.constant dense<0.000000e+00> : vector<8xf32>
    %69 = vector.multi_reduction <add>, %53, %cst_42 [1] : vector<8x32xf32> to vector<8xf32>
    %70 = vector.shape_cast %69 : vector<8xf32> to vector<8x1xf32>
    %cst_43 = arith.constant 3.200000e+01 : f32
    %71 = vector.broadcast %cst_43 : f32 to vector<8x1xf32>
    %72 = arith.divf %70, %71 : vector<8x1xf32>
    %73 = vector.broadcast %72 : vector<8x1xf32> to vector<8x32xf32>
    %74 = arith.subf %53, %73 : vector<8x32xf32>
    %75 = arith.mulf %74, %74 : vector<8x32xf32>
    %cst_44 = arith.constant dense<0.000000e+00> : vector<8xf32>
    %76 = vector.multi_reduction <add>, %75, %cst_44 [1] : vector<8x32xf32> to vector<8xf32>
    %77 = vector.shape_cast %76 : vector<8xf32> to vector<8x1xf32>
    %cst_45 = arith.constant 3.200000e+01 : f32
    %78 = vector.broadcast %cst_45 : f32 to vector<8x1xf32>
    %79 = arith.divf %77, %78 : vector<8x1xf32>
    %80 = vector.broadcast %72 : vector<8x1xf32> to vector<8x32xf32>
    %81 = arith.subf %53, %80 : vector<8x32xf32>
    %cst_46 = arith.constant 9.99999974E-6 : f32
    %82 = vector.broadcast %cst_46 : f32 to vector<8x1xf32>
    %83 = arith.addf %79, %82 : vector<8x1xf32>
    %84 = math.rsqrt %83 : vector<8x1xf32>
    %85 = vector.broadcast %84 : vector<8x1xf32> to vector<8x32xf32>
    %86 = arith.mulf %81, %85 : vector<8x32xf32>
    %87 = vector.broadcast %61 : vector<1x32xf32> to vector<8x32xf32>
    %88 = arith.mulf %86, %87 : vector<8x32xf32>
    %89 = vector.broadcast %62 : vector<1x32xf32> to vector<8x32xf32>
    %90 = arith.addf %88, %89 : vector<8x32xf32>
    %91 = arith.truncf %90 : vector<8x32xf32> to vector<8x32xbf16>
    %cst_47 = arith.constant dense<0.000000e+00> : vector<8xf32>
    %92 = vector.multi_reduction <add>, %53, %cst_47 [1] : vector<8x32xf32> to vector<8xf32>
    %93 = vector.shape_cast %92 : vector<8xf32> to vector<8x1xf32>
    %cst_48 = arith.constant 3.200000e+01 : f32
    %94 = vector.broadcast %cst_48 : f32 to vector<8x1xf32>
    %95 = arith.divf %93, %94 : vector<8x1xf32>
    %96 = vector.broadcast %95 : vector<8x1xf32> to vector<8x32xf32>
    %97 = arith.subf %53, %96 : vector<8x32xf32>
    %98 = arith.mulf %97, %97 : vector<8x32xf32>
    %cst_49 = arith.constant dense<0.000000e+00> : vector<8xf32>
    %99 = vector.multi_reduction <add>, %98, %cst_49 [1] : vector<8x32xf32> to vector<8xf32>
    %100 = vector.shape_cast %99 : vector<8xf32> to vector<8x1xf32>
    %cst_50 = arith.constant 3.200000e+01 : f32
    %101 = vector.broadcast %cst_50 : f32 to vector<8x1xf32>
    %102 = arith.divf %100, %101 : vector<8x1xf32>
    %103 = vector.broadcast %95 : vector<8x1xf32> to vector<8x32xf32>
    %104 = arith.subf %53, %103 : vector<8x32xf32>
    %cst_51 = arith.constant 9.99999974E-6 : f32
    %105 = vector.broadcast %cst_51 : f32 to vector<8x1xf32>
    %106 = arith.addf %102, %105 : vector<8x1xf32>
    %107 = math.rsqrt %106 : vector<8x1xf32>
    %108 = vector.broadcast %107 : vector<8x1xf32> to vector<8x32xf32>
    %109 = arith.mulf %104, %108 : vector<8x32xf32>
    %110 = vector.broadcast %61 : vector<1x32xf32> to vector<8x32xf32>
    %111 = arith.mulf %109, %110 : vector<8x32xf32>
    %112 = vector.broadcast %62 : vector<1x32xf32> to vector<8x32xf32>
    %113 = arith.addf %111, %112 : vector<8x32xf32>
    %114 = arith.truncf %113 : vector<8x32xf32> to vector<8x32xbf16>
    %cst_52 = arith.constant dense<0.000000e+00> : vector<8x32xf32>
    %115 = tpu.matmul %91, %60, %cst_52 {dimension_numbers = #tpu.dot_dimension_numbers<[1], [0], [0], [1], [0, 0, 1, 1], [], []>} : vector<8x32xbf16>, vector<32x32xbf16>, vector<8x32xf32> -> vector<8x32xf32>
    %cst_53 = arith.constant dense<0.000000e+00> : vector<8x64xf32>
    %116 = tpu.matmul %114, %58, %cst_53 {dimension_numbers = #tpu.dot_dimension_numbers<[1], [0], [0], [1], [0, 0, 1, 1], [], []>} : vector<8x32xbf16>, vector<32x64xbf16>, vector<8x64xf32> -> vector<8x64xf32>
    %117 = vector.extract_strided_slice %116 {offsets = [0, 0], sizes = [8, 32], strides = [1, 1]} : vector<8x64xf32> to vector<8x32xf32>
    %118 = vector.extract_strided_slice %116 {offsets = [0, 32], sizes = [8, 32], strides = [1, 1]} : vector<8x64xf32> to vector<8x32xf32>
    %119 = vector.extract_strided_slice %115 {offsets = [0, 0], sizes = [8, 8], strides = [1, 1]} : vector<8x32xf32> to vector<8x8xf32>
    %120 = arith.truncf %119 : vector<8x8xf32> to vector<8x8xbf16>
    %121 = vector.extract_strided_slice %117 {offsets = [0, 0], sizes = [8, 8], strides = [1, 1]} : vector<8x32xf32> to vector<8x8xf32>
    %122 = arith.truncf %121 : vector<8x8xf32> to vector<8x8xbf16>
    "tpu.trace_start"() <{level = 10 : i32, message = "nd,md->nm"}> : () -> ()
    %cst_54 = arith.constant dense<0.000000e+00> : vector<8x8xf32>
    %123 = tpu.matmul %120, %122, %cst_54 {dimension_numbers = #tpu.dot_dimension_numbers<[1], [1], [0], [0], [0, 0, 1, 0], [], []>} : vector<8x8xbf16>, vector<8x8xbf16>, vector<8x8xf32> -> vector<8x8xf32>
    "tpu.trace_stop"() : () -> ()
    %cst_55 = arith.constant dense<0xFF800000> : vector<8xf32>
    %124 = vector.multi_reduction <maximumf>, %123, %cst_55 [1] : vector<8x8xf32> to vector<8xf32>
    %125 = vector.shape_cast %124 : vector<8xf32> to vector<8x1xf32>
    %126 = vector.broadcast %125 : vector<8x1xf32> to vector<8x8xf32>
    %127 = arith.subf %123, %126 : vector<8x8xf32>
    %128 = math.exp %127 : vector<8x8xf32>
    %cst_56 = arith.constant dense<0.000000e+00> : vector<8xf32>
    %129 = vector.multi_reduction <add>, %128, %cst_56 [1] : vector<8x8xf32> to vector<8xf32>
    %130 = vector.shape_cast %129 : vector<8xf32> to vector<8x1xf32>
    %131 = vector.broadcast %130 : vector<8x1xf32> to vector<8x8xf32>
    %132 = arith.divf %128, %131 : vector<8x8xf32>
    %133 = arith.truncf %132 : vector<8x8xf32> to vector<8x8xbf16>
    %134 = vector.extract_strided_slice %118 {offsets = [0, 0], sizes = [8, 8], strides = [1, 1]} : vector<8x32xf32> to vector<8x8xf32>
    %135 = arith.truncf %134 : vector<8x8xf32> to vector<8x8xbf16>
    %cst_57 = arith.constant dense<0.000000e+00> : vector<8x8xf32>
    %136 = tpu.matmul %133, %135, %cst_57 {dimension_numbers = #tpu.dot_dimension_numbers<[1], [0], [0], [1], [0, 0, 1, 1], [], []>} : vector<8x8xbf16>, vector<8x8xbf16>, vector<8x8xf32> -> vector<8x8xf32>
    %137 = vector.extract_strided_slice %115 {offsets = [0, 8], sizes = [8, 8], strides = [1, 1]} : vector<8x32xf32> to vector<8x8xf32>
    %138 = arith.truncf %137 : vector<8x8xf32> to vector<8x8xbf16>
    %139 = vector.extract_strided_slice %117 {offsets = [0, 8], sizes = [8, 8], strides = [1, 1]} : vector<8x32xf32> to vector<8x8xf32>
    %140 = arith.truncf %139 : vector<8x8xf32> to vector<8x8xbf16>
    "tpu.trace_start"() <{level = 10 : i32, message = "nd,md->nm"}> : () -> ()
    %cst_58 = arith.constant dense<0.000000e+00> : vector<8x8xf32>
    %141 = tpu.matmul %138, %140, %cst_58 {dimension_numbers = #tpu.dot_dimension_numbers<[1], [1], [0], [0], [0, 0, 1, 0], [], []>} : vector<8x8xbf16>, vector<8x8xbf16>, vector<8x8xf32> -> vector<8x8xf32>
    "tpu.trace_stop"() : () -> ()
    %cst_59 = arith.constant dense<0xFF800000> : vector<8xf32>
    %142 = vector.multi_reduction <maximumf>, %141, %cst_59 [1] : vector<8x8xf32> to vector<8xf32>
    %143 = vector.shape_cast %142 : vector<8xf32> to vector<8x1xf32>
    %144 = vector.broadcast %143 : vector<8x1xf32> to vector<8x8xf32>
    %145 = arith.subf %141, %144 : vector<8x8xf32>
    %146 = math.exp %145 : vector<8x8xf32>
    %cst_60 = arith.constant dense<0.000000e+00> : vector<8xf32>
    %147 = vector.multi_reduction <add>, %146, %cst_60 [1] : vector<8x8xf32> to vector<8xf32>
    %148 = vector.shape_cast %147 : vector<8xf32> to vector<8x1xf32>
    %149 = vector.broadcast %148 : vector<8x1xf32> to vector<8x8xf32>
    %150 = arith.divf %146, %149 : vector<8x8xf32>
    %151 = arith.truncf %150 : vector<8x8xf32> to vector<8x8xbf16>
    %152 = vector.extract_strided_slice %118 {offsets = [0, 8], sizes = [8, 8], strides = [1, 1]} : vector<8x32xf32> to vector<8x8xf32>
    %153 = arith.truncf %152 : vector<8x8xf32> to vector<8x8xbf16>
    %cst_61 = arith.constant dense<0.000000e+00> : vector<8x8xf32>
    %154 = tpu.matmul %151, %153, %cst_61 {dimension_numbers = #tpu.dot_dimension_numbers<[1], [0], [0], [1], [0, 0, 1, 1], [], []>} : vector<8x8xbf16>, vector<8x8xbf16>, vector<8x8xf32> -> vector<8x8xf32>
    %155 = vector.extract_strided_slice %115 {offsets = [0, 16], sizes = [8, 8], strides = [1, 1]} : vector<8x32xf32> to vector<8x8xf32>
    %156 = arith.truncf %155 : vector<8x8xf32> to vector<8x8xbf16>
    %157 = vector.extract_strided_slice %117 {offsets = [0, 16], sizes = [8, 8], strides = [1, 1]} : vector<8x32xf32> to vector<8x8xf32>
    %158 = arith.truncf %157 : vector<8x8xf32> to vector<8x8xbf16>
    "tpu.trace_start"() <{level = 10 : i32, message = "nd,md->nm"}> : () -> ()
    %cst_62 = arith.constant dense<0.000000e+00> : vector<8x8xf32>
    %159 = tpu.matmul %156, %158, %cst_62 {dimension_numbers = #tpu.dot_dimension_numbers<[1], [1], [0], [0], [0, 0, 1, 0], [], []>} : vector<8x8xbf16>, vector<8x8xbf16>, vector<8x8xf32> -> vector<8x8xf32>
    "tpu.trace_stop"() : () -> ()
    %cst_63 = arith.constant dense<0xFF800000> : vector<8xf32>
    %160 = vector.multi_reduction <maximumf>, %159, %cst_63 [1] : vector<8x8xf32> to vector<8xf32>
    %161 = vector.shape_cast %160 : vector<8xf32> to vector<8x1xf32>
    %162 = vector.broadcast %161 : vector<8x1xf32> to vector<8x8xf32>
    %163 = arith.subf %159, %162 : vector<8x8xf32>
    %164 = math.exp %163 : vector<8x8xf32>
    %cst_64 = arith.constant dense<0.000000e+00> : vector<8xf32>
    %165 = vector.multi_reduction <add>, %164, %cst_64 [1] : vector<8x8xf32> to vector<8xf32>
    %166 = vector.shape_cast %165 : vector<8xf32> to vector<8x1xf32>
    %167 = vector.broadcast %166 : vector<8x1xf32> to vector<8x8xf32>
    %168 = arith.divf %164, %167 : vector<8x8xf32>
    %169 = arith.truncf %168 : vector<8x8xf32> to vector<8x8xbf16>
    %170 = vector.extract_strided_slice %118 {offsets = [0, 16], sizes = [8, 8], strides = [1, 1]} : vector<8x32xf32> to vector<8x8xf32>
    %171 = arith.truncf %170 : vector<8x8xf32> to vector<8x8xbf16>
    %cst_65 = arith.constant dense<0.000000e+00> : vector<8x8xf32>
    %172 = tpu.matmul %169, %171, %cst_65 {dimension_numbers = #tpu.dot_dimension_numbers<[1], [0], [0], [1], [0, 0, 1, 1], [], []>} : vector<8x8xbf16>, vector<8x8xbf16>, vector<8x8xf32> -> vector<8x8xf32>
    %173 = vector.extract_strided_slice %115 {offsets = [0, 24], sizes = [8, 8], strides = [1, 1]} : vector<8x32xf32> to vector<8x8xf32>
    %174 = arith.truncf %173 : vector<8x8xf32> to vector<8x8xbf16>
    %175 = vector.extract_strided_slice %117 {offsets = [0, 24], sizes = [8, 8], strides = [1, 1]} : vector<8x32xf32> to vector<8x8xf32>
    %176 = arith.truncf %175 : vector<8x8xf32> to vector<8x8xbf16>
    "tpu.trace_start"() <{level = 10 : i32, message = "nd,md->nm"}> : () -> ()
    %cst_66 = arith.constant dense<0.000000e+00> : vector<8x8xf32>
    %177 = tpu.matmul %174, %176, %cst_66 {dimension_numbers = #tpu.dot_dimension_numbers<[1], [1], [0], [0], [0, 0, 1, 0], [], []>} : vector<8x8xbf16>, vector<8x8xbf16>, vector<8x8xf32> -> vector<8x8xf32>
    "tpu.trace_stop"() : () -> ()
    %cst_67 = arith.constant dense<0xFF800000> : vector<8xf32>
    %178 = vector.multi_reduction <maximumf>, %177, %cst_67 [1] : vector<8x8xf32> to vector<8xf32>
    %179 = vector.shape_cast %178 : vector<8xf32> to vector<8x1xf32>
    %180 = vector.broadcast %179 : vector<8x1xf32> to vector<8x8xf32>
    %181 = arith.subf %177, %180 : vector<8x8xf32>
    %182 = math.exp %181 : vector<8x8xf32>
    %cst_68 = arith.constant dense<0.000000e+00> : vector<8xf32>
    %183 = vector.multi_reduction <add>, %182, %cst_68 [1] : vector<8x8xf32> to vector<8xf32>
    %184 = vector.shape_cast %183 : vector<8xf32> to vector<8x1xf32>
    %185 = vector.broadcast %184 : vector<8x1xf32> to vector<8x8xf32>
    %186 = arith.divf %182, %185 : vector<8x8xf32>
    %187 = arith.truncf %186 : vector<8x8xf32> to vector<8x8xbf16>
    %188 = vector.extract_strided_slice %118 {offsets = [0, 24], sizes = [8, 8], strides = [1, 1]} : vector<8x32xf32> to vector<8x8xf32>
    %189 = arith.truncf %188 : vector<8x8xf32> to vector<8x8xbf16>
    %cst_69 = arith.constant dense<0.000000e+00> : vector<8x8xf32>
    %190 = tpu.matmul %187, %189, %cst_69 {dimension_numbers = #tpu.dot_dimension_numbers<[1], [0], [0], [1], [0, 0, 1, 1], [], []>} : vector<8x8xbf16>, vector<8x8xbf16>, vector<8x8xf32> -> vector<8x8xf32>
    %191 = tpu.concatenate %136, %154, %172, %190 in 1 : vector<8x8xf32>, vector<8x8xf32>, vector<8x8xf32>, vector<8x8xf32> -> vector<8x32xf32>
    %192 = arith.truncf %191 : vector<8x32xf32> to vector<8x32xbf16>
    %cst_70 = arith.constant dense<0.000000e+00> : vector<8x32xf32>
    %193 = tpu.matmul %192, %59, %cst_70 {dimension_numbers = #tpu.dot_dimension_numbers<[1], [0], [0], [1], [0, 0, 1, 1], [], []>} : vector<8x32xbf16>, vector<32x32xbf16>, vector<8x32xf32> -> vector<8x32xf32>
    %194 = vector.broadcast %63 : vector<1x32xf32> to vector<8x32xf32>
    %195 = arith.addf %193, %194 : vector<8x32xf32>
    %196 = vector.broadcast %64 : vector<1x32xf32> to vector<8x32xf32>
    %197 = arith.mulf %196, %195 : vector<8x32xf32>
    %198 = arith.addf %53, %197 : vector<8x32xf32>
    %cst_71 = arith.constant dense<0.000000e+00> : vector<8xf32>
    %199 = vector.multi_reduction <add>, %198, %cst_71 [1] : vector<8x32xf32> to vector<8xf32>
    %200 = vector.shape_cast %199 : vector<8xf32> to vector<8x1xf32>
    %cst_72 = arith.constant 3.200000e+01 : f32
    %201 = vector.broadcast %cst_72 : f32 to vector<8x1xf32>
    %202 = arith.divf %200, %201 : vector<8x1xf32>
    %203 = vector.broadcast %202 : vector<8x1xf32> to vector<8x32xf32>
    %204 = arith.subf %198, %203 : vector<8x32xf32>
    %205 = arith.mulf %204, %204 : vector<8x32xf32>
    %cst_73 = arith.constant dense<0.000000e+00> : vector<8xf32>
    %206 = vector.multi_reduction <add>, %205, %cst_73 [1] : vector<8x32xf32> to vector<8xf32>
    %207 = vector.shape_cast %206 : vector<8xf32> to vector<8x1xf32>
    %cst_74 = arith.constant 3.200000e+01 : f32
    %208 = vector.broadcast %cst_74 : f32 to vector<8x1xf32>
    %209 = arith.divf %207, %208 : vector<8x1xf32>
    %210 = vector.broadcast %202 : vector<8x1xf32> to vector<8x32xf32>
    %211 = arith.subf %198, %210 : vector<8x32xf32>
    %cst_75 = arith.constant 9.99999974E-6 : f32
    %212 = vector.broadcast %cst_75 : f32 to vector<8x1xf32>
    %213 = arith.addf %209, %212 : vector<8x1xf32>
    %214 = math.rsqrt %213 : vector<8x1xf32>
    %215 = vector.broadcast %214 : vector<8x1xf32> to vector<8x32xf32>
    %216 = arith.mulf %211, %215 : vector<8x32xf32>
    %217 = vector.broadcast %66 : vector<1x32xf32> to vector<8x32xf32>
    %218 = arith.mulf %216, %217 : vector<8x32xf32>
    %219 = vector.broadcast %67 : vector<1x32xf32> to vector<8x32xf32>
    %220 = arith.addf %218, %219 : vector<8x32xf32>
    %221 = arith.truncf %220 : vector<8x32xf32> to vector<8x32xbf16>
    %cst_76 = arith.constant dense<0.000000e+00> : vector<8x64xf32>
    %222 = tpu.matmul %221, %55, %cst_76 {dimension_numbers = #tpu.dot_dimension_numbers<[1], [0], [0], [1], [0, 0, 1, 1], [], []>} : vector<8x32xbf16>, vector<32x64xbf16>, vector<8x64xf32> -> vector<8x64xf32>
    %223 = vector.broadcast %54 : vector<1x64xf32> to vector<8x64xf32>
    %224 = arith.addf %222, %223 : vector<8x64xf32>
    %cst_77 = arith.constant 5.000000e-01 : f32
    %225 = vector.broadcast %cst_77 : f32 to vector<8x64xf32>
    %226 = arith.mulf %225, %224 : vector<8x64xf32>
    %cst_78 = arith.constant 0.707106769 : f32
    %227 = vector.broadcast %cst_78 : f32 to vector<8x64xf32>
    %228 = arith.mulf %224, %227 : vector<8x64xf32>
    %229 = math.erf %228 : vector<8x64xf32>
    %cst_79 = arith.constant 1.000000e+00 : f32
    %230 = vector.broadcast %cst_79 : f32 to vector<8x64xf32>
    %231 = arith.addf %230, %229 : vector<8x64xf32>
    %232 = arith.mulf %226, %231 : vector<8x64xf32>
    %233 = arith.truncf %232 : vector<8x64xf32> to vector<8x64xbf16>
    %cst_80 = arith.constant dense<0.000000e+00> : vector<8x32xf32>
    %234 = tpu.matmul %233, %56, %cst_80 {dimension_numbers = #tpu.dot_dimension_numbers<[1], [0], [0], [1], [0, 0, 1, 1], [], []>} : vector<8x64xbf16>, vector<64x32xbf16>, vector<8x32xf32> -> vector<8x32xf32>
    %235 = vector.broadcast %68 : vector<1x32xf32> to vector<8x32xf32>
    %236 = arith.addf %234, %235 : vector<8x32xf32>
    %237 = vector.broadcast %65 : vector<1x32xf32> to vector<8x32xf32>
    %238 = arith.mulf %237, %236 : vector<8x32xf32>
    %239 = arith.addf %198, %238 : vector<8x32xf32>
    %c0_81 = arith.constant 0 : index
    %c0_82 = arith.constant 0 : index
    %240 = vector.load %arg75[%c0_81, %c0_82] : memref<32x32xbf16, #tpu.memory_space<vmem>>, vector<32x32xbf16>
    %241 = arith.truncf %34 : vector<8x32xf32> to vector<8x32xbf16>
    %cst_83 = arith.constant dense<0.000000e+00> : vector<8x32xf32>
    %242 = tpu.matmul %241, %240, %cst_83 {dimension_numbers = #tpu.dot_dimension_numbers<[1], [0], [0], [1], [0, 0, 1, 1], [], []>} : vector<8x32xbf16>, vector<32x32xbf16>, vector<8x32xf32> -> vector<8x32xf32>
    %c0_84 = arith.constant 0 : index
    %c0_85 = arith.constant 0 : index
    %243 = vector.load %arg76[%c0_84, %c0_85] : memref<32x32xbf16, #tpu.memory_space<vmem>>, vector<32x32xbf16>
    %244 = arith.truncf %239 : vector<8x32xf32> to vector<8x32xbf16>
    %cst_86 = arith.constant dense<0.000000e+00> : vector<8x32xf32>
    %245 = tpu.matmul %244, %243, %cst_86 {dimension_numbers = #tpu.dot_dimension_numbers<[1], [0], [0], [1], [0, 0, 1, 1], [], []>} : vector<8x32xbf16>, vector<32x32xbf16>, vector<8x32xf32> -> vector<8x32xf32>
    %246 = arith.addf %242, %245 : vector<8x32xf32>
    %c0_87 = arith.constant 0 : index
    %c0_88 = arith.constant 0 : index
    %c0_89 = arith.constant 0 : index
    %247 = vector.load %arg3[%c0_87, %c0_88, %c0_89] : memref<1x8x2xf32, #tpu.memory_space<vmem>>, vector<1x8x2xf32>
    %248 = vector.shape_cast %247 : vector<1x8x2xf32> to vector<8x2xf32>
    %249 = vector.extract_strided_slice %248 {offsets = [0, 0], sizes = [8, 1], strides = [1, 1]} : vector<8x2xf32> to vector<8x1xf32>
    %250 = vector.extract_strided_slice %2 {offsets = [0, 0], sizes = [1, 32], strides = [1, 1]} : vector<2x32xf32> to vector<1x32xf32>
    %251 = vector.broadcast %249 : vector<8x1xf32> to vector<8x32xf32>
    %252 = vector.broadcast %250 : vector<1x32xf32> to vector<8x32xf32>
    %253 = arith.mulf %251, %252 : vector<8x32xf32>
    %254 = vector.extract_strided_slice %248 {offsets = [0, 1], sizes = [8, 1], strides = [1, 1]} : vector<8x2xf32> to vector<8x1xf32>
    %255 = vector.extract_strided_slice %2 {offsets = [1, 0], sizes = [1, 32], strides = [1, 1]} : vector<2x32xf32> to vector<1x32xf32>
    %256 = vector.broadcast %254 : vector<8x1xf32> to vector<8x32xf32>
    %257 = vector.broadcast %255 : vector<1x32xf32> to vector<8x32xf32>
    %258 = arith.mulf %256, %257 : vector<8x32xf32>
    %259 = arith.addf %253, %258 : vector<8x32xf32>
    %260 = vector.broadcast %0 : vector<1x32xf32> to vector<8x32xf32>
    %261 = arith.addf %259, %260 : vector<8x32xf32>
    %cst_90 = arith.constant 5.000000e-01 : f32
    %262 = vector.broadcast %cst_90 : f32 to vector<8x32xf32>
    %263 = arith.mulf %262, %261 : vector<8x32xf32>
    %cst_91 = arith.constant 0.707106769 : f32
    %264 = vector.broadcast %cst_91 : f32 to vector<8x32xf32>
    %265 = arith.mulf %261, %264 : vector<8x32xf32>
    %266 = math.erf %265 : vector<8x32xf32>
    %cst_92 = arith.constant 1.000000e+00 : f32
    %267 = vector.broadcast %cst_92 : f32 to vector<8x32xf32>
    %268 = arith.addf %267, %266 : vector<8x32xf32>
    %269 = arith.mulf %263, %268 : vector<8x32xf32>
    %270 = arith.truncf %269 : vector<8x32xf32> to vector<8x32xbf16>
    %cst_93 = arith.constant dense<0.000000e+00> : vector<8x32xf32>
    %271 = tpu.matmul %270, %3, %cst_93 {dimension_numbers = #tpu.dot_dimension_numbers<[1], [0], [0], [1], [0, 0, 1, 1], [], []>} : vector<8x32xbf16>, vector<32x32xbf16>, vector<8x32xf32> -> vector<8x32xf32>
    %272 = vector.broadcast %1 : vector<1x32xf32> to vector<8x32xf32>
    %273 = arith.addf %271, %272 : vector<8x32xf32>
    %c0_94 = arith.constant 0 : index
    %c0_95 = arith.constant 0 : index
    %c0_96 = arith.constant 0 : index
    %274 = vector.load %arg64[%c0_94, %c0_95, %c0_96] : memref<1x1x64xf32, #tpu.memory_space<vmem>>, vector<1x1x64xf32>
    %275 = vector.shape_cast %274 : vector<1x1x64xf32> to vector<1x64xf32>
    %c0_97 = arith.constant 0 : index
    %c0_98 = arith.constant 0 : index
    %c0_99 = arith.constant 0 : index
    %276 = vector.load %arg65[%c0_97, %c0_98, %c0_99] : memref<1x32x64xbf16, #tpu.memory_space<vmem>>, vector<1x32x64xbf16>
    %277 = vector.shape_cast %276 : vector<1x32x64xbf16> to vector<32x64xbf16>
    %c0_100 = arith.constant 0 : index
    %c0_101 = arith.constant 0 : index
    %c0_102 = arith.constant 0 : index
    %278 = vector.load %arg66[%c0_100, %c0_101, %c0_102] : memref<1x64x32xbf16, #tpu.memory_space<vmem>>, vector<1x64x32xbf16>
    %279 = vector.shape_cast %278 : vector<1x64x32xbf16> to vector<64x32xbf16>
    %c0_103 = arith.constant 0 : index
    %c0_104 = arith.constant 0 : index
    %c0_105 = arith.constant 0 : index
    %280 = vector.load %arg67[%c0_103, %c0_104, %c0_105] : memref<1x8x32xf32, #tpu.memory_space<vmem>>, vector<1x8x32xf32>
    %281 = vector.shape_cast %280 : vector<1x8x32xf32> to vector<8x32xf32>
    %c0_106 = arith.constant 0 : index
    %c0_107 = arith.constant 0 : index
    %c0_108 = arith.constant 0 : index
    %282 = vector.load %arg68[%c0_106, %c0_107, %c0_108] : memref<1x32x64xbf16, #tpu.memory_space<vmem>>, vector<1x32x64xbf16>
    %283 = vector.shape_cast %282 : vector<1x32x64xbf16> to vector<32x64xbf16>
    %c0_109 = arith.constant 0 : index
    %c0_110 = arith.constant 0 : index
    %c0_111 = arith.constant 0 : index
    %284 = vector.load %arg69[%c0_109, %c0_110, %c0_111] : memref<1x32x32xbf16, #tpu.memory_space<vmem>>, vector<1x32x32xbf16>
    %285 = vector.shape_cast %284 : vector<1x32x32xbf16> to vector<32x32xbf16>
    %c0_112 = arith.constant 0 : index
    %c0_113 = arith.constant 0 : index
    %c0_114 = arith.constant 0 : index
    %286 = vector.load %arg70[%c0_112, %c0_113, %c0_114] : memref<1x32x32xbf16, #tpu.memory_space<vmem>>, vector<1x32x32xbf16>
    %287 = vector.shape_cast %286 : vector<1x32x32xbf16> to vector<32x32xbf16>
    %288 = vector.extract_strided_slice %281 {offsets = [0, 0], sizes = [1, 32], strides = [1, 1]} : vector<8x32xf32> to vector<1x32xf32>
    %289 = vector.extract_strided_slice %281 {offsets = [1, 0], sizes = [1, 32], strides = [1, 1]} : vector<8x32xf32> to vector<1x32xf32>
    %290 = vector.extract_strided_slice %281 {offsets = [2, 0], sizes = [1, 32], strides = [1, 1]} : vector<8x32xf32> to vector<1x32xf32>
    %291 = vector.extract_strided_slice %281 {offsets = [3, 0], sizes = [1, 32], strides = [1, 1]} : vector<8x32xf32> to vector<1x32xf32>
    %292 = vector.extract_strided_slice %281 {offsets = [4, 0], sizes = [1, 32], strides = [1, 1]} : vector<8x32xf32> to vector<1x32xf32>
    %293 = vector.extract_strided_slice %281 {offsets = [5, 0], sizes = [1, 32], strides = [1, 1]} : vector<8x32xf32> to vector<1x32xf32>
    %294 = vector.extract_strided_slice %281 {offsets = [6, 0], sizes = [1, 32], strides = [1, 1]} : vector<8x32xf32> to vector<1x32xf32>
    %295 = vector.extract_strided_slice %281 {offsets = [7, 0], sizes = [1, 32], strides = [1, 1]} : vector<8x32xf32> to vector<1x32xf32>
    %cst_115 = arith.constant dense<0.000000e+00> : vector<8xf32>
    %296 = vector.multi_reduction <add>, %273, %cst_115 [1] : vector<8x32xf32> to vector<8xf32>
    %297 = vector.shape_cast %296 : vector<8xf32> to vector<8x1xf32>
    %cst_116 = arith.constant 3.200000e+01 : f32
    %298 = vector.broadcast %cst_116 : f32 to vector<8x1xf32>
    %299 = arith.divf %297, %298 : vector<8x1xf32>
    %300 = vector.broadcast %299 : vector<8x1xf32> to vector<8x32xf32>
    %301 = arith.subf %273, %300 : vector<8x32xf32>
    %302 = arith.mulf %301, %301 : vector<8x32xf32>
    %cst_117 = arith.constant dense<0.000000e+00> : vector<8xf32>
    %303 = vector.multi_reduction <add>, %302, %cst_117 [1] : vector<8x32xf32> to vector<8xf32>
    %304 = vector.shape_cast %303 : vector<8xf32> to vector<8x1xf32>
    %cst_118 = arith.constant 3.200000e+01 : f32
    %305 = vector.broadcast %cst_118 : f32 to vector<8x1xf32>
    %306 = arith.divf %304, %305 : vector<8x1xf32>
    %307 = vector.broadcast %299 : vector<8x1xf32> to vector<8x32xf32>
    %308 = arith.subf %273, %307 : vector<8x32xf32>
    %cst_119 = arith.constant 9.99999974E-6 : f32
    %309 = vector.broadcast %cst_119 : f32 to vector<8x1xf32>
    %310 = arith.addf %306, %309 : vector<8x1xf32>
    %311 = math.rsqrt %310 : vector<8x1xf32>
    %312 = vector.broadcast %311 : vector<8x1xf32> to vector<8x32xf32>
    %313 = arith.mulf %308, %312 : vector<8x32xf32>
    %314 = vector.broadcast %288 : vector<1x32xf32> to vector<8x32xf32>
    %315 = arith.mulf %313, %314 : vector<8x32xf32>
    %316 = vector.broadcast %289 : vector<1x32xf32> to vector<8x32xf32>
    %317 = arith.addf %315, %316 : vector<8x32xf32>
    %318 = arith.truncf %317 : vector<8x32xf32> to vector<8x32xbf16>
    %cst_120 = arith.constant dense<0.000000e+00> : vector<8xf32>
    %319 = vector.multi_reduction <add>, %246, %cst_120 [1] : vector<8x32xf32> to vector<8xf32>
    %320 = vector.shape_cast %319 : vector<8xf32> to vector<8x1xf32>
    %cst_121 = arith.constant 3.200000e+01 : f32
    %321 = vector.broadcast %cst_121 : f32 to vector<8x1xf32>
    %322 = arith.divf %320, %321 : vector<8x1xf32>
    %323 = vector.broadcast %322 : vector<8x1xf32> to vector<8x32xf32>
    %324 = arith.subf %246, %323 : vector<8x32xf32>
    %325 = arith.mulf %324, %324 : vector<8x32xf32>
    %cst_122 = arith.constant dense<0.000000e+00> : vector<8xf32>
    %326 = vector.multi_reduction <add>, %325, %cst_122 [1] : vector<8x32xf32> to vector<8xf32>
    %327 = vector.shape_cast %326 : vector<8xf32> to vector<8x1xf32>
    %cst_123 = arith.constant 3.200000e+01 : f32
    %328 = vector.broadcast %cst_123 : f32 to vector<8x1xf32>
    %329 = arith.divf %327, %328 : vector<8x1xf32>
    %330 = vector.broadcast %322 : vector<8x1xf32> to vector<8x32xf32>
    %331 = arith.subf %246, %330 : vector<8x32xf32>
    %cst_124 = arith.constant 9.99999974E-6 : f32
    %332 = vector.broadcast %cst_124 : f32 to vector<8x1xf32>
    %333 = arith.addf %329, %332 : vector<8x1xf32>
    %334 = math.rsqrt %333 : vector<8x1xf32>
    %335 = vector.broadcast %334 : vector<8x1xf32> to vector<8x32xf32>
    %336 = arith.mulf %331, %335 : vector<8x32xf32>
    %337 = vector.broadcast %288 : vector<1x32xf32> to vector<8x32xf32>
    %338 = arith.mulf %336, %337 : vector<8x32xf32>
    %339 = vector.broadcast %289 : vector<1x32xf32> to vector<8x32xf32>
    %340 = arith.addf %338, %339 : vector<8x32xf32>
    %341 = arith.truncf %340 : vector<8x32xf32> to vector<8x32xbf16>
    %cst_125 = arith.constant dense<0.000000e+00> : vector<8x32xf32>
    %342 = tpu.matmul %318, %287, %cst_125 {dimension_numbers = #tpu.dot_dimension_numbers<[1], [0], [0], [1], [0, 0, 1, 1], [], []>} : vector<8x32xbf16>, vector<32x32xbf16>, vector<8x32xf32> -> vector<8x32xf32>
    %cst_126 = arith.constant dense<0.000000e+00> : vector<8x64xf32>
    %343 = tpu.matmul %341, %283, %cst_126 {dimension_numbers = #tpu.dot_dimension_numbers<[1], [0], [0], [1], [0, 0, 1, 1], [], []>} : vector<8x32xbf16>, vector<32x64xbf16>, vector<8x64xf32> -> vector<8x64xf32>
    %344 = vector.extract_strided_slice %343 {offsets = [0, 0], sizes = [8, 32], strides = [1, 1]} : vector<8x64xf32> to vector<8x32xf32>
    %345 = vector.extract_strided_slice %343 {offsets = [0, 32], sizes = [8, 32], strides = [1, 1]} : vector<8x64xf32> to vector<8x32xf32>
    %346 = vector.extract_strided_slice %342 {offsets = [0, 0], sizes = [8, 8], strides = [1, 1]} : vector<8x32xf32> to vector<8x8xf32>
    %347 = arith.truncf %346 : vector<8x8xf32> to vector<8x8xbf16>
    %348 = vector.extract_strided_slice %344 {offsets = [0, 0], sizes = [8, 8], strides = [1, 1]} : vector<8x32xf32> to vector<8x8xf32>
    %349 = arith.truncf %348 : vector<8x8xf32> to vector<8x8xbf16>
    "tpu.trace_start"() <{level = 10 : i32, message = "nd,md->nm"}> : () -> ()
    %cst_127 = arith.constant dense<0.000000e+00> : vector<8x8xf32>
    %350 = tpu.matmul %347, %349, %cst_127 {dimension_numbers = #tpu.dot_dimension_numbers<[1], [1], [0], [0], [0, 0, 1, 0], [], []>} : vector<8x8xbf16>, vector<8x8xbf16>, vector<8x8xf32> -> vector<8x8xf32>
    "tpu.trace_stop"() : () -> ()
    %cst_128 = arith.constant dense<0xFF800000> : vector<8xf32>
    %351 = vector.multi_reduction <maximumf>, %350, %cst_128 [1] : vector<8x8xf32> to vector<8xf32>
    %352 = vector.shape_cast %351 : vector<8xf32> to vector<8x1xf32>
    %353 = vector.broadcast %352 : vector<8x1xf32> to vector<8x8xf32>
    %354 = arith.subf %350, %353 : vector<8x8xf32>
    %355 = math.exp %354 : vector<8x8xf32>
    %cst_129 = arith.constant dense<0.000000e+00> : vector<8xf32>
    %356 = vector.multi_reduction <add>, %355, %cst_129 [1] : vector<8x8xf32> to vector<8xf32>
    %357 = vector.shape_cast %356 : vector<8xf32> to vector<8x1xf32>
    %358 = vector.broadcast %357 : vector<8x1xf32> to vector<8x8xf32>
    %359 = arith.divf %355, %358 : vector<8x8xf32>
    %360 = arith.truncf %359 : vector<8x8xf32> to vector<8x8xbf16>
    %361 = vector.extract_strided_slice %345 {offsets = [0, 0], sizes = [8, 8], strides = [1, 1]} : vector<8x32xf32> to vector<8x8xf32>
    %362 = arith.truncf %361 : vector<8x8xf32> to vector<8x8xbf16>
    %cst_130 = arith.constant dense<0.000000e+00> : vector<8x8xf32>
    %363 = tpu.matmul %360, %362, %cst_130 {dimension_numbers = #tpu.dot_dimension_numbers<[1], [0], [0], [1], [0, 0, 1, 1], [], []>} : vector<8x8xbf16>, vector<8x8xbf16>, vector<8x8xf32> -> vector<8x8xf32>
    %364 = vector.extract_strided_slice %342 {offsets = [0, 8], sizes = [8, 8], strides = [1, 1]} : vector<8x32xf32> to vector<8x8xf32>
    %365 = arith.truncf %364 : vector<8x8xf32> to vector<8x8xbf16>
    %366 = vector.extract_strided_slice %344 {offsets = [0, 8], sizes = [8, 8], strides = [1, 1]} : vector<8x32xf32> to vector<8x8xf32>
    %367 = arith.truncf %366 : vector<8x8xf32> to vector<8x8xbf16>
    "tpu.trace_start"() <{level = 10 : i32, message = "nd,md->nm"}> : () -> ()
    %cst_131 = arith.constant dense<0.000000e+00> : vector<8x8xf32>
    %368 = tpu.matmul %365, %367, %cst_131 {dimension_numbers = #tpu.dot_dimension_numbers<[1], [1], [0], [0], [0, 0, 1, 0], [], []>} : vector<8x8xbf16>, vector<8x8xbf16>, vector<8x8xf32> -> vector<8x8xf32>
    "tpu.trace_stop"() : () -> ()
    %cst_132 = arith.constant dense<0xFF800000> : vector<8xf32>
    %369 = vector.multi_reduction <maximumf>, %368, %cst_132 [1] : vector<8x8xf32> to vector<8xf32>
    %370 = vector.shape_cast %369 : vector<8xf32> to vector<8x1xf32>
    %371 = vector.broadcast %370 : vector<8x1xf32> to vector<8x8xf32>
    %372 = arith.subf %368, %371 : vector<8x8xf32>
    %373 = math.exp %372 : vector<8x8xf32>
    %cst_133 = arith.constant dense<0.000000e+00> : vector<8xf32>
    %374 = vector.multi_reduction <add>, %373, %cst_133 [1] : vector<8x8xf32> to vector<8xf32>
    %375 = vector.shape_cast %374 : vector<8xf32> to vector<8x1xf32>
    %376 = vector.broadcast %375 : vector<8x1xf32> to vector<8x8xf32>
    %377 = arith.divf %373, %376 : vector<8x8xf32>
    %378 = arith.truncf %377 : vector<8x8xf32> to vector<8x8xbf16>
    %379 = vector.extract_strided_slice %345 {offsets = [0, 8], sizes = [8, 8], strides = [1, 1]} : vector<8x32xf32> to vector<8x8xf32>
    %380 = arith.truncf %379 : vector<8x8xf32> to vector<8x8xbf16>
    %cst_134 = arith.constant dense<0.000000e+00> : vector<8x8xf32>
    %381 = tpu.matmul %378, %380, %cst_134 {dimension_numbers = #tpu.dot_dimension_numbers<[1], [0], [0], [1], [0, 0, 1, 1], [], []>} : vector<8x8xbf16>, vector<8x8xbf16>, vector<8x8xf32> -> vector<8x8xf32>
    %382 = vector.extract_strided_slice %342 {offsets = [0, 16], sizes = [8, 8], strides = [1, 1]} : vector<8x32xf32> to vector<8x8xf32>
    %383 = arith.truncf %382 : vector<8x8xf32> to vector<8x8xbf16>
    %384 = vector.extract_strided_slice %344 {offsets = [0, 16], sizes = [8, 8], strides = [1, 1]} : vector<8x32xf32> to vector<8x8xf32>
    %385 = arith.truncf %384 : vector<8x8xf32> to vector<8x8xbf16>
    "tpu.trace_start"() <{level = 10 : i32, message = "nd,md->nm"}> : () -> ()
    %cst_135 = arith.constant dense<0.000000e+00> : vector<8x8xf32>
    %386 = tpu.matmul %383, %385, %cst_135 {dimension_numbers = #tpu.dot_dimension_numbers<[1], [1], [0], [0], [0, 0, 1, 0], [], []>} : vector<8x8xbf16>, vector<8x8xbf16>, vector<8x8xf32> -> vector<8x8xf32>
    "tpu.trace_stop"() : () -> ()
    %cst_136 = arith.constant dense<0xFF800000> : vector<8xf32>
    %387 = vector.multi_reduction <maximumf>, %386, %cst_136 [1] : vector<8x8xf32> to vector<8xf32>
    %388 = vector.shape_cast %387 : vector<8xf32> to vector<8x1xf32>
    %389 = vector.broadcast %388 : vector<8x1xf32> to vector<8x8xf32>
    %390 = arith.subf %386, %389 : vector<8x8xf32>
    %391 = math.exp %390 : vector<8x8xf32>
    %cst_137 = arith.constant dense<0.000000e+00> : vector<8xf32>
    %392 = vector.multi_reduction <add>, %391, %cst_137 [1] : vector<8x8xf32> to vector<8xf32>
    %393 = vector.shape_cast %392 : vector<8xf32> to vector<8x1xf32>
    %394 = vector.broadcast %393 : vector<8x1xf32> to vector<8x8xf32>
    %395 = arith.divf %391, %394 : vector<8x8xf32>
    %396 = arith.truncf %395 : vector<8x8xf32> to vector<8x8xbf16>
    %397 = vector.extract_strided_slice %345 {offsets = [0, 16], sizes = [8, 8], strides = [1, 1]} : vector<8x32xf32> to vector<8x8xf32>
    %398 = arith.truncf %397 : vector<8x8xf32> to vector<8x8xbf16>
    %cst_138 = arith.constant dense<0.000000e+00> : vector<8x8xf32>
    %399 = tpu.matmul %396, %398, %cst_138 {dimension_numbers = #tpu.dot_dimension_numbers<[1], [0], [0], [1], [0, 0, 1, 1], [], []>} : vector<8x8xbf16>, vector<8x8xbf16>, vector<8x8xf32> -> vector<8x8xf32>
    %400 = vector.extract_strided_slice %342 {offsets = [0, 24], sizes = [8, 8], strides = [1, 1]} : vector<8x32xf32> to vector<8x8xf32>
    %401 = arith.truncf %400 : vector<8x8xf32> to vector<8x8xbf16>
    %402 = vector.extract_strided_slice %344 {offsets = [0, 24], sizes = [8, 8], strides = [1, 1]} : vector<8x32xf32> to vector<8x8xf32>
    %403 = arith.truncf %402 : vector<8x8xf32> to vector<8x8xbf16>
    "tpu.trace_start"() <{level = 10 : i32, message = "nd,md->nm"}> : () -> ()
    %cst_139 = arith.constant dense<0.000000e+00> : vector<8x8xf32>
    %404 = tpu.matmul %401, %403, %cst_139 {dimension_numbers = #tpu.dot_dimension_numbers<[1], [1], [0], [0], [0, 0, 1, 0], [], []>} : vector<8x8xbf16>, vector<8x8xbf16>, vector<8x8xf32> -> vector<8x8xf32>
    "tpu.trace_stop"() : () -> ()
    %cst_140 = arith.constant dense<0xFF800000> : vector<8xf32>
    %405 = vector.multi_reduction <maximumf>, %404, %cst_140 [1] : vector<8x8xf32> to vector<8xf32>
    %406 = vector.shape_cast %405 : vector<8xf32> to vector<8x1xf32>
    %407 = vector.broadcast %406 : vector<8x1xf32> to vector<8x8xf32>
    %408 = arith.subf %404, %407 : vector<8x8xf32>
    %409 = math.exp %408 : vector<8x8xf32>
    %cst_141 = arith.constant dense<0.000000e+00> : vector<8xf32>
    %410 = vector.multi_reduction <add>, %409, %cst_141 [1] : vector<8x8xf32> to vector<8xf32>
    %411 = vector.shape_cast %410 : vector<8xf32> to vector<8x1xf32>
    %412 = vector.broadcast %411 : vector<8x1xf32> to vector<8x8xf32>
    %413 = arith.divf %409, %412 : vector<8x8xf32>
    %414 = arith.truncf %413 : vector<8x8xf32> to vector<8x8xbf16>
    %415 = vector.extract_strided_slice %345 {offsets = [0, 24], sizes = [8, 8], strides = [1, 1]} : vector<8x32xf32> to vector<8x8xf32>
    %416 = arith.truncf %415 : vector<8x8xf32> to vector<8x8xbf16>
    %cst_142 = arith.constant dense<0.000000e+00> : vector<8x8xf32>
    %417 = tpu.matmul %414, %416, %cst_142 {dimension_numbers = #tpu.dot_dimension_numbers<[1], [0], [0], [1], [0, 0, 1, 1], [], []>} : vector<8x8xbf16>, vector<8x8xbf16>, vector<8x8xf32> -> vector<8x8xf32>
    %418 = tpu.concatenate %363, %381, %399, %417 in 1 : vector<8x8xf32>, vector<8x8xf32>, vector<8x8xf32>, vector<8x8xf32> -> vector<8x32xf32>
    %419 = arith.truncf %418 : vector<8x32xf32> to vector<8x32xbf16>
    %cst_143 = arith.constant dense<0.000000e+00> : vector<8x32xf32>
    %420 = tpu.matmul %419, %285, %cst_143 {dimension_numbers = #tpu.dot_dimension_numbers<[1], [0], [0], [1], [0, 0, 1, 1], [], []>} : vector<8x32xbf16>, vector<32x32xbf16>, vector<8x32xf32> -> vector<8x32xf32>
    %421 = vector.broadcast %290 : vector<1x32xf32> to vector<8x32xf32>
    %422 = arith.addf %420, %421 : vector<8x32xf32>
    %423 = vector.broadcast %291 : vector<1x32xf32> to vector<8x32xf32>
    %424 = arith.mulf %423, %422 : vector<8x32xf32>
    %425 = arith.addf %273, %424 : vector<8x32xf32>
    %cst_144 = arith.constant dense<0.000000e+00> : vector<8xf32>
    %426 = vector.multi_reduction <add>, %425, %cst_144 [1] : vector<8x32xf32> to vector<8xf32>
    %427 = vector.shape_cast %426 : vector<8xf32> to vector<8x1xf32>
    %cst_145 = arith.constant 3.200000e+01 : f32
    %428 = vector.broadcast %cst_145 : f32 to vector<8x1xf32>
    %429 = arith.divf %427, %428 : vector<8x1xf32>
    %430 = vector.broadcast %429 : vector<8x1xf32> to vector<8x32xf32>
    %431 = arith.subf %425, %430 : vector<8x32xf32>
    %432 = arith.mulf %431, %431 : vector<8x32xf32>
    %cst_146 = arith.constant dense<0.000000e+00> : vector<8xf32>
    %433 = vector.multi_reduction <add>, %432, %cst_146 [1] : vector<8x32xf32> to vector<8xf32>
    %434 = vector.shape_cast %433 : vector<8xf32> to vector<8x1xf32>
    %cst_147 = arith.constant 3.200000e+01 : f32
    %435 = vector.broadcast %cst_147 : f32 to vector<8x1xf32>
    %436 = arith.divf %434, %435 : vector<8x1xf32>
    %437 = vector.broadcast %429 : vector<8x1xf32> to vector<8x32xf32>
    %438 = arith.subf %425, %437 : vector<8x32xf32>
    %cst_148 = arith.constant 9.99999974E-6 : f32
    %439 = vector.broadcast %cst_148 : f32 to vector<8x1xf32>
    %440 = arith.addf %436, %439 : vector<8x1xf32>
    %441 = math.rsqrt %440 : vector<8x1xf32>
    %442 = vector.broadcast %441 : vector<8x1xf32> to vector<8x32xf32>
    %443 = arith.mulf %438, %442 : vector<8x32xf32>
    %444 = vector.broadcast %293 : vector<1x32xf32> to vector<8x32xf32>
    %445 = arith.mulf %443, %444 : vector<8x32xf32>
    %446 = vector.broadcast %294 : vector<1x32xf32> to vector<8x32xf32>
    %447 = arith.addf %445, %446 : vector<8x32xf32>
    %448 = arith.truncf %447 : vector<8x32xf32> to vector<8x32xbf16>
    %cst_149 = arith.constant dense<0.000000e+00> : vector<8x64xf32>
    %449 = tpu.matmul %448, %277, %cst_149 {dimension_numbers = #tpu.dot_dimension_numbers<[1], [0], [0], [1], [0, 0, 1, 1], [], []>} : vector<8x32xbf16>, vector<32x64xbf16>, vector<8x64xf32> -> vector<8x64xf32>
    %450 = vector.broadcast %275 : vector<1x64xf32> to vector<8x64xf32>
    %451 = arith.addf %449, %450 : vector<8x64xf32>
    %cst_150 = arith.constant 5.000000e-01 : f32
    %452 = vector.broadcast %cst_150 : f32 to vector<8x64xf32>
    %453 = arith.mulf %452, %451 : vector<8x64xf32>
    %cst_151 = arith.constant 0.707106769 : f32
    %454 = vector.broadcast %cst_151 : f32 to vector<8x64xf32>
    %455 = arith.mulf %451, %454 : vector<8x64xf32>
    %456 = math.erf %455 : vector<8x64xf32>
    %cst_152 = arith.constant 1.000000e+00 : f32
    %457 = vector.broadcast %cst_152 : f32 to vector<8x64xf32>
    %458 = arith.addf %457, %456 : vector<8x64xf32>
    %459 = arith.mulf %453, %458 : vector<8x64xf32>
    %460 = arith.truncf %459 : vector<8x64xf32> to vector<8x64xbf16>
    %cst_153 = arith.constant dense<0.000000e+00> : vector<8x32xf32>
    %461 = tpu.matmul %460, %279, %cst_153 {dimension_numbers = #tpu.dot_dimension_numbers<[1], [0], [0], [1], [0, 0, 1, 1], [], []>} : vector<8x64xbf16>, vector<64x32xbf16>, vector<8x32xf32> -> vector<8x32xf32>
    %462 = vector.broadcast %295 : vector<1x32xf32> to vector<8x32xf32>
    %463 = arith.addf %461, %462 : vector<8x32xf32>
    %464 = vector.broadcast %292 : vector<1x32xf32> to vector<8x32xf32>
    %465 = arith.mulf %464, %463 : vector<8x32xf32>
    %466 = arith.addf %425, %465 : vector<8x32xf32>
    %c0_154 = arith.constant 0 : index
    %c0_155 = arith.constant 0 : index
    %c0_156 = arith.constant 0 : index
    %467 = vector.load %arg4[%c0_154, %c0_155, %c0_156] : memref<1x8x32xf32, #tpu.memory_space<vmem>>, vector<1x8x32xf32>
    %468 = vector.shape_cast %467 : vector<1x8x32xf32> to vector<8x32xf32>
    %c0_157 = arith.constant 0 : index
    %c0_158 = arith.constant 0 : index
    %469 = vector.load %arg33[%c0_157, %c0_158] : memref<1x32xf32, #tpu.memory_space<vmem>>, vector<1x32xf32>
    %c0_159 = arith.constant 0 : index
    %c0_160 = arith.constant 0 : index
    %470 = vector.load %arg34[%c0_159, %c0_160] : memref<1x32xf32, #tpu.memory_space<vmem>>, vector<1x32xf32>
    %c0_161 = arith.constant 0 : index
    %c0_162 = arith.constant 0 : index
    %471 = vector.load %arg35[%c0_161, %c0_162] : memref<32x32xbf16, #tpu.memory_space<vmem>>, vector<32x32xbf16>
    %c0_163 = arith.constant 0 : index
    %c0_164 = arith.constant 0 : index
    %472 = vector.load %arg36[%c0_163, %c0_164] : memref<32x32xbf16, #tpu.memory_space<vmem>>, vector<32x32xbf16>
    %c0_165 = arith.constant 0 : index
    %c0_166 = arith.constant 0 : index
    %473 = vector.load %arg37[%c0_165, %c0_166] : memref<32x32xbf16, #tpu.memory_space<vmem>>, vector<32x32xbf16>
    %474 = arith.truncf %466 : vector<8x32xf32> to vector<8x32xbf16>
    %cst_167 = arith.constant dense<0.000000e+00> : vector<8x32xf32>
    %475 = tpu.matmul %474, %471, %cst_167 {dimension_numbers = #tpu.dot_dimension_numbers<[1], [0], [0], [1], [0, 0, 1, 1], [], []>} : vector<8x32xbf16>, vector<32x32xbf16>, vector<8x32xf32> -> vector<8x32xf32>
    %476 = arith.truncf %468 : vector<8x32xf32> to vector<8x32xbf16>
    %cst_168 = arith.constant dense<0.000000e+00> : vector<8x32xf32>
    %477 = tpu.matmul %476, %472, %cst_168 {dimension_numbers = #tpu.dot_dimension_numbers<[1], [0], [0], [1], [0, 0, 1, 1], [], []>} : vector<8x32xbf16>, vector<32x32xbf16>, vector<8x32xf32> -> vector<8x32xf32>
    %478 = arith.addf %475, %477 : vector<8x32xf32>
    %479 = vector.broadcast %469 : vector<1x32xf32> to vector<8x32xf32>
    %480 = arith.addf %478, %479 : vector<8x32xf32>
    %cst_169 = arith.constant 5.000000e-01 : f32
    %481 = vector.broadcast %cst_169 : f32 to vector<8x32xf32>
    %482 = arith.mulf %481, %480 : vector<8x32xf32>
    %cst_170 = arith.constant 0.707106769 : f32
    %483 = vector.broadcast %cst_170 : f32 to vector<8x32xf32>
    %484 = arith.mulf %480, %483 : vector<8x32xf32>
    %485 = math.erf %484 : vector<8x32xf32>
    %cst_171 = arith.constant 1.000000e+00 : f32
    %486 = vector.broadcast %cst_171 : f32 to vector<8x32xf32>
    %487 = arith.addf %486, %485 : vector<8x32xf32>
    %488 = arith.mulf %482, %487 : vector<8x32xf32>
    %489 = arith.truncf %488 : vector<8x32xf32> to vector<8x32xbf16>
    %cst_172 = arith.constant dense<0.000000e+00> : vector<8x32xf32>
    %490 = tpu.matmul %489, %473, %cst_172 {dimension_numbers = #tpu.dot_dimension_numbers<[1], [0], [0], [1], [0, 0, 1, 1], [], []>} : vector<8x32xbf16>, vector<32x32xbf16>, vector<8x32xf32> -> vector<8x32xf32>
    %491 = vector.broadcast %470 : vector<1x32xf32> to vector<8x32xf32>
    %492 = arith.addf %490, %491 : vector<8x32xf32>
    %c0_173 = arith.constant 0 : index
    %c0_174 = arith.constant 0 : index
    %c0_175 = arith.constant 0 : index
    %493 = vector.load %arg5[%c0_173, %c0_174, %c0_175] : memref<1x8x32xf32, #tpu.memory_space<vmem>>, vector<1x8x32xf32>
    %494 = vector.shape_cast %493 : vector<1x8x32xf32> to vector<8x32xf32>
    %c0_176 = arith.constant 0 : index
    %c0_177 = arith.constant 0 : index
    %495 = vector.load %arg38[%c0_176, %c0_177] : memref<1x32xf32, #tpu.memory_space<vmem>>, vector<1x32xf32>
    %c0_178 = arith.constant 0 : index
    %c0_179 = arith.constant 0 : index
    %496 = vector.load %arg39[%c0_178, %c0_179] : memref<1x32xf32, #tpu.memory_space<vmem>>, vector<1x32xf32>
    %c0_180 = arith.constant 0 : index
    %c0_181 = arith.constant 0 : index
    %497 = vector.load %arg40[%c0_180, %c0_181] : memref<32x32xbf16, #tpu.memory_space<vmem>>, vector<32x32xbf16>
    %c0_182 = arith.constant 0 : index
    %c0_183 = arith.constant 0 : index
    %498 = vector.load %arg41[%c0_182, %c0_183] : memref<32x32xbf16, #tpu.memory_space<vmem>>, vector<32x32xbf16>
    %c0_184 = arith.constant 0 : index
    %c0_185 = arith.constant 0 : index
    %499 = vector.load %arg42[%c0_184, %c0_185] : memref<32x32xbf16, #tpu.memory_space<vmem>>, vector<32x32xbf16>
    %500 = arith.truncf %246 : vector<8x32xf32> to vector<8x32xbf16>
    %cst_186 = arith.constant dense<0.000000e+00> : vector<8x32xf32>
    %501 = tpu.matmul %500, %497, %cst_186 {dimension_numbers = #tpu.dot_dimension_numbers<[1], [0], [0], [1], [0, 0, 1, 1], [], []>} : vector<8x32xbf16>, vector<32x32xbf16>, vector<8x32xf32> -> vector<8x32xf32>
    %502 = arith.truncf %494 : vector<8x32xf32> to vector<8x32xbf16>
    %cst_187 = arith.constant dense<0.000000e+00> : vector<8x32xf32>
    %503 = tpu.matmul %502, %498, %cst_187 {dimension_numbers = #tpu.dot_dimension_numbers<[1], [0], [0], [1], [0, 0, 1, 1], [], []>} : vector<8x32xbf16>, vector<32x32xbf16>, vector<8x32xf32> -> vector<8x32xf32>
    %504 = arith.addf %501, %503 : vector<8x32xf32>
    %505 = vector.broadcast %495 : vector<1x32xf32> to vector<8x32xf32>
    %506 = arith.addf %504, %505 : vector<8x32xf32>
    %cst_188 = arith.constant 5.000000e-01 : f32
    %507 = vector.broadcast %cst_188 : f32 to vector<8x32xf32>
    %508 = arith.mulf %507, %506 : vector<8x32xf32>
    %cst_189 = arith.constant 0.707106769 : f32
    %509 = vector.broadcast %cst_189 : f32 to vector<8x32xf32>
    %510 = arith.mulf %506, %509 : vector<8x32xf32>
    %511 = math.erf %510 : vector<8x32xf32>
    %cst_190 = arith.constant 1.000000e+00 : f32
    %512 = vector.broadcast %cst_190 : f32 to vector<8x32xf32>
    %513 = arith.addf %512, %511 : vector<8x32xf32>
    %514 = arith.mulf %508, %513 : vector<8x32xf32>
    %515 = arith.truncf %514 : vector<8x32xf32> to vector<8x32xbf16>
    %cst_191 = arith.constant dense<0.000000e+00> : vector<8x32xf32>
    %516 = tpu.matmul %515, %499, %cst_191 {dimension_numbers = #tpu.dot_dimension_numbers<[1], [0], [0], [1], [0, 0, 1, 1], [], []>} : vector<8x32xbf16>, vector<32x32xbf16>, vector<8x32xf32> -> vector<8x32xf32>
    %517 = vector.broadcast %496 : vector<1x32xf32> to vector<8x32xf32>
    %518 = arith.addf %516, %517 : vector<8x32xf32>
    %c0_192 = arith.constant 0 : index
    %c0_193 = arith.constant 0 : index
    %c0_194 = arith.constant 0 : index
    %519 = vector.load %arg19[%c0_192, %c0_193, %c0_194] : memref<1x1x64xf32, #tpu.memory_space<vmem>>, vector<1x1x64xf32>
    %520 = vector.shape_cast %519 : vector<1x1x64xf32> to vector<1x64xf32>
    %c0_195 = arith.constant 0 : index
    %c0_196 = arith.constant 0 : index
    %c0_197 = arith.constant 0 : index
    %521 = vector.load %arg20[%c0_195, %c0_196, %c0_197] : memref<1x32x64xbf16, #tpu.memory_space<vmem>>, vector<1x32x64xbf16>
    %522 = vector.shape_cast %521 : vector<1x32x64xbf16> to vector<32x64xbf16>
    %c0_198 = arith.constant 0 : index
    %c0_199 = arith.constant 0 : index
    %c0_200 = arith.constant 0 : index
    %523 = vector.load %arg21[%c0_198, %c0_199, %c0_200] : memref<1x64x32xbf16, #tpu.memory_space<vmem>>, vector<1x64x32xbf16>
    %524 = vector.shape_cast %523 : vector<1x64x32xbf16> to vector<64x32xbf16>
    %c0_201 = arith.constant 0 : index
    %c0_202 = arith.constant 0 : index
    %c0_203 = arith.constant 0 : index
    %525 = vector.load %arg22[%c0_201, %c0_202, %c0_203] : memref<1x8x32xf32, #tpu.memory_space<vmem>>, vector<1x8x32xf32>
    %526 = vector.shape_cast %525 : vector<1x8x32xf32> to vector<8x32xf32>
    %c0_204 = arith.constant 0 : index
    %c0_205 = arith.constant 0 : index
    %c0_206 = arith.constant 0 : index
    %527 = vector.load %arg23[%c0_204, %c0_205, %c0_206] : memref<1x32x64xbf16, #tpu.memory_space<vmem>>, vector<1x32x64xbf16>
    %528 = vector.shape_cast %527 : vector<1x32x64xbf16> to vector<32x64xbf16>
    %c0_207 = arith.constant 0 : index
    %c0_208 = arith.constant 0 : index
    %c0_209 = arith.constant 0 : index
    %529 = vector.load %arg24[%c0_207, %c0_208, %c0_209] : memref<1x32x32xbf16, #tpu.memory_space<vmem>>, vector<1x32x32xbf16>
    %530 = vector.shape_cast %529 : vector<1x32x32xbf16> to vector<32x32xbf16>
    %c0_210 = arith.constant 0 : index
    %c0_211 = arith.constant 0 : index
    %c0_212 = arith.constant 0 : index
    %531 = vector.load %arg25[%c0_210, %c0_211, %c0_212] : memref<1x32x32xbf16, #tpu.memory_space<vmem>>, vector<1x32x32xbf16>
    %532 = vector.shape_cast %531 : vector<1x32x32xbf16> to vector<32x32xbf16>
    %533 = vector.extract_strided_slice %526 {offsets = [0, 0], sizes = [1, 32], strides = [1, 1]} : vector<8x32xf32> to vector<1x32xf32>
    %534 = vector.extract_strided_slice %526 {offsets = [1, 0], sizes = [1, 32], strides = [1, 1]} : vector<8x32xf32> to vector<1x32xf32>
    %535 = vector.extract_strided_slice %526 {offsets = [2, 0], sizes = [1, 32], strides = [1, 1]} : vector<8x32xf32> to vector<1x32xf32>
    %536 = vector.extract_strided_slice %526 {offsets = [3, 0], sizes = [1, 32], strides = [1, 1]} : vector<8x32xf32> to vector<1x32xf32>
    %537 = vector.extract_strided_slice %526 {offsets = [4, 0], sizes = [1, 32], strides = [1, 1]} : vector<8x32xf32> to vector<1x32xf32>
    %538 = vector.extract_strided_slice %526 {offsets = [5, 0], sizes = [1, 32], strides = [1, 1]} : vector<8x32xf32> to vector<1x32xf32>
    %539 = vector.extract_strided_slice %526 {offsets = [6, 0], sizes = [1, 32], strides = [1, 1]} : vector<8x32xf32> to vector<1x32xf32>
    %540 = vector.extract_strided_slice %526 {offsets = [7, 0], sizes = [1, 32], strides = [1, 1]} : vector<8x32xf32> to vector<1x32xf32>
    %cst_213 = arith.constant dense<0.000000e+00> : vector<8xf32>
    %541 = vector.multi_reduction <add>, %518, %cst_213 [1] : vector<8x32xf32> to vector<8xf32>
    %542 = vector.shape_cast %541 : vector<8xf32> to vector<8x1xf32>
    %cst_214 = arith.constant 3.200000e+01 : f32
    %543 = vector.broadcast %cst_214 : f32 to vector<8x1xf32>
    %544 = arith.divf %542, %543 : vector<8x1xf32>
    %545 = vector.broadcast %544 : vector<8x1xf32> to vector<8x32xf32>
    %546 = arith.subf %518, %545 : vector<8x32xf32>
    %547 = arith.mulf %546, %546 : vector<8x32xf32>
    %cst_215 = arith.constant dense<0.000000e+00> : vector<8xf32>
    %548 = vector.multi_reduction <add>, %547, %cst_215 [1] : vector<8x32xf32> to vector<8xf32>
    %549 = vector.shape_cast %548 : vector<8xf32> to vector<8x1xf32>
    %cst_216 = arith.constant 3.200000e+01 : f32
    %550 = vector.broadcast %cst_216 : f32 to vector<8x1xf32>
    %551 = arith.divf %549, %550 : vector<8x1xf32>
    %552 = vector.broadcast %544 : vector<8x1xf32> to vector<8x32xf32>
    %553 = arith.subf %518, %552 : vector<8x32xf32>
    %cst_217 = arith.constant 9.99999974E-6 : f32
    %554 = vector.broadcast %cst_217 : f32 to vector<8x1xf32>
    %555 = arith.addf %551, %554 : vector<8x1xf32>
    %556 = math.rsqrt %555 : vector<8x1xf32>
    %557 = vector.broadcast %556 : vector<8x1xf32> to vector<8x32xf32>
    %558 = arith.mulf %553, %557 : vector<8x32xf32>
    %559 = vector.broadcast %533 : vector<1x32xf32> to vector<8x32xf32>
    %560 = arith.mulf %558, %559 : vector<8x32xf32>
    %561 = vector.broadcast %534 : vector<1x32xf32> to vector<8x32xf32>
    %562 = arith.addf %560, %561 : vector<8x32xf32>
    %563 = arith.truncf %562 : vector<8x32xf32> to vector<8x32xbf16>
    %cst_218 = arith.constant dense<0.000000e+00> : vector<8xf32>
    %564 = vector.multi_reduction <add>, %518, %cst_218 [1] : vector<8x32xf32> to vector<8xf32>
    %565 = vector.shape_cast %564 : vector<8xf32> to vector<8x1xf32>
    %cst_219 = arith.constant 3.200000e+01 : f32
    %566 = vector.broadcast %cst_219 : f32 to vector<8x1xf32>
    %567 = arith.divf %565, %566 : vector<8x1xf32>
    %568 = vector.broadcast %567 : vector<8x1xf32> to vector<8x32xf32>
    %569 = arith.subf %518, %568 : vector<8x32xf32>
    %570 = arith.mulf %569, %569 : vector<8x32xf32>
    %cst_220 = arith.constant dense<0.000000e+00> : vector<8xf32>
    %571 = vector.multi_reduction <add>, %570, %cst_220 [1] : vector<8x32xf32> to vector<8xf32>
    %572 = vector.shape_cast %571 : vector<8xf32> to vector<8x1xf32>
    %cst_221 = arith.constant 3.200000e+01 : f32
    %573 = vector.broadcast %cst_221 : f32 to vector<8x1xf32>
    %574 = arith.divf %572, %573 : vector<8x1xf32>
    %575 = vector.broadcast %567 : vector<8x1xf32> to vector<8x32xf32>
    %576 = arith.subf %518, %575 : vector<8x32xf32>
    %cst_222 = arith.constant 9.99999974E-6 : f32
    %577 = vector.broadcast %cst_222 : f32 to vector<8x1xf32>
    %578 = arith.addf %574, %577 : vector<8x1xf32>
    %579 = math.rsqrt %578 : vector<8x1xf32>
    %580 = vector.broadcast %579 : vector<8x1xf32> to vector<8x32xf32>
    %581 = arith.mulf %576, %580 : vector<8x32xf32>
    %582 = vector.broadcast %533 : vector<1x32xf32> to vector<8x32xf32>
    %583 = arith.mulf %581, %582 : vector<8x32xf32>
    %584 = vector.broadcast %534 : vector<1x32xf32> to vector<8x32xf32>
    %585 = arith.addf %583, %584 : vector<8x32xf32>
    %586 = arith.truncf %585 : vector<8x32xf32> to vector<8x32xbf16>
    %cst_223 = arith.constant dense<0.000000e+00> : vector<8x32xf32>
    %587 = tpu.matmul %563, %532, %cst_223 {dimension_numbers = #tpu.dot_dimension_numbers<[1], [0], [0], [1], [0, 0, 1, 1], [], []>} : vector<8x32xbf16>, vector<32x32xbf16>, vector<8x32xf32> -> vector<8x32xf32>
    %cst_224 = arith.constant dense<0.000000e+00> : vector<8x64xf32>
    %588 = tpu.matmul %586, %528, %cst_224 {dimension_numbers = #tpu.dot_dimension_numbers<[1], [0], [0], [1], [0, 0, 1, 1], [], []>} : vector<8x32xbf16>, vector<32x64xbf16>, vector<8x64xf32> -> vector<8x64xf32>
    %589 = vector.extract_strided_slice %588 {offsets = [0, 0], sizes = [8, 32], strides = [1, 1]} : vector<8x64xf32> to vector<8x32xf32>
    %590 = vector.extract_strided_slice %588 {offsets = [0, 32], sizes = [8, 32], strides = [1, 1]} : vector<8x64xf32> to vector<8x32xf32>
    %591 = vector.extract_strided_slice %587 {offsets = [0, 0], sizes = [8, 8], strides = [1, 1]} : vector<8x32xf32> to vector<8x8xf32>
    %592 = arith.truncf %591 : vector<8x8xf32> to vector<8x8xbf16>
    %593 = vector.extract_strided_slice %589 {offsets = [0, 0], sizes = [8, 8], strides = [1, 1]} : vector<8x32xf32> to vector<8x8xf32>
    %594 = arith.truncf %593 : vector<8x8xf32> to vector<8x8xbf16>
    "tpu.trace_start"() <{level = 10 : i32, message = "nd,md->nm"}> : () -> ()
    %cst_225 = arith.constant dense<0.000000e+00> : vector<8x8xf32>
    %595 = tpu.matmul %592, %594, %cst_225 {dimension_numbers = #tpu.dot_dimension_numbers<[1], [1], [0], [0], [0, 0, 1, 0], [], []>} : vector<8x8xbf16>, vector<8x8xbf16>, vector<8x8xf32> -> vector<8x8xf32>
    "tpu.trace_stop"() : () -> ()
    %cst_226 = arith.constant dense<0xFF800000> : vector<8xf32>
    %596 = vector.multi_reduction <maximumf>, %595, %cst_226 [1] : vector<8x8xf32> to vector<8xf32>
    %597 = vector.shape_cast %596 : vector<8xf32> to vector<8x1xf32>
    %598 = vector.broadcast %597 : vector<8x1xf32> to vector<8x8xf32>
    %599 = arith.subf %595, %598 : vector<8x8xf32>
    %600 = math.exp %599 : vector<8x8xf32>
    %cst_227 = arith.constant dense<0.000000e+00> : vector<8xf32>
    %601 = vector.multi_reduction <add>, %600, %cst_227 [1] : vector<8x8xf32> to vector<8xf32>
    %602 = vector.shape_cast %601 : vector<8xf32> to vector<8x1xf32>
    %603 = vector.broadcast %602 : vector<8x1xf32> to vector<8x8xf32>
    %604 = arith.divf %600, %603 : vector<8x8xf32>
    %605 = arith.truncf %604 : vector<8x8xf32> to vector<8x8xbf16>
    %606 = vector.extract_strided_slice %590 {offsets = [0, 0], sizes = [8, 8], strides = [1, 1]} : vector<8x32xf32> to vector<8x8xf32>
    %607 = arith.truncf %606 : vector<8x8xf32> to vector<8x8xbf16>
    %cst_228 = arith.constant dense<0.000000e+00> : vector<8x8xf32>
    %608 = tpu.matmul %605, %607, %cst_228 {dimension_numbers = #tpu.dot_dimension_numbers<[1], [0], [0], [1], [0, 0, 1, 1], [], []>} : vector<8x8xbf16>, vector<8x8xbf16>, vector<8x8xf32> -> vector<8x8xf32>
    %609 = vector.extract_strided_slice %587 {offsets = [0, 8], sizes = [8, 8], strides = [1, 1]} : vector<8x32xf32> to vector<8x8xf32>
    %610 = arith.truncf %609 : vector<8x8xf32> to vector<8x8xbf16>
    %611 = vector.extract_strided_slice %589 {offsets = [0, 8], sizes = [8, 8], strides = [1, 1]} : vector<8x32xf32> to vector<8x8xf32>
    %612 = arith.truncf %611 : vector<8x8xf32> to vector<8x8xbf16>
    "tpu.trace_start"() <{level = 10 : i32, message = "nd,md->nm"}> : () -> ()
    %cst_229 = arith.constant dense<0.000000e+00> : vector<8x8xf32>
    %613 = tpu.matmul %610, %612, %cst_229 {dimension_numbers = #tpu.dot_dimension_numbers<[1], [1], [0], [0], [0, 0, 1, 0], [], []>} : vector<8x8xbf16>, vector<8x8xbf16>, vector<8x8xf32> -> vector<8x8xf32>
    "tpu.trace_stop"() : () -> ()
    %cst_230 = arith.constant dense<0xFF800000> : vector<8xf32>
    %614 = vector.multi_reduction <maximumf>, %613, %cst_230 [1] : vector<8x8xf32> to vector<8xf32>
    %615 = vector.shape_cast %614 : vector<8xf32> to vector<8x1xf32>
    %616 = vector.broadcast %615 : vector<8x1xf32> to vector<8x8xf32>
    %617 = arith.subf %613, %616 : vector<8x8xf32>
    %618 = math.exp %617 : vector<8x8xf32>
    %cst_231 = arith.constant dense<0.000000e+00> : vector<8xf32>
    %619 = vector.multi_reduction <add>, %618, %cst_231 [1] : vector<8x8xf32> to vector<8xf32>
    %620 = vector.shape_cast %619 : vector<8xf32> to vector<8x1xf32>
    %621 = vector.broadcast %620 : vector<8x1xf32> to vector<8x8xf32>
    %622 = arith.divf %618, %621 : vector<8x8xf32>
    %623 = arith.truncf %622 : vector<8x8xf32> to vector<8x8xbf16>
    %624 = vector.extract_strided_slice %590 {offsets = [0, 8], sizes = [8, 8], strides = [1, 1]} : vector<8x32xf32> to vector<8x8xf32>
    %625 = arith.truncf %624 : vector<8x8xf32> to vector<8x8xbf16>
    %cst_232 = arith.constant dense<0.000000e+00> : vector<8x8xf32>
    %626 = tpu.matmul %623, %625, %cst_232 {dimension_numbers = #tpu.dot_dimension_numbers<[1], [0], [0], [1], [0, 0, 1, 1], [], []>} : vector<8x8xbf16>, vector<8x8xbf16>, vector<8x8xf32> -> vector<8x8xf32>
    %627 = vector.extract_strided_slice %587 {offsets = [0, 16], sizes = [8, 8], strides = [1, 1]} : vector<8x32xf32> to vector<8x8xf32>
    %628 = arith.truncf %627 : vector<8x8xf32> to vector<8x8xbf16>
    %629 = vector.extract_strided_slice %589 {offsets = [0, 16], sizes = [8, 8], strides = [1, 1]} : vector<8x32xf32> to vector<8x8xf32>
    %630 = arith.truncf %629 : vector<8x8xf32> to vector<8x8xbf16>
    "tpu.trace_start"() <{level = 10 : i32, message = "nd,md->nm"}> : () -> ()
    %cst_233 = arith.constant dense<0.000000e+00> : vector<8x8xf32>
    %631 = tpu.matmul %628, %630, %cst_233 {dimension_numbers = #tpu.dot_dimension_numbers<[1], [1], [0], [0], [0, 0, 1, 0], [], []>} : vector<8x8xbf16>, vector<8x8xbf16>, vector<8x8xf32> -> vector<8x8xf32>
    "tpu.trace_stop"() : () -> ()
    %cst_234 = arith.constant dense<0xFF800000> : vector<8xf32>
    %632 = vector.multi_reduction <maximumf>, %631, %cst_234 [1] : vector<8x8xf32> to vector<8xf32>
    %633 = vector.shape_cast %632 : vector<8xf32> to vector<8x1xf32>
    %634 = vector.broadcast %633 : vector<8x1xf32> to vector<8x8xf32>
    %635 = arith.subf %631, %634 : vector<8x8xf32>
    %636 = math.exp %635 : vector<8x8xf32>
    %cst_235 = arith.constant dense<0.000000e+00> : vector<8xf32>
    %637 = vector.multi_reduction <add>, %636, %cst_235 [1] : vector<8x8xf32> to vector<8xf32>
    %638 = vector.shape_cast %637 : vector<8xf32> to vector<8x1xf32>
    %639 = vector.broadcast %638 : vector<8x1xf32> to vector<8x8xf32>
    %640 = arith.divf %636, %639 : vector<8x8xf32>
    %641 = arith.truncf %640 : vector<8x8xf32> to vector<8x8xbf16>
    %642 = vector.extract_strided_slice %590 {offsets = [0, 16], sizes = [8, 8], strides = [1, 1]} : vector<8x32xf32> to vector<8x8xf32>
    %643 = arith.truncf %642 : vector<8x8xf32> to vector<8x8xbf16>
    %cst_236 = arith.constant dense<0.000000e+00> : vector<8x8xf32>
    %644 = tpu.matmul %641, %643, %cst_236 {dimension_numbers = #tpu.dot_dimension_numbers<[1], [0], [0], [1], [0, 0, 1, 1], [], []>} : vector<8x8xbf16>, vector<8x8xbf16>, vector<8x8xf32> -> vector<8x8xf32>
    %645 = vector.extract_strided_slice %587 {offsets = [0, 24], sizes = [8, 8], strides = [1, 1]} : vector<8x32xf32> to vector<8x8xf32>
    %646 = arith.truncf %645 : vector<8x8xf32> to vector<8x8xbf16>
    %647 = vector.extract_strided_slice %589 {offsets = [0, 24], sizes = [8, 8], strides = [1, 1]} : vector<8x32xf32> to vector<8x8xf32>
    %648 = arith.truncf %647 : vector<8x8xf32> to vector<8x8xbf16>
    "tpu.trace_start"() <{level = 10 : i32, message = "nd,md->nm"}> : () -> ()
    %cst_237 = arith.constant dense<0.000000e+00> : vector<8x8xf32>
    %649 = tpu.matmul %646, %648, %cst_237 {dimension_numbers = #tpu.dot_dimension_numbers<[1], [1], [0], [0], [0, 0, 1, 0], [], []>} : vector<8x8xbf16>, vector<8x8xbf16>, vector<8x8xf32> -> vector<8x8xf32>
    "tpu.trace_stop"() : () -> ()
    %cst_238 = arith.constant dense<0xFF800000> : vector<8xf32>
    %650 = vector.multi_reduction <maximumf>, %649, %cst_238 [1] : vector<8x8xf32> to vector<8xf32>
    %651 = vector.shape_cast %650 : vector<8xf32> to vector<8x1xf32>
    %652 = vector.broadcast %651 : vector<8x1xf32> to vector<8x8xf32>
    %653 = arith.subf %649, %652 : vector<8x8xf32>
    %654 = math.exp %653 : vector<8x8xf32>
    %cst_239 = arith.constant dense<0.000000e+00> : vector<8xf32>
    %655 = vector.multi_reduction <add>, %654, %cst_239 [1] : vector<8x8xf32> to vector<8xf32>
    %656 = vector.shape_cast %655 : vector<8xf32> to vector<8x1xf32>
    %657 = vector.broadcast %656 : vector<8x1xf32> to vector<8x8xf32>
    %658 = arith.divf %654, %657 : vector<8x8xf32>
    %659 = arith.truncf %658 : vector<8x8xf32> to vector<8x8xbf16>
    %660 = vector.extract_strided_slice %590 {offsets = [0, 24], sizes = [8, 8], strides = [1, 1]} : vector<8x32xf32> to vector<8x8xf32>
    %661 = arith.truncf %660 : vector<8x8xf32> to vector<8x8xbf16>
    %cst_240 = arith.constant dense<0.000000e+00> : vector<8x8xf32>
    %662 = tpu.matmul %659, %661, %cst_240 {dimension_numbers = #tpu.dot_dimension_numbers<[1], [0], [0], [1], [0, 0, 1, 1], [], []>} : vector<8x8xbf16>, vector<8x8xbf16>, vector<8x8xf32> -> vector<8x8xf32>
    %663 = tpu.concatenate %608, %626, %644, %662 in 1 : vector<8x8xf32>, vector<8x8xf32>, vector<8x8xf32>, vector<8x8xf32> -> vector<8x32xf32>
    %664 = arith.truncf %663 : vector<8x32xf32> to vector<8x32xbf16>
    %cst_241 = arith.constant dense<0.000000e+00> : vector<8x32xf32>
    %665 = tpu.matmul %664, %530, %cst_241 {dimension_numbers = #tpu.dot_dimension_numbers<[1], [0], [0], [1], [0, 0, 1, 1], [], []>} : vector<8x32xbf16>, vector<32x32xbf16>, vector<8x32xf32> -> vector<8x32xf32>
    %666 = vector.broadcast %535 : vector<1x32xf32> to vector<8x32xf32>
    %667 = arith.addf %665, %666 : vector<8x32xf32>
    %668 = vector.broadcast %536 : vector<1x32xf32> to vector<8x32xf32>
    %669 = arith.mulf %668, %667 : vector<8x32xf32>
    %670 = arith.addf %518, %669 : vector<8x32xf32>
    %cst_242 = arith.constant dense<0.000000e+00> : vector<8xf32>
    %671 = vector.multi_reduction <add>, %670, %cst_242 [1] : vector<8x32xf32> to vector<8xf32>
    %672 = vector.shape_cast %671 : vector<8xf32> to vector<8x1xf32>
    %cst_243 = arith.constant 3.200000e+01 : f32
    %673 = vector.broadcast %cst_243 : f32 to vector<8x1xf32>
    %674 = arith.divf %672, %673 : vector<8x1xf32>
    %675 = vector.broadcast %674 : vector<8x1xf32> to vector<8x32xf32>
    %676 = arith.subf %670, %675 : vector<8x32xf32>
    %677 = arith.mulf %676, %676 : vector<8x32xf32>
    %cst_244 = arith.constant dense<0.000000e+00> : vector<8xf32>
    %678 = vector.multi_reduction <add>, %677, %cst_244 [1] : vector<8x32xf32> to vector<8xf32>
    %679 = vector.shape_cast %678 : vector<8xf32> to vector<8x1xf32>
    %cst_245 = arith.constant 3.200000e+01 : f32
    %680 = vector.broadcast %cst_245 : f32 to vector<8x1xf32>
    %681 = arith.divf %679, %680 : vector<8x1xf32>
    %682 = vector.broadcast %674 : vector<8x1xf32> to vector<8x32xf32>
    %683 = arith.subf %670, %682 : vector<8x32xf32>
    %cst_246 = arith.constant 9.99999974E-6 : f32
    %684 = vector.broadcast %cst_246 : f32 to vector<8x1xf32>
    %685 = arith.addf %681, %684 : vector<8x1xf32>
    %686 = math.rsqrt %685 : vector<8x1xf32>
    %687 = vector.broadcast %686 : vector<8x1xf32> to vector<8x32xf32>
    %688 = arith.mulf %683, %687 : vector<8x32xf32>
    %689 = vector.broadcast %538 : vector<1x32xf32> to vector<8x32xf32>
    %690 = arith.mulf %688, %689 : vector<8x32xf32>
    %691 = vector.broadcast %539 : vector<1x32xf32> to vector<8x32xf32>
    %692 = arith.addf %690, %691 : vector<8x32xf32>
    %693 = arith.truncf %692 : vector<8x32xf32> to vector<8x32xbf16>
    %cst_247 = arith.constant dense<0.000000e+00> : vector<8x64xf32>
    %694 = tpu.matmul %693, %522, %cst_247 {dimension_numbers = #tpu.dot_dimension_numbers<[1], [0], [0], [1], [0, 0, 1, 1], [], []>} : vector<8x32xbf16>, vector<32x64xbf16>, vector<8x64xf32> -> vector<8x64xf32>
    %695 = vector.broadcast %520 : vector<1x64xf32> to vector<8x64xf32>
    %696 = arith.addf %694, %695 : vector<8x64xf32>
    %cst_248 = arith.constant 5.000000e-01 : f32
    %697 = vector.broadcast %cst_248 : f32 to vector<8x64xf32>
    %698 = arith.mulf %697, %696 : vector<8x64xf32>
    %cst_249 = arith.constant 0.707106769 : f32
    %699 = vector.broadcast %cst_249 : f32 to vector<8x64xf32>
    %700 = arith.mulf %696, %699 : vector<8x64xf32>
    %701 = math.erf %700 : vector<8x64xf32>
    %cst_250 = arith.constant 1.000000e+00 : f32
    %702 = vector.broadcast %cst_250 : f32 to vector<8x64xf32>
    %703 = arith.addf %702, %701 : vector<8x64xf32>
    %704 = arith.mulf %698, %703 : vector<8x64xf32>
    %705 = arith.truncf %704 : vector<8x64xf32> to vector<8x64xbf16>
    %cst_251 = arith.constant dense<0.000000e+00> : vector<8x32xf32>
    %706 = tpu.matmul %705, %524, %cst_251 {dimension_numbers = #tpu.dot_dimension_numbers<[1], [0], [0], [1], [0, 0, 1, 1], [], []>} : vector<8x64xbf16>, vector<64x32xbf16>, vector<8x32xf32> -> vector<8x32xf32>
    %707 = vector.broadcast %540 : vector<1x32xf32> to vector<8x32xf32>
    %708 = arith.addf %706, %707 : vector<8x32xf32>
    %709 = vector.broadcast %537 : vector<1x32xf32> to vector<8x32xf32>
    %710 = arith.mulf %709, %708 : vector<8x32xf32>
    %711 = arith.addf %670, %710 : vector<8x32xf32>
    %c0_252 = arith.constant 0 : index
    %c0_253 = arith.constant 0 : index
    %c0_254 = arith.constant 0 : index
    %712 = vector.load %arg26[%c0_252, %c0_253, %c0_254] : memref<1x1x64xf32, #tpu.memory_space<vmem>>, vector<1x1x64xf32>
    %713 = vector.shape_cast %712 : vector<1x1x64xf32> to vector<1x64xf32>
    %c0_255 = arith.constant 0 : index
    %c0_256 = arith.constant 0 : index
    %c0_257 = arith.constant 0 : index
    %714 = vector.load %arg27[%c0_255, %c0_256, %c0_257] : memref<1x32x64xbf16, #tpu.memory_space<vmem>>, vector<1x32x64xbf16>
    %715 = vector.shape_cast %714 : vector<1x32x64xbf16> to vector<32x64xbf16>
    %c0_258 = arith.constant 0 : index
    %c0_259 = arith.constant 0 : index
    %c0_260 = arith.constant 0 : index
    %716 = vector.load %arg28[%c0_258, %c0_259, %c0_260] : memref<1x64x32xbf16, #tpu.memory_space<vmem>>, vector<1x64x32xbf16>
    %717 = vector.shape_cast %716 : vector<1x64x32xbf16> to vector<64x32xbf16>
    %c0_261 = arith.constant 0 : index
    %c0_262 = arith.constant 0 : index
    %c0_263 = arith.constant 0 : index
    %718 = vector.load %arg29[%c0_261, %c0_262, %c0_263] : memref<1x8x32xf32, #tpu.memory_space<vmem>>, vector<1x8x32xf32>
    %719 = vector.shape_cast %718 : vector<1x8x32xf32> to vector<8x32xf32>
    %c0_264 = arith.constant 0 : index
    %c0_265 = arith.constant 0 : index
    %c0_266 = arith.constant 0 : index
    %720 = vector.load %arg30[%c0_264, %c0_265, %c0_266] : memref<1x32x64xbf16, #tpu.memory_space<vmem>>, vector<1x32x64xbf16>
    %721 = vector.shape_cast %720 : vector<1x32x64xbf16> to vector<32x64xbf16>
    %c0_267 = arith.constant 0 : index
    %c0_268 = arith.constant 0 : index
    %c0_269 = arith.constant 0 : index
    %722 = vector.load %arg31[%c0_267, %c0_268, %c0_269] : memref<1x32x32xbf16, #tpu.memory_space<vmem>>, vector<1x32x32xbf16>
    %723 = vector.shape_cast %722 : vector<1x32x32xbf16> to vector<32x32xbf16>
    %c0_270 = arith.constant 0 : index
    %c0_271 = arith.constant 0 : index
    %c0_272 = arith.constant 0 : index
    %724 = vector.load %arg32[%c0_270, %c0_271, %c0_272] : memref<1x32x32xbf16, #tpu.memory_space<vmem>>, vector<1x32x32xbf16>
    %725 = vector.shape_cast %724 : vector<1x32x32xbf16> to vector<32x32xbf16>
    %726 = vector.extract_strided_slice %719 {offsets = [0, 0], sizes = [1, 32], strides = [1, 1]} : vector<8x32xf32> to vector<1x32xf32>
    %727 = vector.extract_strided_slice %719 {offsets = [1, 0], sizes = [1, 32], strides = [1, 1]} : vector<8x32xf32> to vector<1x32xf32>
    %728 = vector.extract_strided_slice %719 {offsets = [2, 0], sizes = [1, 32], strides = [1, 1]} : vector<8x32xf32> to vector<1x32xf32>
    %729 = vector.extract_strided_slice %719 {offsets = [3, 0], sizes = [1, 32], strides = [1, 1]} : vector<8x32xf32> to vector<1x32xf32>
    %730 = vector.extract_strided_slice %719 {offsets = [4, 0], sizes = [1, 32], strides = [1, 1]} : vector<8x32xf32> to vector<1x32xf32>
    %731 = vector.extract_strided_slice %719 {offsets = [5, 0], sizes = [1, 32], strides = [1, 1]} : vector<8x32xf32> to vector<1x32xf32>
    %732 = vector.extract_strided_slice %719 {offsets = [6, 0], sizes = [1, 32], strides = [1, 1]} : vector<8x32xf32> to vector<1x32xf32>
    %733 = vector.extract_strided_slice %719 {offsets = [7, 0], sizes = [1, 32], strides = [1, 1]} : vector<8x32xf32> to vector<1x32xf32>
    %cst_273 = arith.constant dense<0.000000e+00> : vector<8xf32>
    %734 = vector.multi_reduction <add>, %492, %cst_273 [1] : vector<8x32xf32> to vector<8xf32>
    %735 = vector.shape_cast %734 : vector<8xf32> to vector<8x1xf32>
    %cst_274 = arith.constant 3.200000e+01 : f32
    %736 = vector.broadcast %cst_274 : f32 to vector<8x1xf32>
    %737 = arith.divf %735, %736 : vector<8x1xf32>
    %738 = vector.broadcast %737 : vector<8x1xf32> to vector<8x32xf32>
    %739 = arith.subf %492, %738 : vector<8x32xf32>
    %740 = arith.mulf %739, %739 : vector<8x32xf32>
    %cst_275 = arith.constant dense<0.000000e+00> : vector<8xf32>
    %741 = vector.multi_reduction <add>, %740, %cst_275 [1] : vector<8x32xf32> to vector<8xf32>
    %742 = vector.shape_cast %741 : vector<8xf32> to vector<8x1xf32>
    %cst_276 = arith.constant 3.200000e+01 : f32
    %743 = vector.broadcast %cst_276 : f32 to vector<8x1xf32>
    %744 = arith.divf %742, %743 : vector<8x1xf32>
    %745 = vector.broadcast %737 : vector<8x1xf32> to vector<8x32xf32>
    %746 = arith.subf %492, %745 : vector<8x32xf32>
    %cst_277 = arith.constant 9.99999974E-6 : f32
    %747 = vector.broadcast %cst_277 : f32 to vector<8x1xf32>
    %748 = arith.addf %744, %747 : vector<8x1xf32>
    %749 = math.rsqrt %748 : vector<8x1xf32>
    %750 = vector.broadcast %749 : vector<8x1xf32> to vector<8x32xf32>
    %751 = arith.mulf %746, %750 : vector<8x32xf32>
    %752 = vector.broadcast %726 : vector<1x32xf32> to vector<8x32xf32>
    %753 = arith.mulf %751, %752 : vector<8x32xf32>
    %754 = vector.broadcast %727 : vector<1x32xf32> to vector<8x32xf32>
    %755 = arith.addf %753, %754 : vector<8x32xf32>
    %756 = arith.truncf %755 : vector<8x32xf32> to vector<8x32xbf16>
    %cst_278 = arith.constant dense<0.000000e+00> : vector<8xf32>
    %757 = vector.multi_reduction <add>, %711, %cst_278 [1] : vector<8x32xf32> to vector<8xf32>
    %758 = vector.shape_cast %757 : vector<8xf32> to vector<8x1xf32>
    %cst_279 = arith.constant 3.200000e+01 : f32
    %759 = vector.broadcast %cst_279 : f32 to vector<8x1xf32>
    %760 = arith.divf %758, %759 : vector<8x1xf32>
    %761 = vector.broadcast %760 : vector<8x1xf32> to vector<8x32xf32>
    %762 = arith.subf %711, %761 : vector<8x32xf32>
    %763 = arith.mulf %762, %762 : vector<8x32xf32>
    %cst_280 = arith.constant dense<0.000000e+00> : vector<8xf32>
    %764 = vector.multi_reduction <add>, %763, %cst_280 [1] : vector<8x32xf32> to vector<8xf32>
    %765 = vector.shape_cast %764 : vector<8xf32> to vector<8x1xf32>
    %cst_281 = arith.constant 3.200000e+01 : f32
    %766 = vector.broadcast %cst_281 : f32 to vector<8x1xf32>
    %767 = arith.divf %765, %766 : vector<8x1xf32>
    %768 = vector.broadcast %760 : vector<8x1xf32> to vector<8x32xf32>
    %769 = arith.subf %711, %768 : vector<8x32xf32>
    %cst_282 = arith.constant 9.99999974E-6 : f32
    %770 = vector.broadcast %cst_282 : f32 to vector<8x1xf32>
    %771 = arith.addf %767, %770 : vector<8x1xf32>
    %772 = math.rsqrt %771 : vector<8x1xf32>
    %773 = vector.broadcast %772 : vector<8x1xf32> to vector<8x32xf32>
    %774 = arith.mulf %769, %773 : vector<8x32xf32>
    %775 = vector.broadcast %726 : vector<1x32xf32> to vector<8x32xf32>
    %776 = arith.mulf %774, %775 : vector<8x32xf32>
    %777 = vector.broadcast %727 : vector<1x32xf32> to vector<8x32xf32>
    %778 = arith.addf %776, %777 : vector<8x32xf32>
    %779 = arith.truncf %778 : vector<8x32xf32> to vector<8x32xbf16>
    %cst_283 = arith.constant dense<0.000000e+00> : vector<8x32xf32>
    %780 = tpu.matmul %756, %725, %cst_283 {dimension_numbers = #tpu.dot_dimension_numbers<[1], [0], [0], [1], [0, 0, 1, 1], [], []>} : vector<8x32xbf16>, vector<32x32xbf16>, vector<8x32xf32> -> vector<8x32xf32>
    %cst_284 = arith.constant dense<0.000000e+00> : vector<8x64xf32>
    %781 = tpu.matmul %779, %721, %cst_284 {dimension_numbers = #tpu.dot_dimension_numbers<[1], [0], [0], [1], [0, 0, 1, 1], [], []>} : vector<8x32xbf16>, vector<32x64xbf16>, vector<8x64xf32> -> vector<8x64xf32>
    %782 = vector.extract_strided_slice %781 {offsets = [0, 0], sizes = [8, 32], strides = [1, 1]} : vector<8x64xf32> to vector<8x32xf32>
    %783 = vector.extract_strided_slice %781 {offsets = [0, 32], sizes = [8, 32], strides = [1, 1]} : vector<8x64xf32> to vector<8x32xf32>
    %784 = vector.extract_strided_slice %780 {offsets = [0, 0], sizes = [8, 8], strides = [1, 1]} : vector<8x32xf32> to vector<8x8xf32>
    %785 = arith.truncf %784 : vector<8x8xf32> to vector<8x8xbf16>
    %786 = vector.extract_strided_slice %782 {offsets = [0, 0], sizes = [8, 8], strides = [1, 1]} : vector<8x32xf32> to vector<8x8xf32>
    %787 = arith.truncf %786 : vector<8x8xf32> to vector<8x8xbf16>
    "tpu.trace_start"() <{level = 10 : i32, message = "nd,md->nm"}> : () -> ()
    %cst_285 = arith.constant dense<0.000000e+00> : vector<8x8xf32>
    %788 = tpu.matmul %785, %787, %cst_285 {dimension_numbers = #tpu.dot_dimension_numbers<[1], [1], [0], [0], [0, 0, 1, 0], [], []>} : vector<8x8xbf16>, vector<8x8xbf16>, vector<8x8xf32> -> vector<8x8xf32>
    "tpu.trace_stop"() : () -> ()
    %cst_286 = arith.constant dense<0xFF800000> : vector<8xf32>
    %789 = vector.multi_reduction <maximumf>, %788, %cst_286 [1] : vector<8x8xf32> to vector<8xf32>
    %790 = vector.shape_cast %789 : vector<8xf32> to vector<8x1xf32>
    %791 = vector.broadcast %790 : vector<8x1xf32> to vector<8x8xf32>
    %792 = arith.subf %788, %791 : vector<8x8xf32>
    %793 = math.exp %792 : vector<8x8xf32>
    %cst_287 = arith.constant dense<0.000000e+00> : vector<8xf32>
    %794 = vector.multi_reduction <add>, %793, %cst_287 [1] : vector<8x8xf32> to vector<8xf32>
    %795 = vector.shape_cast %794 : vector<8xf32> to vector<8x1xf32>
    %796 = vector.broadcast %795 : vector<8x1xf32> to vector<8x8xf32>
    %797 = arith.divf %793, %796 : vector<8x8xf32>
    %798 = arith.truncf %797 : vector<8x8xf32> to vector<8x8xbf16>
    %799 = vector.extract_strided_slice %783 {offsets = [0, 0], sizes = [8, 8], strides = [1, 1]} : vector<8x32xf32> to vector<8x8xf32>
    %800 = arith.truncf %799 : vector<8x8xf32> to vector<8x8xbf16>
    %cst_288 = arith.constant dense<0.000000e+00> : vector<8x8xf32>
    %801 = tpu.matmul %798, %800, %cst_288 {dimension_numbers = #tpu.dot_dimension_numbers<[1], [0], [0], [1], [0, 0, 1, 1], [], []>} : vector<8x8xbf16>, vector<8x8xbf16>, vector<8x8xf32> -> vector<8x8xf32>
    %802 = vector.extract_strided_slice %780 {offsets = [0, 8], sizes = [8, 8], strides = [1, 1]} : vector<8x32xf32> to vector<8x8xf32>
    %803 = arith.truncf %802 : vector<8x8xf32> to vector<8x8xbf16>
    %804 = vector.extract_strided_slice %782 {offsets = [0, 8], sizes = [8, 8], strides = [1, 1]} : vector<8x32xf32> to vector<8x8xf32>
    %805 = arith.truncf %804 : vector<8x8xf32> to vector<8x8xbf16>
    "tpu.trace_start"() <{level = 10 : i32, message = "nd,md->nm"}> : () -> ()
    %cst_289 = arith.constant dense<0.000000e+00> : vector<8x8xf32>
    %806 = tpu.matmul %803, %805, %cst_289 {dimension_numbers = #tpu.dot_dimension_numbers<[1], [1], [0], [0], [0, 0, 1, 0], [], []>} : vector<8x8xbf16>, vector<8x8xbf16>, vector<8x8xf32> -> vector<8x8xf32>
    "tpu.trace_stop"() : () -> ()
    %cst_290 = arith.constant dense<0xFF800000> : vector<8xf32>
    %807 = vector.multi_reduction <maximumf>, %806, %cst_290 [1] : vector<8x8xf32> to vector<8xf32>
    %808 = vector.shape_cast %807 : vector<8xf32> to vector<8x1xf32>
    %809 = vector.broadcast %808 : vector<8x1xf32> to vector<8x8xf32>
    %810 = arith.subf %806, %809 : vector<8x8xf32>
    %811 = math.exp %810 : vector<8x8xf32>
    %cst_291 = arith.constant dense<0.000000e+00> : vector<8xf32>
    %812 = vector.multi_reduction <add>, %811, %cst_291 [1] : vector<8x8xf32> to vector<8xf32>
    %813 = vector.shape_cast %812 : vector<8xf32> to vector<8x1xf32>
    %814 = vector.broadcast %813 : vector<8x1xf32> to vector<8x8xf32>
    %815 = arith.divf %811, %814 : vector<8x8xf32>
    %816 = arith.truncf %815 : vector<8x8xf32> to vector<8x8xbf16>
    %817 = vector.extract_strided_slice %783 {offsets = [0, 8], sizes = [8, 8], strides = [1, 1]} : vector<8x32xf32> to vector<8x8xf32>
    %818 = arith.truncf %817 : vector<8x8xf32> to vector<8x8xbf16>
    %cst_292 = arith.constant dense<0.000000e+00> : vector<8x8xf32>
    %819 = tpu.matmul %816, %818, %cst_292 {dimension_numbers = #tpu.dot_dimension_numbers<[1], [0], [0], [1], [0, 0, 1, 1], [], []>} : vector<8x8xbf16>, vector<8x8xbf16>, vector<8x8xf32> -> vector<8x8xf32>
    %820 = vector.extract_strided_slice %780 {offsets = [0, 16], sizes = [8, 8], strides = [1, 1]} : vector<8x32xf32> to vector<8x8xf32>
    %821 = arith.truncf %820 : vector<8x8xf32> to vector<8x8xbf16>
    %822 = vector.extract_strided_slice %782 {offsets = [0, 16], sizes = [8, 8], strides = [1, 1]} : vector<8x32xf32> to vector<8x8xf32>
    %823 = arith.truncf %822 : vector<8x8xf32> to vector<8x8xbf16>
    "tpu.trace_start"() <{level = 10 : i32, message = "nd,md->nm"}> : () -> ()
    %cst_293 = arith.constant dense<0.000000e+00> : vector<8x8xf32>
    %824 = tpu.matmul %821, %823, %cst_293 {dimension_numbers = #tpu.dot_dimension_numbers<[1], [1], [0], [0], [0, 0, 1, 0], [], []>} : vector<8x8xbf16>, vector<8x8xbf16>, vector<8x8xf32> -> vector<8x8xf32>
    "tpu.trace_stop"() : () -> ()
    %cst_294 = arith.constant dense<0xFF800000> : vector<8xf32>
    %825 = vector.multi_reduction <maximumf>, %824, %cst_294 [1] : vector<8x8xf32> to vector<8xf32>
    %826 = vector.shape_cast %825 : vector<8xf32> to vector<8x1xf32>
    %827 = vector.broadcast %826 : vector<8x1xf32> to vector<8x8xf32>
    %828 = arith.subf %824, %827 : vector<8x8xf32>
    %829 = math.exp %828 : vector<8x8xf32>
    %cst_295 = arith.constant dense<0.000000e+00> : vector<8xf32>
    %830 = vector.multi_reduction <add>, %829, %cst_295 [1] : vector<8x8xf32> to vector<8xf32>
    %831 = vector.shape_cast %830 : vector<8xf32> to vector<8x1xf32>
    %832 = vector.broadcast %831 : vector<8x1xf32> to vector<8x8xf32>
    %833 = arith.divf %829, %832 : vector<8x8xf32>
    %834 = arith.truncf %833 : vector<8x8xf32> to vector<8x8xbf16>
    %835 = vector.extract_strided_slice %783 {offsets = [0, 16], sizes = [8, 8], strides = [1, 1]} : vector<8x32xf32> to vector<8x8xf32>
    %836 = arith.truncf %835 : vector<8x8xf32> to vector<8x8xbf16>
    %cst_296 = arith.constant dense<0.000000e+00> : vector<8x8xf32>
    %837 = tpu.matmul %834, %836, %cst_296 {dimension_numbers = #tpu.dot_dimension_numbers<[1], [0], [0], [1], [0, 0, 1, 1], [], []>} : vector<8x8xbf16>, vector<8x8xbf16>, vector<8x8xf32> -> vector<8x8xf32>
    %838 = vector.extract_strided_slice %780 {offsets = [0, 24], sizes = [8, 8], strides = [1, 1]} : vector<8x32xf32> to vector<8x8xf32>
    %839 = arith.truncf %838 : vector<8x8xf32> to vector<8x8xbf16>
    %840 = vector.extract_strided_slice %782 {offsets = [0, 24], sizes = [8, 8], strides = [1, 1]} : vector<8x32xf32> to vector<8x8xf32>
    %841 = arith.truncf %840 : vector<8x8xf32> to vector<8x8xbf16>
    "tpu.trace_start"() <{level = 10 : i32, message = "nd,md->nm"}> : () -> ()
    %cst_297 = arith.constant dense<0.000000e+00> : vector<8x8xf32>
    %842 = tpu.matmul %839, %841, %cst_297 {dimension_numbers = #tpu.dot_dimension_numbers<[1], [1], [0], [0], [0, 0, 1, 0], [], []>} : vector<8x8xbf16>, vector<8x8xbf16>, vector<8x8xf32> -> vector<8x8xf32>
    "tpu.trace_stop"() : () -> ()
    %cst_298 = arith.constant dense<0xFF800000> : vector<8xf32>
    %843 = vector.multi_reduction <maximumf>, %842, %cst_298 [1] : vector<8x8xf32> to vector<8xf32>
    %844 = vector.shape_cast %843 : vector<8xf32> to vector<8x1xf32>
    %845 = vector.broadcast %844 : vector<8x1xf32> to vector<8x8xf32>
    %846 = arith.subf %842, %845 : vector<8x8xf32>
    %847 = math.exp %846 : vector<8x8xf32>
    %cst_299 = arith.constant dense<0.000000e+00> : vector<8xf32>
    %848 = vector.multi_reduction <add>, %847, %cst_299 [1] : vector<8x8xf32> to vector<8xf32>
    %849 = vector.shape_cast %848 : vector<8xf32> to vector<8x1xf32>
    %850 = vector.broadcast %849 : vector<8x1xf32> to vector<8x8xf32>
    %851 = arith.divf %847, %850 : vector<8x8xf32>
    %852 = arith.truncf %851 : vector<8x8xf32> to vector<8x8xbf16>
    %853 = vector.extract_strided_slice %783 {offsets = [0, 24], sizes = [8, 8], strides = [1, 1]} : vector<8x32xf32> to vector<8x8xf32>
    %854 = arith.truncf %853 : vector<8x8xf32> to vector<8x8xbf16>
    %cst_300 = arith.constant dense<0.000000e+00> : vector<8x8xf32>
    %855 = tpu.matmul %852, %854, %cst_300 {dimension_numbers = #tpu.dot_dimension_numbers<[1], [0], [0], [1], [0, 0, 1, 1], [], []>} : vector<8x8xbf16>, vector<8x8xbf16>, vector<8x8xf32> -> vector<8x8xf32>
    %856 = tpu.concatenate %801, %819, %837, %855 in 1 : vector<8x8xf32>, vector<8x8xf32>, vector<8x8xf32>, vector<8x8xf32> -> vector<8x32xf32>
    %857 = arith.truncf %856 : vector<8x32xf32> to vector<8x32xbf16>
    %cst_301 = arith.constant dense<0.000000e+00> : vector<8x32xf32>
    %858 = tpu.matmul %857, %723, %cst_301 {dimension_numbers = #tpu.dot_dimension_numbers<[1], [0], [0], [1], [0, 0, 1, 1], [], []>} : vector<8x32xbf16>, vector<32x32xbf16>, vector<8x32xf32> -> vector<8x32xf32>
    %859 = vector.broadcast %728 : vector<1x32xf32> to vector<8x32xf32>
    %860 = arith.addf %858, %859 : vector<8x32xf32>
    %861 = vector.broadcast %729 : vector<1x32xf32> to vector<8x32xf32>
    %862 = arith.mulf %861, %860 : vector<8x32xf32>
    %863 = arith.addf %492, %862 : vector<8x32xf32>
    %cst_302 = arith.constant dense<0.000000e+00> : vector<8xf32>
    %864 = vector.multi_reduction <add>, %863, %cst_302 [1] : vector<8x32xf32> to vector<8xf32>
    %865 = vector.shape_cast %864 : vector<8xf32> to vector<8x1xf32>
    %cst_303 = arith.constant 3.200000e+01 : f32
    %866 = vector.broadcast %cst_303 : f32 to vector<8x1xf32>
    %867 = arith.divf %865, %866 : vector<8x1xf32>
    %868 = vector.broadcast %867 : vector<8x1xf32> to vector<8x32xf32>
    %869 = arith.subf %863, %868 : vector<8x32xf32>
    %870 = arith.mulf %869, %869 : vector<8x32xf32>
    %cst_304 = arith.constant dense<0.000000e+00> : vector<8xf32>
    %871 = vector.multi_reduction <add>, %870, %cst_304 [1] : vector<8x32xf32> to vector<8xf32>
    %872 = vector.shape_cast %871 : vector<8xf32> to vector<8x1xf32>
    %cst_305 = arith.constant 3.200000e+01 : f32
    %873 = vector.broadcast %cst_305 : f32 to vector<8x1xf32>
    %874 = arith.divf %872, %873 : vector<8x1xf32>
    %875 = vector.broadcast %867 : vector<8x1xf32> to vector<8x32xf32>
    %876 = arith.subf %863, %875 : vector<8x32xf32>
    %cst_306 = arith.constant 9.99999974E-6 : f32
    %877 = vector.broadcast %cst_306 : f32 to vector<8x1xf32>
    %878 = arith.addf %874, %877 : vector<8x1xf32>
    %879 = math.rsqrt %878 : vector<8x1xf32>
    %880 = vector.broadcast %879 : vector<8x1xf32> to vector<8x32xf32>
    %881 = arith.mulf %876, %880 : vector<8x32xf32>
    %882 = vector.broadcast %731 : vector<1x32xf32> to vector<8x32xf32>
    %883 = arith.mulf %881, %882 : vector<8x32xf32>
    %884 = vector.broadcast %732 : vector<1x32xf32> to vector<8x32xf32>
    %885 = arith.addf %883, %884 : vector<8x32xf32>
    %886 = arith.truncf %885 : vector<8x32xf32> to vector<8x32xbf16>
    %cst_307 = arith.constant dense<0.000000e+00> : vector<8x64xf32>
    %887 = tpu.matmul %886, %715, %cst_307 {dimension_numbers = #tpu.dot_dimension_numbers<[1], [0], [0], [1], [0, 0, 1, 1], [], []>} : vector<8x32xbf16>, vector<32x64xbf16>, vector<8x64xf32> -> vector<8x64xf32>
    %888 = vector.broadcast %713 : vector<1x64xf32> to vector<8x64xf32>
    %889 = arith.addf %887, %888 : vector<8x64xf32>
    %cst_308 = arith.constant 5.000000e-01 : f32
    %890 = vector.broadcast %cst_308 : f32 to vector<8x64xf32>
    %891 = arith.mulf %890, %889 : vector<8x64xf32>
    %cst_309 = arith.constant 0.707106769 : f32
    %892 = vector.broadcast %cst_309 : f32 to vector<8x64xf32>
    %893 = arith.mulf %889, %892 : vector<8x64xf32>
    %894 = math.erf %893 : vector<8x64xf32>
    %cst_310 = arith.constant 1.000000e+00 : f32
    %895 = vector.broadcast %cst_310 : f32 to vector<8x64xf32>
    %896 = arith.addf %895, %894 : vector<8x64xf32>
    %897 = arith.mulf %891, %896 : vector<8x64xf32>
    %898 = arith.truncf %897 : vector<8x64xf32> to vector<8x64xbf16>
    %cst_311 = arith.constant dense<0.000000e+00> : vector<8x32xf32>
    %899 = tpu.matmul %898, %717, %cst_311 {dimension_numbers = #tpu.dot_dimension_numbers<[1], [0], [0], [1], [0, 0, 1, 1], [], []>} : vector<8x64xbf16>, vector<64x32xbf16>, vector<8x32xf32> -> vector<8x32xf32>
    %900 = vector.broadcast %733 : vector<1x32xf32> to vector<8x32xf32>
    %901 = arith.addf %899, %900 : vector<8x32xf32>
    %902 = vector.broadcast %730 : vector<1x32xf32> to vector<8x32xf32>
    %903 = arith.mulf %902, %901 : vector<8x32xf32>
    %904 = arith.addf %863, %903 : vector<8x32xf32>
    %c0_312 = arith.constant 0 : index
    %c0_313 = arith.constant 0 : index
    %c0_314 = arith.constant 0 : index
    %905 = vector.load %arg6[%c0_312, %c0_313, %c0_314] : memref<1x1x1xf32, #tpu.memory_space<vmem>>, vector<1x1x1xf32>
    %906 = vector.shape_cast %905 : vector<1x1x1xf32> to vector<1x1xf32>
    %c0_315 = arith.constant 0 : index
    %c0_316 = arith.constant 0 : index
    %c0_317 = arith.constant 0 : index
    %907 = vector.load %arg7[%c0_315, %c0_316, %c0_317] : memref<1x1x1xf32, #tpu.memory_space<vmem>>, vector<1x1x1xf32>
    %908 = vector.shape_cast %907 : vector<1x1x1xf32> to vector<1x1xf32>
    %c0_318 = arith.constant 0 : index
    %c0_319 = arith.constant 0 : index
    %909 = vector.load %arg54[%c0_318, %c0_319] : memref<1x32xf32, #tpu.memory_space<vmem>>, vector<1x32xf32>
    %c0_320 = arith.constant 0 : index
    %c0_321 = arith.constant 0 : index
    %910 = vector.load %arg55[%c0_320, %c0_321] : memref<1x32xf32, #tpu.memory_space<vmem>>, vector<1x32xf32>
    %c0_322 = arith.constant 0 : index
    %c0_323 = arith.constant 0 : index
    %911 = vector.load %arg56[%c0_322, %c0_323] : memref<1x32xf32, #tpu.memory_space<vmem>>, vector<1x32xf32>
    %c0_324 = arith.constant 0 : index
    %c0_325 = arith.constant 0 : index
    %912 = vector.load %arg57[%c0_324, %c0_325] : memref<1x1xf32, #tpu.memory_space<vmem>>, vector<1x1xf32>
    %c0_326 = arith.constant 0 : index
    %c0_327 = arith.constant 0 : index
    %913 = vector.load %arg58[%c0_326, %c0_327] : memref<1x32xf32, #tpu.memory_space<vmem>>, vector<1x32xf32>
    %c0_328 = arith.constant 0 : index
    %c0_329 = arith.constant 0 : index
    %914 = vector.load %arg59[%c0_328, %c0_329] : memref<1x32xf32, #tpu.memory_space<vmem>>, vector<1x32xf32>
    %c0_330 = arith.constant 0 : index
    %c0_331 = arith.constant 0 : index
    %915 = vector.load %arg60[%c0_330, %c0_331] : memref<32x32xbf16, #tpu.memory_space<vmem>>, vector<32x32xbf16>
    %c0_332 = arith.constant 0 : index
    %c0_333 = arith.constant 0 : index
    %916 = vector.load %arg61[%c0_332, %c0_333] : memref<32x32xbf16, #tpu.memory_space<vmem>>, vector<32x32xbf16>
    %c0_334 = arith.constant 0 : index
    %c0_335 = arith.constant 0 : index
    %917 = vector.load %arg62[%c0_334, %c0_335] : memref<32x32xbf16, #tpu.memory_space<vmem>>, vector<32x32xbf16>
    %c0_336 = arith.constant 0 : index
    %c0_337 = arith.constant 0 : index
    %918 = vector.load %arg63[%c0_336, %c0_337] : memref<32x1xbf16, #tpu.memory_space<vmem>>, vector<32x1xbf16>
    %919 = arith.truncf %904 : vector<8x32xf32> to vector<8x32xbf16>
    %cst_338 = arith.constant dense<0.000000e+00> : vector<8x32xf32>
    %920 = tpu.matmul %919, %915, %cst_338 {dimension_numbers = #tpu.dot_dimension_numbers<[1], [0], [0], [1], [0, 0, 1, 1], [], []>} : vector<8x32xbf16>, vector<32x32xbf16>, vector<8x32xf32> -> vector<8x32xf32>
    %921 = vector.broadcast %909 : vector<1x32xf32> to vector<8x32xf32>
    %922 = arith.addf %920, %921 : vector<8x32xf32>
    %cst_339 = arith.constant 5.000000e-01 : f32
    %923 = vector.broadcast %cst_339 : f32 to vector<8x32xf32>
    %924 = arith.mulf %923, %922 : vector<8x32xf32>
    %cst_340 = arith.constant 0.707106769 : f32
    %925 = vector.broadcast %cst_340 : f32 to vector<8x32xf32>
    %926 = arith.mulf %922, %925 : vector<8x32xf32>
    %927 = math.erf %926 : vector<8x32xf32>
    %cst_341 = arith.constant 1.000000e+00 : f32
    %928 = vector.broadcast %cst_341 : f32 to vector<8x32xf32>
    %929 = arith.addf %928, %927 : vector<8x32xf32>
    %930 = arith.mulf %924, %929 : vector<8x32xf32>
    %931 = arith.truncf %930 : vector<8x32xf32> to vector<8x32xbf16>
    %cst_342 = arith.constant dense<0.000000e+00> : vector<8x32xf32>
    %932 = tpu.matmul %931, %916, %cst_342 {dimension_numbers = #tpu.dot_dimension_numbers<[1], [0], [0], [1], [0, 0, 1, 1], [], []>} : vector<8x32xbf16>, vector<32x32xbf16>, vector<8x32xf32> -> vector<8x32xf32>
    %933 = vector.broadcast %910 : vector<1x32xf32> to vector<8x32xf32>
    %934 = arith.addf %932, %933 : vector<8x32xf32>
    %cst_343 = arith.constant dense<0.000000e+00> : vector<8xf32>
    %935 = vector.multi_reduction <add>, %934, %cst_343 [1] : vector<8x32xf32> to vector<8xf32>
    %936 = vector.shape_cast %935 : vector<8xf32> to vector<8x1xf32>
    %cst_344 = arith.constant 3.200000e+01 : f32
    %937 = vector.broadcast %cst_344 : f32 to vector<8x1xf32>
    %938 = arith.divf %936, %937 : vector<8x1xf32>
    %939 = vector.broadcast %938 : vector<8x1xf32> to vector<8x32xf32>
    %940 = arith.subf %934, %939 : vector<8x32xf32>
    %941 = arith.mulf %940, %940 : vector<8x32xf32>
    %cst_345 = arith.constant dense<0.000000e+00> : vector<8xf32>
    %942 = vector.multi_reduction <add>, %941, %cst_345 [1] : vector<8x32xf32> to vector<8xf32>
    %943 = vector.shape_cast %942 : vector<8xf32> to vector<8x1xf32>
    %cst_346 = arith.constant 3.200000e+01 : f32
    %944 = vector.broadcast %cst_346 : f32 to vector<8x1xf32>
    %945 = arith.divf %943, %944 : vector<8x1xf32>
    %946 = vector.broadcast %938 : vector<8x1xf32> to vector<8x32xf32>
    %947 = arith.subf %934, %946 : vector<8x32xf32>
    %cst_347 = arith.constant 9.99999974E-6 : f32
    %948 = vector.broadcast %cst_347 : f32 to vector<8x1xf32>
    %949 = arith.addf %945, %948 : vector<8x1xf32>
    %950 = math.rsqrt %949 : vector<8x1xf32>
    %951 = vector.broadcast %950 : vector<8x1xf32> to vector<8x32xf32>
    %952 = arith.mulf %947, %951 : vector<8x32xf32>
    %953 = vector.broadcast %914 : vector<1x32xf32> to vector<8x32xf32>
    %954 = arith.mulf %952, %953 : vector<8x32xf32>
    %955 = vector.broadcast %913 : vector<1x32xf32> to vector<8x32xf32>
    %956 = arith.addf %954, %955 : vector<8x32xf32>
    %957 = arith.truncf %956 : vector<8x32xf32> to vector<8x32xbf16>
    %cst_348 = arith.constant dense<0.000000e+00> : vector<8x32xf32>
    %958 = tpu.matmul %957, %917, %cst_348 {dimension_numbers = #tpu.dot_dimension_numbers<[1], [0], [0], [1], [0, 0, 1, 1], [], []>} : vector<8x32xbf16>, vector<32x32xbf16>, vector<8x32xf32> -> vector<8x32xf32>
    %959 = vector.broadcast %911 : vector<1x32xf32> to vector<8x32xf32>
    %960 = arith.addf %958, %959 : vector<8x32xf32>
    %cst_349 = arith.constant 5.000000e-01 : f32
    %961 = vector.broadcast %cst_349 : f32 to vector<8x32xf32>
    %962 = arith.mulf %961, %960 : vector<8x32xf32>
    %cst_350 = arith.constant 0.707106769 : f32
    %963 = vector.broadcast %cst_350 : f32 to vector<8x32xf32>
    %964 = arith.mulf %960, %963 : vector<8x32xf32>
    %965 = math.erf %964 : vector<8x32xf32>
    %cst_351 = arith.constant 1.000000e+00 : f32
    %966 = vector.broadcast %cst_351 : f32 to vector<8x32xf32>
    %967 = arith.addf %966, %965 : vector<8x32xf32>
    %968 = arith.mulf %962, %967 : vector<8x32xf32>
    %969 = arith.truncf %968 : vector<8x32xf32> to vector<8x32xbf16>
    %cst_352 = arith.constant dense<0.000000e+00> : vector<8x1xf32>
    %970 = tpu.matmul %969, %918, %cst_352 {dimension_numbers = #tpu.dot_dimension_numbers<[1], [0], [0], [1], [0, 0, 1, 1], [], []>} : vector<8x32xbf16>, vector<32x1xbf16>, vector<8x1xf32> -> vector<8x1xf32>
    %971 = vector.broadcast %912 : vector<1x1xf32> to vector<8x1xf32>
    %972 = arith.addf %970, %971 : vector<8x1xf32>
    %973 = vector.broadcast %908 : vector<1x1xf32> to vector<8x1xf32>
    %974 = arith.mulf %972, %973 : vector<8x1xf32>
    %975 = vector.broadcast %906 : vector<1x1xf32> to vector<8x1xf32>
    %976 = arith.addf %974, %975 : vector<8x1xf32>
    %c0_353 = arith.constant 0 : index
    %c0_354 = arith.constant 0 : index
    %977 = vector.load %arg43[%c0_353, %c0_354] : memref<1x64xf32, #tpu.memory_space<vmem>>, vector<1x64xf32>
    %c0_355 = arith.constant 0 : index
    %c0_356 = arith.constant 0 : index
    %978 = vector.load %arg44[%c0_355, %c0_356] : memref<1x32xf32, #tpu.memory_space<vmem>>, vector<1x32xf32>
    %c0_357 = arith.constant 0 : index
    %c0_358 = arith.constant 0 : index
    %979 = vector.load %arg45[%c0_357, %c0_358] : memref<1x32xf32, #tpu.memory_space<vmem>>, vector<1x32xf32>
    %c0_359 = arith.constant 0 : index
    %c0_360 = arith.constant 0 : index
    %980 = vector.load %arg46[%c0_359, %c0_360] : memref<1x1xf32, #tpu.memory_space<vmem>>, vector<1x1xf32>
    %c0_361 = arith.constant 0 : index
    %c0_362 = arith.constant 0 : index
    %981 = vector.load %arg47[%c0_361, %c0_362] : memref<1x32xf32, #tpu.memory_space<vmem>>, vector<1x32xf32>
    %c0_363 = arith.constant 0 : index
    %c0_364 = arith.constant 0 : index
    %982 = vector.load %arg48[%c0_363, %c0_364] : memref<1x32xf32, #tpu.memory_space<vmem>>, vector<1x32xf32>
    %c0_365 = arith.constant 0 : index
    %c0_366 = arith.constant 0 : index
    %983 = vector.load %arg49[%c0_365, %c0_366] : memref<32x64xbf16, #tpu.memory_space<vmem>>, vector<32x64xbf16>
    %c0_367 = arith.constant 0 : index
    %c0_368 = arith.constant 0 : index
    %984 = vector.load %arg50[%c0_367, %c0_368] : memref<1x64xf32, #tpu.memory_space<vmem>>, vector<1x64xf32>
    %c0_369 = arith.constant 0 : index
    %c0_370 = arith.constant 0 : index
    %985 = vector.load %arg51[%c0_369, %c0_370] : memref<64x32xbf16, #tpu.memory_space<vmem>>, vector<64x32xbf16>
    %c0_371 = arith.constant 0 : index
    %c0_372 = arith.constant 0 : index
    %986 = vector.load %arg52[%c0_371, %c0_372] : memref<32x32xbf16, #tpu.memory_space<vmem>>, vector<32x32xbf16>
    %c0_373 = arith.constant 0 : index
    %c0_374 = arith.constant 0 : index
    %987 = vector.load %arg53[%c0_373, %c0_374] : memref<32x1xbf16, #tpu.memory_space<vmem>>, vector<32x1xbf16>
    %988 = vector.broadcast %908 : vector<1x1xf32> to vector<8x1xf32>
    %989 = arith.divf %976, %988 : vector<8x1xf32>
    %990 = arith.truncf %904 : vector<8x32xf32> to vector<8x32xbf16>
    %cst_375 = arith.constant dense<0.000000e+00> : vector<8x64xf32>
    %991 = tpu.matmul %990, %983, %cst_375 {dimension_numbers = #tpu.dot_dimension_numbers<[1], [0], [0], [1], [0, 0, 1, 1], [], []>} : vector<8x32xbf16>, vector<32x64xbf16>, vector<8x64xf32> -> vector<8x64xf32>
    %992 = vector.broadcast %989 : vector<8x1xf32> to vector<8x64xf32>
    %993 = vector.broadcast %984 : vector<1x64xf32> to vector<8x64xf32>
    %994 = arith.mulf %992, %993 : vector<8x64xf32>
    %995 = arith.addf %991, %994 : vector<8x64xf32>
    %996 = vector.broadcast %977 : vector<1x64xf32> to vector<8x64xf32>
    %997 = arith.addf %995, %996 : vector<8x64xf32>
    %cst_376 = arith.constant 5.000000e-01 : f32
    %998 = vector.broadcast %cst_376 : f32 to vector<8x64xf32>
    %999 = arith.mulf %998, %997 : vector<8x64xf32>
    %cst_377 = arith.constant 0.707106769 : f32
    %1000 = vector.broadcast %cst_377 : f32 to vector<8x64xf32>
    %1001 = arith.mulf %997, %1000 : vector<8x64xf32>
    %1002 = math.erf %1001 : vector<8x64xf32>
    %cst_378 = arith.constant 1.000000e+00 : f32
    %1003 = vector.broadcast %cst_378 : f32 to vector<8x64xf32>
    %1004 = arith.addf %1003, %1002 : vector<8x64xf32>
    %1005 = arith.mulf %999, %1004 : vector<8x64xf32>
    %1006 = arith.truncf %1005 : vector<8x64xf32> to vector<8x64xbf16>
    %cst_379 = arith.constant dense<0.000000e+00> : vector<8x32xf32>
    %1007 = tpu.matmul %1006, %985, %cst_379 {dimension_numbers = #tpu.dot_dimension_numbers<[1], [0], [0], [1], [0, 0, 1, 1], [], []>} : vector<8x64xbf16>, vector<64x32xbf16>, vector<8x32xf32> -> vector<8x32xf32>
    %1008 = vector.broadcast %978 : vector<1x32xf32> to vector<8x32xf32>
    %1009 = arith.addf %1007, %1008 : vector<8x32xf32>
    %cst_380 = arith.constant dense<0.000000e+00> : vector<8xf32>
    %1010 = vector.multi_reduction <add>, %1009, %cst_380 [1] : vector<8x32xf32> to vector<8xf32>
    %1011 = vector.shape_cast %1010 : vector<8xf32> to vector<8x1xf32>
    %cst_381 = arith.constant 3.200000e+01 : f32
    %1012 = vector.broadcast %cst_381 : f32 to vector<8x1xf32>
    %1013 = arith.divf %1011, %1012 : vector<8x1xf32>
    %1014 = vector.broadcast %1013 : vector<8x1xf32> to vector<8x32xf32>
    %1015 = arith.subf %1009, %1014 : vector<8x32xf32>
    %1016 = arith.mulf %1015, %1015 : vector<8x32xf32>
    %cst_382 = arith.constant dense<0.000000e+00> : vector<8xf32>
    %1017 = vector.multi_reduction <add>, %1016, %cst_382 [1] : vector<8x32xf32> to vector<8xf32>
    %1018 = vector.shape_cast %1017 : vector<8xf32> to vector<8x1xf32>
    %cst_383 = arith.constant 3.200000e+01 : f32
    %1019 = vector.broadcast %cst_383 : f32 to vector<8x1xf32>
    %1020 = arith.divf %1018, %1019 : vector<8x1xf32>
    %1021 = vector.broadcast %1013 : vector<8x1xf32> to vector<8x32xf32>
    %1022 = arith.subf %1009, %1021 : vector<8x32xf32>
    %cst_384 = arith.constant 9.99999974E-6 : f32
    %1023 = vector.broadcast %cst_384 : f32 to vector<8x1xf32>
    %1024 = arith.addf %1020, %1023 : vector<8x1xf32>
    %1025 = math.rsqrt %1024 : vector<8x1xf32>
    %1026 = vector.broadcast %1025 : vector<8x1xf32> to vector<8x32xf32>
    %1027 = arith.mulf %1022, %1026 : vector<8x32xf32>
    %1028 = vector.broadcast %982 : vector<1x32xf32> to vector<8x32xf32>
    %1029 = arith.mulf %1027, %1028 : vector<8x32xf32>
    %1030 = vector.broadcast %981 : vector<1x32xf32> to vector<8x32xf32>
    %1031 = arith.addf %1029, %1030 : vector<8x32xf32>
    %1032 = arith.truncf %1031 : vector<8x32xf32> to vector<8x32xbf16>
    %cst_385 = arith.constant dense<0.000000e+00> : vector<8x32xf32>
    %1033 = tpu.matmul %1032, %986, %cst_385 {dimension_numbers = #tpu.dot_dimension_numbers<[1], [0], [0], [1], [0, 0, 1, 1], [], []>} : vector<8x32xbf16>, vector<32x32xbf16>, vector<8x32xf32> -> vector<8x32xf32>
    %1034 = vector.broadcast %979 : vector<1x32xf32> to vector<8x32xf32>
    %1035 = arith.addf %1033, %1034 : vector<8x32xf32>
    %cst_386 = arith.constant 5.000000e-01 : f32
    %1036 = vector.broadcast %cst_386 : f32 to vector<8x32xf32>
    %1037 = arith.mulf %1036, %1035 : vector<8x32xf32>
    %cst_387 = arith.constant 0.707106769 : f32
    %1038 = vector.broadcast %cst_387 : f32 to vector<8x32xf32>
    %1039 = arith.mulf %1035, %1038 : vector<8x32xf32>
    %1040 = math.erf %1039 : vector<8x32xf32>
    %cst_388 = arith.constant 1.000000e+00 : f32
    %1041 = vector.broadcast %cst_388 : f32 to vector<8x32xf32>
    %1042 = arith.addf %1041, %1040 : vector<8x32xf32>
    %1043 = arith.mulf %1037, %1042 : vector<8x32xf32>
    %1044 = arith.truncf %1043 : vector<8x32xf32> to vector<8x32xbf16>
    %cst_389 = arith.constant dense<0.000000e+00> : vector<8x1xf32>
    %1045 = tpu.matmul %1044, %987, %cst_389 {dimension_numbers = #tpu.dot_dimension_numbers<[1], [0], [0], [1], [0, 0, 1, 1], [], []>} : vector<8x32xbf16>, vector<32x1xbf16>, vector<8x1xf32> -> vector<8x1xf32>
    %1046 = vector.broadcast %980 : vector<1x1xf32> to vector<8x1xf32>
    %1047 = arith.addf %1045, %1046 : vector<8x1xf32>
    %cst_390 = arith.constant 0.000000e+00 : f32
    %1048 = vector.broadcast %cst_390 : f32 to vector<8x1xf32>
    %1049 = arith.subf %1048, %1047 : vector<8x1xf32>
    %1050 = math.exp %1049 : vector<8x1xf32>
    %cst_391 = arith.constant 1.000000e+00 : f32
    %1051 = vector.broadcast %cst_391 : f32 to vector<8x1xf32>
    %1052 = arith.addf %1051, %1050 : vector<8x1xf32>
    %cst_392 = arith.constant 1.000000e+00 : f32
    %1053 = vector.broadcast %cst_392 : f32 to vector<8x1xf32>
    %1054 = arith.divf %1053, %1052 : vector<8x1xf32>
    %1055 = tpu.concatenate %976, %1054 in 1 : vector<8x1xf32>, vector<8x1xf32> -> vector<8x2xf32>
    %c0_393 = arith.constant 0 : index
    %c0_394 = arith.constant 0 : index
    %c0_395 = arith.constant 0 : index
    %1056 = vector.load %arg77[%c0_393, %c0_394, %c0_395] : memref<1x8x2xf32, #tpu.memory_space<vmem>>, vector<1x8x2xf32>
    %1057 = vector.shape_cast %1056 : vector<1x8x2xf32> to vector<8x2xf32>
    %1058 = vector.shape_cast %1055 : vector<8x2xf32> to vector<1x8x2xf32>
    tpu.vector_store %arg77[%c0_393, %c0_394, %c0_395], %1058 {strides = array<i32>} : memref<1x8x2xf32, #tpu.memory_space<vmem>>, vector<1x8x2xf32>,
    return
  }
  func.func @transform_0(%arg0: i32) -> (i32, i32, i32) {
    %c0_i32 = arith.constant 0 : i32
    %c0_i32_0 = arith.constant 0 : i32
    %c0_i32_1 = arith.constant 0 : i32
    return %arg0, %c0_i32, %c0_i32_0 : i32, i32, i32
  }
  func.func @transform_1(%arg0: i32) -> (i32, i32, i32) {
    %c0_i32 = arith.constant 0 : i32
    %c0_i32_0 = arith.constant 0 : i32
    %c0_i32_1 = arith.constant 0 : i32
    return %arg0, %c0_i32, %c0_i32_0 : i32, i32, i32
  }
  func.func @transform_2(%arg0: i32) -> (i32, i32, i32) {
    %c0_i32 = arith.constant 0 : i32
    %c0_i32_0 = arith.constant 0 : i32
    %c0_i32_1 = arith.constant 0 : i32
    return %arg0, %c0_i32, %c0_i32_0 : i32, i32, i32
  }
  func.func @transform_3(%arg0: i32) -> (i32, i32, i32) {
    %c0_i32 = arith.constant 0 : i32
    %c0_i32_0 = arith.constant 0 : i32
    %c0_i32_1 = arith.constant 0 : i32
    return %arg0, %c0_i32, %c0_i32_0 : i32, i32, i32
  }
  func.func @transform_4(%arg0: i32) -> (i32, i32, i32) {
    %c0_i32 = arith.constant 0 : i32
    %c0_i32_0 = arith.constant 0 : i32
    %c0_i32_1 = arith.constant 0 : i32
    return %arg0, %c0_i32, %c0_i32_0 : i32, i32, i32
  }
  func.func @transform_5(%arg0: i32) -> (i32, i32, i32) {
    %c0_i32 = arith.constant 0 : i32
    %c0_i32_0 = arith.constant 0 : i32
    %c0_i32_1 = arith.constant 0 : i32
    return %arg0, %c0_i32, %c0_i32_0 : i32, i32, i32
  }
  func.func @transform_6(%arg0: i32) -> (i32, i32, i32) {
    %c0_i32 = arith.constant 0 : i32
    %c0_i32_0 = arith.constant 0 : i32
    %c0_i32_1 = arith.constant 0 : i32
    return %arg0, %c0_i32, %c0_i32_0 : i32, i32, i32
  }
  func.func @transform_7(%arg0: i32) -> (i32, i32) {
    %c0_i32 = arith.constant 0 : i32
    %c0_i32_0 = arith.constant 0 : i32
    %c0_i32_1 = arith.constant 0 : i32
    return %c0_i32, %c0_i32_0 : i32, i32
  }
  func.func @transform_8(%arg0: i32) -> (i32, i32) {
    %c0_i32 = arith.constant 0 : i32
    %c0_i32_0 = arith.constant 0 : i32
    %c0_i32_1 = arith.constant 0 : i32
    return %c0_i32, %c0_i32_0 : i32, i32
  }
  func.func @transform_9(%arg0: i32) -> (i32, i32) {
    %c0_i32 = arith.constant 0 : i32
    %c0_i32_0 = arith.constant 0 : i32
    %c0_i32_1 = arith.constant 0 : i32
    return %c0_i32, %c0_i32_0 : i32, i32
  }
  func.func @transform_10(%arg0: i32) -> (i32, i32) {
    %c0_i32 = arith.constant 0 : i32
    %c0_i32_0 = arith.constant 0 : i32
    %c0_i32_1 = arith.constant 0 : i32
    return %c0_i32, %c0_i32_0 : i32, i32
  }
  func.func @transform_11(%arg0: i32) -> (i32, i32) {
    %c0_i32 = arith.constant 0 : i32
    %c0_i32_0 = arith.constant 0 : i32
    %c0_i32_1 = arith.constant 0 : i32
    return %c0_i32, %c0_i32_0 : i32, i32
  }
  func.func @transform_12(%arg0: i32) -> (i32, i32) {
    %c0_i32 = arith.constant 0 : i32
    %c0_i32_0 = arith.constant 0 : i32
    %c0_i32_1 = arith.constant 0 : i32
    return %c0_i32, %c0_i32_0 : i32, i32
  }
  func.func @transform_13(%arg0: i32) -> (i32, i32) {
    %c0_i32 = arith.constant 0 : i32
    %c0_i32_0 = arith.constant 0 : i32
    %c0_i32_1 = arith.constant 0 : i32
    return %c0_i32, %c0_i32_0 : i32, i32
  }
  func.func @transform_14(%arg0: i32) -> (i32, i32) {
    %c0_i32 = arith.constant 0 : i32
    %c0_i32_0 = arith.constant 0 : i32
    %c0_i32_1 = arith.constant 0 : i32
    return %c0_i32, %c0_i32_0 : i32, i32
  }
  func.func @transform_15(%arg0: i32) -> (i32, i32) {
    %c0_i32 = arith.constant 0 : i32
    %c0_i32_0 = arith.constant 0 : i32
    %c0_i32_1 = arith.constant 0 : i32
    return %c0_i32, %c0_i32_0 : i32, i32
  }
  func.func @transform_16(%arg0: i32) -> (i32, i32) {
    %c0_i32 = arith.constant 0 : i32
    %c0_i32_0 = arith.constant 0 : i32
    %c0_i32_1 = arith.constant 0 : i32
    return %c0_i32, %c0_i32_0 : i32, i32
  }
  func.func @transform_17(%arg0: i32) -> (i32, i32) {
    %c0_i32 = arith.constant 0 : i32
    %c0_i32_0 = arith.constant 0 : i32
    %c0_i32_1 = arith.constant 0 : i32
    return %c0_i32, %c0_i32_0 : i32, i32
  }
  func.func @transform_18(%arg0: i32) -> (i32, i32, i32) {
    %c0_i32 = arith.constant 0 : i32
    %c0_i32_0 = arith.constant 0 : i32
    %c0_i32_1 = arith.constant 0 : i32
    %c0_i32_2 = arith.constant 0 : i32
    return %c0_i32, %c0_i32_0, %c0_i32_1 : i32, i32, i32
  }
  func.func @transform_19(%arg0: i32) -> (i32, i32, i32) {
    %c0_i32 = arith.constant 0 : i32
    %c0_i32_0 = arith.constant 0 : i32
    %c0_i32_1 = arith.constant 0 : i32
    %c0_i32_2 = arith.constant 0 : i32
    return %c0_i32, %c0_i32_0, %c0_i32_1 : i32, i32, i32
  }
  func.func @transform_20(%arg0: i32) -> (i32, i32, i32) {
    %c0_i32 = arith.constant 0 : i32
    %c0_i32_0 = arith.constant 0 : i32
    %c0_i32_1 = arith.constant 0 : i32
    %c0_i32_2 = arith.constant 0 : i32
    return %c0_i32, %c0_i32_0, %c0_i32_1 : i32, i32, i32
  }
  func.func @transform_21(%arg0: i32) -> (i32, i32, i32) {
    %c0_i32 = arith.constant 0 : i32
    %c0_i32_0 = arith.constant 0 : i32
    %c0_i32_1 = arith.constant 0 : i32
    %c0_i32_2 = arith.constant 0 : i32
    return %c0_i32, %c0_i32_0, %c0_i32_1 : i32, i32, i32
  }
  func.func @transform_22(%arg0: i32) -> (i32, i32, i32) {
    %c0_i32 = arith.constant 0 : i32
    %c0_i32_0 = arith.constant 0 : i32
    %c0_i32_1 = arith.constant 0 : i32
    %c0_i32_2 = arith.constant 0 : i32
    return %c0_i32, %c0_i32_0, %c0_i32_1 : i32, i32, i32
  }
  func.func @transform_23(%arg0: i32) -> (i32, i32, i32) {
    %c0_i32 = arith.constant 0 : i32
    %c0_i32_0 = arith.constant 0 : i32
    %c0_i32_1 = arith.constant 0 : i32
    %c0_i32_2 = arith.constant 0 : i32
    return %c0_i32, %c0_i32_0, %c0_i32_1 : i32, i32, i32
  }
  func.func @transform_24(%arg0: i32) -> (i32, i32, i32) {
    %c0_i32 = arith.constant 0 : i32
    %c0_i32_0 = arith.constant 0 : i32
    %c0_i32_1 = arith.constant 0 : i32
    %c0_i32_2 = arith.constant 0 : i32
    return %c0_i32, %c0_i32_0, %c0_i32_1 : i32, i32, i32
  }
  func.func @transform_25(%arg0: i32) -> (i32, i32, i32) {
    %c0_i32 = arith.constant 0 : i32
    %c0_i32_0 = arith.constant 0 : i32
    %c0_i32_1 = arith.constant 0 : i32
    %c0_i32_2 = arith.constant 0 : i32
    return %c0_i32, %c0_i32_0, %c0_i32_1 : i32, i32, i32
  }
  func.func @transform_26(%arg0: i32) -> (i32, i32, i32) {
    %c0_i32 = arith.constant 0 : i32
    %c0_i32_0 = arith.constant 0 : i32
    %c0_i32_1 = arith.constant 0 : i32
    %c0_i32_2 = arith.constant 0 : i32
    return %c0_i32, %c0_i32_0, %c0_i32_1 : i32, i32, i32
  }
  func.func @transform_27(%arg0: i32) -> (i32, i32, i32) {
    %c0_i32 = arith.constant 0 : i32
    %c0_i32_0 = arith.constant 0 : i32
    %c0_i32_1 = arith.constant 0 : i32
    %c0_i32_2 = arith.constant 0 : i32
    return %c0_i32, %c0_i32_0, %c0_i32_1 : i32, i32, i32
  }
  func.func @transform_28(%arg0: i32) -> (i32, i32, i32) {
    %c0_i32 = arith.constant 0 : i32
    %c0_i32_0 = arith.constant 0 : i32
    %c0_i32_1 = arith.constant 0 : i32
    %c0_i32_2 = arith.constant 0 : i32
    return %c0_i32, %c0_i32_0, %c0_i32_1 : i32, i32, i32
  }
  func.func @transform_29(%arg0: i32) -> (i32, i32, i32) {
    %c0_i32 = arith.constant 0 : i32
    %c0_i32_0 = arith.constant 0 : i32
    %c0_i32_1 = arith.constant 0 : i32
    %c0_i32_2 = arith.constant 0 : i32
    return %c0_i32, %c0_i32_0, %c0_i32_1 : i32, i32, i32
  }
  func.func @transform_30(%arg0: i32) -> (i32, i32, i32) {
    %c0_i32 = arith.constant 0 : i32
    %c0_i32_0 = arith.constant 0 : i32
    %c0_i32_1 = arith.constant 0 : i32
    %c0_i32_2 = arith.constant 0 : i32
    return %c0_i32, %c0_i32_0, %c0_i32_1 : i32, i32, i32
  }
  func.func @transform_31(%arg0: i32) -> (i32, i32, i32) {
    %c0_i32 = arith.constant 0 : i32
    %c0_i32_0 = arith.constant 0 : i32
    %c0_i32_1 = arith.constant 0 : i32
    %c0_i32_2 = arith.constant 0 : i32
    return %c0_i32, %c0_i32_0, %c0_i32_1 : i32, i32, i32
  }
  func.func @transform_32(%arg0: i32) -> (i32, i32) {
    %c0_i32 = arith.constant 0 : i32
    %c0_i32_0 = arith.constant 0 : i32
    %c0_i32_1 = arith.constant 0 : i32
    return %c0_i32, %c0_i32_0 : i32, i32
  }
  func.func @transform_33(%arg0: i32) -> (i32, i32) {
    %c0_i32 = arith.constant 0 : i32
    %c0_i32_0 = arith.constant 0 : i32
    %c0_i32_1 = arith.constant 0 : i32
    return %c0_i32, %c0_i32_0 : i32, i32
  }
  func.func @transform_34(%arg0: i32) -> (i32, i32) {
    %c0_i32 = arith.constant 0 : i32
    %c0_i32_0 = arith.constant 0 : i32
    %c0_i32_1 = arith.constant 0 : i32
    return %c0_i32, %c0_i32_0 : i32, i32
  }
  func.func @transform_35(%arg0: i32) -> (i32, i32) {
    %c0_i32 = arith.constant 0 : i32
    %c0_i32_0 = arith.constant 0 : i32
    %c0_i32_1 = arith.constant 0 : i32
    return %c0_i32, %c0_i32_0 : i32, i32
  }
  func.func @transform_36(%arg0: i32) -> (i32, i32) {
    %c0_i32 = arith.constant 0 : i32
    %c0_i32_0 = arith.constant 0 : i32
    %c0_i32_1 = arith.constant 0 : i32
    return %c0_i32, %c0_i32_0 : i32, i32
  }
  func.func @transform_37(%arg0: i32) -> (i32, i32) {
    %c0_i32 = arith.constant 0 : i32
    %c0_i32_0 = arith.constant 0 : i32
    %c0_i32_1 = arith.constant 0 : i32
    return %c0_i32, %c0_i32_0 : i32, i32
  }
  func.func @transform_38(%arg0: i32) -> (i32, i32) {
    %c0_i32 = arith.constant 0 : i32
    %c0_i32_0 = arith.constant 0 : i32
    %c0_i32_1 = arith.constant 0 : i32
    return %c0_i32, %c0_i32_0 : i32, i32
  }
  func.func @transform_39(%arg0: i32) -> (i32, i32) {
    %c0_i32 = arith.constant 0 : i32
    %c0_i32_0 = arith.constant 0 : i32
    %c0_i32_1 = arith.constant 0 : i32
    return %c0_i32, %c0_i32_0 : i32, i32
  }
  func.func @transform_40(%arg0: i32) -> (i32, i32) {
    %c0_i32 = arith.constant 0 : i32
    %c0_i32_0 = arith.constant 0 : i32
    %c0_i32_1 = arith.constant 0 : i32
    return %c0_i32, %c0_i32_0 : i32, i32
  }
  func.func @transform_41(%arg0: i32) -> (i32, i32) {
    %c0_i32 = arith.constant 0 : i32
    %c0_i32_0 = arith.constant 0 : i32
    %c0_i32_1 = arith.constant 0 : i32
    return %c0_i32, %c0_i32_0 : i32, i32
  }
  func.func @transform_42(%arg0: i32) -> (i32, i32) {
    %c0_i32 = arith.constant 0 : i32
    %c0_i32_0 = arith.constant 0 : i32
    %c0_i32_1 = arith.constant 0 : i32
    return %c0_i32, %c0_i32_0 : i32, i32
  }
  func.func @transform_43(%arg0: i32) -> (i32, i32) {
    %c0_i32 = arith.constant 0 : i32
    %c0_i32_0 = arith.constant 0 : i32
    %c0_i32_1 = arith.constant 0 : i32
    return %c0_i32, %c0_i32_0 : i32, i32
  }
  func.func @transform_44(%arg0: i32) -> (i32, i32) {
    %c0_i32 = arith.constant 0 : i32
    %c0_i32_0 = arith.constant 0 : i32
    %c0_i32_1 = arith.constant 0 : i32
    return %c0_i32, %c0_i32_0 : i32, i32
  }
  func.func @transform_45(%arg0: i32) -> (i32, i32) {
    %c0_i32 = arith.constant 0 : i32
    %c0_i32_0 = arith.constant 0 : i32
    %c0_i32_1 = arith.constant 0 : i32
    return %c0_i32, %c0_i32_0 : i32, i32
  }
  func.func @transform_46(%arg0: i32) -> (i32, i32) {
    %c0_i32 = arith.constant 0 : i32
    %c0_i32_0 = arith.constant 0 : i32
    %c0_i32_1 = arith.constant 0 : i32
    return %c0_i32, %c0_i32_0 : i32, i32
  }
  func.func @transform_47(%arg0: i32) -> (i32, i32) {
    %c0_i32 = arith.constant 0 : i32
    %c0_i32_0 = arith.constant 0 : i32
    %c0_i32_1 = arith.constant 0 : i32
    return %c0_i32, %c0_i32_0 : i32, i32
  }
  func.func @transform_48(%arg0: i32) -> (i32, i32) {
    %c0_i32 = arith.constant 0 : i32
    %c0_i32_0 = arith.constant 0 : i32
    %c0_i32_1 = arith.constant 0 : i32
    return %c0_i32, %c0_i32_0 : i32, i32
  }
  func.func @transform_49(%arg0: i32) -> (i32, i32) {
    %c0_i32 = arith.constant 0 : i32
    %c0_i32_0 = arith.constant 0 : i32
    %c0_i32_1 = arith.constant 0 : i32
    return %c0_i32, %c0_i32_0 : i32, i32
  }
  func.func @transform_50(%arg0: i32) -> (i32, i32) {
    %c0_i32 = arith.constant 0 : i32
    %c0_i32_0 = arith.constant 0 : i32
    %c0_i32_1 = arith.constant 0 : i32
    return %c0_i32, %c0_i32_0 : i32, i32
  }
  func.func @transform_51(%arg0: i32) -> (i32, i32) {
    %c0_i32 = arith.constant 0 : i32
    %c0_i32_0 = arith.constant 0 : i32
    %c0_i32_1 = arith.constant 0 : i32
    return %c0_i32, %c0_i32_0 : i32, i32
  }
  func.func @transform_52(%arg0: i32) -> (i32, i32) {
    %c0_i32 = arith.constant 0 : i32
    %c0_i32_0 = arith.constant 0 : i32
    %c0_i32_1 = arith.constant 0 : i32
    return %c0_i32, %c0_i32_0 : i32, i32
  }
  func.func @transform_53(%arg0: i32) -> (i32, i32) {
    %c0_i32 = arith.constant 0 : i32
    %c0_i32_0 = arith.constant 0 : i32
    %c0_i32_1 = arith.constant 0 : i32
    return %c0_i32, %c0_i32_0 : i32, i32
  }
  func.func @transform_54(%arg0: i32) -> (i32, i32) {
    %c0_i32 = arith.constant 0 : i32
    %c0_i32_0 = arith.constant 0 : i32
    %c0_i32_1 = arith.constant 0 : i32
    return %c0_i32, %c0_i32_0 : i32, i32
  }
  func.func @transform_55(%arg0: i32) -> (i32, i32) {
    %c0_i32 = arith.constant 0 : i32
    %c0_i32_0 = arith.constant 0 : i32
    %c0_i32_1 = arith.constant 0 : i32
    return %c0_i32, %c0_i32_0 : i32, i32
  }
  func.func @transform_56(%arg0: i32) -> (i32, i32) {
    %c0_i32 = arith.constant 0 : i32
    %c0_i32_0 = arith.constant 0 : i32
    %c0_i32_1 = arith.constant 0 : i32
    return %c0_i32, %c0_i32_0 : i32, i32
  }
  func.func @transform_57(%arg0: i32) -> (i32, i32) {
    %c0_i32 = arith.constant 0 : i32
    %c0_i32_0 = arith.constant 0 : i32
    %c0_i32_1 = arith.constant 0 : i32
    return %c0_i32, %c0_i32_0 : i32, i32
  }
  func.func @transform_58(%arg0: i32) -> (i32, i32) {
    %c0_i32 = arith.constant 0 : i32
    %c0_i32_0 = arith.constant 0 : i32
    %c0_i32_1 = arith.constant 0 : i32
    return %c0_i32, %c0_i32_0 : i32, i32
  }
  func.func @transform_59(%arg0: i32) -> (i32, i32) {
    %c0_i32 = arith.constant 0 : i32
    %c0_i32_0 = arith.constant 0 : i32
    %c0_i32_1 = arith.constant 0 : i32
    return %c0_i32, %c0_i32_0 : i32, i32
  }
  func.func @transform_60(%arg0: i32) -> (i32, i32) {
    %c0_i32 = arith.constant 0 : i32
    %c0_i32_0 = arith.constant 0 : i32
    %c0_i32_1 = arith.constant 0 : i32
    return %c0_i32, %c0_i32_0 : i32, i32
  }
  func.func @transform_61(%arg0: i32) -> (i32, i32) {
    %c0_i32 = arith.constant 0 : i32
    %c0_i32_0 = arith.constant 0 : i32
    %c0_i32_1 = arith.constant 0 : i32
    return %c0_i32, %c0_i32_0 : i32, i32
  }
  func.func @transform_62(%arg0: i32) -> (i32, i32) {
    %c0_i32 = arith.constant 0 : i32
    %c0_i32_0 = arith.constant 0 : i32
    %c0_i32_1 = arith.constant 0 : i32
    return %c0_i32, %c0_i32_0 : i32, i32
  }
  func.func @transform_63(%arg0: i32) -> (i32, i32, i32) {
    %c0_i32 = arith.constant 0 : i32
    %c0_i32_0 = arith.constant 0 : i32
    %c0_i32_1 = arith.constant 0 : i32
    %c0_i32_2 = arith.constant 0 : i32
    return %c0_i32, %c0_i32_0, %c0_i32_1 : i32, i32, i32
  }
  func.func @transform_64(%arg0: i32) -> (i32, i32, i32) {
    %c0_i32 = arith.constant 0 : i32
    %c0_i32_0 = arith.constant 0 : i32
    %c0_i32_1 = arith.constant 0 : i32
    %c0_i32_2 = arith.constant 0 : i32
    return %c0_i32, %c0_i32_0, %c0_i32_1 : i32, i32, i32
  }
  func.func @transform_65(%arg0: i32) -> (i32, i32, i32) {
    %c0_i32 = arith.constant 0 : i32
    %c0_i32_0 = arith.constant 0 : i32
    %c0_i32_1 = arith.constant 0 : i32
    %c0_i32_2 = arith.constant 0 : i32
    return %c0_i32, %c0_i32_0, %c0_i32_1 : i32, i32, i32
  }
  func.func @transform_66(%arg0: i32) -> (i32, i32, i32) {
    %c0_i32 = arith.constant 0 : i32
    %c0_i32_0 = arith.constant 0 : i32
    %c0_i32_1 = arith.constant 0 : i32
    %c0_i32_2 = arith.constant 0 : i32
    return %c0_i32, %c0_i32_0, %c0_i32_1 : i32, i32, i32
  }
  func.func @transform_67(%arg0: i32) -> (i32, i32, i32) {
    %c0_i32 = arith.constant 0 : i32
    %c0_i32_0 = arith.constant 0 : i32
    %c0_i32_1 = arith.constant 0 : i32
    %c0_i32_2 = arith.constant 0 : i32
    return %c0_i32, %c0_i32_0, %c0_i32_1 : i32, i32, i32
  }
  func.func @transform_68(%arg0: i32) -> (i32, i32, i32) {
    %c0_i32 = arith.constant 0 : i32
    %c0_i32_0 = arith.constant 0 : i32
    %c0_i32_1 = arith.constant 0 : i32
    %c0_i32_2 = arith.constant 0 : i32
    return %c0_i32, %c0_i32_0, %c0_i32_1 : i32, i32, i32
  }
  func.func @transform_69(%arg0: i32) -> (i32, i32, i32) {
    %c0_i32 = arith.constant 0 : i32
    %c0_i32_0 = arith.constant 0 : i32
    %c0_i32_1 = arith.constant 0 : i32
    %c0_i32_2 = arith.constant 0 : i32
    return %c0_i32, %c0_i32_0, %c0_i32_1 : i32, i32, i32
  }
  func.func @transform_70(%arg0: i32) -> (i32, i32) {
    %c0_i32 = arith.constant 0 : i32
    %c0_i32_0 = arith.constant 0 : i32
    %c0_i32_1 = arith.constant 0 : i32
    return %c0_i32, %c0_i32_0 : i32, i32
  }
  func.func @transform_71(%arg0: i32) -> (i32, i32) {
    %c0_i32 = arith.constant 0 : i32
    %c0_i32_0 = arith.constant 0 : i32
    %c0_i32_1 = arith.constant 0 : i32
    return %c0_i32, %c0_i32_0 : i32, i32
  }
  func.func @transform_72(%arg0: i32) -> (i32, i32) {
    %c0_i32 = arith.constant 0 : i32
    %c0_i32_0 = arith.constant 0 : i32
    %c0_i32_1 = arith.constant 0 : i32
    return %c0_i32, %c0_i32_0 : i32, i32
  }
  func.func @transform_73(%arg0: i32) -> (i32, i32) {
    %c0_i32 = arith.constant 0 : i32
    %c0_i32_0 = arith.constant 0 : i32
    %c0_i32_1 = arith.constant 0 : i32
    return %c0_i32, %c0_i32_0 : i32, i32
  }
  func.func @transform_74(%arg0: i32) -> (i32, i32) {
    %c0_i32 = arith.constant 0 : i32
    %c0_i32_0 = arith.constant 0 : i32
    %c0_i32_1 = arith.constant 0 : i32
    return %c0_i32, %c0_i32_0 : i32, i32
  }
  func.func @transform_75(%arg0: i32) -> (i32, i32) {
    %c0_i32 = arith.constant 0 : i32
    %c0_i32_0 = arith.constant 0 : i32
    %c0_i32_1 = arith.constant 0 : i32
    return %c0_i32, %c0_i32_0 : i32, i32
  }
  func.func @transform_76(%arg0: i32) -> (i32, i32, i32) {
    %c0_i32 = arith.constant 0 : i32
    %c0_i32_0 = arith.constant 0 : i32
    %c0_i32_1 = arith.constant 0 : i32
    return %arg0, %c0_i32, %c0_i32_0 : i32, i32, i32
  }
}

</mosaic_0001>

<bundles_post_ra>
// kernel: custom-call.11
= control target key start
LH: loop header
LB: loop body
LE: loop exit
PB: predicated region body
PF: predicated region fallthrough
CT: control target
= control target key end

     0   :  { %5 = vsyncpa [#allocation6], 0  ;;  %s909_s0 = inlined_call_operand.vmem [shape: f32[2,3,3], index: 0, kind: input, shape index: {}]   ;;  %s910_s1 = inlined_call_operand.vmem [shape: f32[2,3,3], index: 1, kind: output, shape index: {0}]   ;;  %s911_s2 = inlined_call_operand.hbm [shape: s32[2,3], index: 2, kind: output, shape index: {1}]   ;;  %s912_s3 = inlined_call_operand.vmem [shape: s32[2,3], index: 3, kind: output, shape index: {2}]  }
   0x1   :  { %7 = vsyncpa [#allocation6 + $0x1], 0  ;;  %s726_s12 = smov 0   ;;  %s728_s13 = smov 0  }
   0x2   :  { %s730_s14 = smov 0   ;;  %s732_s15 = smov 0  }
   0x3 LB: > { %s747_s16 = sadd.s32 4294967295, %s698_s15   ;;  %s563_s17 = sadd.s32 4294967294, %s698_s15   ;;  %s698_s15 = sphi %s732_s15, %s920_s15   ;;  %s694_s14 = sphi %s730_s14, %s919_s14   ;;  %s690_s13 = sphi %s728_s13, %s918_s13   ;;  %s686_s12 = sphi %s726_s12, %s917_s12  }
   0x4   : > { %s751_s18 = sadd.s32 1, %s698_s15   ;;  %s17_s19 = sshrl.u32 %s698_s15, 3 }
   0x5   : > { %s18_s20 = sshrl.u32 %s751_s18, 3  ;;  %s22_s21 = sadd.s32 1, %s694_s14 }
   0x6   : > { %s19_s22 = ssub.s32 %s17_s19, %s18_s20  ;;  %p32_p0 = scmp.ne.s32.totalorder %s694_s14, %s690_s13 }
   0x7   : > { %p20_p1 = scmp.eq.s32.totalorder %s19_s22, 0  ;;  %p33_p2 = scmp.eq.s32.totalorder %s747_s16, 1 }
   0x8   : > { %p38_p3 = scmp.ne.s32.totalorder %s690_s13, %s686_s12  ;;  %p39_p4 = scmp.eq.s32.totalorder %s563_s17, 1 }
   0x9   : > { %s762_s23 = scalar_select %p20_p1, %s694_s14, %s22_s21  }
   0xa   : > { %p764_p5 = por %p33_p2, %p32_p0  ;;  %p768_p6 = por %p39_p4, %p38_p3 }
   0xb   : > { %p565_p7 = scmp.ge.s32.totalorder %s698_s15, 2 }
   0xc   : > { %s85_s26 = sand.u32 (!%p565_p7), 1, %s698_s15   ;;  %s567_s27 = sshll.u32 (!%p565_p7), %s698_s15, 2 }
   0xd   : > { %83 = sbr.rel (%p565_p7) target bundleno = 20 (0x14), region = 16  ;;  %s566_s28 = sshll.u32 (!%p565_p7), %s85_s26, 2 }
   0xe   : > { %s89_s4 = scalar_lea.vmem (!%p565_p7), %s909_s0, %s567_s27  ;;  %s87_s5 = scalar_lea.vmem (!%p565_p7), [#allocation1], %s566_s28 }
  0x12   : > { %v106_v0 = vld [vmem:[%s89_s4] sm:$0xf] }
  0x13   : > { %107 = vst [vmem:[%s87_s5] sm:$0xf] %v106_v0 }
  0x14 PF: > { %p568_p8 = scmp.ge.s32.totalorder %s698_s15, 1  ;;  %p124_p9 = scmp.lt.s32.totalorder %s698_s15, 3 }
  0x16   : > { %p125_p10 = pnand %p568_p8, %p124_p9 }
  0x18   : > { %128 = sbr.rel (%p125_p10) target bundleno = 446 (0x1be), region = 50 }
  0x1d   : > { %s135_s6 = sand.u32 1, %s747_s16   ;;  %s146_s7 = sand.u32 1, %s690_s13   ;;  %v169_v1 = vlaneseq  ;;  %v704_v4 = vmov 0  }
  0x1e   : > { %s784_s8 = sshll.u32 %s135_s6, 2  ;;  %s788_s9 = sshll.u32 %s146_s7, 1 }
  0x1f   : > { %v791_v2 = vshrl.u32 %v169_v1, 7  ;;  %s137_s10 = scalar_lea.vmem [#allocation1], %s784_s8  ;;  %s164_s11 = sand.u32 7, %s747_s16  }
  0x20   : > { %v158_v3 = vld [vmem:[%s137_s10] sm:$0xf]  ;;  %s796_s17 = scalar_lea.vmem [#allocation4], %s164_s11  ;;  %s141_s19 = scalar_lea.vmem [#allocation3], %s784_s8 }
  0x21   : > { %159 = vst [vmem:[#allocation0] sm:$0xf] %v158_v3  ;;  %173 = vst [vmem:[#allocation9] sm:$0xff] %v791_v2  ;;  %s148_s20 = scalar_lea.vmem [#allocation5], %s788_s9  ;;  %s154_s21 = scalar_lea.vmem [#allocation8], %s788_s9 }
  0x22   : > { %168 = vst [vmem:[%s796_s17] sm:$0x1] %v704_v4  ;;  %s802_s22 = scalar_lea.vmem [#allocation7], %s164_s11  ;;  %s804_s26 = smov 0  }
  0x28   : > { %v162_v5 = vld [vmem:[#allocation0] sm:$0xff] }
  0x29   : > { %163 = vst [vmem:[#allocation2] sm:$0xff] %v162_v5 }
  0x2a LB: >> { %vm189_vm0 = vcmp.lt.s32.totalorder %v791_v2, 3  ;;  %v811_v8 = vstv %s702_s26  ;;  %s230_s27 = ssub.s32 128, %s702_s26  ;;  %v236_v38 = vand.u32 127, %v169_v1  ;;  %v239_v40 = vld [vmem:[%s796_s17] ss:$0 sm:$0xff]  ;;  %s242_s28 = scalar_lea.vmem [#allocation2], %s702_s26  ;;  %s702_s26 = sphi %s804_s26, %s179_s26  }
  0x2b   : >> { %vm188_vm1 = vcmp.ge.s32.totalorder %v791_v2, %v811_v8  ;;  %s248_s30 = scalar_lea.vmem [#allocation9], %s702_s26  ;;  %vm268_vm15 = vcmp.gt.s32.totalorder %v791_v2, %v811_v8  ;;  %s179_s26 = sadd.s32 1, %s702_s26  }
  0x2c   : >> { %vm190_vm3 = vmand %vm188_vm1, %vm189_vm0  ;;  %vm260_vm12 = vcmp.gt.s32.totalorder %v236_v38, %v811_v8  ;;  %vm237_vm13 = vcmp.eq.s32.totalorder %v236_v38, %v811_v8  ;;  %v250_v42 = vld [vmem:[%s248_s30] ss:$0 sm:$0xff]  ;;  %p176_p11 = scmp.ge.s32.totalorder %s179_s26, 3  }
  0x2d   : >> { %vm272_vm1 = vmand %vm268_vm15, %vm237_vm13  ;;  %s913_s6 = sshrl.u32 (%p176_p11), %s747_s16, 3  ;;  %s577_s10 = sshll.u32 (%p176_p11), %s747_s16, 2 }
  0x2e   : > { %s578_s11 = sshll.u32 (%p176_p11), %s913_s6, 5 }
  0x30   : >> { %v184_v6 = vld [vmem:[#allocation2] sm:$0xff]  ;;  %v244_v41 = vld [vmem:[%s242_s28] ss:$0 sm:$0xff] }
  0x31   : >> { %v185_v7 = vand.u32 2147483647, %v184_v6 }
  0x33   : >> { %vm573_vm2 = vcmp.gt.f32.partialorder %v185_v7, -inf }
  0x34   : >> { %vm192_vm4 = vmand %vm190_vm3, %vm573_vm2 }
  0x35   : >> { %v193_v9 = vsel %vm192_vm4, %v791_v2, %v811_v8  ;;  %v194_v10 = vsel %vm192_vm4, %v185_v7, -inf }
  0x36   : >> { %v195_v11 = vrot.slane %v194_v10, 1  ;;  %v196_v12 = vrot.slane %v193_v9, 1 }
  0x38   : >> { %vm197_vm5 = vcmp.ge.f32.partialorder %v195_v11, %v194_v10  ;;  %v200_v13 = vrot.slane %v195_v11, 1  ;;  %v201_v14 = vrot.slane %v196_v12, 1 }
  0x39   : >> { %v198_v15 = vsel %vm197_vm5, %v195_v11, %v194_v10  ;;  %v199_v16 = vsel %vm197_vm5, %v196_v12, %v193_v9 }
  0x3a   : >> { %vm202_vm6 = vcmp.ge.f32.partialorder %v200_v13, %v198_v15  ;;  %v205_v17 = vrot.slane %v200_v13, 1  ;;  %v206_v18 = vrot.slane %v201_v14, 1 }
  0x3b   : >> { %v203_v19 = vsel %vm202_vm6, %v200_v13, %v198_v15  ;;  %v204_v20 = vsel %vm202_vm6, %v201_v14, %v199_v16 }
  0x3c   : >> { %vm207_vm7 = vcmp.ge.f32.partialorder %v205_v17, %v203_v19  ;;  %v210_v21 = vrot.slane %v205_v17, 1  ;;  %v211_v22 = vrot.slane %v206_v18, 1 }
  0x3d   : >> { %v208_v23 = vsel %vm207_vm7, %v205_v17, %v203_v19  ;;  %v209_v24 = vsel %vm207_vm7, %v206_v18, %v204_v20 }
  0x3e   : >> { %vm212_vm8 = vcmp.ge.f32.partialorder %v210_v21, %v208_v23  ;;  %v215_v25 = vrot.slane %v210_v21, 1  ;;  %v216_v26 = vrot.slane %v211_v22, 1 }
  0x3f   : >> { %v213_v27 = vsel %vm212_vm8, %v210_v21, %v208_v23  ;;  %v214_v28 = vsel %vm212_vm8, %v211_v22, %v209_v24 }
  0x40   : >> { %vm217_vm9 = vcmp.ge.f32.partialorder %v215_v25, %v213_v27  ;;  %v220_v29 = vrot.slane %v215_v25, 1  ;;  %v221_v30 = vrot.slane %v216_v26, 1 }
  0x41   : >> { %v218_v31 = vsel %vm217_vm9, %v215_v25, %v213_v27  ;;  %v219_v32 = vsel %vm217_vm9, %v216_v26, %v214_v28 }
  0x42   : >> { %vm222_vm10 = vcmp.ge.f32.partialorder %v220_v29, %v218_v31  ;;  %v225_v33 = vrot.slane %v220_v29, 1  ;;  %v226_v34 = vrot.slane %v221_v30, 1 }
  0x43   : >> { %v223_v35 = vsel %vm222_vm10, %v220_v29, %v218_v31  ;;  %v224_v36 = vsel %vm222_vm10, %v221_v30, %v219_v32 }
  0x44   : >> { %vm227_vm11 = vcmp.ge.f32.partialorder %v225_v33, %v223_v35 }
  0x45   : >> { %v229_v37 = vsel %vm227_vm11, %v226_v34, %v224_v36 }
  0x46   : >> { %231 = vrot.lane.b32.xlu0 %v229_v37, %s230_s27  ;;  %s849_s27 = scalar_lea.vmem (%p176_p11), %s910_s1, %s577_s10 }
  0xb8   : >> { %v232_v39 = vpop.permute.xlu0 %231 }
  0xb9   : >> { %582 = vpush %v232_v39 }
  0xea   : >> { %s583_s29 = spop %582 }
  0xeb   : >> { %v238_v43 = vstv %s583_s29  ;;  %s243_s4 = scalar_lea.vmem [#allocation2], %s583_s29  ;;  %s249_s5 = scalar_lea.vmem [#allocation9], %s583_s29 }
  0xec   : >> { %v245_v44 = vld [vmem:[%s243_s4] ss:$0 sm:$0xff]  ;;  %v240_v46 = vsel %vm237_vm13, %v238_v43, %v239_v40 }
  0xed   : >> { %v251_v45 = vld [vmem:[%s249_s5] ss:$0 sm:$0xff]  ;;  %246 = vst [vmem:[%s243_s4] sm:$0x1] %v244_v41  ;;  %vm254_vm14 = vcmp.ne.f32.partialorder %v245_v44, 0.0  ;;  %241 = vst [vmem:[%s796_s17] sm:$0x1] %v240_v46  ;;  %v261_v53 = vsel %vm260_vm12, %v245_v44, 0.0 }
  0xee   : >> { %252 = vst [vmem:[%s249_s5] sm:$0x1] %v250_v42  ;;  %247 = vst [vmem:[%s242_s28] sm:$0x1] %v245_v44  ;;  %s410_s4 = sshll.u32 (%p176_p11), %s148_s20, 4  ;;  %s357_s5 = scalar_lea.sflag (%p176_p11), [#allocation6], %s146_s7  ;;  %s411_s4 = int_to_ptr.vmem [resolvable:$true] %s410_s4 }
  0xef   : >> { %253 = vst [vmem:[%s248_s30] sm:$0x1] %v251_v45  ;;  %vm255_vm0 = vmand %vm237_vm13, %vm254_vm14  ;;  %s854_s30 = scalar_lea.hbm (%p176_p11), %s911_s2, %s578_s11  ;;  %s634_s6 = scalar_lea.vmem (%p176_p11), %s411_s4, 32 }
  0xf0   : >> { %v256_v47 = vsel %vm255_vm0, %v245_v44, 1.0  ;;  %p635_p12 = scmp.ne.s32.totalorder (%p176_p11), %s411_s4, %s634_s6  ;;  %s705_s17 = smov (%p176_p11), [#allocation5]  }
  0xf1   : >> { %v269_v48 = vsel %vm268_vm15, %v256_v47, 1.0  ;;  %s638_s10 = sshll.u32 (%p176_p11), %s705_s17, 4  ;;  %s639_s10 = int_to_ptr.vmem [resolvable:$false] %s638_s10 }
  0xf2   : >> { %632 = vrcp.f32 %v269_v48  ;;  %p636_p13 = pnand (%p176_p11), %p635_p12, %p764_p5  ;;  %s640_s26 = scalar_lea.vmem (%p176_p11), %s639_s10, 64 }
  0xf3   : > { %p641_p1 = scmp.lt.s32.totalorder (%p176_p11), %s411_s4, %s639_s10  ;;  %p642_p2 = scmp.lt.s32.totalorder (%p176_p11), %s640_s26, %s634_s6 }
  0xf4   : > { %v340_v59 = vld [vmem:[#allocation4] sm:$0x3] (%p176_p11)  ;;  %p637_p0 = pneg (%p176_p11), %p636_p13 }
  0xf5   : >> { %v265_v50 = vld [vmem:[#allocation2] sm:$0xff]  ;;  %343 = vst [vmem:[%s148_s20] sm:$0x3] (%p176_p11), %v340_v59  ;;  %p643_p3 = por (%p176_p11), %p642_p2, %p641_p1 }
  0xf6   : > { %v279_v57 = vld [vmem:[#allocation9] sm:$0xff] (%p176_p11) }
  0xf7   : > { %p644_p4 = pnand (%p176_p11), %p643_p3, %p637_p0 }
  0xff   : >> { %v633_v49 = vpop.eup %632 }
 0x100   : >> { %v271_v51 = vmul.f32 %v633_v49, %v265_v50 }
 0x102   : >> { %v273_v52 = vsel %vm272_vm1, %v271_v51, 0.0 }
 0x103   : >> { %274 = vadd.xlane.f32.xlu0 %v273_v52 }
 0x130   : > { %295 = vxpose.xlu0.b32.start.end [1/1] (short) (narrow) (%p176_p11), %v279_v57, 8 }
 0x18c   : >> { %v275_v54 = vpop.xlane.xlu0 %274 }
 0x18d   : >> { %v276_v55 = vmul.f32 %v275_v54, %v261_v53  ;;  %178 = sbr.rel (!%p176_p11) target bundleno = 42 (0x2a), region = 202 }
 0x18f   : >> { %v277_v56 = vsub.f32 %v271_v51, %v276_v55 }
 0x191   : >> { %278 = vst [vmem:[#allocation2] sm:$0xff] %v277_v56 }
 0x198   : > { %v332_v58 = vld [vmem:[#allocation2] sm:$0xf] }
 0x199   : > { %335 = vst [vmem:[%s141_s19] sm:$0xf] %v332_v58 }
 0x1a0   : > { %v383_v60 = vld [vmem:[%s141_s19] sm:$0xf] }
 0x1a1   : > { %647 = shalt.err (!%p644_p4)
}
 0x1a2   : > { %s648_s8 = scalar_lea.hbm %s854_s30, 32  ;;  %s652_s20 = scalar_lea.hbm %s911_s2, 32 }
 0x1a3   : > { %p649_p8 = scmp.ne.s32.totalorder %s854_s30, %s648_s8  ;;  %p653_p11 = scmp.lt.s32.totalorder %s854_s30, %s911_s2 }
 0x1a4   : > { %p654_p12 = scmp.lt.s32.totalorder %s652_s20, %s648_s8 }
 0x1a5   : > { %p650_p9 = pnand %p649_p8, %p764_p5 }
 0x1a6   : > { %p655_p13 = por %p654_p12, %p653_p11 }
 0x1a7   : > { %p651_p10 = pneg %p650_p9 }
 0x1a9   : > { %p656_p0 = pnand %p655_p13, %p651_p10 }
 0x1ab   : > { %659 = shalt.err (!%p656_p0)
}
 0x1ac   : > { %584 = dma.vmem_to_hbm [thread:$0]  (%p764_p5), %s411_s4, 32, %s854_s30, %s357_s5   ;;  %384 = vst [vmem:[%s849_s27] sm:$0xf] %v383_v60  ;;  %v311_v61 = vpop.trf.xlu0 }
 0x1ad   : > { %327 = vst [vmem:[%s802_s22] sm:$0x1] %v311_v61  ;;  %s916_s6 = sshrl.u32 (%p764_p5), %s747_s16, 3 }
 0x1ae   : > { %s579_s29 = sshll.u32 (%p764_p5), %s916_s6, 1 }
 0x1af   : > { %s419_s26 = scalar_lea.vmem (%p764_p5), %s912_s3, %s579_s29 }
 0x1b1   : > { %416 = sbr.rel (!%p764_p5) target bundleno = 446 (0x1be), region = 96 }
 0x1b4   : > { %v348_v62 = vld [vmem:[#allocation7] sm:$0x3] }
 0x1b5   : > { %351 = vst [vmem:[%s154_s21] sm:$0x3] %v348_v62 }
 0x1bc   : > { %v436_v63 = vld [vmem:[%s154_s21] sm:$0x3] }
 0x1bd   : > { %437 = vst [vmem:[%s419_s26] sm:$0x3] %v436_v63 }
 0x1be PF: > { %s465_s22 = sand.u32 1, %s686_s12   ;;  %p587_p5 = pnand %p565_p7, %p768_p6 }
 0x1bf   : > { %s466_s16 = scalar_lea.sflag [#allocation6], %s465_s22 }
 0x1c0   : > { %p588_p1 = pneg %p587_p5 }
 0x1c2   : > { %681 = dma.done.wait (%p588_p1), %s466_s16, 32  }
 0x1c3   : > { %683 = vsyncadd (%p588_p1), %s466_s16, 4294967264  ;;  %p10_p2 = scmp.ge.s32.totalorder %s751_s18, 4   ;;  %s917_s12 = smov %s690_s13 }
 0x1c4   : > { %s918_s13 = smov %s694_s14  ;;  %s919_s14 = smov %s762_s23 }
 0x1c5   : > { %s920_s15 = smov %s751_s18  ;;  %12 = sbr.rel (!%p10_p2) target bundleno = 3 (0x3), region = 213 }
 0x1ca   :  { %478 = vsyncpa [#allocation6], 1 }
 0x1cb   :  { %480 = vsyncpa [#allocation6 + $0x1], 1 }

// kernel: custom-call.13
= control target key start
LH: loop header
LB: loop body
LE: loop exit
PB: predicated region body
PF: predicated region fallthrough
CT: control target
= control target key end

     0   :  { %s350_s6 = smov 0   ;;  %s352_s7 = smov 0   ;;  %s397_s0 = inlined_call_operand.vmem [shape: f32[2,1,3,3], index: 0, kind: input, shape index: {}]   ;;  %s398_s1 = inlined_call_operand.vmem [shape: f32[2,1,3,3], index: 1, kind: output, shape index: {}]  }
   0x1   :  { %s354_s8 = smov 0  }
   0x2 LB: > { %s276_s9 = sadd.s32 4294967295, %s337_s8   ;;  %s33_s10 = sadd.s32 1, %s333_s7  ;;  %s337_s8 = sphi %s354_s8, %s7_s8   ;;  %s333_s7 = sphi %s352_s7, %s400_s7   ;;  %s329_s6 = sphi %s350_s6, %s399_s6  }
   0x3   : > { %p35_p0 = scmp.ge.s32.totalorder %s33_s10, 2  ;;  %p278_p1 = scmp.ge.s32.totalorder %s337_s8, 2 }
   0x4   : > { %s49_s11 = sand.u32 (!%p278_p1), 1, %s337_s8   ;;  %s280_s12 = sshll.u32 (!%p278_p1), %s333_s7, 2 }
   0x5   : > { %s402_s10 = smov (%p35_p0, %s33_s10), 0  ;;  %47 = sbr.rel (%p278_p1) target bundleno = 12 (0xc), region = 16 }
   0x6   : > { %s279_s13 = sshll.u32 (!%p278_p1), %s49_s11, 2  ;;  %s56_s16 = scalar_lea.vmem (!%p278_p1), %s397_s0, %s280_s12 }
   0x7   : > { %s51_s17 = scalar_lea.vmem (!%p278_p1), [#allocation1], %s279_s13 }
   0xa   : > { %v73_v0 = vld [vmem:[%s56_s16] sm:$0xf] }
   0xb   : > { %74 = vst [vmem:[%s51_s17] sm:$0xf] %v73_v0 }
   0xc PF: > { %p281_p2 = scmp.ge.s32.totalorder %s337_s8, 1  ;;  %p91_p3 = scmp.lt.s32.totalorder %s337_s8, 3 }
   0xe   : > { %p92_p4 = pnand %p281_p2, %p91_p3 }
  0x10   : > { %95 = sbr.rel (%p92_p4) target bundleno = 500 (0x1f4), region = 50 }
  0x15   : > { %s377_s18 = sand.u32 1, %s276_s9   ;;  %v114_v1 = vlaneseq  ;;  %v339_v11 = vmov -1.0   ;;  %s285_s22 = sshll.u32 %s329_s6, 2 }
  0x16   : > { %s282_s19 = sshll.u32 %s377_s18, 2  ;;  %s183_s25 = scalar_lea.vmem %s398_s1, %s285_s22 }
  0x17   : > { %s104_s20 = scalar_lea.vmem [#allocation1], %s282_s19  ;;  %v115_v3 = vand.u32 127, %v114_v1  ;;  %v118_v4 = vshrl.u32 %v114_v1, 7  ;;  %s108_s21 = scalar_lea.vmem [#allocation3], %s282_s19 }
  0x18   : > { %v112_v2 = vld [vmem:[%s104_s20] sm:$0xf] }
  0x19   : > { %113 = vst [vmem:[#allocation0] sm:$0xf] %v112_v2  ;;  %vm116_vm0 = vcmp.lt.s32.totalorder %v115_v3, 3  ;;  %vm125_vm1 = vcmp.ge.s32.totalorder %v118_v4, %v115_v3  ;;  %vm120_vm2 = vcmp.eq.s32.totalorder %v118_v4, %v115_v3  ;;  %vm139_vm4 = vcmp.eq.s32.totalorder %v115_v3, 0 }
  0x1a   : > { %vm126_vm3 = vmand %vm125_vm1, %vm116_vm0  ;;  %vm136_vm5 = vcmp.eq.s32.totalorder %v115_v3, %v118_v4  ;;  %v140_v12 = vsel %vm139_vm4, 1.0, %v339_v11  ;;  %vm147_vm6 = vcmp.eq.s32.totalorder %v115_v3, 1  ;;  %vm157_vm7 = vcmp.eq.s32.totalorder %v115_v3, 2 }
  0x1b   : > { %v141_v13 = vsel %vm136_vm5, %v140_v12, 0.0 }
  0x20   : > { %v121_v5 = vld [vmem:[#allocation0] sm:$0xff] }
  0x21   : > { %v122_v6 = vsel %vm120_vm2, %v121_v5, 0.0  ;;  %v127_v7 = vsel %vm126_vm3, %v121_v5, 0.0 }
  0x22   : > { %123 = vadd.xlane.f32.xlu0 %v122_v6 }
  0xab   : > { %v124_v8 = vpop.xlane.xlu0 %123 }
  0xac   : > { %313 = vrcp.f32 %v124_v8  ;;  %vm164_vm8 = vweird.f32 %v124_v8 }
  0xb9   : > { %v314_v9 = vpop.eup %313 }
  0xba   : > { %v129_v10 = vmul.f32 %v314_v9, %v127_v7 }
  0xbc   : > { %130 = vst [vmem:[#allocation4] sm:$0xff] %v129_v10 }
  0xc3   : > { %v143_v14 = vld [vmem:[#allocation4 + $0x1] ss:$0 sm:$0xff]  ;;  %v153_v17 = vld [vmem:[#allocation4 + $0x2] ss:$0 sm:$0xff] }
  0xc4   : > { %v144_v15 = vxor.u32 2147483648, %v143_v14  ;;  %v154_v19 = vxor.u32 2147483648, %v153_v17 }
  0xc6   : > { %v148_v16 = vmul.f32 %v144_v15, %v141_v13 }
  0xc8   : > { %149 = vadd.xlane.f32.xlu0 %v148_v16 }
 0x151   : > { %v150_v18 = vpop.xlane.xlu0 %149 }
 0x152   : > { %v151_v20 = vsel %vm147_vm6, %v150_v18, %v141_v13 }
 0x153   : > { %v158_v21 = vmul.f32 %v154_v19, %v151_v20 }
 0x155   : > { %159 = vadd.xlane.f32.xlu1 %v158_v21 }
 0x1de   : > { %v160_v22 = vpop.xlane.xlu1 %159 }
 0x1df   : > { %v161_v23 = vsel %vm157_vm7, %v160_v22, %v151_v20 }
 0x1e0   : > { %v163_v24 = vmul.f32 %v314_v9, %v161_v23 }
 0x1e2   : > { %v165_v25 = vsel %vm164_vm8, %v161_v23, %v163_v24 }
 0x1e3   : > { %166 = vst [vmem:[#allocation2] sm:$0xff] %v165_v25 }
 0x1ea   : > { %v171_v26 = vld [vmem:[#allocation2] sm:$0xf] }
 0x1eb   : > { %174 = vst [vmem:[%s108_s21] sm:$0xf] %v171_v26 }
 0x1f2   : > { %v200_v27 = vld [vmem:[%s108_s21] sm:$0xf] }
 0x1f3   : > { %201 = vst [vmem:[%s183_s25] sm:$0xf] %v200_v27 }
 0x1f4 PF: > { %s7_s8 = sadd.s32 1, %s337_s8   ;;  %s399_s6 = smov %s333_s7 }
 0x1f5   : > { %p4_p5 = scmp.ge.s32.totalorder %s7_s8, 4   ;;  %s400_s7 = smov %s402_s10 }
 0x1f7   :  { %6 = sbr.rel (!%p4_p5) target bundleno = 2 (0x2), region = 112 }

// kernel: custom-call.12
= control target key start
LH: loop header
LB: loop body
LE: loop exit
PB: predicated region body
PF: predicated region fallthrough
CT: control target
= control target key end

     0   :  { %s349_s6 = smov 0   ;;  %s351_s7 = smov 0   ;;  %s396_s0 = inlined_call_operand.vmem [shape: f32[2,1,3,3], index: 0, kind: input, shape index: {}]   ;;  %s397_s1 = inlined_call_operand.vmem [shape: f32[2,1,3,3], index: 1, kind: output, shape index: {}]  }
   0x1   :  { %s353_s8 = smov 0  }
   0x2 LB: > { %s275_s9 = sadd.s32 4294967295, %s336_s8   ;;  %s33_s10 = sadd.s32 1, %s332_s7  ;;  %s336_s8 = sphi %s353_s8, %s7_s8   ;;  %s332_s7 = sphi %s351_s7, %s399_s7   ;;  %s328_s6 = sphi %s349_s6, %s398_s6  }
   0x3   : > { %p35_p0 = scmp.ge.s32.totalorder %s33_s10, 2  ;;  %p277_p1 = scmp.ge.s32.totalorder %s336_s8, 2 }
   0x4   : > { %s49_s11 = sand.u32 (!%p277_p1), 1, %s336_s8   ;;  %s279_s12 = sshll.u32 (!%p277_p1), %s332_s7, 2 }
   0x5   : > { %s401_s10 = smov (%p35_p0, %s33_s10), 0  ;;  %47 = sbr.rel (%p277_p1) target bundleno = 12 (0xc), region = 16 }
   0x6   : > { %s278_s13 = sshll.u32 (!%p277_p1), %s49_s11, 2  ;;  %s56_s16 = scalar_lea.vmem (!%p277_p1), %s396_s0, %s279_s12 }
   0x7   : > { %s51_s17 = scalar_lea.vmem (!%p277_p1), [#allocation1], %s278_s13 }
   0xa   : > { %v73_v0 = vld [vmem:[%s56_s16] sm:$0xf] }
   0xb   : > { %74 = vst [vmem:[%s51_s17] sm:$0xf] %v73_v0 }
   0xc PF: > { %p280_p2 = scmp.ge.s32.totalorder %s336_s8, 1  ;;  %p91_p3 = scmp.lt.s32.totalorder %s336_s8, 3 }
   0xe   : > { %p92_p4 = pnand %p280_p2, %p91_p3 }
  0x10   : > { %95 = sbr.rel (%p92_p4) target bundleno = 500 (0x1f4), region = 50 }
  0x15   : > { %s376_s18 = sand.u32 1, %s275_s9   ;;  %v114_v1 = vlaneseq  ;;  %v338_v11 = vmov -1.0   ;;  %s284_s22 = sshll.u32 %s328_s6, 2 }
  0x16   : > { %s281_s19 = sshll.u32 %s376_s18, 2  ;;  %s182_s25 = scalar_lea.vmem %s397_s1, %s284_s22 }
  0x17   : > { %s104_s20 = scalar_lea.vmem [#allocation1], %s281_s19  ;;  %v115_v3 = vand.u32 127, %v114_v1  ;;  %v118_v4 = vshrl.u32 %v114_v1, 7  ;;  %s108_s21 = scalar_lea.vmem [#allocation3], %s281_s19 }
  0x18   : > { %v112_v2 = vld [vmem:[%s104_s20] sm:$0xf] }
  0x19   : > { %113 = vst [vmem:[#allocation0] sm:$0xf] %v112_v2  ;;  %vm116_vm0 = vcmp.lt.s32.totalorder %v115_v3, 3  ;;  %vm125_vm1 = vcmp.le.s32.totalorder %v118_v4, %v115_v3  ;;  %vm120_vm2 = vcmp.eq.s32.totalorder %v118_v4, %v115_v3  ;;  %vm139_vm4 = vcmp.eq.s32.totalorder %v115_v3, 2 }
  0x1a   : > { %vm126_vm3 = vmand %vm125_vm1, %vm116_vm0  ;;  %vm136_vm5 = vcmp.eq.s32.totalorder %v115_v3, %v118_v4  ;;  %v140_v12 = vsel %vm139_vm4, 1.0, %v338_v11  ;;  %vm147_vm6 = vcmp.eq.s32.totalorder %v115_v3, 1  ;;  %vm156_vm7 = vcmp.eq.s32.totalorder %v115_v3, 0 }
  0x1b   : > { %v141_v13 = vsel %vm136_vm5, %v140_v12, 0.0 }
  0x20   : > { %v121_v5 = vld [vmem:[#allocation0] sm:$0xff] }
  0x21   : > { %v122_v6 = vsel %vm120_vm2, %v121_v5, 0.0  ;;  %v127_v7 = vsel %vm126_vm3, %v121_v5, 0.0 }
  0x22   : > { %123 = vadd.xlane.f32.xlu0 %v122_v6 }
  0xab   : > { %v124_v8 = vpop.xlane.xlu0 %123 }
  0xac   : > { %312 = vrcp.f32 %v124_v8  ;;  %vm163_vm8 = vweird.f32 %v124_v8 }
  0xb9   : > { %v313_v9 = vpop.eup %312 }
  0xba   : > { %v129_v10 = vmul.f32 %v313_v9, %v127_v7 }
  0xbc   : > { %130 = vst [vmem:[#allocation4] sm:$0xff] %v129_v10 }
  0xc3   : > { %v143_v14 = vld [vmem:[#allocation4 + $0x1] ss:$0 sm:$0xff]  ;;  %v152_v17 = vld [vmem:[#allocation4] ss:$0 sm:$0xff] }
  0xc4   : > { %v144_v15 = vxor.u32 2147483648, %v143_v14  ;;  %v153_v19 = vxor.u32 2147483648, %v152_v17 }
  0xc6   : > { %v148_v16 = vmul.f32 %v144_v15, %v141_v13 }
  0xc8   : > { %149 = vadd.xlane.f32.xlu0 %v148_v16 }
 0x151   : > { %v150_v18 = vpop.xlane.xlu0 %149 }
 0x152   : > { %v151_v20 = vsel %vm147_vm6, %v150_v18, %v141_v13 }
 0x153   : > { %v157_v21 = vmul.f32 %v153_v19, %v151_v20 }
 0x155   : > { %158 = vadd.xlane.f32.xlu1 %v157_v21 }
 0x1de   : > { %v159_v22 = vpop.xlane.xlu1 %158 }
 0x1df   : > { %v160_v23 = vsel %vm156_vm7, %v159_v22, %v151_v20 }
 0x1e0   : > { %v162_v24 = vmul.f32 %v313_v9, %v160_v23 }
 0x1e2   : > { %v164_v25 = vsel %vm163_vm8, %v160_v23, %v162_v24 }
 0x1e3   : > { %165 = vst [vmem:[#allocation2] sm:$0xff] %v164_v25 }
 0x1ea   : > { %v170_v26 = vld [vmem:[#allocation2] sm:$0xf] }
 0x1eb   : > { %173 = vst [vmem:[%s108_s21] sm:$0xf] %v170_v26 }
 0x1f2   : > { %v199_v27 = vld [vmem:[%s108_s21] sm:$0xf] }
 0x1f3   : > { %200 = vst [vmem:[%s182_s25] sm:$0xf] %v199_v27 }
 0x1f4 PF: > { %s7_s8 = sadd.s32 1, %s336_s8   ;;  %s398_s6 = smov %s332_s7 }
 0x1f5   : > { %p4_p5 = scmp.ge.s32.totalorder %s7_s8, 4   ;;  %s399_s7 = smov %s401_s10 }
 0x1f7   :  { %6 = sbr.rel (!%p4_p5) target bundleno = 2 (0x2), region = 111 }

// kernel: _lambda_.1
= control target key start
LH: loop header
LB: loop body
LE: loop exit
PB: predicated region body
PF: predicated region fallthrough
CT: control target
= control target key end

     0   :  { %s10301_s6 = smov 1   ;;  %s10302_s10 = smov 2   ;;  %s11878_s0 = inlined_call_operand.smem [shape: u32[77], index: -1, kind: input, shape index: {}] }
   0x1   :  { %s10427_s5 = sld [smem:[%s11878_s0]]   ;;  %s10303_s14 = smov 3  }
   0x2   :  { %s10432_s9 = sld [smem:[%s11878_s0 + %s10301_s6]]   ;;  %s10304_s18 = smov 4  }
   0x3   :  { %s10437_s13 = sld [smem:[%s11878_s0 + %s10302_s10]]   ;;  %s10305_s22 = smov 5  }
   0x4   :  { %s10442_s17 = sld [smem:[%s11878_s0 + %s10303_s14]]   ;;  %s10306_s26 = smov 6  }
   0x5   :  { %s10447_s21 = sld [smem:[%s11878_s0 + %s10304_s18]]   ;;  %s10307_s30 = smov 7  }
   0x6   :  { %s10452_s25 = sld [smem:[%s11878_s0 + %s10305_s22]]   ;;  %s10308_s4 = smov 8  }
   0x7   :  { %11957 = sst [smem:[#allocation59_spill]] %s10427_s5  ;;  %s10309_s10 = smov 9  }
   0x8   :  { %11958 = sst [smem:[#allocation60_spill]] %s10432_s9  ;;  %s10310_s15 = smov 10  }
   0x9   :  { %11959 = sst [smem:[#allocation61_spill]] %s10437_s13  ;;  %s10311_s20 = smov 11  }
   0xa   :  { %11960 = sst [smem:[#allocation62_spill]] %s10442_s17  ;;  %s10313_s1 = smov 13  }
   0xb   :  { %11961 = sst [smem:[#allocation63_spill]] %s10447_s21  ;;  %s10314_s7 = smov 14  }
   0xc   :  { %11962 = sst [smem:[#allocation64_spill]] %s10452_s25  ;;  %s10316_s22 = smov 16  }
   0xd   :  { %s10457_s29 = sld [smem:[%s11878_s0 + %s10306_s26]]   ;;  %s10312_s26 = smov 12  }
   0xe   :  { %s10462_s3 = sld [smem:[%s11878_s0 + %s10307_s30]]   ;;  %s10317_s28 = smov 17  }
   0xf   :  { %s10467_s8 = sld [smem:[%s11878_s0 + %s10308_s4]]   ;;  %s10347_s16 = smov 47  }
  0x10   :  { %s10472_s14 = sld [smem:[%s11878_s0 + %s10309_s10]]   ;;  %s10346_s10 = smov 46  }
  0x11   :  { %s10477_s19 = sld [smem:[%s11878_s0 + %s10310_s15]]   ;;  %s10315_s15 = smov 15  }
  0x12   :  { %s10482_s24 = sld [smem:[%s11878_s0 + %s10311_s20]]   ;;  %s10348_s23 = smov 48  }
  0x13   :  { %11963 = sst [smem:[#allocation65_spill]] %s10457_s29 }
  0x14   :  { %11964 = sst [smem:[#allocation66_spill]] %s10462_s3 }
  0x15   :  { %11965 = sst [smem:[#allocation67_spill]] %s10467_s8 }
  0x16   :  { %11966 = sst [smem:[#allocation68_spill]] %s10472_s14 }
  0x17   :  { %11967 = sst [smem:[#allocation69_spill]] %s10477_s19 }
  0x18   :  { %s10487_s30 = sld [smem:[%s11878_s0 + %s10312_s26]]  }
  0x19   :  { %s10492_s6 = sld [smem:[%s11878_s0 + %s10313_s1]]   ;;  %s10349_s1 = smov 49  }
  0x1a   :  { %s10497_s12 = sld [smem:[%s11878_s0 + %s10314_s7]]   ;;  %s10318_s7 = smov 18  }
  0x1b   :  { %s10502_s20 = sld [smem:[%s11878_s0 + %s10315_s15]]   ;;  %s10319_s15 = smov 19  }
  0x1c   :  { %s10507_s27 = sld [smem:[%s11878_s0 + %s10316_s22]]   ;;  %s10320_s22 = smov 20  }
  0x1d   :  { %s10512_s4 = sld [smem:[%s11878_s0 + %s10317_s28]]   ;;  %s10321_s28 = smov 21  }
  0x1e   :  { %11968 = sst [smem:[#allocation70_spill]] %s10487_s30 }
  0x1f   :  { %11969 = sst [smem:[#allocation71_spill]] %s10492_s6 }
  0x20   :  { %11970 = sst [smem:[#allocation72_spill]] %s10497_s12 }
  0x21   :  { %11971 = sst [smem:[#allocation73_spill]] %s10502_s20 }
  0x22   :  { %11972 = sst [smem:[#allocation74_spill]] %s10507_s27 }
  0x23   :  { %11973 = sst [smem:[#allocation75_spill]] %s10512_s4 }
  0x24   :  { %s10517_s25 = sld [smem:[%s11878_s0 + %s10318_s7]]   ;;  %s10322_s7 = smov 22  }
  0x25   :  { %s10522_s29 = sld [smem:[%s11878_s0 + %s10319_s15]]   ;;  %s10323_s15 = smov 23  }
  0x26   :  { %s10527_s21 = sld [smem:[%s11878_s0 + %s10320_s22]]   ;;  %s10324_s22 = smov 24  }
  0x27   :  { %s10532_s17 = sld [smem:[%s11878_s0 + %s10321_s28]]   ;;  %s10325_s28 = smov 25  }
  0x28   :  { %s10537_s6 = sld [smem:[%s11878_s0 + %s10322_s7]]   ;;  %s10326_s7 = smov 26  }
  0x29   :  { %s10655_s5 = sld [smem:[%s11878_s0 + %s10346_s10]]   ;;  %s10350_s10 = smov 50  }
  0x2a   :  { %11974 = sst [smem:[#allocation76_spill]] %s10517_s25 }
  0x2b   :  { %11975 = sst [smem:[#allocation77_spill]] %s10522_s29 }
  0x2c   :  { %11976 = sst [smem:[#allocation78_spill]] %s10527_s21 }
  0x2d   :  { %11977 = sst [smem:[#allocation79_spill]] %s10532_s17 }
  0x2e   :  { %11978 = sst [smem:[#allocation80_spill]] %s10537_s6 }
  0x2f   :  { %s10542_s29 = sld [smem:[%s11878_s0 + %s10323_s15]]   ;;  %s10327_s15 = smov 27  }
  0x30   :  { %s10547_s21 = sld [smem:[%s11878_s0 + %s10324_s22]]   ;;  %s10328_s22 = smov 28  }
  0x31   :  { %s10552_s17 = sld [smem:[%s11878_s0 + %s10325_s28]]   ;;  %s10329_s28 = smov 29  }
  0x32   :  { %s10557_s6 = sld [smem:[%s11878_s0 + %s10326_s7]]   ;;  %s10330_s7 = smov 30  }
  0x33   :  { %s10572_s30 = sld [smem:[%s11878_s0 + %s10329_s28]]   ;;  %s10333_s28 = smov 33  }
  0x34   :  { %11998 = sst [smem:[#allocation100_spill]] %s10655_s5 }
  0x35   :  { %11979 = sst [smem:[#allocation81_spill]] %s10542_s29 }
  0x36   :  { %11980 = sst [smem:[#allocation82_spill]] %s10547_s21 }
  0x37   :  { %s10562_s29 = sld [smem:[%s11878_s0 + %s10327_s15]]   ;;  %s10331_s15 = smov 31  }
  0x38   :  { %11981 = sst [smem:[#allocation83_spill]] %s10557_s6 }
  0x39   :  { %s10567_s21 = sld [smem:[%s11878_s0 + %s10328_s22]]   ;;  %s10332_s22 = smov 32  }
  0x3a   :  { %11984 = sst [smem:[#allocation86_spill]] %s10572_s30 }
  0x3b   :  { %s10577_s6 = sld [smem:[%s11878_s0 + %s10330_s7]]   ;;  %s10334_s7 = smov 34  }
  0x3c   :  { %s10587_s13 = sld [smem:[%s11878_s0 + %s10332_s22]]   ;;  %s10336_s22 = smov 36  }
  0x3d   :  { %11982 = sst [smem:[#allocation84_spill]] %s10562_s29 }
  0x3e   :  { %s10582_s29 = sld [smem:[%s11878_s0 + %s10331_s15]]   ;;  %s10335_s15 = smov 35  }
  0x3f   :  { %11983 = sst [smem:[#allocation85_spill]] %s10567_s21 }
  0x40   :  { %s10592_s30 = sld [smem:[%s11878_s0 + %s10333_s28]]   ;;  %s10337_s28 = smov 37  }
  0x41   :  { %11985 = sst [smem:[#allocation87_spill]] %s10577_s6 }
  0x42   :  { %11987 = sst [smem:[#allocation89_spill]] %s10587_s13 }
  0x43   :  { %s10597_s6 = sld [smem:[%s11878_s0 + %s10334_s7]]   ;;  %s10338_s7 = smov 38  }
  0x44   :  { %11986 = sst [smem:[#allocation88_spill]] %s10582_s29 }
  0x45   :  { %s10602_s29 = sld [smem:[%s11878_s0 + %s10335_s15]]   ;;  %s10339_s15 = smov 39  }
  0x46   :  { %11988 = sst [smem:[#allocation90_spill]] %s10592_s30 }
  0x47   :  { %s10607_s27 = sld [smem:[%s11878_s0 + %s10336_s22]]   ;;  %s10340_s22 = smov 40  }
  0x48   :  { %s10612_s4 = sld [smem:[%s11878_s0 + %s10337_s28]]   ;;  %s10341_s28 = smov 41  }
  0x49   :  { %11989 = sst [smem:[#allocation91_spill]] %s10597_s6 }
  0x4a   :  { %s10617_s6 = sld [smem:[%s11878_s0 + %s10338_s7]]   ;;  %s10342_s7 = smov 42  }
  0x4b   :  { %11990 = sst [smem:[#allocation92_spill]] %s10602_s29 }
  0x4c   :  { %s10622_s29 = sld [smem:[%s11878_s0 + %s10339_s15]]   ;;  %s10343_s15 = smov 43  }
  0x4d   :  { %11991 = sst [smem:[#allocation93_spill]] %s10607_s27 }
  0x4e   :  { %11992 = sst [smem:[#allocation94_spill]] %s10612_s4 }
  0x4f   :  { %s10627_s27 = sld [smem:[%s11878_s0 + %s10340_s22]]   ;;  %s10344_s22 = smov 44  }
  0x50   :  { %11993 = sst [smem:[#allocation95_spill]] %s10617_s6 }
  0x51   :  { %s10632_s12 = sld [smem:[%s11878_s0 + %s10341_s28]]   ;;  %s10345_s28 = smov 45  }
  0x52   :  { %11994 = sst [smem:[#allocation96_spill]] %s10622_s29 }
  0x53   :  { %s10637_s20 = sld [smem:[%s11878_s0 + %s10342_s7]]   ;;  %s10354_s7 = smov 54  }
  0x54   :  { %s10642_s29 = sld [smem:[%s11878_s0 + %s10343_s15]]   ;;  %s10359_s15 = smov 59  }
  0x55   :  { %11995 = sst [smem:[#allocation97_spill]] %s10627_s27 }
  0x56   :  { %s10647_s27 = sld [smem:[%s11878_s0 + %s10344_s22]]  }
  0x57   :  { %11996 = sst [smem:[#allocation98_spill]] %s10632_s12 }
  0x58   :  { %s7957_s12 = sld [smem:[%s11878_s0 + %s10345_s28]]  }
  0x59   :  { %s10660_s19 = sld [smem:[%s11878_s0 + %s10347_s16]]   ;;  %s10351_s16 = smov 51  }
  0x5a   :  { %11997 = sst [smem:[#allocation99_spill]] %s10642_s29 }
  0x5b   :  { %s10665_s9 = sld [smem:[%s11878_s0 + %s10348_s23]]   ;;  %s10352_s23 = smov 52  }
  0x5c   :  { %s10670_s29 = sld [smem:[%s11878_s0 + %s10349_s1]]   ;;  %s10353_s1 = smov 53  }
  0x5d   :  { %s10675_s5 = sld [smem:[%s11878_s0 + %s10350_s10]]  }
  0x5e   :  { %s10680_s6 = sld [smem:[%s11878_s0 + %s10351_s16]]   ;;  %v158_v0 = vstv %s7957_s12  ;;  %s10355_s12 = smov 55  }
  0x5f   :  { %s10685_s28 = sld [smem:[%s11878_s0 + %s10352_s23]]   ;;  %159 = vst [vmem:[#allocation2] sm:$0x1] %v158_v0  ;;  %s10356_s23 = smov 56  }
  0x60   :  { %s10690_s10 = sld [smem:[%s11878_s0 + %s10353_s1]]   ;;  %s10365_s1 = smov 65  }
  0x61   :  { %11999 = sst [smem:[#allocation101_spill]] %s10665_s9  ;;  %s10357_s9 = smov 57  }
  0x62   :  { %12000 = sst [smem:[#allocation102_spill]] %s10670_s29 }
  0x63   :  { %12001 = sst [smem:[#allocation103_spill]] %s10675_s5  ;;  %s10358_s5 = smov 58  }
  0x64   :  { %12002 = sst [smem:[#allocation104_spill]] %s10680_s6 }
  0x65   :  { %12003 = sst [smem:[#allocation105_spill]] %s10685_s28  ;;  %s10360_s28 = smov 60  }
  0x66   :  { %12004 = sst [smem:[#allocation106_spill]] %s10690_s10 }
  0x67   :  { %s10695_s16 = sld [smem:[%s11878_s0 + %s10354_s7]]  }
  0x68   :  { %s10700_s22 = sld [smem:[%s11878_s0 + %s10355_s12]]  }
  0x69   :  { %s7968_s6 = sld [smem:[%s11878_s0 + %s10356_s23]]  }
  0x6a   :  { %s10708_s29 = sld [smem:[%s11878_s0 + %s10357_s9]]   ;;  %s10361_s9 = smov 61  }
  0x6b   :  { %s10718_s30 = sld [smem:[%s11878_s0 + %s10359_s15]]   ;;  %s10363_s15 = smov 63  }
  0x6c   :  { %s10723_s21 = sld [smem:[%s11878_s0 + %s10360_s28]]   ;;  %s10364_s28 = smov 64  }
  0x6d   :  { %12005 = sst [smem:[#allocation107_spill]] %s10695_s16 }
  0x6e   :  { %s10713_s16 = sld [smem:[%s11878_s0 + %s10358_s5]]   ;;  %s10362_s5 = smov 62  }
  0x6f   :  { %s10733_s25 = sld [smem:[%s11878_s0 + %s10362_s5]]   ;;  %v160_v1 = vstv %s7968_s6  ;;  %s10366_s6 = smov 66  }
  0x70   :  { %12006 = sst [smem:[#allocation108_spill]] %s10708_s29  ;;  %161 = vst [vmem:[#allocation3] sm:$0x1] %v160_v1 }
  0x71   :  { %12007 = sst [smem:[#allocation109_spill]] %s10718_s30 }
  0x72   :  { %12008 = sst [smem:[#allocation110_spill]] %s10723_s21  ;;  %s10368_s21 = smov 68  }
  0x73   :  { %s10728_s29 = sld [smem:[%s11878_s0 + %s10361_s9]]  }
  0x74   :  { %s10738_s23 = sld [smem:[%s11878_s0 + %s10363_s15]]   ;;  %s10367_s15 = smov 67  }
  0x75   :  { %12010 = sst [smem:[#allocation112_spill]] %s10733_s25  ;;  %s10371_s25 = smov 71  }
  0x76   :  { %s10743_s9 = sld [smem:[%s11878_s0 + %s10364_s28]]  }
  0x77   :  { %s10748_s5 = sld [smem:[%s11878_s0 + %s10365_s1]]  }
  0x78   :  { %s10753_s12 = sld [smem:[%s11878_s0 + %s10366_s6]]   ;;  %s10370_s6 = smov 70  }
  0x79   :  { %12009 = sst [smem:[#allocation111_spill]] %s10728_s29  ;;  %s10369_s29 = smov 69  }
  0x7a   :  { %12011 = sst [smem:[#allocation113_spill]] %s10738_s23 }
  0x7b   :  { %s10758_s30 = sld [smem:[%s11878_s0 + %s10367_s15]]  }
  0x7c   :  { %12012 = sst [smem:[#allocation114_spill]] %s10743_s9 }
  0x7d   :  { %12013 = sst [smem:[#allocation115_spill]] %s10748_s5 }
  0x7e   :  { %12014 = sst [smem:[#allocation116_spill]] %s10753_s12 }
  0x7f   :  { %s10763_s9 = sld [smem:[%s11878_s0 + %s10368_s21]]   ;;  %s10372_s21 = smov 72  }
  0x80   :  { %s10768_s5 = sld [smem:[%s11878_s0 + %s10369_s29]]   ;;  %s10373_s29 = smov 73  }
  0x81   :  { %12015 = sst [smem:[#allocation117_spill]] %s10758_s30 }
  0x82   :  { %s10773_s23 = sld [smem:[%s11878_s0 + %s10370_s6]]   ;;  %s10374_s6 = smov 74  }
  0x83   :  { %s10778_s30 = sld [smem:[%s11878_s0 + %s10371_s25]]   ;;  %s10375_s25 = smov 75  }
  0x84   :  { %s10798_s14 = sld [smem:[%s11878_s0 + %s10375_s25]]  }
  0x85   :  { %12016 = sst [smem:[#allocation118_spill]] %s10763_s9 }
  0x86   :  { %12017 = sst [smem:[#allocation119_spill]] %s10768_s5 }
  0x87   :  { %s10783_s9 = sld [smem:[%s11878_s0 + %s10372_s21]]   ;;  %s10376_s21 = smov 76  }
  0x88   :  { %12018 = sst [smem:[#allocation120_spill]] %s10773_s23 }
  0x89   :  { %s10788_s5 = sld [smem:[%s11878_s0 + %s10373_s29]]  }
  0x8a   :  { %s10793_s23 = sld [smem:[%s11878_s0 + %s10374_s6]]  }
  0x8d   :  { %12019 = sst [smem:[#allocation121_spill]] %s10783_s9 }
  0x8e   :  { %s10803_s9 = sld [smem:[%s11878_s0 + %s10376_s21]]  }
  0x8f   :  { %12020 = sst [smem:[#allocation122_spill]] %s10788_s5 }
  0x90   :  { %162 = vsyncpa [#allocation5], 0 }
  0x91   :  { %163 = vsyncpa [#allocation7], 0 }
  0x92   :  { %164 = vsyncpa [#allocation10], 0 }
  0x93   :  { %165 = vsyncpa [#allocation13], 0 }
  0x94   :  { %166 = vsyncpa [#allocation16], 0 }
  0x95   :  { %167 = vsyncpa [#allocation19], 0 }
  0x96   :  { %168 = vsyncpa [#allocation22], 0 }
  0x97   :  { %169 = vsyncpa [#allocation25], 0 }
  0x98   :  { %170 = vsyncpa [#allocation28], 0 }
  0x99   :  { %171 = vsyncpa [#allocation31], 0 }
  0x9a   :  { %172 = vsyncpa [#allocation34], 0 }
  0x9b   :  { %173 = vsyncpa [#allocation37], 0 }
  0x9c   :  { %174 = vsyncpa [#allocation40], 0 }
  0x9d   :  { %175 = vsyncpa [#allocation43], 0  ;;  %s10805_s29 = smov 0  }
  0x9e LB: > { %s12021_s5 = sld [smem:[#allocation122_spill]]  ;;  %s10377_s0 = smov [#allocation6]   ;;  %s10299_s29 = sphi %s10805_s29, %s181_s29  }
  0x9f   : > { %s1867_s1 = sshll.u32 %s10377_s0, 4  ;;  %s10811_s2 = sadd.s32 4294967295, %s10299_s29   ;;  %s1868_s1 = int_to_ptr.vmem [resolvable:$true] %s1867_s1 }
  0xa0   : > { %p7991_p0 = scmp.ge.s32.totalorder %s10299_s29, 1  ;;  %p1843_p1 = scmp.lt.s32.totalorder %s10299_s29, 3 }
  0xa1   : > { %p11914_p2 = scmp.eq.s32.totalorder %s10811_s2, 0  ;;  %s10378_s7 = smov [#allocation9]  }
  0xa2   : > { %p10816_p3 = pnand %p7991_p0, %p1843_p1  ;;  %s1892_s11 = sshll.u32 %s10378_s7, 4  ;;  %s10822_s11 = int_to_ptr.vmem [resolvable:$true] %s1892_s11 }
  0xa3   : > { %s10379_s25 = smov [#allocation12]   ;;  %s10380_s21 = smov [#allocation15]  }
  0xa4   : > { %s12022_s6 = scalar_select %p10816_p3, 1, 0 }
  0xa5   : > { %p9064_p4 = pneg %p10816_p3  ;;  %s1950_s15 = sshll.u32 %s10379_s25, 4  ;;  %s10830_s15 = int_to_ptr.vmem [resolvable:$true] %s1950_s15 }
  0xa6   : > { %s1987_s28 = sshll.u32 %s10380_s21, 4  ;;  %s9546_s0 = scalar_lea.vmem %s1868_s1, 16  ;;  %s10832_s28 = int_to_ptr.vmem [resolvable:$true] %s1987_s28 }
  0xa7   : > { %p10826_p5 = pnand %p11914_p2, %p9064_p4  ;;  %p9547_p7 = scmp.ne.s32.totalorder %s1868_s1, %s9546_s0 }
  0xa8   : > { %s9553_s7 = scalar_lea.vmem %s1868_s1, 32  ;;  %p9554_p10 = scmp.lt.s32.totalorder %s1868_s1, %s1868_s1 }
  0xa9   : > { %p10836_p6 = pneg %p10826_p5  ;;  %p9555_p11 = scmp.lt.s32.totalorder %s9553_s7, %s9546_s0 }
  0xab   : > { %p9549_p8 = pnand %p9547_p7, %p10836_p6  ;;  %p9556_p12 = por %p9555_p11, %p9554_p10 }
  0xad   : > { %p9550_p9 = pneg %p9549_p8 }
  0xaf   : > { %p9557_p13 = pnand %p9556_p12, %p9550_p9 }
  0xb1   : > { %9560 = shalt.err (!%p9557_p13)
}
  0xb2   : > { %s12025_s8 = sld [smem:[#allocation67_spill]]  ;;  %s9572_s25 = scalar_lea.vmem %s10822_s11, 16 }
  0xb3   : > { %p9573_p0 = scmp.ne.s32.totalorder %s10822_s11, %s9572_s25  ;;  %s9579_s21 = scalar_lea.vmem %s10822_s11, 32 }
  0xb4   : > { %p9580_p7 = scmp.lt.s32.totalorder %s10822_s11, %s10822_s11  ;;  %p9581_p8 = scmp.lt.s32.totalorder %s9579_s21, %s9572_s25 }
  0xb5   : > { %p9575_p1 = pnand %p9573_p0, %p10836_p6 }
  0xb6   : > { %p9582_p9 = por %p9581_p8, %p9580_p7 }
  0xb7   : > { %p9576_p4 = pneg %p9575_p1 }
  0xb8   : > { %9070 = dma.hbm_to_vmem [thread:$0]  (!%p10826_p5), %s12025_s8, 16, %s1868_s1, [#allocation7]  }
  0xb9   : > { %p9583_p10 = pnand %p9582_p9, %p9576_p4 }
  0xbb   : > { %9586 = shalt.err (!%p9583_p10)
}
  0xbc   : > { %9076 = dma.hbm_to_vmem [thread:$0]  (!%p10826_p5), %s10482_s24, 16, %s10822_s11, [#allocation10]  }
  0xbd   : > { %s9598_s1 = scalar_lea.vmem %s10830_s15, 16  ;;  %s9605_s0 = scalar_lea.vmem %s10830_s15, 32 }
  0xbe   : > { %p9599_p11 = scmp.ne.s32.totalorder %s10830_s15, %s9598_s1  ;;  %p9606_p0 = scmp.lt.s32.totalorder %s10830_s15, %s10830_s15 }
  0xbf   : > { %p9607_p1 = scmp.lt.s32.totalorder %s9605_s0, %s9598_s1 }
  0xc0   : > { %p9601_p12 = pnand %p9599_p11, %p10836_p6 }
  0xc1   : > { %p9608_p4 = por %p9607_p1, %p9606_p0 }
  0xc2   : > { %p9602_p13 = pneg %p9601_p12 }
  0xc4   : > { %p9609_p7 = pnand %p9608_p4, %p9602_p13 }
  0xc6   : > { %9612 = shalt.err (!%p9609_p7)
}
  0xc7   : > { %9082 = dma.hbm_to_vmem [thread:$0]  (!%p10826_p5), %s10552_s17, 16, %s10830_s15, [#allocation13]  }
  0xc8   : > { %s9624_s11 = scalar_lea.vmem %s10832_s28, 16  ;;  %s9631_s7 = scalar_lea.vmem %s10832_s28, 32 }
  0xc9   : > { %p9625_p8 = scmp.ne.s32.totalorder %s10832_s28, %s9624_s11  ;;  %p9632_p11 = scmp.lt.s32.totalorder %s10832_s28, %s10832_s28 }
  0xca   : > { %p9633_p12 = scmp.lt.s32.totalorder %s9631_s7, %s9624_s11 }
  0xcb   : > { %p9627_p9 = pnand %p9625_p8, %p10836_p6 }
  0xcc   : > { %p9634_p13 = por %p9633_p12, %p9632_p11 }
  0xcd   : > { %p9628_p10 = pneg %p9627_p9 }
  0xcf   : > { %p9635_p0 = pnand %p9634_p13, %p9628_p10 }
  0xd1   : > { %9638 = shalt.err (!%p9635_p0)
}
  0xd2   : > { %s12026_s13 = sld [smem:[#allocation89_spill]]  ;;  %s10381_s25 = smov [#allocation18]  }
  0xd3   : > { %s2018_s15 = sshll.u32 %s10381_s25, 4  ;;  %s10382_s21 = smov [#allocation21]   ;;  %s2019_s15 = int_to_ptr.vmem [resolvable:$true] %s2018_s15 }
  0xd4   : > { %s2049_s1 = sshll.u32 %s10382_s21, 4  ;;  %s9650_s0 = scalar_lea.vmem %s2019_s15, 16  ;;  %s2050_s1 = int_to_ptr.vmem [resolvable:$true] %s2049_s1 }
  0xd5   : > { %p9651_p1 = scmp.ne.s32.totalorder %s2019_s15, %s9650_s0  ;;  %s9657_s11 = scalar_lea.vmem %s2019_s15, 32 }
  0xd6   : > { %p9658_p8 = scmp.lt.s32.totalorder %s2019_s15, %s2019_s15  ;;  %p9659_p9 = scmp.lt.s32.totalorder %s9657_s11, %s9650_s0 }
  0xd7   : > { %p9653_p4 = pnand %p9651_p1, %p10836_p6 }
  0xd8   : > { %9088 = dma.hbm_to_vmem [thread:$0]  (!%p10826_p5), %s12026_s13, 16, %s10832_s28, [#allocation16]  }
  0xd9   : > { %p9654_p7 = pneg %p9653_p4  ;;  %p9660_p10 = por %p9659_p9, %p9658_p8 }
  0xdb   : > { %p9661_p11 = pnand %p9660_p10, %p9654_p7 }
  0xdd   : > { %9664 = shalt.err (!%p9661_p11)
}
  0xde   : > { %s12027_s4 = sld [smem:[#allocation94_spill]]  ;;  %s9676_s28 = scalar_lea.vmem %s2050_s1, 16 }
  0xdf   : > { %p9677_p12 = scmp.ne.s32.totalorder %s2050_s1, %s9676_s28  ;;  %s9683_s7 = scalar_lea.vmem %s2050_s1, 32 }
  0xe0   : > { %p9684_p1 = scmp.lt.s32.totalorder %s2050_s1, %s2050_s1  ;;  %p9685_p4 = scmp.lt.s32.totalorder %s9683_s7, %s9676_s28 }
  0xe1   : > { %p9679_p13 = pnand %p9677_p12, %p10836_p6 }
  0xe2   : > { %p9686_p2 = por %p9685_p4, %p9684_p1 }
  0xe3   : > { %p9680_p0 = pneg %p9679_p13 }
  0xe4   : > { %9094 = dma.hbm_to_vmem [thread:$0]  (!%p10826_p5), %s12027_s4, 16, %s2019_s15, [#allocation19]  }
  0xe5   : > { %p9687_p3 = pnand %p9686_p2, %p9680_p0 }
  0xe7   : > { %9690 = shalt.err (!%p9687_p3)
}
  0xe8   : > { %9100 = dma.hbm_to_vmem [thread:$0]  (!%p10826_p5), %s10637_s20, 16, %s2050_s1, [#allocation22]  }
  0xe9   : > { %s10383_s25 = smov [#allocation24]   ;;  %s10384_s15 = smov [#allocation27]  }
  0xea   : > { %s2071_s21 = sshll.u32 %s10383_s25, 4  ;;  %s2096_s0 = sshll.u32 %s10384_s15, 4  ;;  %s2072_s21 = int_to_ptr.vmem [resolvable:$true] %s2071_s21  ;;  %s2097_s0 = int_to_ptr.vmem [resolvable:$true] %s2096_s0 }
  0xeb   : > { %s9702_s11 = scalar_lea.vmem %s2072_s21, 16  ;;  %s9709_s4 = scalar_lea.vmem %s2072_s21, 32 }
  0xec   : > { %p9703_p7 = scmp.ne.s32.totalorder %s2072_s21, %s9702_s11  ;;  %p9710_p10 = scmp.lt.s32.totalorder %s2072_s21, %s2072_s21 }
  0xed   : > { %p9711_p11 = scmp.lt.s32.totalorder %s9709_s4, %s9702_s11 }
  0xee   : > { %p9705_p8 = pnand %p9703_p7, %p10836_p6 }
  0xef   : > { %p9712_p2 = por %p9711_p11, %p9710_p10 }
  0xf0   : > { %p9706_p9 = pneg %p9705_p8 }
  0xf2   : > { %p9713_p3 = pnand %p9712_p2, %p9706_p9 }
  0xf4   : > { %9716 = shalt.err (!%p9713_p3)
}
  0xf5   : > { %9106 = dma.hbm_to_vmem [thread:$0]  (!%p10826_p5), %s10647_s27, 16, %s2072_s21, [#allocation25]  }
  0xf6   : > { %s9728_s1 = scalar_lea.vmem %s2097_s0, 16  ;;  %s9735_s28 = scalar_lea.vmem %s2097_s0, 32 }
  0xf7   : > { %p9729_p12 = scmp.ne.s32.totalorder %s2097_s0, %s9728_s1  ;;  %p9736_p1 = scmp.lt.s32.totalorder %s2097_s0, %s2097_s0 }
  0xf8   : > { %p9737_p4 = scmp.lt.s32.totalorder %s9735_s28, %s9728_s1 }
  0xf9   : > { %p9731_p13 = pnand %p9729_p12, %p10836_p6 }
  0xfa   : > { %p9738_p7 = por %p9737_p4, %p9736_p1 }
  0xfb   : > { %p9732_p0 = pneg %p9731_p13 }
  0xfd   : > { %p9739_p8 = pnand %p9738_p7, %p9732_p0 }
  0xff   : > { %9742 = shalt.err (!%p9739_p8)
}
 0x100   : > { %9112 = dma.hbm_to_vmem [thread:$0]  (!%p10826_p5), %s10660_s19, 16, %s2097_s0, [#allocation28]  }
 0x101   : > { %s10385_s4 = smov [#allocation30]   ;;  %s10386_s25 = smov [#allocation33]  }
 0x102   : > { %s2130_s7 = sshll.u32 %s10385_s4, 4  ;;  %s2152_s21 = sshll.u32 %s10386_s25, 4  ;;  %s2131_s7 = int_to_ptr.vmem [resolvable:$true] %s2130_s7  ;;  %s2153_s21 = int_to_ptr.vmem [resolvable:$true] %s2152_s21 }
 0x103   : > { %s9754_s15 = scalar_lea.vmem %s2131_s7, 16  ;;  %s9761_s11 = scalar_lea.vmem %s2131_s7, 32 }
 0x104   : > { %p9755_p9 = scmp.ne.s32.totalorder %s2131_s7, %s9754_s15  ;;  %p9762_p2 = scmp.lt.s32.totalorder %s2131_s7, %s2131_s7 }
 0x105   : > { %p9763_p3 = scmp.lt.s32.totalorder %s9761_s11, %s9754_s15 }
 0x106   : > { %p9757_p10 = pnand %p9755_p9, %p10836_p6 }
 0x107   : > { %p9764_p12 = por %p9763_p3, %p9762_p2 }
 0x108   : > { %p9758_p11 = pneg %p9757_p10 }
 0x10a   : > { %p9765_p13 = pnand %p9764_p12, %p9758_p11 }
 0x10c   : > { %9768 = shalt.err (!%p9765_p13)
}
 0x10d   : > { %s12028_s10 = sld [smem:[#allocation106_spill]]  ;;  %s9780_s0 = scalar_lea.vmem %s2153_s21, 16 }
 0x10e   : > { %p9781_p0 = scmp.ne.s32.totalorder %s2153_s21, %s9780_s0  ;;  %s9787_s1 = scalar_lea.vmem %s2153_s21, 32 }
 0x10f   : > { %p9788_p7 = scmp.lt.s32.totalorder %s2153_s21, %s2153_s21  ;;  %p9789_p8 = scmp.lt.s32.totalorder %s9787_s1, %s9780_s0 }
 0x110   : > { %p9783_p1 = pnand %p9781_p0, %p10836_p6 }
 0x111   : > { %p9790_p9 = por %p9789_p8, %p9788_p7 }
 0x112   : > { %p9784_p4 = pneg %p9783_p1 }
 0x113   : > { %9118 = dma.hbm_to_vmem [thread:$0]  (!%p10826_p5), %s12028_s10, 16, %s2131_s7, [#allocation31]  }
 0x114   : > { %p9791_p10 = pnand %p9790_p9, %p9784_p4 }
 0x116   : > { %9794 = shalt.err (!%p9791_p10)
}
 0x117   : > { %9124 = dma.hbm_to_vmem [thread:$0]  (!%p10826_p5), %s10700_s22, 16, %s2153_s21, [#allocation34]  }
 0x118   : > { %s10387_s28 = smov [#allocation36]   ;;  %s10388_s7 = smov [#allocation39]  }
 0x119   : > { %s2177_s4 = sshll.u32 %s10387_s28, 4  ;;  %s2217_s25 = sshll.u32 %s10388_s7, 4  ;;  %s2178_s4 = int_to_ptr.vmem [resolvable:$true] %s2177_s4  ;;  %s2218_s25 = int_to_ptr.vmem [resolvable:$true] %s2217_s25 }
 0x11a   : > { %s9806_s15 = scalar_lea.vmem %s2178_s4, 16  ;;  %s9813_s11 = scalar_lea.vmem %s2178_s4, 32 }
 0x11b   : > { %p9807_p11 = scmp.ne.s32.totalorder %s2178_s4, %s9806_s15  ;;  %p9814_p12 = scmp.lt.s32.totalorder %s2178_s4, %s2178_s4 }
 0x11c   : > { %p9815_p13 = scmp.lt.s32.totalorder %s9813_s11, %s9806_s15 }
 0x11d   : > { %p9809_p2 = pnand %p9807_p11, %p10836_p6 }
 0x11e   : > { %p9816_p0 = por %p9815_p13, %p9814_p12 }
 0x11f   : > { %p9810_p3 = pneg %p9809_p2 }
 0x121   : > { %p9817_p1 = pnand %p9816_p0, %p9810_p3 }
 0x123   : > { %9820 = shalt.err (!%p9817_p1)
}
 0x124   : > { %9130 = dma.hbm_to_vmem [thread:$0]  (!%p10826_p5), %s10713_s16, 16, %s2178_s4, [#allocation37]  }
 0x125   : > { %s9832_s21 = scalar_lea.vmem %s2218_s25, 128  ;;  %p9840_p9 = scmp.lt.s32.totalorder %s2218_s25, %s2218_s25 }
 0x126   : > { %p9833_p4 = scmp.ne.s32.totalorder %s2218_s25, %s9832_s21  ;;  %p9841_p10 = scmp.lt.s32.totalorder %s9832_s21, %s9832_s21 }
 0x128   : > { %p9835_p7 = pnand %p9833_p4, %p10836_p6  ;;  %p9842_p11 = por %p9841_p10, %p9840_p9 }
 0x12a   : > { %p9836_p8 = pneg %p9835_p7 }
 0x12c   : > { %p9843_p2 = pnand %p9842_p11, %p9836_p8 }
 0x12e   : > { %9846 = shalt.err (!%p9843_p2)
}
 0x12f   : > { %s12029_s12 = sld [smem:[#allocation116_spill]]  ;;  %s10389_s0 = smov [#allocation42]  }
 0x130   : > { %s2248_s1 = sshll.u32 %s10389_s0, 4  ;;  %s10390_s28 = smov [#allocation4]   ;;  %s2249_s1 = int_to_ptr.vmem [resolvable:$true] %s2248_s1 }
 0x131   : > { %s1856_s4 = sshll.u32 %s10390_s28, 4  ;;  %s9858_s7 = scalar_lea.vmem %s2249_s1, 16  ;;  %s1857_s4 = int_to_ptr.vmem [resolvable:$true] %s1856_s4 }
 0x132   : > { %p9859_p3 = scmp.ne.s32.totalorder %s2249_s1, %s9858_s7  ;;  %s9865_s15 = scalar_lea.vmem %s2249_s1, 32 }
 0x133   : > { %p9866_p0 = scmp.lt.s32.totalorder %s2249_s1, %s2249_s1  ;;  %p9867_p1 = scmp.lt.s32.totalorder %s9865_s15, %s9858_s7 }
 0x134   : > { %p9861_p12 = pnand %p9859_p3, %p10836_p6 }
 0x135   : > { %9136 = dma.hbm_to_vmem [thread:$0]  (!%p10826_p5), %s12029_s12, 128, %s2218_s25, [#allocation40]  }
 0x136   : > { %p9862_p13 = pneg %p9861_p12  ;;  %p9868_p4 = por %p9867_p1, %p9866_p0 }
 0x138   : > { %p9869_p7 = pnand %p9868_p4, %p9862_p13 }
 0x13a   : > { %9872 = shalt.err (!%p9869_p7)
}
 0x13b   : > { %9142 = dma.hbm_to_vmem [thread:$0]  (!%p10826_p5), %s10778_s30, 16, %s2249_s1, [#allocation43]  }
 0x13c   : > { %s9884_s25 = scalar_lea.vmem %s1857_s4, 16  ;;  %s9891_s11 = scalar_lea.vmem %s1857_s4, 32 }
 0x13d   : > { %p9885_p8 = scmp.ne.s32.totalorder %s1857_s4, %s9884_s25  ;;  %p9892_p11 = scmp.lt.s32.totalorder %s1857_s4, %s1857_s4 }
 0x13e   : > { %p9893_p2 = scmp.lt.s32.totalorder %s9891_s11, %s9884_s25 }
 0x13f   : > { %p9887_p9 = pnand %p9885_p8, %p10836_p6 }
 0x140   : > { %p9894_p3 = por %p9893_p2, %p9892_p11 }
 0x141   : > { %p9888_p10 = pneg %p9887_p9 }
 0x143   : > { %p9895_p12 = pnand %p9894_p3, %p9888_p10 }
 0x145   : > { %9898 = shalt.err (!%p9895_p12)
}
 0x146   : > { %s12030_s3 = sld [smem:[#allocation66_spill]]  ;;  %s10391_s21 = smov [#allocation8]  }
 0x147   : > { %s1878_s0 = sshll.u32 %s10391_s21, 4  ;;  %s10392_s1 = smov [#allocation11]   ;;  %s1879_s0 = int_to_ptr.vmem [resolvable:$true] %s1878_s0 }
 0x148   : > { %s1921_s28 = sshll.u32 %s10392_s1, 4  ;;  %s9910_s7 = scalar_lea.vmem %s1879_s0, 16  ;;  %s1922_s28 = int_to_ptr.vmem [resolvable:$true] %s1921_s28 }
 0x149   : > { %p9911_p13 = scmp.ne.s32.totalorder %s1879_s0, %s9910_s7  ;;  %s9917_s15 = scalar_lea.vmem %s1879_s0, 32 }
 0x14a   : > { %p9918_p4 = scmp.lt.s32.totalorder %s1879_s0, %s1879_s0  ;;  %p9919_p7 = scmp.lt.s32.totalorder %s9917_s15, %s9910_s7 }
 0x14b   : > { %p9913_p0 = pnand %p9911_p13, %p10836_p6 }
 0x14c   : > { %9067 = dma.hbm_to_vmem [thread:$0]  (!%p10826_p5), %s12030_s3, 16, %s1857_s4, [#allocation5]  }
 0x14d   : > { %p9914_p1 = pneg %p9913_p0  ;;  %p9920_p8 = por %p9919_p7, %p9918_p4 }
 0x14f   : > { %p9921_p9 = pnand %p9920_p8, %p9914_p1 }
 0x151   : > { %9924 = shalt.err (!%p9921_p9)
}
 0x152   : > { %s12031_s25 = sld [smem:[#allocation68_spill]]  ;;  %s9936_s4 = scalar_lea.vmem %s1922_s28, 16 }
 0x153   : > { %p9937_p10 = scmp.ne.s32.totalorder %s1922_s28, %s9936_s4  ;;  %s9943_s11 = scalar_lea.vmem %s1922_s28, 32 }
 0x154   : > { %p9944_p3 = scmp.lt.s32.totalorder %s1922_s28, %s1922_s28  ;;  %p9945_p12 = scmp.lt.s32.totalorder %s9943_s11, %s9936_s4 }
 0x155   : > { %p9939_p11 = pnand %p9937_p10, %p10836_p6 }
 0x156   : > { %p9946_p13 = por %p9945_p12, %p9944_p3 }
 0x157   : > { %p9940_p2 = pneg %p9939_p11 }
 0x158   : > { %9073 = dma.hbm_to_vmem [thread:$0]  (!%p10826_p5), %s12031_s25, 16, %s1879_s0, [#allocation7]  }
 0x159   : > { %p9947_p0 = pnand %p9946_p13, %p9940_p2 }
 0x15b   : > { %9950 = shalt.err (!%p9947_p0)
}
 0x15c   : > { %s12032_s21 = sld [smem:[#allocation76_spill]]  ;;  %s10393_s1 = smov [#allocation14]  }
 0x15d   : > { %s1967_s7 = sshll.u32 %s10393_s1, 4  ;;  %s10394_s0 = smov [#allocation17]   ;;  %s1968_s7 = int_to_ptr.vmem [resolvable:$true] %s1967_s7 }
 0x15e   : > { %s1998_s15 = sshll.u32 %s10394_s0, 4  ;;  %s9962_s25 = scalar_lea.vmem %s1968_s7, 128  ;;  %s1999_s15 = int_to_ptr.vmem [resolvable:$true] %s1998_s15 }
 0x15f   : > { %p9963_p1 = scmp.ne.s32.totalorder %s1968_s7, %s9962_s25  ;;  %p9970_p8 = scmp.lt.s32.totalorder %s1968_s7, %s1968_s7 }
 0x160   : > { %p9971_p9 = scmp.lt.s32.totalorder %s9962_s25, %s9962_s25 }
 0x161   : > { %p9965_p4 = pnand %p9963_p1, %p10836_p6 }
 0x162   : > { %9079 = dma.hbm_to_vmem [thread:$0]  (!%p10826_p5), %s12032_s21, 16, %s1922_s28, [#allocation10]  }
 0x163   : > { %p9966_p7 = pneg %p9965_p4  ;;  %p9972_p10 = por %p9971_p9, %p9970_p8 }
 0x165   : > { %p9973_p11 = pnand %p9972_p10, %p9966_p7 }
 0x167   : > { %9976 = shalt.err (!%p9973_p11)
}
 0x168   : > { %s12033_s4 = sld [smem:[#allocation85_spill]]  ;;  %s9988_s28 = scalar_lea.vmem %s1999_s15, 16 }
 0x169   : > { %p9989_p2 = scmp.ne.s32.totalorder %s1999_s15, %s9988_s28  ;;  %s9995_s11 = scalar_lea.vmem %s1999_s15, 32 }
 0x16a   : > { %p9996_p13 = scmp.lt.s32.totalorder %s1999_s15, %s1999_s15  ;;  %p9997_p0 = scmp.lt.s32.totalorder %s9995_s11, %s9988_s28 }
 0x16b   : > { %p9991_p3 = pnand %p9989_p2, %p10836_p6 }
 0x16c   : > { %p9998_p1 = por %p9997_p0, %p9996_p13 }
 0x16d   : > { %p9992_p12 = pneg %p9991_p3 }
 0x16e   : > { %9085 = dma.hbm_to_vmem [thread:$0]  (!%p10826_p5), %s12033_s4, 128, %s1968_s7, [#allocation13]  }
 0x16f   : > { %p9999_p4 = pnand %p9998_p1, %p9992_p12 }
 0x171   : > { %10002 = shalt.err (!%p9999_p4)
}
 0x172   : > { %s12034_s21 = sld [smem:[#allocation90_spill]]  ;;  %s10395_s1 = smov [#allocation20]  }
 0x173   : > { %s2029_s0 = sshll.u32 %s10395_s1, 4  ;;  %s10396_s7 = smov [#allocation23]   ;;  %s2030_s0 = int_to_ptr.vmem [resolvable:$true] %s2029_s0 }
 0x174   : > { %s2060_s25 = sshll.u32 %s10396_s7, 4  ;;  %s10014_s4 = scalar_lea.vmem %s2030_s0, 16  ;;  %s2061_s25 = int_to_ptr.vmem [resolvable:$true] %s2060_s25 }
 0x175   : > { %p10015_p7 = scmp.ne.s32.totalorder %s2030_s0, %s10014_s4  ;;  %s10021_s3 = scalar_lea.vmem %s2030_s0, 32 }
 0x176   : > { %p10022_p10 = scmp.lt.s32.totalorder %s2030_s0, %s2030_s0  ;;  %p10023_p11 = scmp.lt.s32.totalorder %s10021_s3, %s10014_s4 }
 0x177   : > { %p10017_p8 = pnand %p10015_p7, %p10836_p6 }
 0x178   : > { %9091 = dma.hbm_to_vmem [thread:$0]  (!%p10826_p5), %s12034_s21, 16, %s1999_s15, [#allocation16]  }
 0x179   : > { %p10018_p9 = pneg %p10017_p8  ;;  %p10024_p2 = por %p10023_p11, %p10022_p10 }
 0x17b   : > { %p10025_p3 = pnand %p10024_p2, %p10018_p9 }
 0x17d   : > { %10028 = shalt.err (!%p10025_p3)
}
 0x17e   : > { %s12035_s28 = sld [smem:[#allocation95_spill]]  ;;  %s10040_s15 = scalar_lea.vmem %s2061_s25, 16 }
 0x17f   : > { %p10041_p12 = scmp.ne.s32.totalorder %s2061_s25, %s10040_s15  ;;  %s10047_s11 = scalar_lea.vmem %s2061_s25, 32 }
 0x180   : > { %p10048_p1 = scmp.lt.s32.totalorder %s2061_s25, %s2061_s25  ;;  %p10049_p4 = scmp.lt.s32.totalorder %s10047_s11, %s10040_s15 }
 0x181   : > { %p10043_p13 = pnand %p10041_p12, %p10836_p6 }
 0x182   : > { %p10050_p7 = por %p10049_p4, %p10048_p1 }
 0x183   : > { %p10044_p0 = pneg %p10043_p13 }
 0x184   : > { %9097 = dma.hbm_to_vmem [thread:$0]  (!%p10826_p5), %s12035_s28, 16, %s2030_s0, [#allocation19]  }
 0x185   : > { %p10051_p8 = pnand %p10050_p7, %p10044_p0 }
 0x187   : > { %10054 = shalt.err (!%p10051_p8)
}
 0x188   : > { %s12036_s3 = sld [smem:[#allocation99_spill]]  ;;  %s10397_s21 = smov [#allocation26]  }
 0x189   : > { %s2085_s1 = sshll.u32 %s10397_s21, 4  ;;  %s10398_s0 = smov [#allocation29]   ;;  %s2086_s1 = int_to_ptr.vmem [resolvable:$true] %s2085_s1 }
 0x18a   : > { %s2110_s7 = sshll.u32 %s10398_s0, 4  ;;  %s10066_s4 = scalar_lea.vmem %s2086_s1, 16  ;;  %s2111_s7 = int_to_ptr.vmem [resolvable:$true] %s2110_s7 }
 0x18b   : > { %p10067_p9 = scmp.ne.s32.totalorder %s2086_s1, %s10066_s4  ;;  %s10073_s28 = scalar_lea.vmem %s2086_s1, 32 }
 0x18c   : > { %p10074_p2 = scmp.lt.s32.totalorder %s2086_s1, %s2086_s1  ;;  %p10075_p3 = scmp.lt.s32.totalorder %s10073_s28, %s10066_s4 }
 0x18d   : > { %p10069_p10 = pnand %p10067_p9, %p10836_p6 }
 0x18e   : > { %9103 = dma.hbm_to_vmem [thread:$0]  (!%p10826_p5), %s12036_s3, 16, %s2061_s25, [#allocation22]  }
 0x18f   : > { %p10070_p11 = pneg %p10069_p10  ;;  %p10076_p12 = por %p10075_p3, %p10074_p2 }
 0x191   : > { %p10077_p13 = pnand %p10076_p12, %p10070_p11 }
 0x193   : > { %10080 = shalt.err (!%p10077_p13)
}
 0x194   : > { %s12037_s15 = sld [smem:[#allocation100_spill]]  ;;  %s10092_s25 = scalar_lea.vmem %s2111_s7, 16 }
 0x195   : > { %p10093_p0 = scmp.ne.s32.totalorder %s2111_s7, %s10092_s25  ;;  %s10099_s11 = scalar_lea.vmem %s2111_s7, 32 }
 0x196   : > { %p10100_p7 = scmp.lt.s32.totalorder %s2111_s7, %s2111_s7  ;;  %p10101_p8 = scmp.lt.s32.totalorder %s10099_s11, %s10092_s25 }
 0x197   : > { %p10095_p1 = pnand %p10093_p0, %p10836_p6 }
 0x198   : > { %p10102_p9 = por %p10101_p8, %p10100_p7 }
 0x199   : > { %p10096_p4 = pneg %p10095_p1 }
 0x19a   : > { %9109 = dma.hbm_to_vmem [thread:$0]  (!%p10826_p5), %s12037_s15, 16, %s2086_s1, [#allocation25]  }
 0x19b   : > { %p10103_p10 = pnand %p10102_p9, %p10096_p4 }
 0x19d   : > { %10106 = shalt.err (!%p10103_p10)
}
 0x19e   : > { %s12038_s3 = sld [smem:[#allocation102_spill]]  ;;  %s10399_s21 = smov [#allocation32]  }
 0x19f   : > { %s2141_s0 = sshll.u32 %s10399_s21, 4  ;;  %s10400_s1 = smov [#allocation35]   ;;  %s2142_s0 = int_to_ptr.vmem [resolvable:$true] %s2141_s0 }
 0x1a0   : > { %s2166_s4 = sshll.u32 %s10400_s1, 4  ;;  %s10118_s28 = scalar_lea.vmem %s2142_s0, 16  ;;  %s2167_s4 = int_to_ptr.vmem [resolvable:$true] %s2166_s4 }
 0x1a1   : > { %p10119_p11 = scmp.ne.s32.totalorder %s2142_s0, %s10118_s28  ;;  %s10125_s15 = scalar_lea.vmem %s2142_s0, 32 }
 0x1a2   : > { %p10126_p12 = scmp.lt.s32.totalorder %s2142_s0, %s2142_s0  ;;  %p10127_p13 = scmp.lt.s32.totalorder %s10125_s15, %s10118_s28 }
 0x1a3   : > { %p10121_p2 = pnand %p10119_p11, %p10836_p6 }
 0x1a4   : > { %9115 = dma.hbm_to_vmem [thread:$0]  (!%p10826_p5), %s12038_s3, 16, %s2111_s7, [#allocation28]  }
 0x1a5   : > { %p10122_p3 = pneg %p10121_p2  ;;  %p10128_p0 = por %p10127_p13, %p10126_p12 }
 0x1a7   : > { %p10129_p1 = pnand %p10128_p0, %p10122_p3 }
 0x1a9   : > { %10132 = shalt.err (!%p10129_p1)
}
 0x1aa   : > { %s12039_s25 = sld [smem:[#allocation107_spill]]  ;;  %s10144_s7 = scalar_lea.vmem %s2167_s4, 16 }
 0x1ab   : > { %p10145_p4 = scmp.ne.s32.totalorder %s2167_s4, %s10144_s7  ;;  %s10151_s11 = scalar_lea.vmem %s2167_s4, 32 }
 0x1ac   : > { %p10152_p9 = scmp.lt.s32.totalorder %s2167_s4, %s2167_s4  ;;  %p10153_p10 = scmp.lt.s32.totalorder %s10151_s11, %s10144_s7 }
 0x1ad   : > { %p10147_p7 = pnand %p10145_p4, %p10836_p6 }
 0x1ae   : > { %p10154_p11 = por %p10153_p10, %p10152_p9 }
 0x1af   : > { %p10148_p8 = pneg %p10147_p7 }
 0x1b0   : > { %9121 = dma.hbm_to_vmem [thread:$0]  (!%p10826_p5), %s12039_s25, 16, %s2142_s0, [#allocation31]  }
 0x1b1   : > { %p10155_p2 = pnand %p10154_p11, %p10148_p8 }
 0x1b3   : > { %10158 = shalt.err (!%p10155_p2)
}
 0x1b4   : > { %s12040_s3 = sld [smem:[#allocation108_spill]]  ;;  %s10401_s21 = smov [#allocation38]  }
 0x1b5   : > { %s2200_s1 = sshll.u32 %s10401_s21, 4  ;;  %s10402_s0 = smov [#allocation41]   ;;  %s2201_s1 = int_to_ptr.vmem [resolvable:$true] %s2200_s1 }
 0x1b6   : > { %s2237_s28 = sshll.u32 %s10402_s0, 4  ;;  %s10170_s15 = scalar_lea.vmem %s2201_s1, 16  ;;  %s2238_s28 = int_to_ptr.vmem [resolvable:$true] %s2237_s28 }
 0x1b7   : > { %p10171_p3 = scmp.ne.s32.totalorder %s2201_s1, %s10170_s15  ;;  %s10177_s25 = scalar_lea.vmem %s2201_s1, 32 }
 0x1b8   : > { %p10178_p0 = scmp.lt.s32.totalorder %s2201_s1, %s2201_s1  ;;  %p10179_p1 = scmp.lt.s32.totalorder %s10177_s25, %s10170_s15 }
 0x1b9   : > { %p10173_p12 = pnand %p10171_p3, %p10836_p6 }
 0x1ba   : > { %9127 = dma.hbm_to_vmem [thread:$0]  (!%p10826_p5), %s12040_s3, 16, %s2167_s4, [#allocation34]  }
 0x1bb   : > { %p10174_p13 = pneg %p10173_p12  ;;  %p10180_p4 = por %p10179_p1, %p10178_p0 }
 0x1bd   : > { %p10181_p7 = pnand %p10180_p4, %p10174_p13 }
 0x1bf   : > { %10184 = shalt.err (!%p10181_p7)
}
 0x1c0   : > { %s12041_s7 = sld [smem:[#allocation113_spill]]  ;;  %s10196_s4 = scalar_lea.vmem %s2238_s28, 16 }
 0x1c1   : > { %p10197_p8 = scmp.ne.s32.totalorder %s2238_s28, %s10196_s4  ;;  %s10203_s11 = scalar_lea.vmem %s2238_s28, 32 }
 0x1c2   : > { %p10204_p11 = scmp.lt.s32.totalorder %s2238_s28, %s2238_s28  ;;  %p10205_p2 = scmp.lt.s32.totalorder %s10203_s11, %s10196_s4 }
 0x1c3   : > { %p10199_p9 = pnand %p10197_p8, %p10836_p6 }
 0x1c4   : > { %p10206_p3 = por %p10205_p2, %p10204_p11 }
 0x1c5   : > { %p10200_p10 = pneg %p10199_p9 }
 0x1c6   : > { %9133 = dma.hbm_to_vmem [thread:$0]  (!%p10826_p5), %s12041_s7, 16, %s2201_s1, [#allocation37]  }
 0x1c7   : > { %p10207_p12 = pnand %p10206_p3, %p10200_p10 }
 0x1c9   : > { %10210 = shalt.err (!%p10207_p12)
}
 0x1ca   : > { %s12042_s3 = sld [smem:[#allocation120_spill]]  ;;  %s10403_s21 = smov [#allocation44]  }
 0x1cb   : > { %s2259_s0 = sshll.u32 %s10403_s21, 4  ;;  %s2260_s0 = int_to_ptr.vmem [resolvable:$true] %s2259_s0 }
 0x1cc   : > { %s10222_s1 = scalar_lea.vmem %s2260_s0, 32  ;;  %p10230_p4 = scmp.lt.s32.totalorder %s2260_s0, %s2260_s0 }
 0x1cd   : > { %p10223_p13 = scmp.ne.s32.totalorder %s2260_s0, %s10222_s1  ;;  %p10231_p7 = scmp.lt.s32.totalorder %s10222_s1, %s10222_s1 }
 0x1cf   : > { %p10225_p0 = pnand %p10223_p13, %p10836_p6  ;;  %p10232_p8 = por %p10231_p7, %p10230_p4 }
 0x1d0   : > { %9139 = dma.hbm_to_vmem [thread:$0]  (!%p10826_p5), %s12042_s3, 16, %s2238_s28, [#allocation40]  }
 0x1d1   : > { %p10226_p1 = pneg %p10225_p0 }
 0x1d3   : > { %p10233_p9 = pnand %p10232_p8, %p10226_p1 }
 0x1d5   : > { %10236 = shalt.err (!%p10233_p9)
}
 0x1d6   : > { %s12043_s15 = sld [smem:[#allocation121_spill]]  ;;  %p12044_p10 = scmp.ne.s32.totalorder %s12022_s6, 0 }
 0x1d7   : > { %p12045_p11 = scmp.eq.s32.totalorder (!%p12044_p10), %s10811_s2, 0 }
 0x1d8   : > { %2328 = sbr.rel (%p12044_p10) target bundleno = 13721 (0x3599), region = 324 }
 0x1dc   : > { %9145 = dma.hbm_to_vmem [thread:$0]  (!%p10826_p5), %s12043_s15, 32, %s2260_s0, [#allocation43]  }
 0x1dd   : > { %10242 = dma.done.wait (%p12045_p11), [#allocation5], 16   ;;  %p12046_p2 = pmov %p12045_p11 }
 0x1df   : > { %10244 = vsyncadd (%p12046_p2), [#allocation5], 4294967280  ;;  %p12047_p6 = pmov %p12046_p2 }
 0x1e0   : > { %p12048_p3 = pmov %p12046_p2 }
 0x1e1   : > { %10246 = dma.done.wait (%p12047_p6), [#allocation7], 32  }
 0x1e2   : > { %10248 = vsyncadd (%p12048_p3), [#allocation7], 4294967264  ;;  %p12049_p12 = pmov %p12046_p2 }
 0x1e3   : > { %p12050_p5 = pmov %p12046_p2 }
 0x1e4   : > { %10250 = dma.done.wait (%p12049_p12), [#allocation10], 32  }
 0x1e5   : > { %10252 = vsyncadd (%p12050_p5), [#allocation10], 4294967264  ;;  %p12051_p13 = pmov %p12046_p2 }
 0x1e6   : > { %p12052_p0 = pmov %p12046_p2 }
 0x1e7   : > { %10254 = dma.done.wait (%p12051_p13), [#allocation13], 144  }
 0x1e8   : > { %10256 = vsyncadd (%p12052_p0), [#allocation13], 4294967152  ;;  %p12053_p1 = pmov %p12052_p0 }
 0x1e9   : > { %p12054_p4 = pmov %p12052_p0 }
 0x1ea   : > { %10258 = dma.done.wait (%p12053_p1), [#allocation16], 32  }
 0x1eb   : > { %10260 = vsyncadd (%p12054_p4), [#allocation16], 4294967264  ;;  %p12055_p7 = pmov %p12052_p0 }
 0x1ec   : > { %p12056_p8 = pmov %p12052_p0 }
 0x1ed   : > { %10262 = dma.done.wait (%p12055_p7), [#allocation19], 32  }
 0x1ee   : > { %10264 = vsyncadd (%p12056_p8), [#allocation19], 4294967264  ;;  %p12057_p9 = pmov %p12052_p0 }
 0x1ef   : > { %p12058_p10 = pmov %p12052_p0 }
 0x1f0   : > { %10266 = dma.done.wait (%p12057_p9), [#allocation22], 32  }
 0x1f1   : > { %10268 = vsyncadd (%p12058_p10), [#allocation22], 4294967264  ;;  %p12059_p11 = pmov %p12052_p0 }
 0x1f2   : > { %p12060_p2 = pmov %p12052_p0 }
 0x1f3   : > { %10270 = dma.done.wait (%p12059_p11), [#allocation25], 32  }
 0x1f4   : > { %10272 = vsyncadd (%p12060_p2), [#allocation25], 4294967264  ;;  %p12061_p6 = pmov %p12052_p0 }
 0x1f5   : > { %p12062_p3 = pmov %p12052_p0 }
 0x1f6   : > { %10274 = dma.done.wait (%p12061_p6), [#allocation28], 32  }
 0x1f7   : > { %10276 = vsyncadd (%p12062_p3), [#allocation28], 4294967264  ;;  %p12063_p12 = pmov %p12052_p0 }
 0x1f8   : > { %p12064_p5 = pmov %p12052_p0 }
 0x1f9   : > { %10278 = dma.done.wait (%p12063_p12), [#allocation31], 32  }
 0x1fa   : > { %10280 = vsyncadd (%p12064_p5), [#allocation31], 4294967264  ;;  %p12065_p13 = pmov %p12052_p0 }
 0x1fc   : > { %10282 = dma.done.wait (%p12065_p13), [#allocation34], 32  }
 0x1fd   : > { %10284 = vsyncadd (%p12052_p0), [#allocation34], 4294967264  ;;  %p12066_p1 = pmov %p12052_p0 }
 0x1fe   : > { %p12067_p4 = pmov %p12052_p0 }
 0x1ff   : > { %10286 = dma.done.wait (%p12066_p1), [#allocation37], 32  }
 0x200   : > { %10288 = vsyncadd (%p12067_p4), [#allocation37], 4294967264  ;;  %p12068_p7 = pmov %p12052_p0 }
 0x201   : > { %p12069_p8 = pmov %p12052_p0 }
 0x202   : > { %10290 = dma.done.wait (%p12068_p7), [#allocation40], 144  }
 0x203   : > { %10292 = vsyncadd (%p12069_p8), [#allocation40], 4294967152  ;;  %p12070_p9 = pmov %p12052_p0 }
 0x204   : > { %p12071_p10 = pmov %p12052_p0 }
 0x205   : > { %10294 = dma.done.wait (%p12070_p9), [#allocation43], 48  }
 0x206   : > { %10296 = vsyncadd (%p12071_p10), [#allocation43], 4294967248  ;;  %s12072_s6 = sld [smem:[#allocation60_spill]]  ;;  %p2622_p11 = scmp.lt.s32.totalorder %s10811_s2, 1  ;;  %v10404_v2 = vmov 0   ;;  %v10405_v5 = vmov 0.0   ;;  %v2673_v36 = vlaneseq }
 0x207   : > { %s12073_s18 = sld [smem:[#allocation69_spill]]  ;;  %9326 = vset.pattern.permute.xlu0 %v10404_v2  ;;  %9327 = vset.pattern.permute.xlu1 %v10404_v2  ;;  %vm10406_vm0 = vmmov 0   ;;  %v8059_v7 = vld [vmem:[#allocation8] ss:$0 sm:$0xff]  ;;  %v8060_v9 = vld [vmem:[#allocation4] ss:$0 sm:$0xff] }
 0x208   : > { %s12127_s2 = smov (!%p2622_p11, %s10811_s2), 1  ;;  %8440 = vmatprep.subr.bf16.mxu1 %v10405_v5  ;;  %8432 = vmatprep.subr.bf16.mxu0 %v10405_v5  ;;  %s12074_s25 = sld [smem:[#allocation59_spill]]  ;;  %vm2719_vm1 = vcmask 261120   ;;  %v8061_v19 = vld [vmem:[#allocation6] ss:$0 sm:$0xff]  ;;  %v10407_v26 = vmov 1  }
 0x209   : > { %s11056_s26 = sshll.u32 %s12127_s2, 3  ;;  %8444 = vmatprep.mubr.msk.bf16.mxu1 %vm10406_vm0, %v10405_v5  ;;  %8436 = vmatprep.mubr.msk.bf16.mxu0 %vm10406_vm0, %v10405_v5  ;;  %s12075_s4 = sld [smem:[#allocation73_spill]]  ;;  %v11083_v33 = vld [vmem:[%s12021_s5 + $0x8] sm:$0xff]   ;;  %v11091_v35 = vld [vmem:[%s12021_s5] sm:$0xff]   ;;  %v11095_v37 = vshrl.u32 %v2673_v36, 7  ;;  %vm3010_vm2 = vcmask 64512  }
 0x20a   : > { %8433 = vmatpush3.bf16.msra.mxu0 %v11083_v33  ;;  %s12076_s11 = sld [smem:[#allocation72_spill]]  ;;  %v2655_v41 = vld [vmem:[#allocation44] sm:$0x3]  ;;  %v11111_v50 = vld [vmem:[#allocation41] ss:$0 sm:$0xff]  ;;  %s11934_s21 = smov 120  }
 0x20b   : > { %8434 = vmatprep.subr.bf16.mxu0 %v10405_v5  ;;  %v11098_v39 = vsub.s32 0, %v11095_v37  ;;  %v11101_v40 = vsub.s32 1, %v11095_v37  ;;  %s12077_s3 = sld [smem:[#allocation75_spill]]  ;;  %s11932_s0 = smov 112   ;;  %vm3075_vm3 = vcmask 1043456   ;;  %vm3463_vm4 = vcmask 130048  }
 0x20c   : > { %s2629_s28 = scalar_lea.vmem %s12072_s6, %s11056_s26  ;;  %s11930_s1 = smov 104   ;;  %vm3465_vm5 = vcmask 195584   ;;  %vm3652_vm6 = vcmask 523264   ;;  %vm7531_vm7 = vcmask 7168   ;;  %vm7533_vm8 = vcmask 15360  }
 0x20d   : > { %v2763_v3 = vld [vmem:[%s2629_s28] sm:$0xff]  ;;  %v9329_v4 = vld [vmem:[%s12073_s18 + $0x8] sm:$0xff]   ;;  %v11104_v43 = vrot.slane %v2655_v41, %v11098_v39  ;;  %v11107_v45 = vrot.slane %v2655_v41, %v11101_v40  ;;  %s11916_s15 = smov 88   ;;  %s11928_s6 = smov 96  }
 0x20e   : > { %2766 = vperm.xlu0 %9326, %v2763_v3   ;;  %8441 = vmatpush3.bf16.msra.mxu1 %v9329_v4  ;;  %v9330_v6 = vld [vmem:[%s12073_s18] sm:$0xff]   ;;  %s2625_s7 = scalar_lea.vmem %s12074_s25, %s11056_s26  ;;  %s11924_s28 = smov 72  }
 0x20f   : > { %8442 = vmatprep.subr.bf16.mxu1 %v10405_v5  ;;  %v2667_v18 = vld [vmem:[%s2625_s7] sm:$0xff]  ;;  %v9331_v32 = vld [vmem:[%s12075_s4 + $0x8] sm:$0xff]   ;;  %8435 = vmatpush3.bf16.msra.mxu0 %v11091_v35  ;;  %s11926_s25 = smov 80   ;;  %s12078_s7 = sld [smem:[#allocation74_spill]] }
 0x210   : > { %2670 = vperm.xlu1 %9327, %v2667_v18   ;;  %v9332_v34 = vld [vmem:[%s12075_s4] sm:$0xff]   ;;  %8448 = vmatprep.subr.bf16.mxu0 %v10405_v5  ;;  %s12089_s4 = smov 16   ;;  %s12090_s5 = smov 24  }
 0x211   : > { %v11115_v54 = vld [vmem:[%s12076_s11] sm:$0xff]  ;;  %v9335_v2 = vld [vmem:[%s12077_s3 + $0x8] sm:$0xff]   ;;  %s11918_s11 = smov 8   ;;  %s12092_s8 = sld [smem:[#allocation115_spill]] }
 0x212   : > { %8443 = vmatpush3.bf16.msra.mxu1 %v9330_v6  ;;  %v2893_v55 = vrot.slane %v11115_v54, %v11098_v39  ;;  %v2898_v58 = vrot.slane %v11115_v54, %v11101_v40  ;;  %v9336_v4 = vld [vmem:[%s12077_s3] sm:$0xff]   ;;  %s12088_s3 = smov 8   ;;  %s12094_s10 = sld [smem:[#allocation62_spill]] }
 0x213   : > { %8456 = vmatprep.subr.bf16.mxu1 %v10405_v5  ;;  %s12099_s12 = sld [smem:[#allocation96_spill]] }
 0x214   : > { %9328 = vset.pattern.permute.xlu1 %v10407_v26  ;;  %s12110_s13 = sld [smem:[#allocation88_spill]] }
 0x289   : > { %v2767_v8 = vpop.permute.xlu0 %2766 }
 0x28a   : > { %v2775_v10 = vmul.f32 %v8059_v7, %v2767_v8 }
 0x28b   : > { %v2671_v38 = vpop.permute.xlu1 %2670 }
 0x28c   : > { %v2782_v11 = vadd.f32 %v8060_v9, %v2775_v10  ;;  %v2677_v48 = vmul.f32 %v11104_v43, %v2671_v38 }
 0x28e   : > { %v2784_v12 = vmul.f32 0.70710677, %v2782_v11  ;;  %v2783_v14 = vmul.f32 0.5, %v2782_v11 }
 0x290   : > { %9415 = verf.f32 %v2784_v12 }
 0x29d   : > { %v9416_v13 = vpop.eup %9415 }
 0x29e   : > { %v2786_v15 = vadd.f32 1.0, %v9416_v13 }
 0x2a0   : > { %v2787_v16 = vmul.f32 %v2786_v15, %v2783_v14 }
 0x2a2   : > { %v2788_v17 = vpack.c.bf16 %v2787_v16, %v2787_v16 }
 0x2a4   : > { %8445 = vmatmul.mubr.msk.bf16.vlgmr.msra.gmra.mxu1 %vm2719_vm1, %v2788_v17 }
 0x2a5   : > { %8460 = vmatprep.mubr.msk.bf16.mxu1 %vm10406_vm0, %v10405_v5  ;;  %8457 = vmatpush3.bf16.msra.mxu1 %v9331_v32 }
 0x2a6   : > { %8458 = vmatprep.subr.bf16.mxu1 %v10405_v5 }
 0x2a9   : > { %8459 = vmatpush3.bf16.msra.mxu1 %v9332_v34 }
 0x2aa   : > { %8470 = vmatprep.subr.bf16.mxu1 %v10405_v5 }
 0x364   : > { %v2844_v20 = vpop.f32.mrf.mxu1 }
 0x365   : > { %v11075_v21 = vadd.f32 %v8061_v19, %v2844_v20 }
 0x366   : > { %v8446_v22 = vpop.f32.mrf.mxu1 }
 0x367   : > { %v2876_v23 = vsel %vm2719_vm1, %v11075_v21, 0.0 }
 0x368   : > { %2877 = vadd.xlane.f32.xlu0 %v2876_v23  ;;  %v2847_v24 = vpop.f32.mrf.mxu1 }
 0x36a   : > { %v8447_v25 = vpop.f32.mrf.mxu1 }
 0x3f1   : > { %v2878_v27 = vpop.xlane.xlu0 %2877 }
 0x3f2   : > { %v2880_v28 = vmul.f32 0.03125, %v2878_v27 }
 0x3f4   : > { %v2881_v29 = vsub.f32 %v11075_v21, %v2880_v28 }
 0x3f6   : > { %v2882_v30 = vmul.f32 %v2881_v29, %v2881_v29 }
 0x3f8   : > { %v2883_v31 = vsel %vm2719_vm1, %v2882_v30, 0.0 }
 0x3f9   : > { %2884 = vadd.xlane.f32.xlu1 %v2883_v31 }
 0x40a   : > { %2679 = vperm.xlu1 %9328, %v2667_v18  }
 0x482   : > { %v2885_v42 = vpop.xlane.xlu1 %2884 }
 0x483   : > { %v2886_v44 = vmul.f32 0.03125, %v2885_v42 }
 0x485   : > { %v2887_v46 = vadd.f32 1e-05, %v2886_v44 }
 0x486   : > { %v2680_v47 = vpop.permute.xlu1 %2679 }
 0x487   : > { %9417 = vrsqrt.f32 %v2887_v46  ;;  %v2686_v49 = vmul.f32 %v11107_v45, %v2680_v47 }
 0x489   : > { %v2687_v51 = vadd.f32 %v2686_v49, %v2677_v48 }
 0x48b   : > { %v2694_v52 = vadd.f32 %v11111_v50, %v2687_v51 }
 0x48d   : > { %v2696_v53 = vmul.f32 0.70710677, %v2694_v52  ;;  %v2695_v63 = vmul.f32 0.5, %v2694_v52 }
 0x48f   : > { %9419 = verf.f32 %v2696_v53 }
 0x494   : > { %v9418_v56 = vpop.eup %9417 }
 0x495   : > { %v2889_v57 = vmul.f32 %v9418_v56, %v2881_v29 }
 0x497   : > { %v2894_v59 = vmul.f32 %v2893_v55, %v2889_v57 }
 0x499   : > { %v2899_v60 = vadd.f32 %v2898_v58, %v2894_v59 }
 0x49b   : > { %v2900_v61 = vpack.c.bf16 %v2899_v60, %v2899_v60 }
 0x49c   : > { %v9420_v62 = vpop.eup %9419 }
 0x49d   : > { %8461 = vmatmul.mubr.msk.bf16.vlgmr.msra.gmra.mxu1 %vm2719_vm1, %v2900_v61  ;;  %v2698_v0 = vadd.f32 1.0, %v9420_v62 }
 0x49e   : > { %8472 = vmatprep.mubr.msk.bf16.mxu1 %vm10406_vm0, %v10405_v5 }
 0x49f   : > { %v2699_v1 = vmul.f32 %v2698_v0, %v2695_v63 }
 0x4a1   : > { %v2700_v3 = vpack.c.bf16 %v2699_v1, %v2699_v1 }
 0x4a3   : > { %8437 = vmatmul.mubr.msk.bf16.vlgmr.msra.gmra.mxu0 %vm2719_vm1, %v2700_v3 }
 0x4a4   : > { %8449 = vmatpush3.bf16.msra.mxu0 %v9335_v2  ;;  %8452 = vmatprep.mubr.msk.bf16.mxu0 %vm10406_vm0, %v10405_v5 }
 0x4a5   : > { %8450 = vmatprep.subr.bf16.mxu0 %v10405_v5 }
 0x4a8   : > { %8451 = vmatpush3.bf16.msra.mxu0 %v9336_v4 }
 0x4a9   : > { %8464 = vmatprep.subr.bf16.mxu0 %v10405_v5 }
 0x4ab   : > { %8453 = vmatmul.mubr.msk.bf16.vlgmr.msra.gmra.mxu0 %vm2719_vm1, %v2900_v61 }
 0x4ac   : > { %8466 = vmatprep.mubr.msk.bf16.mxu0 %vm10406_vm0, %v10405_v5 }
 0x55d   : > { %v3002_v6 = vpop.f32.mrf.mxu1 }
 0x55e   : > { %v11134_v7 = vpack.c.bf16 %v3002_v6, %v3002_v6 }
 0x55f   : > { %v8462_v8 = vpop.f32.mrf.mxu1 }
 0x560   : > { %3122 = vrot.lane.b32.xlu1 %v11134_v7, %s11934_s21  ;;  %v3015_v9 = vsel %vm3010_vm2, %v11134_v7, 0 }
 0x561   : > { %v3005_v10 = vpop.f32.mrf.mxu1  ;;  %8465 = vmatpush3.bf16.xpose.msra.mxu0 %v3015_v9 }
 0x562   : > { %8476 = vmatprep.subr.bf16.mxu0 %v10405_v5 }
 0x563   : > { %v11141_v11 = vpop.f32.mrf.mxu0  ;;  %v8463_v12 = vpop.f32.mrf.mxu1 }
 0x565   : > { %v8438_v13 = vpop.f32.mrf.mxu0 }
 0x567   : > { %v2760_v14 = vpop.f32.mrf.mxu0 }
 0x569   : > { %v8439_v15 = vpop.f32.mrf.mxu0 }
 0x56b   : > { %v2950_v16 = vpop.f32.mrf.mxu0 }
 0x56c   : > { %v3008_v17 = vpack.c.bf16 %v2950_v16, %v2950_v16 }
 0x56d   : > { %v8454_v18 = vpop.f32.mrf.mxu0 }
 0x56e   : > { %3230 = vrot.lane.b32.xlu0 %v3008_v17, %s11932_s0  ;;  %3120 = vrot.lane.b32.xlu1 %v3008_v17, %s11934_s21 }
 0x56f   : > { %8467 = vmatmul.mubr.msk.bf16.vlgmr.msra.gmra.mxu0 %vm3010_vm2, %v3008_v17  ;;  %v2953_v19 = vpop.f32.mrf.mxu0 }
 0x570   : > { %8478 = vmatprep.mubr.msk.bf16.mxu0 %vm10406_vm0, %v10405_v5 }
 0x571   : > { %v8455_v20 = vpop.f32.mrf.mxu0 }
 0x572   : > { %3232 = vrot.lane.b32.xlu1 %v11134_v7, %s11932_s0 }
 0x576   : > { %3342 = vrot.lane.b32.xlu1 %v11134_v7, %s11930_s1 }
 0x57a   : > { %3340 = vrot.lane.b32.xlu1 %v3008_v17, %s11930_s1 }
 0x5d2   : > { %v3123_v22 = vpop.permute.xlu1 %3122 }
 0x5d3   : > { %v3128_v23 = vsel %vm3010_vm2, %v3123_v22, 0 }
 0x5d4   : > { %8477 = vmatpush3.bf16.xpose.msra.mxu0 %v3128_v23 }
 0x5d5   : > { %8488 = vmatprep.subr.bf16.mxu0 %v10405_v5 }
 0x5e0   : > { %v3121_v24 = vpop.permute.xlu1 %3120  ;;  %v3231_v28 = vpop.permute.xlu0 %3230 }
 0x5e1   : > { %8479 = vmatmul.mubr.msk.bf16.vlgmr.msra.gmra.mxu0 %vm3010_vm2, %v3121_v24 }
 0x5e2   : > { %8490 = vmatprep.mubr.msk.bf16.mxu0 %vm10406_vm0, %v10405_v5 }
 0x5e4   : > { %v3233_v25 = vpop.permute.xlu1 %3232 }
 0x5e5   : > { %v3238_v26 = vsel %vm3010_vm2, %v3233_v25, 0 }
 0x5e6   : > { %8489 = vmatpush3.bf16.xpose.msra.mxu0 %v3238_v26 }
 0x5e7   : > { %8500 = vmatprep.subr.bf16.mxu0 %v10405_v5 }
 0x5e8   : > { %v3343_v27 = vpop.permute.xlu1 %3342 }
 0x5e9   : > { %v3348_v29 = vsel %vm3010_vm2, %v3343_v27, 0 }
 0x5ec   : > { %v3341_v30 = vpop.permute.xlu1 %3340 }
 0x5ed   : > { %8491 = vmatmul.mubr.msk.bf16.vlgmr.msra.gmra.mxu0 %vm3010_vm2, %v3231_v28 }
 0x5ee   : > { %8501 = vmatpush3.bf16.xpose.msra.mxu0 %v3348_v29  ;;  %8502 = vmatprep.mubr.msk.bf16.mxu0 %vm10406_vm0, %v10405_v5 }
 0x5ef   : > { %8512 = vmatprep.subr.bf16.mxu0 %v10405_v5 }
 0x5f5   : > { %8503 = vmatmul.mubr.msk.bf16.vlgmr.msra.gmra.mxu0 %vm3010_vm2, %v3341_v30 }
 0x5f6   : > { %8516 = vmatprep.mubr.msk.bf16.mxu0 %vm10406_vm0, %v10405_v5 }
 0x62f   : > { %v3051_v31 = vpop.f32.mrf.mxu0 }
 0x630   : > { %v3057_v32 = vsel %vm3010_vm2, %v3051_v31, -inf }
 0x631   : > { %3058 = vmax.xlane.f32.xlu1 %v3057_v32  ;;  %v8468_v34 = vpop.f32.mrf.mxu0 }
 0x633   : > { %v3054_v36 = vpop.f32.mrf.mxu0 }
 0x635   : > { %v8469_v38 = vpop.f32.mrf.mxu0 }
 0x6a1   : > { %v3164_v41 = vpop.f32.mrf.mxu0 }
 0x6a2   : > { %v3170_v42 = vsel %vm3010_vm2, %v3164_v41, -inf }
 0x6a3   : > { %3171 = vmax.xlane.f32.xlu0 %v3170_v42  ;;  %v8480_v44 = vpop.f32.mrf.mxu0 }
 0x6a5   : > { %v3167_v46 = vpop.f32.mrf.mxu0 }
 0x6a7   : > { %v8481_v47 = vpop.f32.mrf.mxu0 }
 0x6ad   : > { %v3274_v48 = vpop.f32.mrf.mxu0 }
 0x6ae   : > { %v3280_v49 = vsel %vm3010_vm2, %v3274_v48, -inf }
 0x6af   : > { %3281 = vmax.xlane.f32.xlu1 %v3280_v49  ;;  %v8492_v51 = vpop.f32.mrf.mxu0 }
 0x6b1   : > { %v3277_v52 = vpop.f32.mrf.mxu0 }
 0x6b3   : > { %v8493_v53 = vpop.f32.mrf.mxu0 }
 0x6b5   : > { %v3384_v55 = vpop.f32.mrf.mxu0 }
 0x6b6   : > { %v3390_v56 = vsel %vm3010_vm2, %v3384_v55, -inf }
 0x6b7   : > { %3391 = vmax.xlane.f32.xlu1 %v3390_v56  ;;  %v8504_v57 = vpop.f32.mrf.mxu0 }
 0x6b9   : > { %v3387_v58 = vpop.f32.mrf.mxu0 }
 0x6ba   : > { %v3059_v59 = vpop.xlane.xlu1 %3058 }
 0x6bb   : > { %v3060_v60 = vsub.f32 %v3051_v31, %v3059_v59  ;;  %v8505_v61 = vpop.f32.mrf.mxu0 }
 0x6bc   : > { %v9338_v61 = vld [vmem:[%s12078_s7] sm:$0xff]  }
 0x6bd   : > { %v3061_v62 = vmul.f32 1.442695, %v3060_v60  ;;  %v9337_v60 = vld [vmem:[%s12078_s7 + $0x8] sm:$0xff]   ;;  %s12091_s7 = sld [smem:[#allocation114_spill]] }
 0x6be   : > { %8513 = vmatpush3.bf16.msra.mxu0 %v9337_v60 }
 0x6bf   : > { %9421 = vpow2.f32 %v3061_v62  ;;  %8514 = vmatprep.subr.bf16.mxu0 %v10405_v5 }
 0x6c2   : > { %8515 = vmatpush3.bf16.msra.mxu0 %v9338_v61 }
 0x6c3   : > { %8528 = vmatprep.subr.bf16.mxu0 %v10405_v5 }
 0x6cc   : > { %v9422_v63 = vpop.eup %9421 }
 0x6cd   : > { %v3063_v0 = vsel %vm3010_vm2, %v9422_v63, 0.0 }
 0x6ce   : > { %3064 = vadd.xlane.f32.xlu0 %v3063_v0 }
 0x72c   : > { %v3172_v1 = vpop.xlane.xlu0 %3171 }
 0x72d   : > { %v3173_v2 = vsub.f32 %v3164_v41, %v3172_v1 }
 0x72f   : > { %v3174_v3 = vmul.f32 1.442695, %v3173_v2 }
 0x731   : > { %9423 = vpow2.f32 %v3174_v3 }
 0x738   : > { %v3282_v4 = vpop.xlane.xlu1 %3281 }
 0x739   : > { %v3283_v6 = vsub.f32 %v3274_v48, %v3282_v4 }
 0x73b   : > { %v3284_v8 = vmul.f32 1.442695, %v3283_v6 }
 0x73d   : > { %9425 = vpow2.f32 %v3284_v8 }
 0x73e   : > { %v9424_v9 = vpop.eup %9423 }
 0x73f   : > { %v3176_v10 = vsel %vm3010_vm2, %v9424_v9, 0.0 }
 0x740   : > { %3177 = vadd.xlane.f32.xlu1 %v3176_v10  ;;  %v3392_v14 = vpop.xlane.xlu1 %3391 }
 0x741   : > { %v3393_v15 = vsub.f32 %v3384_v55, %v3392_v14 }
 0x743   : > { %v3394_v16 = vmul.f32 1.442695, %v3393_v15 }
 0x745   : > { %9427 = vpow2.f32 %v3394_v16  ;;  %v11218_v16 = vsub.s32 2, %v11095_v37 }
 0x74a   : > { %v9426_v12 = vpop.eup %9425 }
 0x74b   : > { %v3286_v13 = vsel %vm3010_vm2, %v9426_v12, 0.0 }
 0x74c   : > { %3287 = vadd.xlane.f32.xlu0 %v3286_v13 }
 0x751   : > { %3182 = vrot.lane.b32.xlu1 %v11134_v7, %s11916_s15  ;;  %s11920_s15 = smov 16  }
 0x752   : > { %v9428_v17 = vpop.eup %9427 }
 0x753   : > { %v3396_v18 = vsel %vm3010_vm2, %v9428_v17, 0.0 }
 0x757   : > { %v3065_v19 = vpop.xlane.xlu0 %3064 }
 0x758   : > { %9429 = vrcp.f32 %v3065_v19 }
 0x762   : > { %3070 = vrot.lane.b32.xlu0 %v11134_v7, %s11928_s6 }
 0x765   : > { %v9430_v22 = vpop.eup %9429 }
 0x766   : > { %3402 = vrot.lane.b32.xlu0 %v11134_v7, %s11924_s28  ;;  %v3067_v24 = vmul.f32 %v9430_v22, %v9422_v63 }
 0x768   : > { %v3068_v28 = vpack.c.bf16 %v3067_v24, %v3067_v24 }
 0x775   : > { %3397 = vadd.xlane.f32.xlu1 %v3396_v18  ;;  %v3471_v18 = vrot.slane %v11115_v54, %v11218_v16 }
 0x786   : > { %3292 = vrot.lane.b32.xlu1 %v11134_v7, %s11926_s25  ;;  %s12083_s25 = sld [smem:[#allocation119_spill]] }
 0x7c9   : > { %v3178_v20 = vpop.xlane.xlu1 %3177 }
 0x7ca   : > { %9431 = vrcp.f32 %v3178_v20 }
 0x7cd   : > { %v3183_v27 = vpop.permute.xlu1 %3182 }
 0x7ce   : > { %v3188_v30 = vsel %vm3075_vm3, %v3183_v27, 0 }
 0x7d5   : > { %v3288_v23 = vpop.xlane.xlu0 %3287 }
 0x7d6   : > { %9433 = vrcp.f32 %v3288_v23 }
 0x7d7   : > { %v9432_v29 = vpop.eup %9431 }
 0x7d8   : > { %v3180_v7 = vmul.f32 %v9432_v29, %v9424_v9 }
 0x7d9   : > { %v3071_v25 = vpop.permute.xlu0 %3070 }
 0x7da   : > { %v3077_v26 = vsel %vm3075_vm3, %v3071_v25, 0  ;;  %v3181_v31 = vpack.c.bf16 %v3180_v7, %v3180_v7 }
 0x7db   : > { %8471 = vmatpush3.bf16.msra.mxu1 %v3077_v26 }
 0x7dc   : > { %8482 = vmatprep.subr.bf16.mxu1 %v10405_v5 }
 0x7dd   : > { %v3403_v42 = vpop.permute.xlu0 %3402 }
 0x7de   : > { %8473 = vmatmul.mubr.msk.bf16.vlgmr.msra.gmra.mxu1 %vm3010_vm2, %v3068_v28  ;;  %v3408_v46 = vsel %vm3075_vm3, %v3403_v42, 0 }
 0x7df   : > { %8483 = vmatpush3.bf16.msra.mxu1 %v3188_v30  ;;  %8484 = vmatprep.mubr.msk.bf16.mxu1 %vm10406_vm0, %v10405_v5 }
 0x7e0   : > { %8494 = vmatprep.subr.bf16.mxu1 %v10405_v5 }
 0x7e3   : > { %v9434_v32 = vpop.eup %9433 }
 0x7e4   : > { %v3290_v36 = vmul.f32 %v9434_v32, %v9426_v12 }
 0x7e6   : > { %8485 = vmatmul.mubr.msk.bf16.vlgmr.msra.gmra.mxu1 %vm3010_vm2, %v3181_v31  ;;  %v3291_v44 = vpack.c.bf16 %v3290_v36, %v3290_v36 }
 0x7e7   : > { %8496 = vmatprep.mubr.msk.bf16.mxu1 %vm10406_vm0, %v10405_v5 }
 0x7fe   : > { %v3398_v34 = vpop.xlane.xlu1 %3397 }
 0x7ff   : > { %9435 = vrcp.f32 %v3398_v34 }
 0x802   : > { %v3293_v38 = vpop.permute.xlu1 %3292 }
 0x803   : > { %v3298_v41 = vsel %vm3075_vm3, %v3293_v38, 0 }
 0x804   : > { %8495 = vmatpush3.bf16.msra.mxu1 %v3298_v41 }
 0x805   : > { %8506 = vmatprep.subr.bf16.mxu1 %v10405_v5 }
 0x807   : > { %8497 = vmatmul.mubr.msk.bf16.vlgmr.msra.gmra.mxu1 %vm3010_vm2, %v3291_v44  ;;  %v11241_v44 = vsub.s32 5, %v11095_v37 }
 0x808   : > { %8507 = vmatpush3.bf16.msra.mxu1 %v3408_v46  ;;  %8508 = vmatprep.mubr.msk.bf16.mxu1 %vm10406_vm0, %v10405_v5  ;;  %v11244_v46 = vsub.s32 6, %v11095_v37 }
 0x809   : > { %8520 = vmatprep.subr.bf16.mxu1 %v10405_v5 }
 0x80c   : > { %v9436_v47 = vpop.eup %9435 }
 0x80d   : > { %v3400_v48 = vmul.f32 %v9436_v47, %v9428_v17  ;;  %v11221_v17 = vsub.s32 3, %v11095_v37  ;;  %v3549_v47 = vrot.slane %v11115_v54, %v11241_v44 }
 0x80f   : > { %v3401_v49 = vpack.c.bf16 %v3400_v48, %v3400_v48  ;;  %v3530_v19 = vrot.slane %v11115_v54, %v11221_v17 }
 0x811   : > { %8509 = vmatmul.mubr.msk.bf16.vlgmr.msra.gmra.mxu1 %vm3010_vm2, %v3401_v49 }
 0x812   : > { %8524 = vmatprep.mubr.msk.bf16.mxu1 %vm10406_vm0, %v10405_v5 }
 0x89e   : > { %v3113_v51 = vpop.f32.mrf.mxu1 }
 0x8a0   : > { %v8474_v52 = vpop.f32.mrf.mxu1 }
 0x8a2   : > { %v3116_v53 = vpop.f32.mrf.mxu1 }
 0x8a4   : > { %v8475_v55 = vpop.f32.mrf.mxu1 }
 0x8a6   : > { %v3224_v56 = vpop.f32.mrf.mxu1 }
 0x8a7   : > { %3451 = vrot.lane.b32.xlu1 %v3224_v56, %s11918_s11  ;;  %s11922_s11 = smov 24  }
 0x8a8   : > { %v8486_v57 = vpop.f32.mrf.mxu1 }
 0x8aa   : > { %v3227_v58 = vpop.f32.mrf.mxu1 }
 0x8ac   : > { %v8487_v59 = vpop.f32.mrf.mxu1 }
 0x8c7   : > { %v3334_v62 = vpop.f32.mrf.mxu1 }
 0x8c8   : > { %3455 = vrot.lane.b32.xlu0 %v3334_v62, %s11920_s15  ;;  %s12079_s15 = sld [smem:[#allocation61_spill]] }
 0x8c9   : > { %v8498_v63 = vpop.f32.mrf.mxu1 }
 0x8cb   : > { %v3337_v0 = vpop.f32.mrf.mxu1 }
 0x8cd   : > { %v8499_v1 = vpop.f32.mrf.mxu1 }
 0x8ce   : > { %s2633_s28 = scalar_lea.vmem %s12079_s15, %s11056_s26  ;;  %s12081_s15 = sld [smem:[#allocation71_spill]]  ;;  %v8082_v1 = vld [vmem:[#allocation9] ss:$0 sm:$0xff] }
 0x8cf   : > { %v3822_v29 = vld [vmem:[%s2633_s28] sm:$0xff]  ;;  %s12082_s28 = sld [smem:[#allocation117_spill]] }
 0x8d1   : > { %v3444_v2 = vpop.f32.mrf.mxu1 }
 0x8d2   : > { %3459 = vrot.lane.b32.xlu1 %v3444_v2, %s11922_s11  ;;  %s12080_s11 = sld [smem:[#allocation70_spill]] }
 0x8d3   : > { %v8510_v3 = vpop.f32.mrf.mxu1 }
 0x8d4   : > { %v9341_v56 = vld [vmem:[%s12081_s15 + $0x18] sm:$0xff]   ;;  %v9342_v57 = vld [vmem:[%s12081_s15 + $0x10] sm:$0xff]   ;;  %v9343_v58 = vld [vmem:[%s12081_s15 + $0x8] sm:$0xff]  }
 0x8d5   : > { %v3447_v4 = vpop.f32.mrf.mxu1  ;;  %v9344_v59 = vld [vmem:[%s12081_s15] sm:$0xff]  }
 0x8d7   : > { %v8511_v6 = vpop.f32.mrf.mxu1 }
 0x8d8   : > { %v9340_v36 = vld [vmem:[%s12080_s11] sm:$0xff]  }
 0x919   : > { %v3452_v8 = vpop.permute.xlu1 %3451 }
 0x91a   : > { %v3462_v10 = vsel %vm3010_vm2, %v3113_v51, %v3452_v8  ;;  %v3554_v51 = vrot.slane %v11115_v54, %v11244_v46 }
 0x93a   : > { %v3456_v9 = vpop.permute.xlu0 %3455 }
 0x93b   : > { %v3464_v12 = vsel %vm3463_vm4, %v3462_v10, %v3456_v9 }
 0x944   : > { %v3460_v13 = vpop.permute.xlu1 %3459 }
 0x945   : > { %v3466_v14 = vsel %vm3465_vm5, %v3464_v12, %v3460_v13 }
 0x946   : > { %v3467_v15 = vpack.c.bf16 %v3466_v14, %v3466_v14 }
 0x948   : > { %8517 = vmatmul.mubr.msk.bf16.vlgmr.msra.gmra.mxu0 %vm2719_vm1, %v3467_v15 }
 0x949   : > { %8536 = vmatprep.mubr.msk.bf16.mxu0 %vm10406_vm0, %v10405_v5  ;;  %8529 = vmatpush3.bf16.msra.mxu0 %v9341_v56 }
 0x94a   : > { %8530 = vmatprep.subr.bf16.mxu0 %v10405_v5 }
 0x94d   : > { %8531 = vmatpush3.bf16.msra.mxu0 %v9342_v57 }
 0x94e   : > { %8532 = vmatprep.subr.bf16.mxu0 %v10405_v5 }
 0x951   : > { %8533 = vmatpush3.bf16.msra.mxu0 %v9343_v58 }
 0x952   : > { %8534 = vmatprep.subr.bf16.mxu0 %v10405_v5 }
 0x955   : > { %8535 = vmatpush3.bf16.msra.mxu0 %v9344_v59 }
 0x956   : > { %8556 = vmatprep.subr.bf16.mxu0 %v10405_v5 }
 0xa08   : > { %v3521_v20 = vpop.f32.mrf.mxu0 }
 0xa09   : > { %v3522_v22 = vadd.f32 %v3521_v20, %v3471_v18 }
 0xa0a   : > { %v8518_v23 = vpop.f32.mrf.mxu0 }
 0xa0b   : > { %v3531_v24 = vmul.f32 %v3530_v19, %v3522_v22  ;;  %v9345_v23 = vld [vmem:[%s10798_s14 + $0x8] sm:$0xff]  }
 0xa0c   : > { %v3524_v25 = vpop.f32.mrf.mxu0 }
 0xa0d   : > { %v11228_v26 = vadd.f32 %v3531_v24, %v11075_v21  ;;  %v9339_v21 = vld [vmem:[%s12080_s11 + $0x8] sm:$0xff]   ;;  %v11279_v24 = vsub.s32 7, %v11095_v37  ;;  %s2637_s11 = scalar_lea.vmem %s12094_s10, %s11056_s26  ;;  %s12096_s10 = sld [smem:[#allocation93_spill]] }
 0xa0e   : > { %v8519_v27 = vpop.f32.mrf.mxu0  ;;  %8521 = vmatpush3.bf16.msra.mxu1 %v9339_v21  ;;  %v9347_v21 = vld [vmem:[%s10793_s23 + $0x8] sm:$0xff]  }
 0xa0f   : > { %v3533_v28 = vsel %vm2719_vm1, %v11228_v26, 0.0  ;;  %8522 = vmatprep.subr.bf16.mxu1 %v10405_v5  ;;  %v3627_v25 = vrot.slane %v11115_v54, %v11279_v24 }
 0xa10   : > { %3534 = vadd.xlane.f32.xlu0 %v3533_v28 }
 0xa12   : > { %8523 = vmatpush3.bf16.msra.mxu1 %v9340_v36 }
 0xa13   : > { %8540 = vmatprep.subr.bf16.mxu1 %v10405_v5 }
 0xa26   : > { %3825 = vperm.xlu0 %9326, %v3822_v29  }
 0xa99   : > { %v3535_v30 = vpop.xlane.xlu0 %3534 }
 0xa9a   : > { %v3536_v7 = vmul.f32 0.03125, %v3535_v30 }
 0xa9c   : > { %v3537_v31 = vsub.f32 %v11228_v26, %v3536_v7 }
 0xa9e   : > { %v3538_v32 = vmul.f32 %v3537_v31, %v3537_v31 }
 0xaa0   : > { %v3539_v34 = vsel %vm2719_vm1, %v3538_v32, 0.0 }
 0xaa1   : > { %3540 = vadd.xlane.f32.xlu1 %v3539_v34  ;;  %v3826_v61 = vpop.permute.xlu0 %3825 }
 0xaa2   : > { %v3828_v63 = vmul.f32 %v3826_v61, %v11104_v43 }
 0xab2   : > { %3830 = vperm.xlu1 %9328, %v3822_v29  }
 0xb2a   : > { %v3541_v38 = vpop.xlane.xlu1 %3540 }
 0xb2b   : > { %v3542_v41 = vmul.f32 0.03125, %v3541_v38  ;;  %v8055_v38 = vld [vmem:[#allocation42] ss:$0 sm:$0xff] }
 0xb2d   : > { %v3543_v42 = vadd.f32 1e-05, %v3542_v41 }
 0xb2e   : > { %v3831_v60 = vpop.permute.xlu1 %3830 }
 0xb2f   : > { %9437 = vrsqrt.f32 %v3543_v42  ;;  %v3833_v62 = vmul.f32 %v3831_v60, %v11107_v45 }
 0xb31   : > { %v3834_v0 = vadd.f32 %v3833_v62, %v3828_v63 }
 0xb33   : > { %v3835_v2 = vadd.f32 %v11111_v50, %v3834_v0 }
 0xb35   : > { %v3837_v8 = vmul.f32 0.70710677, %v3835_v2  ;;  %v3836_v50 = vmul.f32 0.5, %v3835_v2 }
 0xb3c   : > { %v9438_v48 = vpop.eup %9437 }
 0xb3d   : > { %v3545_v49 = vmul.f32 %v9438_v48, %v3537_v31 }
 0xb3f   : > { %v3550_v52 = vmul.f32 %v3549_v47, %v3545_v49  ;;  %v2758_v47 = vadd.f32 %v8055_v38, %v11141_v11 }
 0xb41   : > { %v3555_v53 = vadd.f32 %v3554_v51, %v3550_v52  ;;  %v3706_v51 = vpack.c.bf16 %v2758_v47, %v2758_v47 }
 0xb43   : > { %v3556_v55 = vpack.c.bf16 %v3555_v53, %v3555_v53 }
 0xb45   : > { %8525 = vmatmul.mubr.msk.bf16.vlgmr.msra.gmra.mxu1 %vm2719_vm1, %v3556_v55 }
 0xb46   : > { %8544 = vmatprep.mubr.msk.bf16.mxu1 %vm10406_vm0, %v10405_v5  ;;  %8541 = vmatpush3.bf16.msra.mxu1 %v9345_v23 }
 0xb47   : > { %8542 = vmatprep.subr.bf16.mxu1 %v10405_v5 }
 0xc05   : > { %v3612_v3 = vpop.f32.mrf.mxu1 }
 0xc06   : > { %v3613_v4 = vadd.f32 %v8082_v1, %v3612_v3 }
 0xc07   : > { %v8526_v6 = vpop.f32.mrf.mxu1 }
 0xc08   : > { %v3619_v9 = vmul.f32 0.70710677, %v3613_v4  ;;  %v3618_v14 = vmul.f32 0.5, %v3613_v4 }
 0xc09   : > { %v3615_v10 = vpop.f32.mrf.mxu1 }
 0xc0a   : > { %9439 = verf.f32 %v3619_v9  ;;  %v9349_v10 = vld [vmem:[%s12082_s28 + $0x8] sm:$0xff]  }
 0xc0b   : > { %v8527_v12 = vpop.f32.mrf.mxu1  ;;  %9441 = verf.f32 %v3837_v8 }
 0xc0c   : > { %v9350_v12 = vld [vmem:[%s12083_s25 + $0x8] sm:$0xff]  }
 0xc17   : > { %v9440_v13 = vpop.eup %9439 }
 0xc18   : > { %v3621_v15 = vadd.f32 1.0, %v9440_v13  ;;  %v9442_v18 = vpop.eup %9441  ;;  %v9351_v13 = vld [vmem:[%s12082_s28] sm:$0xff]  }
 0xc19   : > { %v3839_v43 = vadd.f32 1.0, %v9442_v18 }
 0xc1a   : > { %v3622_v45 = vmul.f32 %v3621_v15, %v3618_v14  ;;  %v9352_v14 = vld [vmem:[%s12083_s25] sm:$0xff]  }
 0xc1b   : > { %v3840_v20 = vmul.f32 %v3839_v43, %v3836_v50 }
 0xc1c   : > { %v3623_v19 = vpack.c.bf16 %v3622_v45, %v3622_v45 }
 0xc1d   : > { %v3841_v22 = vpack.c.bf16 %v3840_v20, %v3840_v20  ;;  %v11320_v20 = vld [vmem:[#allocation39] sm:$0xff] }
 0xc1e   : > { %8537 = vmatmul.mubr.msk.bf16.vlgmr.msra.gmra.mxu0 %vm3652_vm6, %v3623_v19 }
 0xc1f   : > { %8557 = vmatpush3.bf16.msra.mxu0 %v11083_v33  ;;  %8560 = vmatprep.mubr.msk.bf16.mxu0 %vm10406_vm0, %v10405_v5  ;;  %v9346_v33 = vld [vmem:[%s10798_s14] sm:$0xff]  }
 0xc20   : > { %8558 = vmatprep.subr.bf16.mxu0 %v10405_v5  ;;  %8543 = vmatpush3.bf16.msra.mxu1 %v9346_v33 }
 0xc21   : > { %8548 = vmatprep.subr.bf16.mxu1 %v10405_v5 }
 0xc23   : > { %8559 = vmatpush3.bf16.msra.mxu0 %v11091_v35  ;;  %v11282_v35 = vsub.s32 4, %v11095_v37 }
 0xc24   : > { %8572 = vmatprep.subr.bf16.mxu0 %v10405_v5 }
 0xc25   : > { %v3699_v27 = vrot.slane %v11115_v54, %v11282_v35  ;;  %v9348_v54 = vld [vmem:[%s10793_s23] sm:$0xff]  }
 0xc26   : > { %8561 = vmatmul.mubr.msk.bf16.vlgmr.msra.gmra.mxu0 %vm2719_vm1, %v3841_v22  ;;  %v3927_v22 = vrot.slane %v11320_v20, %v11098_v39 }
 0xc27   : > { %8576 = vmatprep.mubr.msk.bf16.mxu0 %vm10406_vm0, %v10405_v5  ;;  %8573 = vmatpush3.bf16.msra.mxu0 %v9349_v10 }
 0xc28   : > { %8574 = vmatprep.subr.bf16.mxu0 %v10405_v5 }
 0xc2b   : > { %8575 = vmatpush3.bf16.msra.mxu0 %v9351_v13 }
 0xc2c   : > { %8586 = vmatprep.subr.bf16.mxu0 %v10405_v5 }
 0xcde   : > { %v3690_v28 = vpop.f32.mrf.mxu0 }
 0xcdf   : > { %v3691_v29 = vadd.f32 %v3690_v28, %v3627_v25  ;;  %v3932_v25 = vrot.slane %v11320_v20, %v11101_v40 }
 0xce0   : > { %v8538_v30 = vpop.f32.mrf.mxu0 }
 0xce1   : > { %v3700_v7 = vmul.f32 %v3699_v27, %v3691_v29 }
 0xce2   : > { %v3693_v31 = vpop.f32.mrf.mxu0 }
 0xce3   : > { %v3701_v32 = vadd.f32 %v3700_v7, %v11228_v26 }
 0xce4   : > { %v8539_v34 = vpop.f32.mrf.mxu0 }
 0xce5   : > { %v3711_v36 = vpack.c.bf16 %v3701_v32, %v3701_v32 }
 0xce6   : > { %v3879_v37 = vpop.f32.mrf.mxu0 }
 0xce7   : > { %v11290_v41 = vadd.f32 %v8055_v38, %v3879_v37  ;;  %8545 = vmatmul.mubr.msk.bf16.vlgmr.msra.gmra.mxu1 %vm2719_vm1, %v3711_v36 }
 0xce8   : > { %8549 = vmatpush3.bf16.msra.mxu1 %v9347_v21  ;;  %v8562_v42 = vpop.f32.mrf.mxu0  ;;  %8552 = vmatprep.mubr.msk.bf16.mxu1 %vm10406_vm0, %v10405_v5 }
 0xce9   : > { %v3911_v26 = vsel %vm2719_vm1, %v11290_v41, 0.0  ;;  %8550 = vmatprep.subr.bf16.mxu1 %v10405_v5 }
 0xcea   : > { %3912 = vadd.xlane.f32.xlu1 %v3911_v26  ;;  %v3882_v48 = vpop.f32.mrf.mxu0 }
 0xcec   : > { %8551 = vmatpush3.bf16.msra.mxu1 %v9348_v54  ;;  %v8563_v49 = vpop.f32.mrf.mxu0 }
 0xced   : > { %8564 = vmatprep.subr.bf16.mxu1 %v10405_v5 }
 0xcef   : > { %8553 = vmatmul.mubr.msk.bf16.vlgmr.msra.gmra.mxu1 %vm2719_vm1, %v3706_v51 }
 0xcf0   : > { %8568 = vmatprep.mubr.msk.bf16.mxu1 %vm10406_vm0, %v10405_v5  ;;  %8565 = vmatpush3.bf16.msra.mxu1 %v9350_v12 }
 0xcf1   : > { %8566 = vmatprep.subr.bf16.mxu1 %v10405_v5 }
 0xcf4   : > { %8567 = vmatpush3.bf16.msra.mxu1 %v9352_v14 }
 0xcf5   : > { %8580 = vmatprep.subr.bf16.mxu1 %v10405_v5 }
 0xd73   : > { %v3913_v62 = vpop.xlane.xlu1 %3912 }
 0xd74   : > { %v3914_v63 = vmul.f32 0.03125, %v3913_v62 }
 0xd76   : > { %v3915_v2 = vsub.f32 %v11290_v41, %v3914_v63 }
 0xd78   : > { %v3916_v8 = vmul.f32 %v3915_v2, %v3915_v2 }
 0xd7a   : > { %v3917_v9 = vsel %vm2719_vm1, %v3916_v8, 0.0 }
 0xda7   : > { %v3761_v52 = vpop.f32.mrf.mxu1 }
 0xda9   : > { %v8546_v53 = vpop.f32.mrf.mxu1 }
 0xdab   : > { %v3764_v11 = vpop.f32.mrf.mxu1 }
 0xdad   : > { %v8547_v55 = vpop.f32.mrf.mxu1 }
 0xdaf   : > { %v3816_v56 = vpop.f32.mrf.mxu1 }
 0xdb0   : > { %v11304_v57 = vadd.f32 %v3816_v56, %v3761_v52 }
 0xdb1   : > { %v8554_v58 = vpop.f32.mrf.mxu1 }
 0xdb2   : > { %v3935_v59 = vsel %vm2719_vm1, %v11304_v57, 0.0 }
 0xdb3   : > { %3936 = vadd.xlane.f32.xlu0 %v3935_v59  ;;  %v3819_v60 = vpop.f32.mrf.mxu1 }
 0xdb5   : > { %v8555_v61 = vpop.f32.mrf.mxu1 }
 0xe3c   : > { %v3937_v0 = vpop.xlane.xlu0 %3936 }
 0xe3d   : > { %v3938_v1 = vmul.f32 0.03125, %v3937_v0 }
 0xe3f   : > { %v3939_v3 = vsub.f32 %v11304_v57, %v3938_v1 }
 0xe41   : > { %v3940_v4 = vmul.f32 %v3939_v3, %v3939_v3 }
 0xe43   : > { %v3941_v6 = vsel %vm2719_vm1, %v3940_v4, 0.0 }
 0xe44   : > { %3942 = vadd.xlane.f32.xlu0 %v3941_v6 }
 0xe48   : > { %3918 = vadd.xlane.f32.xlu0 %v3917_v9 }
 0xecd   : > { %v3943_v15 = vpop.xlane.xlu0 %3942 }
 0xece   : > { %v3944_v18 = vmul.f32 0.03125, %v3943_v15 }
 0xed0   : > { %v3945_v45 = vadd.f32 1e-05, %v3944_v18 }
 0xed1   : > { %v3919_v43 = vpop.xlane.xlu0 %3918 }
 0xed2   : > { %9443 = vrsqrt.f32 %v3945_v45  ;;  %v3920_v19 = vmul.f32 0.03125, %v3919_v43 }
 0xed4   : > { %v3921_v50 = vadd.f32 1e-05, %v3920_v19 }
 0xed6   : > { %9445 = vrsqrt.f32 %v3921_v50 }
 0xedf   : > { %v9444_v23 = vpop.eup %9443 }
 0xee0   : > { %v3947_v33 = vmul.f32 %v9444_v23, %v3939_v3 }
 0xee2   : > { %v3948_v27 = vmul.f32 %v3947_v33, %v3927_v22 }
 0xee3   : > { %v9446_v28 = vpop.eup %9445 }
 0xee4   : > { %v3923_v29 = vmul.f32 %v9446_v28, %v3915_v2  ;;  %v3949_v30 = vadd.f32 %v3948_v27, %v3932_v25 }
 0xee6   : > { %v3950_v7 = vpack.c.bf16 %v3949_v30, %v3949_v30  ;;  %v3928_v31 = vmul.f32 %v3927_v22, %v3923_v29 }
 0xee8   : > { %8577 = vmatmul.mubr.msk.bf16.vlgmr.msra.gmra.mxu0 %vm2719_vm1, %v3950_v7  ;;  %v3933_v32 = vadd.f32 %v3932_v25, %v3928_v31 }
 0xee9   : > { %8588 = vmatprep.mubr.msk.bf16.mxu0 %vm10406_vm0, %v10405_v5 }
 0xeea   : > { %v3934_v34 = vpack.c.bf16 %v3933_v32, %v3933_v32 }
 0xeec   : > { %8569 = vmatmul.mubr.msk.bf16.vlgmr.msra.gmra.mxu1 %vm2719_vm1, %v3934_v34 }
 0xeed   : > { %8582 = vmatprep.mubr.msk.bf16.mxu1 %vm10406_vm0, %v10405_v5 }
 0xfa8   : > { %v4055_v21 = vpop.f32.mrf.mxu0 }
 0xfa9   : > { %v11332_v36 = vpack.c.bf16 %v4055_v21, %v4055_v21 }
 0xfaa   : > { %v8578_v38 = vpop.f32.mrf.mxu0 }
 0xfab   : > { %4173 = vrot.lane.b32.xlu1 %v11332_v36, %s11934_s21  ;;  %v4067_v37 = vsel %vm3010_vm2, %v11332_v36, 0 }
 0xfac   : > { %v4000_v42 = vpop.f32.mrf.mxu1  ;;  %v4058_v54 = vpop.f32.mrf.mxu0  ;;  %8581 = vmatpush3.bf16.xpose.msra.mxu1 %v4067_v37 }
 0xfad   : > { %v4061_v47 = vpack.c.bf16 %v4000_v42, %v4000_v42  ;;  %8592 = vmatprep.subr.bf16.mxu1 %v10405_v5 }
 0xfae   : > { %v8570_v26 = vpop.f32.mrf.mxu1  ;;  %v8579_v48 = vpop.f32.mrf.mxu0 }
 0xfaf   : > { %4171 = vrot.lane.b32.xlu0 %v4061_v47, %s11934_s21  ;;  %4283 = vrot.lane.b32.xlu1 %v11332_v36, %s11932_s0  ;;  %s12087_s21 = sld [smem:[#allocation118_spill]] }
 0xfb0   : > { %v4003_v49 = vpop.f32.mrf.mxu1 }
 0xfb2   : > { %v8571_v51 = vpop.f32.mrf.mxu1 }
 0xfb3   : > { %4393 = vrot.lane.b32.xlu0 %v11332_v36, %s11930_s1  ;;  %4281 = vrot.lane.b32.xlu1 %v4061_v47, %s11932_s0  ;;  %s12086_s0 = smov 88  }
 0xfb4   : > { %8583 = vmatmul.mubr.msk.bf16.vlgmr.msra.gmra.mxu1 %vm3010_vm2, %v4061_v47 }
 0xfb5   : > { %8594 = vmatprep.mubr.msk.bf16.mxu1 %vm10406_vm0, %v10405_v5 }
 0xfb7   : > { %4391 = vrot.lane.b32.xlu1 %v4061_v47, %s11930_s1  ;;  %s12085_s1 = smov 72  }
0x101d   : > { %v4174_v52 = vpop.permute.xlu1 %4173 }
0x101e   : > { %v4179_v53 = vsel %vm3010_vm2, %v4174_v52, 0 }
0x101f   : > { %8593 = vmatpush3.bf16.xpose.msra.mxu1 %v4179_v53 }
0x1020   : > { %8604 = vmatprep.subr.bf16.mxu1 %v10405_v5 }
0x1021   : > { %v4284_v11 = vpop.permute.xlu1 %4283  ;;  %v4172_v55 = vpop.permute.xlu0 %4171 }
0x1022   : > { %v4289_v56 = vsel %vm3010_vm2, %v4284_v11, 0 }
0x1025   : > { %v4394_v58 = vpop.permute.xlu0 %4393  ;;  %v4282_v59 = vpop.permute.xlu1 %4281 }
0x1026   : > { %8595 = vmatmul.mubr.msk.bf16.vlgmr.msra.gmra.mxu1 %vm3010_vm2, %v4172_v55  ;;  %v4399_v60 = vsel %vm3010_vm2, %v4394_v58, 0 }
0x1027   : > { %8605 = vmatpush3.bf16.xpose.msra.mxu1 %v4289_v56  ;;  %8606 = vmatprep.mubr.msk.bf16.mxu1 %vm10406_vm0, %v10405_v5 }
0x1028   : > { %8616 = vmatprep.subr.bf16.mxu1 %v10405_v5 }
0x1029   : > { %v4392_v61 = vpop.permute.xlu1 %4391 }
0x102e   : > { %8607 = vmatmul.mubr.msk.bf16.vlgmr.msra.gmra.mxu1 %vm3010_vm2, %v4282_v59 }
0x102f   : > { %8617 = vmatpush3.bf16.xpose.msra.mxu1 %v4399_v60  ;;  %8618 = vmatprep.mubr.msk.bf16.mxu1 %vm10406_vm0, %v10405_v5 }
0x1030   : > { %8628 = vmatprep.subr.bf16.mxu1 %v10405_v5 }
0x1036   : > { %8619 = vmatmul.mubr.msk.bf16.vlgmr.msra.gmra.mxu1 %vm3010_vm2, %v4392_v61 }
0x1037   : > { %8632 = vmatprep.mubr.msk.bf16.mxu1 %vm10406_vm0, %v10405_v5 }
0x1074   : > { %v4103_v62 = vpop.f32.mrf.mxu1 }
0x1075   : > { %v4109_v63 = vsel %vm3010_vm2, %v4103_v62, -inf }
0x1076   : > { %4110 = vmax.xlane.f32.xlu0 %v4109_v63  ;;  %v8584_v0 = vpop.f32.mrf.mxu1 }
0x1078   : > { %v4106_v1 = vpop.f32.mrf.mxu1 }
0x107a   : > { %v8585_v2 = vpop.f32.mrf.mxu1 }
0x10e6   : > { %v4215_v3 = vpop.f32.mrf.mxu1 }
0x10e7   : > { %v4221_v4 = vsel %vm3010_vm2, %v4215_v3, -inf }
0x10e8   : > { %4222 = vmax.xlane.f32.xlu1 %v4221_v4  ;;  %v8596_v6 = vpop.f32.mrf.mxu1 }
0x10ea   : > { %v4218_v8 = vpop.f32.mrf.mxu1 }
0x10ec   : > { %v8597_v9 = vpop.f32.mrf.mxu1 }
0x10ee   : > { %v4325_v10 = vpop.f32.mrf.mxu1 }
0x10ef   : > { %v4331_v12 = vsel %vm3010_vm2, %v4325_v10, -inf }
0x10f0   : > { %4332 = vmax.xlane.f32.xlu0 %v4331_v12  ;;  %v8608_v13 = vpop.f32.mrf.mxu1 }
0x10f2   : > { %v4328_v14 = vpop.f32.mrf.mxu1 }
0x10f4   : > { %v8609_v15 = vpop.f32.mrf.mxu1 }
0x10f6   : > { %v4435_v18 = vpop.f32.mrf.mxu1 }
0x10f7   : > { %v4441_v45 = vsel %vm3010_vm2, %v4435_v18, -inf }
0x10f8   : > { %4442 = vmax.xlane.f32.xlu0 %v4441_v45  ;;  %v8620_v43 = vpop.f32.mrf.mxu1  ;;  %v9353_v45 = vld [vmem:[%s12087_s21 + $0x8] sm:$0xff]  }
0x10f9   : > { %8629 = vmatpush3.bf16.msra.mxu1 %v9353_v45 }
0x10fa   : > { %v4438_v19 = vpop.f32.mrf.mxu1  ;;  %8630 = vmatprep.subr.bf16.mxu1 %v10405_v5 }
0x10fc   : > { %v8621_v50 = vpop.f32.mrf.mxu1 }
0x10fd   : > { %v9354_v50 = vld [vmem:[%s12087_s21] sm:$0xff]  }
0x10fe   : > { %8631 = vmatpush3.bf16.msra.mxu1 %v9354_v50  ;;  %v8115_v50 = vld [vmem:[#allocation38] ss:$0 sm:$0xff] }
0x10ff   : > { %v4111_v22 = vpop.xlane.xlu0 %4110  ;;  %8644 = vmatprep.subr.bf16.mxu1 %v10405_v5 }
0x1100   : > { %v4112_v23 = vsub.f32 %v4103_v62, %v4111_v22 }
0x1102   : > { %v4113_v33 = vmul.f32 1.442695, %v4112_v23 }
0x1104   : > { %9447 = vpow2.f32 %v4113_v33 }
0x1111   : > { %v9448_v25 = vpop.eup %9447 }
0x1112   : > { %v4115_v27 = vsel %vm3010_vm2, %v9448_v25, 0.0 }
0x1113   : > { %4116 = vadd.xlane.f32.xlu1 %v4115_v27 }
0x1124   : > { %4122 = vrot.lane.b32.xlu1 %v11332_v36, %s11928_s6  ;;  %s12084_s6 = smov 80  }
0x1171   : > { %v4223_v28 = vpop.xlane.xlu1 %4222 }
0x1172   : > { %v4224_v29 = vsub.f32 %v4215_v3, %v4223_v28 }
0x1174   : > { %v4225_v30 = vmul.f32 1.442695, %v4224_v29 }
0x1176   : > { %9449 = vpow2.f32 %v4225_v30 }
0x1179   : > { %v4333_v7 = vpop.xlane.xlu0 %4332 }
0x117a   : > { %v4334_v31 = vsub.f32 %v4325_v10, %v4333_v7 }
0x117c   : > { %v4335_v32 = vmul.f32 1.442695, %v4334_v31 }
0x117e   : > { %9451 = vpow2.f32 %v4335_v32 }
0x1181   : > { %v4443_v34 = vpop.xlane.xlu0 %4442 }
0x1182   : > { %v4444_v21 = vsub.f32 %v4435_v18, %v4443_v34 }
0x1183   : > { %v9450_v38 = vpop.eup %9449 }
0x1184   : > { %v4445_v37 = vmul.f32 1.442695, %v4444_v21  ;;  %v4227_v42 = vsel %vm3010_vm2, %v9450_v38, 0.0 }
0x1185   : > { %4228 = vadd.xlane.f32.xlu0 %v4227_v42 }
0x1186   : > { %9453 = vpow2.f32 %v4445_v37 }
0x118b   : > { %v9452_v54 = vpop.eup %9451 }
0x118c   : > { %v4337_v47 = vsel %vm3010_vm2, %v9452_v54, 0.0 }
0x118d   : > { %4338 = vadd.xlane.f32.xlu1 %v4337_v47  ;;  %v4520_v47 = vrot.slane %v11320_v20, %v11218_v16 }
0x1193   : > { %v9454_v26 = vpop.eup %9453 }
0x1194   : > { %v4447_v48 = vsel %vm3010_vm2, %v9454_v26, 0.0 }
0x1195   : > { %4448 = vadd.xlane.f32.xlu0 %v4447_v48 }
0x119c   : > { %v4117_v49 = vpop.xlane.xlu1 %4116 }
0x119d   : > { %9455 = vrcp.f32 %v4117_v49 }
0x119e   : > { %4343 = vrot.lane.b32.xlu1 %v11332_v36, %s12084_s6 }
0x11a0   : > { %v4123_v51 = vpop.permute.xlu1 %4122 }
0x11a1   : > { %v4128_v52 = vsel %vm3075_vm3, %v4123_v51, 0 }
0x11a2   : > { %8587 = vmatpush3.bf16.msra.mxu0 %v4128_v52  ;;  %4453 = vrot.lane.b32.xlu1 %v11332_v36, %s12085_s1 }
0x11a3   : > { %8598 = vmatprep.subr.bf16.mxu0 %v10405_v5 }
0x11aa   : > { %v9456_v53 = vpop.eup %9455 }
0x11ab   : > { %4233 = vrot.lane.b32.xlu0 %v11332_v36, %s12086_s0  ;;  %v4119_v11 = vmul.f32 %v9456_v53, %v9448_v25 }
0x11ad   : > { %v4120_v55 = vpack.c.bf16 %v4119_v11, %v4119_v11 }
0x11af   : > { %8589 = vmatmul.mubr.msk.bf16.vlgmr.msra.gmra.mxu0 %vm3010_vm2, %v4120_v55 }
0x11b0   : > { %8600 = vmatprep.mubr.msk.bf16.mxu0 %vm10406_vm0, %v10405_v5 }
0x120e   : > { %v4229_v56 = vpop.xlane.xlu0 %4228 }
0x120f   : > { %9457 = vrcp.f32 %v4229_v56 }
0x1216   : > { %v4339_v58 = vpop.xlane.xlu1 %4338 }
0x1217   : > { %9459 = vrcp.f32 %v4339_v58 }
0x121a   : > { %v4344_v0 = vpop.permute.xlu1 %4343 }
0x121b   : > { %v4349_v2 = vsel %vm3075_vm3, %v4344_v0, 0  ;;  %v9356_v0 = vld [vmem:[%s12091_s7] sm:$0xff]  }
0x121c   : > { %v9458_v59 = vpop.eup %9457 }
0x121d   : > { %v4231_v61 = vmul.f32 %v9458_v59, %v9450_v38 }
0x121e   : > { %v4449_v60 = vpop.xlane.xlu0 %4448  ;;  %v4454_v4 = vpop.permute.xlu1 %4453 }
0x121f   : > { %9461 = vrcp.f32 %v4449_v60  ;;  %v4232_v36 = vpack.c.bf16 %v4231_v61, %v4231_v61  ;;  %v4459_v9 = vsel %vm3075_vm3, %v4454_v4, 0 }
0x1222   : > { %v4234_v62 = vpop.permute.xlu0 %4233 }
0x1223   : > { %v4239_v63 = vsel %vm3075_vm3, %v4234_v62, 0 }
0x1224   : > { %8599 = vmatpush3.bf16.msra.mxu0 %v4239_v63  ;;  %v9460_v1 = vpop.eup %9459  ;;  %v9355_v63 = vld [vmem:[%s12091_s7 + $0x8] sm:$0xff]   ;;  %s12093_s7 = sld [smem:[#allocation92_spill]] }
0x1225   : > { %8610 = vmatprep.subr.bf16.mxu0 %v10405_v5  ;;  %v4341_v3 = vmul.f32 %v9460_v1, %v9452_v54 }
0x1227   : > { %8601 = vmatmul.mubr.msk.bf16.vlgmr.msra.gmra.mxu0 %vm3010_vm2, %v4232_v36  ;;  %v4342_v6 = vpack.c.bf16 %v4341_v3, %v4341_v3 }
0x1228   : > { %8611 = vmatpush3.bf16.msra.mxu0 %v4349_v2  ;;  %8612 = vmatprep.mubr.msk.bf16.mxu0 %vm10406_vm0, %v10405_v5  ;;  %v4598_v2 = vrot.slane %v11320_v20, %v11241_v44 }
0x1229   : > { %8622 = vmatprep.subr.bf16.mxu0 %v10405_v5 }
0x122a   : > { %v9362_v45 = vld [vmem:[%s12093_s7] sm:$0xff]  }
0x122c   : > { %v9462_v8 = vpop.eup %9461 }
0x122d   : > { %v4451_v10 = vmul.f32 %v9462_v8, %v9454_v26  ;;  %v4579_v26 = vrot.slane %v11320_v20, %v11221_v17 }
0x122f   : > { %8613 = vmatmul.mubr.msk.bf16.vlgmr.msra.gmra.mxu0 %vm3010_vm2, %v4342_v6  ;;  %v4452_v12 = vpack.c.bf16 %v4451_v10, %v4451_v10  ;;  %v4603_v6 = vrot.slane %v11320_v20, %v11244_v46 }
0x1230   : > { %8623 = vmatpush3.bf16.msra.mxu0 %v4459_v9  ;;  %8624 = vmatprep.mubr.msk.bf16.mxu0 %vm10406_vm0, %v10405_v5 }
0x1231   : > { %8636 = vmatprep.subr.bf16.mxu0 %v10405_v5 }
0x1237   : > { %8625 = vmatmul.mubr.msk.bf16.vlgmr.msra.gmra.mxu0 %vm3010_vm2, %v4452_v12  ;;  %v9357_v12 = vld [vmem:[%s12092_s8 + $0x18] sm:$0xff]  }
0x1238   : > { %8640 = vmatprep.mubr.msk.bf16.mxu0 %vm10406_vm0, %v10405_v5  ;;  %8637 = vmatpush3.bf16.msra.mxu0 %v9355_v63  ;;  %v8130_v63 = vld [vmem:[#allocation15] ss:$0 sm:$0xff] }
0x1239   : > { %8638 = vmatprep.subr.bf16.mxu0 %v10405_v5 }
0x123c   : > { %8639 = vmatpush3.bf16.msra.mxu0 %v9356_v0 }
0x123d   : > { %8656 = vmatprep.subr.bf16.mxu0 %v10405_v5 }
0x126f   : > { %v4164_v13 = vpop.f32.mrf.mxu0 }
0x1271   : > { %v8590_v14 = vpop.f32.mrf.mxu0 }
0x1272   : > { %v9359_v14 = vld [vmem:[%s12092_s8 + $0x8] sm:$0xff]  }
0x1273   : > { %v4167_v15 = vpop.f32.mrf.mxu0 }
0x1274   : > { %v9360_v15 = vld [vmem:[%s12092_s8] sm:$0xff]  }
0x1275   : > { %v8591_v18 = vpop.f32.mrf.mxu0 }
0x1276   : > { %v9361_v18 = vld [vmem:[%s12093_s7 + $0x8] sm:$0xff]   ;;  %s12098_s7 = sld [smem:[#allocation63_spill]] }
0x12e7   : > { %v4275_v43 = vpop.f32.mrf.mxu0 }
0x12e8   : > { %4502 = vrot.lane.b32.xlu0 %v4275_v43, %s12088_s3  ;;  %v4750_v43 = vld [vmem:[%s2637_s11] sm:$0xff]  ;;  %s12097_s11 = sld [smem:[#allocation97_spill]] }
0x12e9   : > { %v8602_v19 = vpop.f32.mrf.mxu0 }
0x12ea   : > { %v4766_v19 = vpack.c.bf16 %v4750_v43, %v4750_v43 }
0x12eb   : > { %v4278_v22 = vpop.f32.mrf.mxu0 }
0x12ed   : > { %v8603_v23 = vpop.f32.mrf.mxu0 }
0x12ef   : > { %v4385_v33 = vpop.f32.mrf.mxu0 }
0x12f0   : > { %4506 = vrot.lane.b32.xlu1 %v4385_v33, %s12089_s4 }
0x12f1   : > { %v8614_v25 = vpop.f32.mrf.mxu0 }
0x12f3   : > { %v4388_v27 = vpop.f32.mrf.mxu0 }
0x12f5   : > { %v8615_v28 = vpop.f32.mrf.mxu0 }
0x12f7   : > { %v4495_v29 = vpop.f32.mrf.mxu0 }
0x12f8   : > { %4510 = vrot.lane.b32.xlu0 %v4495_v29, %s12090_s5 }
0x12f9   : > { %v8626_v30 = vpop.f32.mrf.mxu0 }
0x12fb   : > { %v4498_v7 = vpop.f32.mrf.mxu0 }
0x12fd   : > { %v8627_v31 = vpop.f32.mrf.mxu0 }
0x135a   : > { %v4503_v32 = vpop.permute.xlu0 %4502 }
0x135b   : > { %v4513_v21 = vsel %vm3010_vm2, %v4164_v13, %v4503_v32  ;;  %v9358_v13 = vld [vmem:[%s12092_s8 + $0x10] sm:$0xff]   ;;  %s12095_s8 = sld [smem:[#allocation91_spill]] }
0x1362   : > { %v4507_v34 = vpop.permute.xlu1 %4506 }
0x1363   : > { %v4514_v38 = vsel %vm3463_vm4, %v4513_v21, %v4507_v34  ;;  %v9363_v34 = vld [vmem:[%s12095_s8 + $0x8] sm:$0xff]   ;;  %v9364_v21 = vld [vmem:[%s12095_s8] sm:$0xff]   ;;  %s2641_s8 = scalar_lea.vmem %s12098_s7, %s11056_s26  ;;  %s12101_s7 = sld [smem:[#allocation82_spill]] }
0x136a   : > { %v4511_v37 = vpop.permute.xlu0 %4510 }
0x136b   : > { %v4515_v42 = vsel %vm3465_vm5, %v4514_v38, %v4511_v37 }
0x136c   : > { %v4516_v54 = vpack.c.bf16 %v4515_v42, %v4515_v42 }
0x136e   : > { %8633 = vmatmul.mubr.msk.bf16.vlgmr.msra.gmra.mxu1 %vm2719_vm1, %v4516_v54 }
0x136f   : > { %8652 = vmatprep.mubr.msk.bf16.mxu1 %vm10406_vm0, %v10405_v5  ;;  %8645 = vmatpush3.bf16.msra.mxu1 %v9357_v12  ;;  %v9369_v12 = vld [vmem:[%s12099_s12 + $0x8] sm:$0xff]  }
0x1370   : > { %8646 = vmatprep.subr.bf16.mxu1 %v10405_v5 }
0x1373   : > { %8647 = vmatpush3.bf16.msra.mxu1 %v9358_v13 }
0x1374   : > { %8648 = vmatprep.subr.bf16.mxu1 %v10405_v5 }
0x1377   : > { %8649 = vmatpush3.bf16.msra.mxu1 %v9359_v14  ;;  %v9370_v14 = vld [vmem:[%s12099_s12] sm:$0xff]   ;;  %s12108_s12 = sld [smem:[#allocation81_spill]] }
0x1378   : > { %8650 = vmatprep.subr.bf16.mxu1 %v10405_v5 }
0x137b   : > { %8651 = vmatpush3.bf16.msra.mxu1 %v9360_v15  ;;  %v4966_v15 = vpack.c.bf16 %v11304_v57, %v11304_v57 }
0x137c   : > { %8672 = vmatprep.subr.bf16.mxu1 %v10405_v5 }
0x142e   : > { %v4570_v48 = vpop.f32.mrf.mxu1 }
0x142f   : > { %v4571_v49 = vadd.f32 %v4570_v48, %v4520_v47  ;;  %v4676_v47 = vrot.slane %v11320_v20, %v11279_v24 }
0x1430   : > { %v8634_v51 = vpop.f32.mrf.mxu1 }
0x1431   : > { %v4580_v52 = vmul.f32 %v4579_v26, %v4571_v49  ;;  %v4747_v26 = vrot.slane %v11320_v20, %v11282_v35  ;;  %v9366_v20 = vld [vmem:[%s12097_s11 + $0x8] sm:$0xff]  }
0x1432   : > { %v4573_v53 = vpop.f32.mrf.mxu1 }
0x1433   : > { %v11418_v11 = vadd.f32 %v4580_v52, %v11290_v41 }
0x1434   : > { %v8635_v55 = vpop.f32.mrf.mxu1 }
0x1435   : > { %v4582_v56 = vsel %vm2719_vm1, %v11418_v11, 0.0 }
0x1436   : > { %4583 = vadd.xlane.f32.xlu1 %v4582_v56 }
0x14bf   : > { %v4584_v58 = vpop.xlane.xlu1 %4583 }
0x14c0   : > { %v4585_v59 = vmul.f32 0.03125, %v4584_v58 }
0x14c2   : > { %v4586_v60 = vsub.f32 %v11418_v11, %v4585_v59  ;;  %v9365_v59 = vld [vmem:[%s12096_s10 + $0x8] sm:$0xff]  }
0x14c4   : > { %v4587_v61 = vmul.f32 %v4586_v60, %v4586_v60 }
0x14c6   : > { %v4588_v62 = vsel %vm2719_vm1, %v4587_v61, 0.0  ;;  %v9368_v61 = vld [vmem:[%s12097_s11] sm:$0xff]   ;;  %s12107_s11 = smov 96  }
0x14c7   : > { %4589 = vadd.xlane.f32.xlu0 %v4588_v62 }
0x1550   : > { %v4590_v41 = vpop.xlane.xlu0 %4589 }
0x1551   : > { %v4591_v36 = vmul.f32 0.03125, %v4590_v41 }
0x1553   : > { %v4592_v1 = vadd.f32 1e-05, %v4591_v36 }
0x1555   : > { %9463 = vrsqrt.f32 %v4592_v1 }
0x1562   : > { %v9464_v3 = vpop.eup %9463 }
0x1563   : > { %v4594_v4 = vmul.f32 %v9464_v3, %v4586_v60  ;;  %v9367_v60 = vld [vmem:[%s12096_s10] sm:$0xff]   ;;  %s12103_s10 = sld [smem:[#allocation79_spill]] }
0x1565   : > { %v4599_v8 = vmul.f32 %v4598_v2, %v4594_v4 }
0x1567   : > { %v4604_v9 = vadd.f32 %v4603_v6, %v4599_v8 }
0x1569   : > { %v4605_v10 = vpack.c.bf16 %v4604_v9, %v4604_v9 }
0x156b   : > { %8641 = vmatmul.mubr.msk.bf16.vlgmr.msra.gmra.mxu0 %vm2719_vm1, %v4605_v10 }
0x156c   : > { %8660 = vmatprep.mubr.msk.bf16.mxu0 %vm10406_vm0, %v10405_v5  ;;  %8657 = vmatpush3.bf16.msra.mxu0 %v9361_v18 }
0x156d   : > { %8658 = vmatprep.subr.bf16.mxu0 %v10405_v5 }
0x1570   : > { %8659 = vmatpush3.bf16.msra.mxu0 %v9362_v45 }
0x1571   : > { %8664 = vmatprep.subr.bf16.mxu0 %v10405_v5 }
0x1573   : > { %8661 = vmatmul.mubr.msk.bf16.vlgmr.msra.gmra.mxu0 %vm2719_vm1, %v4766_v19 }
0x1574   : > { %8668 = vmatprep.mubr.msk.bf16.mxu0 %vm10406_vm0, %v10405_v5  ;;  %8665 = vmatpush3.bf16.msra.mxu0 %v9363_v34 }
0x1575   : > { %8666 = vmatprep.subr.bf16.mxu0 %v10405_v5 }
0x1578   : > { %8667 = vmatpush3.bf16.msra.mxu0 %v9364_v21 }
0x1579   : > { %8680 = vmatprep.subr.bf16.mxu0 %v10405_v5 }
0x162b   : > { %v4661_v22 = vpop.f32.mrf.mxu0 }
0x162c   : > { %v4662_v23 = vadd.f32 %v8115_v50, %v4661_v22 }
0x162d   : > { %v8642_v33 = vpop.f32.mrf.mxu0 }
0x162e   : > { %v4668_v25 = vmul.f32 0.70710677, %v4662_v23  ;;  %v4667_v30 = vmul.f32 0.5, %v4662_v23 }
0x162f   : > { %v4664_v27 = vpop.f32.mrf.mxu0 }
0x1630   : > { %9465 = verf.f32 %v4668_v25  ;;  %v8141_v27 = vld [vmem:[#allocation18] ss:$0 sm:$0xff] }
0x1631   : > { %v8643_v28 = vpop.f32.mrf.mxu0 }
0x1633   : > { %v4816_v38 = vpop.f32.mrf.mxu0 }
0x1635   : > { %v8662_v37 = vpop.f32.mrf.mxu0 }
0x1637   : > { %v4819_v42 = vpop.f32.mrf.mxu0 }
0x1639   : > { %v8663_v54 = vpop.f32.mrf.mxu0 }
0x163d   : > { %v9466_v29 = vpop.eup %9465 }
0x163e   : > { %v4670_v7 = vadd.f32 1.0, %v9466_v29 }
0x1640   : > { %v4671_v31 = vmul.f32 %v4670_v7, %v4667_v30 }
0x1642   : > { %v4672_v32 = vpack.c.bf16 %v4671_v31, %v4671_v31 }
0x1644   : > { %8653 = vmatmul.mubr.msk.bf16.vlgmr.msra.gmra.mxu1 %vm3652_vm6, %v4672_v32 }
0x1645   : > { %8676 = vmatprep.mubr.msk.bf16.mxu1 %vm10406_vm0, %v10405_v5  ;;  %8673 = vmatpush3.bf16.msra.mxu1 %v9365_v59 }
0x1646   : > { %8674 = vmatprep.subr.bf16.mxu1 %v10405_v5 }
0x1649   : > { %8675 = vmatpush3.bf16.msra.mxu1 %v9367_v60  ;;  %v9373_v60 = vld [vmem:[%s12101_s7 + $0x8] sm:$0xff]  }
0x164a   : > { %8688 = vmatprep.subr.bf16.mxu1 %v10405_v5 }
0x1704   : > { %v4738_v48 = vpop.f32.mrf.mxu1 }
0x1705   : > { %v4739_v49 = vadd.f32 %v4738_v48, %v4676_v47  ;;  %v8142_v47 = vld [vmem:[#allocation20] ss:$0 sm:$0xff] }
0x1706   : > { %v8654_v51 = vpop.f32.mrf.mxu1 }
0x1707   : > { %v4748_v52 = vmul.f32 %v4747_v26, %v4739_v49 }
0x1708   : > { %v4741_v53 = vpop.f32.mrf.mxu1 }
0x1709   : > { %v4749_v55 = vadd.f32 %v4748_v52, %v11418_v11  ;;  %v4951_v11 = vld [vmem:[%s2641_s8] sm:$0xff]  ;;  %s12100_s8 = sld [smem:[#allocation98_spill]] }
0x170a   : > { %v8655_v56 = vpop.f32.mrf.mxu1  ;;  %v4967_v62 = vpack.c.bf16 %v4951_v11, %v4951_v11  ;;  %v9375_v11 = vld [vmem:[%s12101_s7] sm:$0xff]   ;;  %s12105_s7 = smov 112  }
0x170b   : > { %v4765_v58 = vpack.c.bf16 %v4749_v55, %v4749_v55 }
0x170d   : > { %8669 = vmatmul.mubr.msk.bf16.vlgmr.msra.gmra.mxu0 %vm2719_vm1, %v4765_v58 }
0x170e   : > { %8684 = vmatprep.mubr.msk.bf16.mxu0 %vm10406_vm0, %v10405_v5  ;;  %8681 = vmatpush3.bf16.msra.mxu0 %v9366_v20 }
0x170f   : > { %8682 = vmatprep.subr.bf16.mxu0 %v10405_v5  ;;  %v9371_v50 = vld [vmem:[%s12100_s8 + $0x8] sm:$0xff]   ;;  %v9372_v22 = vld [vmem:[%s12100_s8] sm:$0xff]   ;;  %s12102_s8 = sld [smem:[#allocation80_spill]] }
0x1712   : > { %8683 = vmatpush3.bf16.msra.mxu0 %v9368_v61 }
0x1713   : > { %8696 = vmatprep.subr.bf16.mxu0 %v10405_v5 }
0x1715   : > { %8685 = vmatmul.mubr.msk.bf16.vlgmr.msra.gmra.mxu0 %vm2719_vm1, %v4967_v62  ;;  %v9374_v61 = vld [vmem:[%s12102_s8 + $0x8] sm:$0xff]   ;;  %v9376_v62 = vld [vmem:[%s12102_s8] sm:$0xff]   ;;  %s12106_s8 = smov 104  }
0x1716   : > { %8700 = vmatprep.mubr.msk.bf16.mxu0 %vm10406_vm0, %v10405_v5  ;;  %8697 = vmatpush3.bf16.msra.mxu0 %v9371_v50 }
0x1717   : > { %8698 = vmatprep.subr.bf16.mxu0 %v10405_v5 }
0x171a   : > { %8699 = vmatpush3.bf16.msra.mxu0 %v9372_v22 }
0x171b   : > { %8712 = vmatprep.subr.bf16.mxu0 %v10405_v5 }
0x17cd   : > { %v4871_v0 = vpop.f32.mrf.mxu0 }
0x17ce   : > { %v4872_v41 = vadd.f32 %v4871_v0, %v4816_v38 }
0x17cf   : > { %v8670_v36 = vpop.f32.mrf.mxu0 }
0x17d0   : > { %v4883_v1 = vadd.f32 %v8130_v63, %v4872_v41  ;;  %v11516_v36 = vld [vmem:[%s12103_s10] sm:$0xff]  ;;  %s12104_s10 = smov 120  }
0x17d1   : > { %v4874_v2 = vpop.f32.mrf.mxu0 }
0x17d2   : > { %v4885_v3 = vmul.f32 0.70710677, %v4883_v1  ;;  %v4884_v8 = vmul.f32 0.5, %v4883_v1  ;;  %v5194_v1 = vrot.slane %v11516_v36, %v11098_v39 }
0x17d3   : > { %v8671_v4 = vpop.f32.mrf.mxu0 }
0x17d4   : > { %9467 = verf.f32 %v4885_v3  ;;  %v5199_v4 = vrot.slane %v11516_v36, %v11101_v40 }
0x17d5   : > { %v5017_v18 = vpop.f32.mrf.mxu0 }
0x17d7   : > { %v8686_v45 = vpop.f32.mrf.mxu0 }
0x17d9   : > { %v5020_v43 = vpop.f32.mrf.mxu0 }
0x17db   : > { %v8687_v19 = vpop.f32.mrf.mxu0 }
0x17e1   : > { %v9468_v6 = vpop.eup %9467 }
0x17e2   : > { %v4887_v9 = vadd.f32 1.0, %v9468_v6 }
0x17e4   : > { %v4888_v10 = vmul.f32 %v4887_v9, %v4884_v8 }
0x17e6   : > { %v4889_v13 = vpack.c.bf16 %v4888_v10, %v4888_v10 }
0x17e8   : > { %8677 = vmatmul.mubr.msk.bf16.vlgmr.msra.gmra.mxu1 %vm2719_vm1, %v4889_v13 }
0x17e9   : > { %8689 = vmatpush3.bf16.msra.mxu1 %v9369_v12  ;;  %8692 = vmatprep.mubr.msk.bf16.mxu1 %vm10406_vm0, %v10405_v5 }
0x17ea   : > { %8690 = vmatprep.subr.bf16.mxu1 %v10405_v5 }
0x17ed   : > { %8691 = vmatpush3.bf16.msra.mxu1 %v9370_v14 }
0x17ee   : > { %8704 = vmatprep.subr.bf16.mxu1 %v10405_v5 }
0x17f0   : > { %8693 = vmatmul.mubr.msk.bf16.vlgmr.msra.gmra.mxu1 %vm2719_vm1, %v4966_v15 }
0x17f1   : > { %8708 = vmatprep.mubr.msk.bf16.mxu1 %vm10406_vm0, %v10405_v5  ;;  %8705 = vmatpush3.bf16.msra.mxu1 %v9373_v60 }
0x17f2   : > { %8706 = vmatprep.subr.bf16.mxu1 %v10405_v5 }
0x17f5   : > { %8707 = vmatpush3.bf16.msra.mxu1 %v9375_v11 }
0x17f6   : > { %8720 = vmatprep.subr.bf16.mxu1 %v10405_v5 }
0x18a8   : > { %v11496_v57 = vpop.f32.mrf.mxu1 }
0x18aa   : > { %v8678_v23 = vpop.f32.mrf.mxu1 }
0x18ac   : > { %v4948_v33 = vpop.f32.mrf.mxu1 }
0x18ae   : > { %v8679_v25 = vpop.f32.mrf.mxu1 }
0x18b0   : > { %v5072_v28 = vpop.f32.mrf.mxu1 }
0x18b1   : > { %v5073_v29 = vadd.f32 %v5072_v28, %v5017_v18 }
0x18b2   : > { %v8694_v30 = vpop.f32.mrf.mxu1 }
0x18b3   : > { %v5084_v7 = vadd.f32 %v8141_v27, %v5073_v29 }
0x18b4   : > { %v5075_v31 = vpop.f32.mrf.mxu1 }
0x18b5   : > { %v5086_v32 = vmul.f32 0.70710677, %v5084_v7  ;;  %v5085_v38 = vmul.f32 0.5, %v5084_v7 }
0x18b6   : > { %v8695_v34 = vpop.f32.mrf.mxu1 }
0x18b7   : > { %9469 = verf.f32 %v5086_v32 }
0x18c4   : > { %v9470_v21 = vpop.eup %9469 }
0x18c5   : > { %v5088_v37 = vadd.f32 1.0, %v9470_v21 }
0x18c7   : > { %v5089_v42 = vmul.f32 %v5088_v37, %v5085_v38 }
0x18c9   : > { %v5090_v54 = vpack.c.bf16 %v5089_v42, %v5089_v42 }
0x18cb   : > { %8701 = vmatmul.mubr.msk.bf16.vlgmr.msra.gmra.mxu0 %vm2719_vm1, %v5090_v54 }
0x18cc   : > { %8716 = vmatprep.mubr.msk.bf16.mxu0 %vm10406_vm0, %v10405_v5  ;;  %8713 = vmatpush3.bf16.msra.mxu0 %v9374_v61 }
0x18cd   : > { %8714 = vmatprep.subr.bf16.mxu0 %v10405_v5 }
0x18d0   : > { %8715 = vmatpush3.bf16.msra.mxu0 %v9376_v62 }
0x18d1   : > { %8726 = vmatprep.subr.bf16.mxu0 %v10405_v5 }
0x198b   : > { %v5146_v26 = vpop.f32.mrf.mxu0 }
0x198c   : > { %v11501_v48 = vadd.f32 %v8142_v47, %v5146_v26 }
0x198d   : > { %v8702_v49 = vpop.f32.mrf.mxu0 }
0x198e   : > { %v5178_v51 = vsel %vm2719_vm1, %v11501_v48, 0.0 }
0x198f   : > { %5179 = vadd.xlane.f32.xlu0 %v5178_v51  ;;  %v5149_v52 = vpop.f32.mrf.mxu0 }
0x1991   : > { %v8703_v53 = vpop.f32.mrf.mxu0 }
0x1a18   : > { %v5180_v55 = vpop.xlane.xlu0 %5179 }
0x1a19   : > { %v5181_v56 = vmul.f32 0.03125, %v5180_v55 }
0x1a1b   : > { %v5182_v58 = vsub.f32 %v11501_v48, %v5181_v56 }
0x1a1d   : > { %v5183_v59 = vmul.f32 %v5182_v58, %v5182_v58 }
0x1a1f   : > { %v5184_v20 = vsel %vm2719_vm1, %v5183_v59, 0.0 }
0x1a20   : > { %5185 = vadd.xlane.f32.xlu1 %v5184_v20 }
0x1aa9   : > { %v5186_v63 = vpop.xlane.xlu1 %5185 }
0x1aaa   : > { %v5187_v0 = vmul.f32 0.03125, %v5186_v63 }
0x1aac   : > { %v5188_v41 = vadd.f32 1e-05, %v5187_v0 }
0x1aae   : > { %9471 = vrsqrt.f32 %v5188_v41 }
0x1abb   : > { %v9472_v2 = vpop.eup %9471 }
0x1abc   : > { %v5190_v3 = vmul.f32 %v9472_v2, %v5182_v58 }
0x1abe   : > { %v5195_v6 = vmul.f32 %v5194_v1, %v5190_v3 }
0x1ac0   : > { %v5200_v8 = vadd.f32 %v5199_v4, %v5195_v6 }
0x1ac2   : > { %v5201_v9 = vpack.c.bf16 %v5200_v8, %v5200_v8 }
0x1ac4   : > { %8709 = vmatmul.mubr.msk.bf16.vlgmr.msra.gmra.mxu1 %vm2719_vm1, %v5201_v9  ;;  %8717 = vmatmul.mubr.msk.bf16.vlgmr.msra.gmra.mxu0 %vm2719_vm1, %v5201_v9 }
0x1ac5   : > { %8722 = vmatprep.mubr.msk.bf16.mxu1 %vm10406_vm0, %v10405_v5  ;;  %8728 = vmatprep.mubr.msk.bf16.mxu0 %vm10406_vm0, %v10405_v5 }
0x1b84   : > { %v5251_v10 = vpop.f32.mrf.mxu1  ;;  %v5303_v12 = vpop.f32.mrf.mxu0 }
0x1b85   : > { %v5309_v13 = vpack.c.bf16 %v5251_v10, %v5251_v10  ;;  %v11528_v14 = vpack.c.bf16 %v5303_v12, %v5303_v12 }
0x1b86   : > { %v8710_v15 = vpop.f32.mrf.mxu1  ;;  %v8718_v18 = vpop.f32.mrf.mxu0 }
0x1b87   : > { %5419 = vrot.lane.b32.xlu1 %v5309_v13, %s12104_s10  ;;  %5421 = vrot.lane.b32.xlu0 %v11528_v14, %s12104_s10  ;;  %v5315_v45 = vsel %vm3010_vm2, %v11528_v14, 0 }
0x1b88   : > { %v5254_v43 = vpop.f32.mrf.mxu1  ;;  %v5306_v19 = vpop.f32.mrf.mxu0  ;;  %8721 = vmatpush3.bf16.xpose.msra.mxu1 %v5315_v45 }
0x1b89   : > { %8732 = vmatprep.subr.bf16.mxu1 %v10405_v5 }
0x1b8a   : > { %v8711_v50 = vpop.f32.mrf.mxu1  ;;  %v8719_v22 = vpop.f32.mrf.mxu0 }
0x1b8b   : > { %5531 = vrot.lane.b32.xlu1 %v11528_v14, %s12105_s7  ;;  %5529 = vrot.lane.b32.xlu0 %v5309_v13, %s12105_s7 }
0x1b8f   : > { %5641 = vrot.lane.b32.xlu1 %v11528_v14, %s12106_s8  ;;  %5639 = vrot.lane.b32.xlu0 %v5309_v13, %s12106_s8 }
0x1b90   : > { %8723 = vmatmul.mubr.msk.bf16.vlgmr.msra.gmra.mxu1 %vm3010_vm2, %v5309_v13 }
0x1b91   : > { %8734 = vmatprep.mubr.msk.bf16.mxu1 %vm10406_vm0, %v10405_v5 }
0x1bf9   : > { %v5420_v23 = vpop.permute.xlu1 %5419  ;;  %v5422_v33 = vpop.permute.xlu0 %5421 }
0x1bfa   : > { %v5427_v25 = vsel %vm3010_vm2, %v5422_v33, 0 }
0x1bfb   : > { %8733 = vmatpush3.bf16.xpose.msra.mxu1 %v5427_v25 }
0x1bfc   : > { %8744 = vmatprep.subr.bf16.mxu1 %v10405_v5 }
0x1bfd   : > { %v5532_v27 = vpop.permute.xlu1 %5531  ;;  %v5530_v30 = vpop.permute.xlu0 %5529 }
0x1bfe   : > { %v5537_v28 = vsel %vm3010_vm2, %v5532_v27, 0 }
0x1c01   : > { %v5642_v29 = vpop.permute.xlu1 %5641  ;;  %v5640_v31 = vpop.permute.xlu0 %5639 }
0x1c02   : > { %8735 = vmatmul.mubr.msk.bf16.vlgmr.msra.gmra.mxu1 %vm3010_vm2, %v5420_v23  ;;  %v5647_v7 = vsel %vm3010_vm2, %v5642_v29, 0 }
0x1c03   : > { %8745 = vmatpush3.bf16.xpose.msra.mxu1 %v5537_v28  ;;  %8746 = vmatprep.mubr.msk.bf16.mxu1 %vm10406_vm0, %v10405_v5 }
0x1c04   : > { %8756 = vmatprep.subr.bf16.mxu1 %v10405_v5 }
0x1c0a   : > { %8747 = vmatmul.mubr.msk.bf16.vlgmr.msra.gmra.mxu1 %vm3010_vm2, %v5530_v30 }
0x1c0b   : > { %8757 = vmatpush3.bf16.xpose.msra.mxu1 %v5647_v7  ;;  %8758 = vmatprep.mubr.msk.bf16.mxu1 %vm10406_vm0, %v10405_v5 }
0x1c0c   : > { %8768 = vmatprep.subr.bf16.mxu1 %v10405_v5 }
0x1c12   : > { %8759 = vmatmul.mubr.msk.bf16.vlgmr.msra.gmra.mxu1 %vm3010_vm2, %v5640_v31 }
0x1c13   : > { %8772 = vmatprep.mubr.msk.bf16.mxu1 %vm10406_vm0, %v10405_v5 }
0x1c50   : > { %v5351_v32 = vpop.f32.mrf.mxu1 }
0x1c51   : > { %v5357_v34 = vsel %vm3010_vm2, %v5351_v32, -inf }
0x1c52   : > { %5358 = vmax.xlane.f32.xlu1 %v5357_v34  ;;  %v8724_v21 = vpop.f32.mrf.mxu1 }
0x1c54   : > { %v5354_v38 = vpop.f32.mrf.mxu1 }
0x1c56   : > { %v8725_v37 = vpop.f32.mrf.mxu1 }
0x1cc2   : > { %v5463_v42 = vpop.f32.mrf.mxu1 }
0x1cc3   : > { %v5469_v54 = vsel %vm3010_vm2, %v5463_v42, -inf }
0x1cc4   : > { %5470 = vmax.xlane.f32.xlu0 %v5469_v54  ;;  %v8736_v47 = vpop.f32.mrf.mxu1 }
0x1cc6   : > { %v5466_v26 = vpop.f32.mrf.mxu1 }
0x1cc8   : > { %v8737_v49 = vpop.f32.mrf.mxu1 }
0x1cca   : > { %v5573_v51 = vpop.f32.mrf.mxu1 }
0x1ccb   : > { %v5579_v52 = vsel %vm3010_vm2, %v5573_v51, -inf }
0x1ccc   : > { %5580 = vmax.xlane.f32.xlu0 %v5579_v52  ;;  %v8748_v53 = vpop.f32.mrf.mxu1 }
0x1cce   : > { %v5576_v55 = vpop.f32.mrf.mxu1 }
0x1cd0   : > { %v8749_v56 = vpop.f32.mrf.mxu1 }
0x1cd2   : > { %v5683_v58 = vpop.f32.mrf.mxu1 }
0x1cd3   : > { %v5689_v59 = vsel %vm3010_vm2, %v5683_v58, -inf }
0x1cd4   : > { %5690 = vmax.xlane.f32.xlu1 %v5689_v59  ;;  %v8760_v20 = vpop.f32.mrf.mxu1 }
0x1cd6   : > { %v5686_v60 = vpop.f32.mrf.mxu1 }
0x1cd8   : > { %v8761_v61 = vpop.f32.mrf.mxu1 }
0x1cdb   : > { %v5359_v11 = vpop.xlane.xlu1 %5358 }
0x1cdc   : > { %v5360_v62 = vsub.f32 %v5351_v32, %v5359_v11  ;;  %v9377_v11 = vld [vmem:[%s12108_s12 + $0x8] sm:$0xff]  }
0x1cdd   : > { %8769 = vmatpush3.bf16.msra.mxu1 %v9377_v11 }
0x1cde   : > { %v5361_v63 = vmul.f32 1.442695, %v5360_v62  ;;  %8770 = vmatprep.subr.bf16.mxu1 %v10405_v5  ;;  %v9378_v62 = vld [vmem:[%s12108_s12] sm:$0xff]   ;;  %s12109_s12 = sld [smem:[#allocation77_spill]] }
0x1ce0   : > { %9473 = vpow2.f32 %v5361_v63 }
0x1ce1   : > { %8771 = vmatpush3.bf16.msra.mxu1 %v9378_v62 }
0x1ce2   : > { %8784 = vmatprep.subr.bf16.mxu1 %v10405_v5 }
0x1ced   : > { %v9474_v0 = vpop.eup %9473 }
0x1cee   : > { %v5363_v41 = vsel %vm3010_vm2, %v9474_v0, 0.0 }
0x1cef   : > { %5364 = vadd.xlane.f32.xlu0 %v5363_v41 }
0x1d4d   : > { %v5471_v1 = vpop.xlane.xlu0 %5470 }
0x1d4e   : > { %v5472_v2 = vsub.f32 %v5463_v42, %v5471_v1 }
0x1d50   : > { %v5473_v3 = vmul.f32 1.442695, %v5472_v2 }
0x1d52   : > { %9475 = vpow2.f32 %v5473_v3 }
0x1d55   : > { %v5581_v4 = vpop.xlane.xlu0 %5580 }
0x1d56   : > { %v5582_v6 = vsub.f32 %v5573_v51, %v5581_v4 }
0x1d58   : > { %v5583_v8 = vmul.f32 1.442695, %v5582_v6 }
0x1d5a   : > { %9477 = vpow2.f32 %v5583_v8 }
0x1d5d   : > { %v5691_v15 = vpop.xlane.xlu1 %5690 }
0x1d5e   : > { %v5692_v18 = vsub.f32 %v5683_v58, %v5691_v15 }
0x1d5f   : > { %v9476_v9 = vpop.eup %9475 }
0x1d60   : > { %v5475_v10 = vsel %vm3010_vm2, %v9476_v9, 0.0  ;;  %v5693_v45 = vmul.f32 1.442695, %v5692_v18 }
0x1d61   : > { %5476 = vadd.xlane.f32.xlu1 %v5475_v10 }
0x1d62   : > { %9479 = vpow2.f32 %v5693_v45  ;;  %v5768_v45 = vrot.slane %v11516_v36, %v11218_v16 }
0x1d67   : > { %v9478_v12 = vpop.eup %9477 }
0x1d68   : > { %v5585_v13 = vsel %vm3010_vm2, %v9478_v12, 0.0 }
0x1d69   : > { %5586 = vadd.xlane.f32.xlu0 %v5585_v13 }
0x1d6f   : > { %v9480_v43 = vpop.eup %9479 }
0x1d70   : > { %v5695_v19 = vsel %vm3010_vm2, %v9480_v43, 0.0 }
0x1d72   : > { %5481 = vrot.lane.b32.xlu1 %v11528_v14, %s12086_s0 }
0x1d78   : > { %v5365_v50 = vpop.xlane.xlu0 %5364 }
0x1d79   : > { %9481 = vrcp.f32 %v5365_v50 }
0x1d7f   : > { %5370 = vrot.lane.b32.xlu0 %v11528_v14, %s12107_s11 }
0x1d83   : > { %5701 = vrot.lane.b32.xlu0 %v11528_v14, %s12085_s1 }
0x1d86   : > { %v9482_v23 = vpop.eup %9481 }
0x1d87   : > { %v5367_v25 = vmul.f32 %v9482_v23, %v9474_v0 }
0x1d89   : > { %v5368_v30 = vpack.c.bf16 %v5367_v25, %v5367_v25 }
0x1d96   : > { %5696 = vadd.xlane.f32.xlu1 %v5695_v19 }
0x1da7   : > { %5591 = vrot.lane.b32.xlu1 %v11528_v14, %s12084_s6 }
0x1dea   : > { %v5477_v22 = vpop.xlane.xlu1 %5476 }
0x1deb   : > { %9483 = vrcp.f32 %v5477_v22 }
0x1dee   : > { %v5482_v29 = vpop.permute.xlu1 %5481 }
0x1def   : > { %v5487_v31 = vsel %vm3075_vm3, %v5482_v29, 0 }
0x1df2   : > { %v5587_v33 = vpop.xlane.xlu0 %5586 }
0x1df3   : > { %9485 = vrcp.f32 %v5587_v33  ;;  %v8131_v33 = vld [vmem:[#allocation17] ss:$0 sm:$0xff] }
0x1df4   : > { %v11617_v29 = vadd.f32 %v8131_v33, %v11496_v57 }
0x1df6   : > { %v5371_v27 = vpop.permute.xlu0 %5370 }
0x1df7   : > { %v5376_v28 = vsel %vm3075_vm3, %v5371_v27, 0 }
0x1df8   : > { %8727 = vmatpush3.bf16.msra.mxu0 %v5376_v28  ;;  %v9484_v7 = vpop.eup %9483 }
0x1df9   : > { %8738 = vmatprep.subr.bf16.mxu0 %v10405_v5  ;;  %v5479_v14 = vmul.f32 %v9484_v7, %v9476_v9  ;;  %v6024_v7 = vsel %vm2719_vm1, %v11617_v29, 0.0 }
0x1dfa   : > { %v5702_v54 = vpop.permute.xlu0 %5701 }
0x1dfb   : > { %8729 = vmatmul.mubr.msk.bf16.vlgmr.msra.gmra.mxu0 %vm3010_vm2, %v5368_v30  ;;  %v5480_v32 = vpack.c.bf16 %v5479_v14, %v5479_v14  ;;  %v5707_v26 = vsel %vm3075_vm3, %v5702_v54, 0  ;;  %v9379_v54 = vld [vmem:[%s12109_s12 + $0x8] sm:$0xff]  }
0x1dfc   : > { %8739 = vmatpush3.bf16.msra.mxu0 %v5487_v31  ;;  %8740 = vmatprep.mubr.msk.bf16.mxu0 %vm10406_vm0, %v10405_v5 }
0x1dfd   : > { %8750 = vmatprep.subr.bf16.mxu0 %v10405_v5 }
0x1e00   : > { %v9486_v34 = vpop.eup %9485 }
0x1e01   : > { %v5589_v38 = vmul.f32 %v9486_v34, %v9478_v12 }
0x1e03   : > { %8741 = vmatmul.mubr.msk.bf16.vlgmr.msra.gmra.mxu0 %vm3010_vm2, %v5480_v32  ;;  %v5590_v47 = vpack.c.bf16 %v5589_v38, %v5589_v38 }
0x1e04   : > { %8752 = vmatprep.mubr.msk.bf16.mxu0 %vm10406_vm0, %v10405_v5 }
0x1e1f   : > { %v5697_v21 = vpop.xlane.xlu1 %5696 }
0x1e20   : > { %9487 = vrcp.f32 %v5697_v21 }
0x1e23   : > { %v5592_v37 = vpop.permute.xlu1 %5591 }
0x1e24   : > { %v5597_v42 = vsel %vm3075_vm3, %v5592_v37, 0 }
0x1e25   : > { %8751 = vmatpush3.bf16.msra.mxu0 %v5597_v42 }
0x1e26   : > { %8762 = vmatprep.subr.bf16.mxu0 %v10405_v5 }
0x1e28   : > { %8753 = vmatmul.mubr.msk.bf16.vlgmr.msra.gmra.mxu0 %vm3010_vm2, %v5590_v47  ;;  %v9380_v47 = vld [vmem:[%s12109_s12] sm:$0xff]   ;;  %s12111_s12 = sld [smem:[#allocation78_spill]] }
0x1e29   : > { %8763 = vmatpush3.bf16.msra.mxu0 %v5707_v26  ;;  %8764 = vmatprep.mubr.msk.bf16.mxu0 %vm10406_vm0, %v10405_v5 }
0x1e2a   : > { %8776 = vmatprep.subr.bf16.mxu0 %v10405_v5 }
0x1e2d   : > { %v9488_v49 = vpop.eup %9487 }
0x1e2e   : > { %v5699_v51 = vmul.f32 %v9488_v49, %v9480_v43  ;;  %v5827_v43 = vrot.slane %v11516_v36, %v11221_v17 }
0x1e30   : > { %v5700_v52 = vpack.c.bf16 %v5699_v51, %v5699_v51 }
0x1e32   : > { %8765 = vmatmul.mubr.msk.bf16.vlgmr.msra.gmra.mxu0 %vm3010_vm2, %v5700_v52 }
0x1e33   : > { %8780 = vmatprep.mubr.msk.bf16.mxu0 %vm10406_vm0, %v10405_v5  ;;  %8777 = vmatpush3.bf16.msra.mxu0 %v9379_v54 }
0x1e34   : > { %8778 = vmatprep.subr.bf16.mxu0 %v10405_v5 }
0x1e37   : > { %8779 = vmatpush3.bf16.msra.mxu0 %v9380_v47 }
0x1e38   : > { %8796 = vmatprep.subr.bf16.mxu0 %v10405_v5 }
0x1ebb   : > { %v5412_v53 = vpop.f32.mrf.mxu0 }
0x1ebd   : > { %v8730_v55 = vpop.f32.mrf.mxu0 }
0x1ebf   : > { %v5415_v56 = vpop.f32.mrf.mxu0 }
0x1ec0   : > { %v5846_v56 = vrot.slane %v11516_v36, %v11241_v44 }
0x1ec1   : > { %v8731_v58 = vpop.f32.mrf.mxu0 }
0x1ec3   : > { %v5523_v59 = vpop.f32.mrf.mxu0 }
0x1ec4   : > { %5750 = vrot.lane.b32.xlu1 %v5523_v59, %s12088_s3  ;;  %v11633_v59 = vld [vmem:[#allocation14] sm:$0xff] }
0x1ec5   : > { %v8742_v20 = vpop.f32.mrf.mxu0  ;;  %v11639_v11 = vrot.slane %v11633_v59, %v11098_v39 }
0x1ec7   : > { %v5526_v60 = vpop.f32.mrf.mxu0 }
0x1ec8   : > { %v5851_v60 = vrot.slane %v11516_v36, %v11244_v46 }
0x1ec9   : > { %v8743_v61 = vpop.f32.mrf.mxu0 }
0x1ee8   : > { %v5633_v63 = vpop.f32.mrf.mxu0 }
0x1ee9   : > { %5754 = vrot.lane.b32.xlu0 %v5633_v63, %s12089_s4 }
0x1eea   : > { %v8754_v0 = vpop.f32.mrf.mxu0 }
0x1eec   : > { %v5636_v41 = vpop.f32.mrf.mxu0 }
0x1eed   : > { %v9381_v41 = vld [vmem:[%s12110_s13 + $0x8] sm:$0xff]  }
0x1eee   : > { %v8755_v1 = vpop.f32.mrf.mxu0 }
0x1ef2   : > { %v5743_v2 = vpop.f32.mrf.mxu0 }
0x1ef3   : > { %5758 = vrot.lane.b32.xlu1 %v5743_v2, %s12090_s5 }
0x1ef4   : > { %v8766_v3 = vpop.f32.mrf.mxu0 }
0x1ef5   : > { %v11645_v3 = vrot.slane %v11633_v59, %v11101_v40  ;;  %v9383_v40 = vld [vmem:[%s12111_s12 + $0x18] sm:$0xff]  }
0x1ef6   : > { %v5746_v4 = vpop.f32.mrf.mxu0 }
0x1ef7   : > { %v9382_v4 = vld [vmem:[%s12110_s13] sm:$0xff]  }
0x1ef8   : > { %v8767_v6 = vpop.f32.mrf.mxu0 }
0x1f36   : > { %v5751_v8 = vpop.permute.xlu1 %5750 }
0x1f37   : > { %v5761_v10 = vsel %vm3010_vm2, %v5412_v53, %v5751_v8  ;;  %v9384_v8 = vld [vmem:[%s12111_s12 + $0x10] sm:$0xff]  }
0x1f5b   : > { %v5755_v9 = vpop.permute.xlu0 %5754 }
0x1f5c   : > { %v5762_v12 = vsel %vm3463_vm4, %v5761_v10, %v5755_v9  ;;  %v9385_v9 = vld [vmem:[%s12111_s12 + $0x8] sm:$0xff]   ;;  %v9386_v10 = vld [vmem:[%s12111_s12] sm:$0xff]   ;;  %s12112_s12 = sld [smem:[#allocation86_spill]] }
0x1f65   : > { %v5759_v13 = vpop.permute.xlu1 %5758 }
0x1f66   : > { %v5763_v15 = vsel %vm3465_vm5, %v5762_v12, %v5759_v13  ;;  %v8163_v12 = vld [vmem:[#allocation11] ss:$0 sm:$0xff] }
0x1f67   : > { %v5764_v18 = vpack.c.bf16 %v5763_v15, %v5763_v15 }
0x1f69   : > { %8773 = vmatmul.mubr.msk.bf16.vlgmr.msra.gmra.mxu1 %vm2719_vm1, %v5764_v18 }
0x1f6a   : > { %8792 = vmatprep.mubr.msk.bf16.mxu1 %vm10406_vm0, %v10405_v5  ;;  %8785 = vmatpush3.bf16.msra.mxu1 %v9383_v40 }
0x1f6b   : > { %8786 = vmatprep.subr.bf16.mxu1 %v10405_v5 }
0x1f6e   : > { %8787 = vmatpush3.bf16.msra.mxu1 %v9384_v8 }
0x1f6f   : > { %8788 = vmatprep.subr.bf16.mxu1 %v10405_v5 }
0x1f72   : > { %8789 = vmatpush3.bf16.msra.mxu1 %v9385_v9 }
0x1f73   : > { %8790 = vmatprep.subr.bf16.mxu1 %v10405_v5 }
0x1f76   : > { %8791 = vmatpush3.bf16.msra.mxu1 %v9386_v10 }
0x1f77   : > { %8812 = vmatprep.subr.bf16.mxu1 %v10405_v5 }
0x2029   : > { %v5818_v19 = vpop.f32.mrf.mxu1 }
0x202a   : > { %v5819_v50 = vadd.f32 %v5818_v19, %v5768_v45 }
0x202b   : > { %v8774_v22 = vpop.f32.mrf.mxu1 }
0x202c   : > { %v5828_v23 = vmul.f32 %v5827_v43, %v5819_v50 }
0x202d   : > { %v5821_v25 = vpop.f32.mrf.mxu1 }
0x202e   : > { %v11614_v27 = vadd.f32 %v5828_v23, %v11501_v48 }
0x202f   : > { %v8775_v28 = vpop.f32.mrf.mxu1 }
0x2030   : > { %v5830_v30 = vsel %vm2719_vm1, %v11614_v27, 0.0 }
0x2031   : > { %5831 = vadd.xlane.f32.xlu0 %v5830_v30 }
0x2035   : > { %6025 = vadd.xlane.f32.xlu0 %v6024_v7 }
0x20ba   : > { %v5832_v31 = vpop.xlane.xlu0 %5831 }
0x20bb   : > { %v5833_v14 = vmul.f32 0.03125, %v5832_v31 }
0x20bd   : > { %v5834_v32 = vsub.f32 %v11614_v27, %v5833_v14  ;;  %v5924_v14 = vrot.slane %v11516_v36, %v11279_v24 }
0x20be   : > { %v6026_v48 = vpop.xlane.xlu0 %6025 }
0x20bf   : > { %v6027_v34 = vmul.f32 0.03125, %v6026_v48  ;;  %v5835_v21 = vmul.f32 %v5834_v32, %v5834_v32 }
0x20c1   : > { %v6028_v57 = vsub.f32 %v11617_v29, %v6027_v34  ;;  %v5836_v38 = vsel %vm2719_vm1, %v5835_v21, 0.0 }
0x20c2   : > { %5837 = vadd.xlane.f32.xlu1 %v5836_v38 }
0x20c3   : > { %v6029_v37 = vmul.f32 %v6028_v57, %v6028_v57 }
0x20c5   : > { %v6030_v42 = vsel %vm2719_vm1, %v6029_v37, 0.0 }
0x20c6   : > { %6031 = vadd.xlane.f32.xlu1 %v6030_v42 }
0x214b   : > { %v5838_v26 = vpop.xlane.xlu1 %5837 }
0x214c   : > { %v5839_v49 = vmul.f32 0.03125, %v5838_v26 }
0x214e   : > { %v5840_v51 = vadd.f32 1e-05, %v5839_v49 }
0x214f   : > { %v6032_v52 = vpop.xlane.xlu1 %6031 }
0x2150   : > { %9489 = vrsqrt.f32 %v5840_v51  ;;  %v6033_v53 = vmul.f32 0.03125, %v6032_v52 }
0x2152   : > { %v6034_v55 = vadd.f32 1e-05, %v6033_v53  ;;  %v9387_v53 = vld [vmem:[%s12112_s12 + $0x8] sm:$0xff]  }
0x2154   : > { %9491 = vrsqrt.f32 %v6034_v55  ;;  %v9388_v55 = vld [vmem:[%s12112_s12] sm:$0xff]  }
0x215d   : > { %v9490_v58 = vpop.eup %9489 }
0x215e   : > { %v5842_v20 = vmul.f32 %v9490_v58, %v5834_v32  ;;  %v5995_v32 = vrot.slane %v11516_v36, %v11282_v35 }
0x2160   : > { %v5847_v61 = vmul.f32 %v5846_v56, %v5842_v20 }
0x2161   : > { %v9492_v62 = vpop.eup %9491 }
0x2162   : > { %v6036_v63 = vmul.f32 %v9492_v62, %v6028_v57  ;;  %v5852_v0 = vadd.f32 %v5851_v60, %v5847_v61 }
0x2164   : > { %v5853_v1 = vpack.c.bf16 %v5852_v0, %v5852_v0  ;;  %v6041_v2 = vmul.f32 %v11639_v11, %v6036_v63 }
0x2166   : > { %8781 = vmatmul.mubr.msk.bf16.vlgmr.msra.gmra.mxu0 %vm2719_vm1, %v5853_v1  ;;  %v6046_v39 = vadd.f32 %v11645_v3, %v6041_v2 }
0x2167   : > { %8797 = vmatpush3.bf16.msra.mxu0 %v9381_v41  ;;  %8800 = vmatprep.mubr.msk.bf16.mxu0 %vm10406_vm0, %v10405_v5 }
0x2168   : > { %8798 = vmatprep.subr.bf16.mxu0 %v10405_v5  ;;  %v6047_v6 = vpack.c.bf16 %v6046_v39, %v6046_v39 }
0x216b   : > { %8799 = vmatpush3.bf16.msra.mxu0 %v9382_v4 }
0x216c   : > { %8804 = vmatprep.subr.bf16.mxu0 %v10405_v5 }
0x216e   : > { %8801 = vmatmul.mubr.msk.bf16.vlgmr.msra.gmra.mxu0 %vm2719_vm1, %v6047_v6 }
0x216f   : > { %8808 = vmatprep.mubr.msk.bf16.mxu0 %vm10406_vm0, %v10405_v5  ;;  %8805 = vmatpush3.bf16.msra.mxu0 %v9387_v53 }
0x2170   : > { %8806 = vmatprep.subr.bf16.mxu0 %v10405_v5 }
0x2173   : > { %8807 = vmatpush3.bf16.msra.mxu0 %v9388_v55 }
0x2174   : > { %8818 = vmatprep.subr.bf16.mxu0 %v10405_v5 }
0x2226   : > { %v5909_v13 = vpop.f32.mrf.mxu0 }
0x2227   : > { %v5910_v15 = vadd.f32 %v8163_v12, %v5909_v13 }
0x2228   : > { %v8782_v18 = vpop.f32.mrf.mxu0 }
0x2229   : > { %v5916_v45 = vmul.f32 0.70710677, %v5910_v15  ;;  %v5915_v28 = vmul.f32 0.5, %v5910_v15 }
0x222a   : > { %v5912_v43 = vpop.f32.mrf.mxu0 }
0x222b   : > { %9493 = verf.f32 %v5916_v45 }
0x222c   : > { %v8783_v19 = vpop.f32.mrf.mxu0 }
0x222e   : > { %v6113_v50 = vpop.f32.mrf.mxu0 }
0x222f   : > { %v6174_v36 = vpack.c.bf16 %v6113_v50, %v6113_v50 }
0x2230   : > { %v8802_v22 = vpop.f32.mrf.mxu0 }
0x2232   : > { %v6116_v23 = vpop.f32.mrf.mxu0 }
0x2234   : > { %v8803_v33 = vpop.f32.mrf.mxu0 }
0x2238   : > { %v9494_v25 = vpop.eup %9493 }
0x2239   : > { %v5918_v30 = vadd.f32 1.0, %v9494_v25 }
0x223b   : > { %v5919_v7 = vmul.f32 %v5918_v30, %v5915_v28 }
0x223d   : > { %v5920_v31 = vpack.c.bf16 %v5919_v7, %v5919_v7 }
0x223f   : > { %8793 = vmatmul.mubr.msk.bf16.vlgmr.msra.gmra.mxu1 %vm3652_vm6, %v5920_v31 }
0x2240   : > { %8814 = vmatprep.mubr.msk.bf16.mxu1 %vm10406_vm0, %v10405_v5 }
0x22ff   : > { %v5986_v48 = vpop.f32.mrf.mxu1 }
0x2300   : > { %v5987_v34 = vadd.f32 %v5986_v48, %v5924_v14 }
0x2301   : > { %v8794_v21 = vpop.f32.mrf.mxu1 }
0x2302   : > { %v5996_v57 = vmul.f32 %v5995_v32, %v5987_v34 }
0x2303   : > { %v5989_v38 = vpop.f32.mrf.mxu1 }
0x2304   : > { %v5997_v37 = vadd.f32 %v5996_v57, %v11614_v27 }
0x2305   : > { %v8795_v42 = vpop.f32.mrf.mxu1 }
0x2306   : > { %v6048_v54 = vsel %vm2719_vm1, %v5997_v37, 0.0 }
0x2307   : > { %6049 = vadd.xlane.f32.xlu0 %v6048_v54 }
0x2390   : > { %v6050_v47 = vpop.xlane.xlu0 %6049 }
0x2391   : > { %v6051_v26 = vmul.f32 0.03125, %v6050_v47 }
0x2393   : > { %v6052_v49 = vsub.f32 %v5997_v37, %v6051_v26 }
0x2395   : > { %v6053_v51 = vmul.f32 %v6052_v49, %v6052_v49 }
0x2397   : > { %v6054_v52 = vsel %vm2719_vm1, %v6053_v51, 0.0 }
0x2398   : > { %6055 = vadd.xlane.f32.xlu0 %v6054_v52 }
0x23ae   : > { %6284 = vrot.lane.b32.xlu0 %v6174_v36, %s12104_s10 }
0x2421   : > { %v6056_v27 = vpop.xlane.xlu0 %6055 }
0x2422   : > { %v6057_v56 = vmul.f32 0.03125, %v6056_v27 }
0x2424   : > { %v6058_v58 = vadd.f32 1e-05, %v6057_v56 }
0x2425   : > { %v6285_v40 = vpop.permute.xlu0 %6284 }
0x2426   : > { %9495 = vrsqrt.f32 %v6058_v58 }
0x2433   : > { %v9496_v20 = vpop.eup %9495 }
0x2434   : > { %v6060_v60 = vmul.f32 %v9496_v20, %v6052_v49 }
0x2436   : > { %v6061_v61 = vmul.f32 %v6060_v60, %v11639_v11 }
0x2438   : > { %v6062_v62 = vadd.f32 %v6061_v61, %v11645_v3 }
0x243a   : > { %v6063_v63 = vpack.c.bf16 %v6062_v62, %v6062_v62 }
0x243c   : > { %8809 = vmatmul.mubr.msk.bf16.vlgmr.msra.gmra.mxu0 %vm2719_vm1, %v6063_v63 }
0x243d   : > { %8820 = vmatprep.mubr.msk.bf16.mxu0 %vm10406_vm0, %v10405_v5 }
0x24fc   : > { %v6168_v0 = vpop.f32.mrf.mxu0 }
0x24fd   : > { %v11685_v41 = vpack.c.bf16 %v6168_v0, %v6168_v0 }
0x24fe   : > { %v8810_v1 = vpop.f32.mrf.mxu0 }
0x24ff   : > { %6506 = vrot.lane.b32.xlu0 %v11685_v41, %s12106_s8  ;;  %6286 = vrot.lane.b32.xlu1 %v11685_v41, %s12104_s10  ;;  %v6180_v11 = vsel %vm3010_vm2, %v11685_v41, 0  ;;  %s12122_s10 = sld [smem:[#allocation64_spill]] }
0x2500   : > { %v6171_v2 = vpop.f32.mrf.mxu0  ;;  %8813 = vmatpush3.bf16.xpose.msra.mxu1 %v6180_v11 }
0x2501   : > { %8824 = vmatprep.subr.bf16.mxu1 %v10405_v5 }
0x2502   : > { %v8811_v3 = vpop.f32.mrf.mxu0 }
0x2503   : > { %6396 = vrot.lane.b32.xlu1 %v11685_v41, %s12105_s7 }
0x2507   : > { %6394 = vrot.lane.b32.xlu1 %v6174_v36, %s12105_s7  ;;  %8815 = vmatmul.mubr.msk.bf16.vlgmr.msra.gmra.mxu1 %vm3010_vm2, %v6174_v36  ;;  %s12121_s7 = sld [smem:[#allocation65_spill]] }
0x2508   : > { %8826 = vmatprep.mubr.msk.bf16.mxu1 %vm10406_vm0, %v10405_v5 }
0x250b   : > { %6504 = vrot.lane.b32.xlu1 %v6174_v36, %s12106_s8  ;;  %s12120_s8 = sld [smem:[#allocation112_spill]] }
0x2571   : > { %v6287_v4 = vpop.permute.xlu1 %6286  ;;  %v6507_v9 = vpop.permute.xlu0 %6506 }
0x2572   : > { %v6292_v39 = vsel %vm3010_vm2, %v6287_v4, 0  ;;  %v6512_v12 = vsel %vm3010_vm2, %v6507_v9, 0 }
0x2573   : > { %8825 = vmatpush3.bf16.xpose.msra.mxu1 %v6292_v39 }
0x2574   : > { %8836 = vmatprep.subr.bf16.mxu1 %v10405_v5 }
0x2575   : > { %v6397_v6 = vpop.permute.xlu1 %6396 }
0x2576   : > { %v6402_v8 = vsel %vm3010_vm2, %v6397_v6, 0 }
0x2579   : > { %v6395_v10 = vpop.permute.xlu1 %6394 }
0x257a   : > { %8827 = vmatmul.mubr.msk.bf16.vlgmr.msra.gmra.mxu1 %vm3010_vm2, %v6285_v40 }
0x257b   : > { %8837 = vmatpush3.bf16.xpose.msra.mxu1 %v6402_v8  ;;  %8838 = vmatprep.mubr.msk.bf16.mxu1 %vm10406_vm0, %v10405_v5 }
0x257c   : > { %8848 = vmatprep.subr.bf16.mxu1 %v10405_v5 }
0x257d   : > { %v6505_v13 = vpop.permute.xlu1 %6504 }
0x2582   : > { %8839 = vmatmul.mubr.msk.bf16.vlgmr.msra.gmra.mxu1 %vm3010_vm2, %v6395_v10 }
0x2583   : > { %8849 = vmatpush3.bf16.xpose.msra.mxu1 %v6512_v12  ;;  %8850 = vmatprep.mubr.msk.bf16.mxu1 %vm10406_vm0, %v10405_v5 }
0x2584   : > { %8860 = vmatprep.subr.bf16.mxu1 %v10405_v5 }
0x258a   : > { %8851 = vmatmul.mubr.msk.bf16.vlgmr.msra.gmra.mxu1 %vm3010_vm2, %v6505_v13 }
0x258b   : > { %8864 = vmatprep.mubr.msk.bf16.mxu1 %vm10406_vm0, %v10405_v5 }
0x25c7   : > { %v6216_v15 = vpop.f32.mrf.mxu1 }
0x25c8   : > { %v6222_v18 = vsel %vm3010_vm2, %v6216_v15, -inf }
0x25c9   : > { %6223 = vmax.xlane.f32.xlu0 %v6222_v18  ;;  %v8816_v45 = vpop.f32.mrf.mxu1 }
0x25cb   : > { %v6219_v43 = vpop.f32.mrf.mxu1 }
0x25cd   : > { %v8817_v19 = vpop.f32.mrf.mxu1 }
0x263a   : > { %v6328_v50 = vpop.f32.mrf.mxu1 }
0x263b   : > { %v6334_v22 = vsel %vm3010_vm2, %v6328_v50, -inf }
0x263c   : > { %6335 = vmax.xlane.f32.xlu1 %v6334_v22  ;;  %v8828_v23 = vpop.f32.mrf.mxu1 }
0x263e   : > { %v6331_v33 = vpop.f32.mrf.mxu1 }
0x2640   : > { %v8829_v25 = vpop.f32.mrf.mxu1 }
0x2642   : > { %v6438_v28 = vpop.f32.mrf.mxu1 }
0x2643   : > { %v6444_v30 = vsel %vm3010_vm2, %v6438_v28, -inf }
0x2644   : > { %6445 = vmax.xlane.f32.xlu0 %v6444_v30  ;;  %v8840_v7 = vpop.f32.mrf.mxu1 }
0x2646   : > { %v6441_v31 = vpop.f32.mrf.mxu1 }
0x2648   : > { %v8841_v14 = vpop.f32.mrf.mxu1 }
0x264a   : > { %v6548_v32 = vpop.f32.mrf.mxu1 }
0x264b   : > { %v6554_v48 = vsel %vm3010_vm2, %v6548_v32, -inf }
0x264c   : > { %6555 = vmax.xlane.f32.xlu0 %v6554_v48  ;;  %v8852_v34 = vpop.f32.mrf.mxu1 }
0x264e   : > { %v6551_v21 = vpop.f32.mrf.mxu1 }
0x2650   : > { %v8853_v57 = vpop.f32.mrf.mxu1 }
0x2652   : > { %v6224_v38 = vpop.xlane.xlu0 %6223 }
0x2653   : > { %v6225_v37 = vsub.f32 %v6216_v15, %v6224_v38 }
0x2655   : > { %v6226_v42 = vmul.f32 1.442695, %v6225_v37 }
0x2657   : > { %9497 = vpow2.f32 %v6226_v42 }
0x2664   : > { %v9498_v54 = vpop.eup %9497 }
0x2665   : > { %v6228_v47 = vsel %vm3010_vm2, %v9498_v54, 0.0 }
0x2666   : > { %6229 = vadd.xlane.f32.xlu1 %v6228_v47 }
0x2677   : > { %6235 = vrot.lane.b32.xlu1 %v11685_v41, %s12107_s11  ;;  %s12119_s11 = sld [smem:[#allocation101_spill]] }
0x26c5   : > { %v6336_v26 = vpop.xlane.xlu1 %6335 }
0x26c6   : > { %v6337_v49 = vsub.f32 %v6328_v50, %v6336_v26 }
0x26c8   : > { %v6338_v51 = vmul.f32 1.442695, %v6337_v49 }
0x26ca   : > { %9499 = vpow2.f32 %v6338_v51 }
0x26cd   : > { %v6446_v52 = vpop.xlane.xlu0 %6445 }
0x26ce   : > { %v6447_v36 = vsub.f32 %v6438_v28, %v6446_v52 }
0x26d0   : > { %v6448_v53 = vmul.f32 1.442695, %v6447_v36 }
0x26d2   : > { %9501 = vpow2.f32 %v6448_v53 }
0x26d5   : > { %v6556_v55 = vpop.xlane.xlu0 %6555 }
0x26d6   : > { %v6557_v27 = vsub.f32 %v6548_v32, %v6556_v55 }
0x26d7   : > { %v9500_v56 = vpop.eup %9499 }
0x26d8   : > { %v6558_v58 = vmul.f32 1.442695, %v6557_v27  ;;  %v6340_v20 = vsel %vm3010_vm2, %v9500_v56, 0.0 }
0x26d9   : > { %6341 = vadd.xlane.f32.xlu0 %v6340_v20  ;;  %v6692_v20 = vrot.slane %v11633_v59, %v11221_v17 }
0x26da   : > { %9503 = vpow2.f32 %v6558_v58  ;;  %v6633_v58 = vrot.slane %v11633_v59, %v11218_v16 }
0x26df   : > { %v9502_v60 = vpop.eup %9501 }
0x26e0   : > { %v6450_v61 = vsel %vm3010_vm2, %v9502_v60, 0.0 }
0x26e1   : > { %6451 = vadd.xlane.f32.xlu1 %v6450_v61 }
0x26e7   : > { %v9504_v62 = vpop.eup %9503 }
0x26e8   : > { %v6560_v63 = vsel %vm3010_vm2, %v9504_v62, 0.0 }
0x26e9   : > { %6561 = vadd.xlane.f32.xlu0 %v6560_v63 }
0x26ef   : > { %v6230_v0 = vpop.xlane.xlu1 %6229 }
0x26f0   : > { %9505 = vrcp.f32 %v6230_v0 }
0x26f2   : > { %6456 = vrot.lane.b32.xlu1 %v11685_v41, %s12084_s6  ;;  %s12118_s6 = sld [smem:[#allocation111_spill]] }
0x26f3   : > { %v6236_v1 = vpop.permute.xlu1 %6235 }
0x26f4   : > { %v6241_v11 = vsel %vm3075_vm3, %v6236_v1, 0 }
0x26f5   : > { %8819 = vmatpush3.bf16.msra.mxu0 %v6241_v11 }
0x26f6   : > { %6566 = vrot.lane.b32.xlu1 %v11685_v41, %s12085_s1  ;;  %8830 = vmatprep.subr.bf16.mxu0 %v10405_v5  ;;  %s12117_s1 = sld [smem:[#allocation110_spill]] }
0x26fd   : > { %v9506_v2 = vpop.eup %9505 }
0x26fe   : > { %v6232_v3 = vmul.f32 %v9506_v2, %v9498_v54 }
0x26ff   : > { %6346 = vrot.lane.b32.xlu0 %v11685_v41, %s12086_s0  ;;  %s12113_s0 = sld [smem:[#allocation87_spill]] }
0x2700   : > { %v6233_v4 = vpack.c.bf16 %v6232_v3, %v6232_v3 }
0x2702   : > { %8821 = vmatmul.mubr.msk.bf16.vlgmr.msra.gmra.mxu0 %vm3010_vm2, %v6233_v4 }
0x2703   : > { %8832 = vmatprep.mubr.msk.bf16.mxu0 %vm10406_vm0, %v10405_v5 }
0x2705   : > { %v9389_v31 = vld [vmem:[%s12113_s0 + $0x8] sm:$0xff]   ;;  %v9390_v48 = vld [vmem:[%s12113_s0] sm:$0xff]   ;;  %s2647_s0 = scalar_lea.vmem %s12121_s7, %s12127_s2  ;;  %s2651_s7 = scalar_lea.vmem %s10803_s9, %s11056_s26 }
0x2706   : > { %8861 = vmatpush3.bf16.msra.mxu1 %v9389_v31 }
0x2707   : > { %8862 = vmatprep.subr.bf16.mxu1 %v10405_v5 }
0x270a   : > { %8863 = vmatpush3.bf16.msra.mxu1 %v9390_v48 }
0x270b   : > { %8876 = vmatprep.subr.bf16.mxu1 %v10405_v5 }
0x2762   : > { %v6342_v39 = vpop.xlane.xlu0 %6341 }
0x2763   : > { %9507 = vrcp.f32 %v6342_v39 }
0x276a   : > { %v6452_v6 = vpop.xlane.xlu1 %6451 }
0x276b   : > { %9509 = vrcp.f32 %v6452_v6 }
0x276e   : > { %v6457_v13 = vpop.permute.xlu1 %6456 }
0x276f   : > { %v6462_v18 = vsel %vm3075_vm3, %v6457_v13, 0 }
0x2770   : > { %v9508_v40 = vpop.eup %9507 }
0x2771   : > { %v6344_v9 = vmul.f32 %v9508_v40, %v9500_v56 }
0x2772   : > { %v6562_v8 = vpop.xlane.xlu0 %6561  ;;  %v6567_v43 = vpop.permute.xlu1 %6566 }
0x2773   : > { %9511 = vrcp.f32 %v6562_v8  ;;  %v6345_v41 = vpack.c.bf16 %v6344_v9, %v6344_v9  ;;  %v6572_v22 = vsel %vm3075_vm3, %v6567_v43, 0 }
0x2776   : > { %v6347_v10 = vpop.permute.xlu0 %6346 }
0x2777   : > { %v6352_v12 = vsel %vm3075_vm3, %v6347_v10, 0  ;;  %v6711_v10 = vrot.slane %v11633_v59, %v11241_v44 }
0x2778   : > { %8831 = vmatpush3.bf16.msra.mxu0 %v6352_v12  ;;  %v9510_v15 = vpop.eup %9509 }
0x2779   : > { %8842 = vmatprep.subr.bf16.mxu0 %v10405_v5  ;;  %v6454_v45 = vmul.f32 %v9510_v15, %v9502_v60 }
0x277b   : > { %8833 = vmatmul.mubr.msk.bf16.vlgmr.msra.gmra.mxu0 %vm3010_vm2, %v6345_v41  ;;  %v6455_v19 = vpack.c.bf16 %v6454_v45, %v6454_v45  ;;  %v6716_v41 = vrot.slane %v11633_v59, %v11244_v46 }
0x277c   : > { %8843 = vmatpush3.bf16.msra.mxu0 %v6462_v18  ;;  %8844 = vmatprep.mubr.msk.bf16.mxu0 %vm10406_vm0, %v10405_v5 }
0x277d   : > { %8854 = vmatprep.subr.bf16.mxu0 %v10405_v5 }
0x2780   : > { %v9512_v50 = vpop.eup %9511 }
0x2781   : > { %v6564_v23 = vmul.f32 %v9512_v50, %v9504_v62  ;;  %v8189_v50 = vld [vmem:[#allocation12] ss:$0 sm:$0xff] }
0x2783   : > { %8845 = vmatmul.mubr.msk.bf16.vlgmr.msra.gmra.mxu0 %vm3010_vm2, %v6455_v19  ;;  %v6565_v33 = vpack.c.bf16 %v6564_v23, %v6564_v23 }
0x2784   : > { %8855 = vmatpush3.bf16.msra.mxu0 %v6572_v22  ;;  %8856 = vmatprep.mubr.msk.bf16.mxu0 %vm10406_vm0, %v10405_v5 }
0x2785   : > { %8868 = vmatprep.subr.bf16.mxu0 %v10405_v5 }
0x278b   : > { %8857 = vmatmul.mubr.msk.bf16.vlgmr.msra.gmra.mxu0 %vm3010_vm2, %v6565_v33 }
0x278c   : > { %8872 = vmatprep.mubr.msk.bf16.mxu0 %vm10406_vm0, %v10405_v5 }
0x27c2   : > { %v6277_v25 = vpop.f32.mrf.mxu0 }
0x27c4   : > { %v8822_v28 = vpop.f32.mrf.mxu0 }
0x27c6   : > { %v6280_v30 = vpop.f32.mrf.mxu0 }
0x27c8   : > { %v8823_v7 = vpop.f32.mrf.mxu0 }
0x283b   : > { %v6388_v14 = vpop.f32.mrf.mxu0 }
0x283c   : > { %6615 = vrot.lane.b32.xlu0 %v6388_v14, %s12088_s3  ;;  %s12116_s3 = sld [smem:[#allocation109_spill]] }
0x283d   : > { %v8834_v32 = vpop.f32.mrf.mxu0 }
0x283f   : > { %v6391_v34 = vpop.f32.mrf.mxu0 }
0x2841   : > { %v8835_v21 = vpop.f32.mrf.mxu0 }
0x2842   : > { %v9397_v34 = vld [vmem:[%s12116_s3 + $0x8] sm:$0xff]   ;;  %v9398_v21 = vld [vmem:[%s12116_s3] sm:$0xff]   ;;  %s2644_s3 = scalar_lea.vmem %s12122_s10, %s12127_s2  ;;  %s12124_s2 = sld [smem:[#allocation104_spill]] }
0x2843   : > { %v6498_v57 = vpop.f32.mrf.mxu0 }
0x2844   : > { %6619 = vrot.lane.b32.xlu1 %v6498_v57, %s12089_s4  ;;  %s12115_s4 = sld [smem:[#allocation84_spill]]  ;;  %v6789_v57 = vrot.slane %v11633_v59, %v11279_v24  ;;  %v9399_v24 = vld [vmem:[%s12117_s1 + $0x8] sm:$0xff]  }
0x2845   : > { %v8846_v38 = vpop.f32.mrf.mxu0 }
0x2846   : > { %v6860_v38 = vrot.slane %v11633_v59, %v11282_v35  ;;  %v9400_v35 = vld [vmem:[%s12117_s1] sm:$0xff]   ;;  %v8198_v59 = vld [vmem:[#allocation30] ss:$0 sm:$0xff]  ;;  %s12123_s1 = sld [smem:[#allocation103_spill]] }
0x2847   : > { %v6501_v37 = vpop.f32.mrf.mxu0 }
0x2849   : > { %v8847_v42 = vpop.f32.mrf.mxu0 }
0x284a   : > { %v9393_v43 = vld [vmem:[%s12115_s4 + $0x18] sm:$0xff]   ;;  %v9394_v19 = vld [vmem:[%s12115_s4 + $0x10] sm:$0xff]   ;;  %v9395_v44 = vld [vmem:[%s12115_s4 + $0x8] sm:$0xff]  }
0x284b   : > { %v6608_v54 = vpop.f32.mrf.mxu0  ;;  %v9396_v46 = vld [vmem:[%s12115_s4] sm:$0xff]  }
0x284c   : > { %6623 = vrot.lane.b32.xlu0 %v6608_v54, %s12090_s5  ;;  %s12114_s5 = sld [smem:[#allocation83_spill]] }
0x284d   : > { %v8858_v47 = vpop.f32.mrf.mxu0 }
0x284f   : > { %v6611_v26 = vpop.f32.mrf.mxu0 }
0x2851   : > { %v8859_v49 = vpop.f32.mrf.mxu0 }
0x2852   : > { %v9391_v6 = vld [vmem:[%s12114_s5 + $0x8] sm:$0xff]   ;;  %v9392_v40 = vld [vmem:[%s12114_s5] sm:$0xff]  }
0x2853   : > { %8869 = vmatpush3.bf16.msra.mxu0 %v9391_v6 }
0x2854   : > { %8870 = vmatprep.subr.bf16.mxu0 %v10405_v5 }
0x2857   : > { %8871 = vmatpush3.bf16.msra.mxu0 %v9392_v40 }
0x2858   : > { %8888 = vmatprep.subr.bf16.mxu0 %v10405_v5 }
0x28ae   : > { %v6616_v51 = vpop.permute.xlu0 %6615 }
0x28af   : > { %v6626_v36 = vsel %vm3010_vm2, %v6277_v25, %v6616_v51 }
0x28b6   : > { %v6620_v52 = vpop.permute.xlu1 %6619 }
0x28b7   : > { %v6627_v53 = vsel %vm3463_vm4, %v6626_v36, %v6620_v52 }
0x28be   : > { %v6624_v55 = vpop.permute.xlu0 %6623 }
0x28bf   : > { %v6628_v27 = vsel %vm3465_vm5, %v6627_v53, %v6624_v55 }
0x28c0   : > { %v6629_v56 = vpack.c.bf16 %v6628_v27, %v6628_v27 }
0x28c2   : > { %8865 = vmatmul.mubr.msk.bf16.vlgmr.msra.gmra.mxu1 %vm2719_vm1, %v6629_v56 }
0x28c3   : > { %8884 = vmatprep.mubr.msk.bf16.mxu1 %vm10406_vm0, %v10405_v5  ;;  %8877 = vmatpush3.bf16.msra.mxu1 %v9393_v43 }
0x28c4   : > { %8878 = vmatprep.subr.bf16.mxu1 %v10405_v5 }
0x28c7   : > { %8879 = vmatpush3.bf16.msra.mxu1 %v9394_v19 }
0x28c8   : > { %8880 = vmatprep.subr.bf16.mxu1 %v10405_v5 }
0x28cb   : > { %8881 = vmatpush3.bf16.msra.mxu1 %v9395_v44  ;;  %v9403_v44 = vld [vmem:[%s12119_s11 + $0x8] sm:$0xff]  }
0x28cc   : > { %8882 = vmatprep.subr.bf16.mxu1 %v10405_v5 }
0x28cf   : > { %8883 = vmatpush3.bf16.msra.mxu1 %v9396_v46 }
0x28d0   : > { %8904 = vmatprep.subr.bf16.mxu1 %v10405_v5 }
0x2982   : > { %v6683_v60 = vpop.f32.mrf.mxu1 }
0x2983   : > { %v6684_v61 = vadd.f32 %v6683_v60, %v6633_v58 }
0x2984   : > { %v8866_v62 = vpop.f32.mrf.mxu1 }
0x2985   : > { %v6693_v63 = vmul.f32 %v6692_v20, %v6684_v61 }
0x2986   : > { %v6686_v0 = vpop.f32.mrf.mxu1 }
0x2987   : > { %v11770_v1 = vadd.f32 %v6693_v63, %v11617_v29  ;;  %v8202_v0 = vld [vmem:[#allocation32] ss:$0 sm:$0xff] }
0x2988   : > { %v8867_v11 = vpop.f32.mrf.mxu1 }
0x2989   : > { %v6695_v2 = vsel %vm2719_vm1, %v11770_v1, 0.0 }
0x298a   : > { %6696 = vadd.xlane.f32.xlu1 %v6695_v2 }
0x2a13   : > { %v6697_v3 = vpop.xlane.xlu1 %6696 }
0x2a14   : > { %v6698_v16 = vmul.f32 0.03125, %v6697_v3 }
0x2a16   : > { %v6699_v4 = vsub.f32 %v11770_v1, %v6698_v16 }
0x2a18   : > { %v6700_v17 = vmul.f32 %v6699_v4, %v6699_v4 }
0x2a1a   : > { %v6701_v39 = vsel %vm2719_vm1, %v6700_v17, 0.0 }
0x2a1b   : > { %6702 = vadd.xlane.f32.xlu0 %v6701_v39 }
0x2aa4   : > { %v6703_v29 = vpop.xlane.xlu0 %6702 }
0x2aa5   : > { %v6704_v8 = vmul.f32 0.03125, %v6703_v29 }
0x2aa7   : > { %v6705_v9 = vadd.f32 1e-05, %v6704_v8  ;;  %v9401_v8 = vld [vmem:[%s12118_s6 + $0x8] sm:$0xff]  }
0x2aa9   : > { %9513 = vrsqrt.f32 %v6705_v9  ;;  %v9402_v9 = vld [vmem:[%s12118_s6] sm:$0xff]  }
0x2ab6   : > { %v9514_v12 = vpop.eup %9513 }
0x2ab7   : > { %v6707_v13 = vmul.f32 %v9514_v12, %v6699_v4 }
0x2ab9   : > { %v6712_v15 = vmul.f32 %v6711_v10, %v6707_v13 }
0x2abb   : > { %v6717_v18 = vadd.f32 %v6716_v41, %v6712_v15  ;;  %v8206_v15 = vld [vmem:[#allocation36] ss:$0 sm:$0xff] }
0x2abd   : > { %v6718_v45 = vpack.c.bf16 %v6717_v18, %v6717_v18 }
0x2abf   : > { %8873 = vmatmul.mubr.msk.bf16.vlgmr.msra.gmra.mxu0 %vm2719_vm1, %v6718_v45  ;;  %v8207_v45 = vld [vmem:[#allocation35] ss:$0 sm:$0xff] }
0x2ac0   : > { %8892 = vmatprep.mubr.msk.bf16.mxu0 %vm10406_vm0, %v10405_v5  ;;  %8889 = vmatpush3.bf16.msra.mxu0 %v9397_v34 }
0x2ac1   : > { %8890 = vmatprep.subr.bf16.mxu0 %v10405_v5 }
0x2ac4   : > { %8891 = vmatpush3.bf16.msra.mxu0 %v9398_v21 }
0x2ac5   : > { %8896 = vmatprep.subr.bf16.mxu0 %v10405_v5 }
0x2b7f   : > { %v6774_v22 = vpop.f32.mrf.mxu0 }
0x2b80   : > { %v6775_v23 = vadd.f32 %v8189_v50, %v6774_v22  ;;  %v9404_v50 = vld [vmem:[%s12119_s11] sm:$0xff]   ;;  %v9405_v22 = vld [vmem:[%s12120_s8 + $0x8] sm:$0xff]  }
0x2b81   : > { %v8874_v33 = vpop.f32.mrf.mxu0 }
0x2b82   : > { %v6781_v25 = vmul.f32 0.70710677, %v6775_v23  ;;  %v6780_v31 = vmul.f32 0.5, %v6775_v23  ;;  %v9406_v23 = vld [vmem:[%s12120_s8] sm:$0xff]   ;;  %v8208_v33 = vld [vmem:[#allocation33] ss:$0 sm:$0xff] }
0x2b83   : > { %v6777_v28 = vpop.f32.mrf.mxu0 }
0x2b84   : > { %9515 = verf.f32 %v6781_v25 }
0x2b85   : > { %v8875_v30 = vpop.f32.mrf.mxu0 }
0x2b91   : > { %v9516_v7 = vpop.eup %9515 }
0x2b92   : > { %v6783_v14 = vadd.f32 1.0, %v9516_v7 }
0x2b94   : > { %v6784_v32 = vmul.f32 %v6783_v14, %v6780_v31 }
0x2b96   : > { %v6785_v48 = vpack.c.bf16 %v6784_v32, %v6784_v32 }
0x2b98   : > { %8885 = vmatmul.mubr.msk.bf16.vlgmr.msra.gmra.mxu1 %vm3652_vm6, %v6785_v48 }
0x2b99   : > { %8908 = vmatprep.mubr.msk.bf16.mxu1 %vm10406_vm0, %v10405_v5  ;;  %8905 = vmatpush3.bf16.msra.mxu1 %v9401_v8 }
0x2b9a   : > { %8906 = vmatprep.subr.bf16.mxu1 %v10405_v5 }
0x2b9d   : > { %8907 = vmatpush3.bf16.msra.mxu1 %v9402_v9 }
0x2b9e   : > { %8920 = vmatprep.subr.bf16.mxu1 %v10405_v5 }
0x2c58   : > { %v6851_v37 = vpop.f32.mrf.mxu1 }
0x2c59   : > { %v6852_v42 = vadd.f32 %v6851_v37, %v6789_v57 }
0x2c5a   : > { %v8886_v54 = vpop.f32.mrf.mxu1 }
0x2c5b   : > { %v6861_v47 = vmul.f32 %v6860_v38, %v6852_v42 }
0x2c5c   : > { %v6854_v26 = vpop.f32.mrf.mxu1 }
0x2c5d   : > { %v6862_v49 = vadd.f32 %v6861_v47, %v11770_v1  ;;  %v8216_v47 = vld [vmem:[%s2647_s0] ss:$0 sm:$0xff]  ;;  %v8212_v26 = vld [vmem:[#allocation3] ss:$0 sm:$0xff]  ;;  %s12125_s0 = sld [smem:[#allocation105_spill]] }
0x2c5e   : > { %v8887_v51 = vpop.f32.mrf.mxu1 }
0x2c5f   : > { %v11807_v52 = vpack.c.bf16 %v6862_v49, %v6862_v49 }
0x2c61   : > { %8893 = vmatmul.mubr.msk.bf16.vlgmr.msra.gmra.mxu0 %vm2719_vm1, %v11807_v52 }
0x2c62   : > { %8900 = vmatprep.mubr.msk.bf16.mxu0 %vm10406_vm0, %v10405_v5  ;;  %8897 = vmatpush3.bf16.msra.mxu0 %v9399_v24 }
0x2c63   : > { %8898 = vmatprep.subr.bf16.mxu0 %v10405_v5 }
0x2c66   : > { %8899 = vmatpush3.bf16.msra.mxu0 %v9400_v35 }
0x2c67   : > { %8912 = vmatprep.subr.bf16.mxu0 %v10405_v5 }
0x2d21   : > { %v6943_v36 = vpop.f32.mrf.mxu0 }
0x2d22   : > { %v6944_v53 = vadd.f32 %v8198_v59, %v6943_v36 }
0x2d23   : > { %v8894_v55 = vpop.f32.mrf.mxu0 }
0x2d24   : > { %v6950_v27 = vmul.f32 0.70710677, %v6944_v53  ;;  %v6949_v60 = vmul.f32 0.5, %v6944_v53 }
0x2d25   : > { %v6946_v56 = vpop.f32.mrf.mxu0 }
0x2d26   : > { %9517 = verf.f32 %v6950_v27  ;;  %v9407_v56 = vld [vmem:[%s12123_s1 + $0x18] sm:$0xff]  }
0x2d27   : > { %v8895_v58 = vpop.f32.mrf.mxu0 }
0x2d28   : > { %v9408_v58 = vld [vmem:[%s12123_s1 + $0x10] sm:$0xff]  }
0x2d33   : > { %v9518_v20 = vpop.eup %9517 }
0x2d34   : > { %v6952_v61 = vadd.f32 1.0, %v9518_v20  ;;  %v9409_v20 = vld [vmem:[%s12123_s1 + $0x8] sm:$0xff]  }
0x2d36   : > { %v6953_v62 = vmul.f32 %v6952_v61, %v6949_v60  ;;  %v9410_v60 = vld [vmem:[%s12123_s1] sm:$0xff]   ;;  %v8218_v61 = vld [vmem:[#allocation29] ss:$0 sm:$0xff] }
0x2d38   : > { %v6954_v63 = vpack.c.bf16 %v6953_v62, %v6953_v62 }
0x2d3a   : > { %8901 = vmatmul.mubr.msk.bf16.vlgmr.msra.gmra.mxu0 %vm2719_vm1, %v6954_v63 }
0x2d3b   : > { %8916 = vmatprep.mubr.msk.bf16.mxu0 %vm10406_vm0, %v10405_v5  ;;  %8913 = vmatpush3.bf16.msra.mxu0 %v9405_v22 }
0x2d3c   : > { %8914 = vmatprep.subr.bf16.mxu0 %v10405_v5 }
0x2d3f   : > { %8915 = vmatpush3.bf16.msra.mxu0 %v9406_v23  ;;  %v8229_v23 = vld [vmem:[#allocation27] ss:$0 sm:$0xff] }
0x2d40   : > { %8928 = vmatprep.subr.bf16.mxu0 %v10405_v5 }
0x2dfa   : > { %v7010_v1 = vpop.f32.mrf.mxu0 }
0x2dfb   : > { %v7011_v11 = vadd.f32 %v8202_v0, %v7010_v1  ;;  %v8222_v0 = vld [vmem:[#allocation21] ss:$0 sm:$0xff] }
0x2dfc   : > { %v8902_v2 = vpop.f32.mrf.mxu0 }
0x2dfd   : > { %v7016_v3 = vsel %vm2719_vm1, %v7011_v11, 0.0 }
0x2dfe   : > { %7017 = vadd.xlane.f32.xlu0 %v7016_v3  ;;  %v7013_v16 = vpop.f32.mrf.mxu0 }
0x2e00   : > { %v8903_v4 = vpop.f32.mrf.mxu0 }
0x2e87   : > { %v7018_v17 = vpop.xlane.xlu0 %7017 }
0x2e88   : > { %v7019_v39 = vmul.f32 0.03125, %v7018_v17 }
0x2e8a   : > { %v7020_v6 = vsub.f32 %v7011_v11, %v7019_v39 }
0x2e8c   : > { %v7021_v40 = vmul.f32 %v7020_v6, %v7020_v6 }
0x2e8e   : > { %v7022_v29 = vsel %vm2719_vm1, %v7021_v40, 0.0 }
0x2e8f   : > { %7023 = vadd.xlane.f32.xlu1 %v7022_v29 }
0x2f18   : > { %v7024_v10 = vpop.xlane.xlu1 %7023 }
0x2f19   : > { %v7025_v12 = vmul.f32 0.03125, %v7024_v10 }
0x2f1b   : > { %v7026_v13 = vadd.f32 1e-05, %v7025_v12 }
0x2f1d   : > { %9519 = vrsqrt.f32 %v7026_v13 }
0x2f2a   : > { %v9520_v41 = vpop.eup %9519 }
0x2f2b   : > { %v7028_v18 = vmul.f32 %v9520_v41, %v7020_v6  ;;  %v8223_v6 = vld [vmem:[#allocation23] ss:$0 sm:$0xff] }
0x2f2d   : > { %v7035_v43 = vmul.f32 %v8206_v15, %v7028_v18 }
0x2f2f   : > { %v7042_v19 = vadd.f32 %v8207_v45, %v7035_v43  ;;  %v9411_v43 = vld [vmem:[%s12124_s2 + $0x8] sm:$0xff]  }
0x2f31   : > { %v7043_v46 = vpack.c.bf16 %v7042_v19, %v7042_v19  ;;  %v9412_v19 = vld [vmem:[%s12124_s2] sm:$0xff]  }
0x2f33   : > { %8909 = vmatmul.mubr.msk.bf16.vlgmr.msra.gmra.mxu1 %vm2719_vm1, %v7043_v46 }
0x2f34   : > { %8921 = vmatpush3.bf16.msra.mxu1 %v9403_v44  ;;  %8924 = vmatprep.mubr.msk.bf16.mxu1 %vm10406_vm0, %v10405_v5 }
0x2f35   : > { %8922 = vmatprep.subr.bf16.mxu1 %v10405_v5 }
0x2f38   : > { %8923 = vmatpush3.bf16.msra.mxu1 %v9404_v50 }
0x2f39   : > { %8940 = vmatprep.subr.bf16.mxu1 %v10405_v5 }
0x2f3b   : > { %8925 = vmatmul.mubr.msk.bf16.vlgmr.msra.gmra.mxu1 %vm2719_vm1, %v11807_v52  ;;  %v8217_v52 = vld [vmem:[%s2644_s3] ss:$0 sm:$0xff]  ;;  %s10418_s3 = smov 1  }
0x2f3c   : > { %8944 = vmatprep.mubr.msk.bf16.mxu1 %vm10406_vm0, %v10405_v5  ;;  %8941 = vmatpush3.bf16.msra.mxu1 %v9411_v43 }
0x2f3d   : > { %8942 = vmatprep.subr.bf16.mxu1 %v10405_v5 }
0x2f40   : > { %8943 = vmatpush3.bf16.msra.mxu1 %v9412_v19 }
0x2f41   : > { %8948 = vmatprep.subr.bf16.mxu1 %v10405_v5 }
0x2ff3   : > { %v7099_v25 = vpop.f32.mrf.mxu1 }
0x2ff4   : > { %v7100_v28 = vadd.f32 %v8208_v33, %v7099_v25  ;;  %v8230_v25 = vld [vmem:[#allocation26] ss:$0 sm:$0xff] }
0x2ff5   : > { %v8910_v30 = vpop.f32.mrf.mxu1 }
0x2ff6   : > { %v7106_v7 = vmul.f32 0.70710677, %v7100_v28  ;;  %v7105_v38 = vmul.f32 0.5, %v7100_v28 }
0x2ff7   : > { %v7102_v31 = vpop.f32.mrf.mxu1 }
0x2ff8   : > { %9521 = verf.f32 %v7106_v7  ;;  %v9413_v31 = vld [vmem:[%s12125_s0 + $0x8] sm:$0xff]  }
0x2ff9   : > { %v8911_v14 = vpop.f32.mrf.mxu1  ;;  %9523 = vrcp.f32 %v8216_v47 }
0x2ffa   : > { %v9414_v14 = vld [vmem:[%s12125_s0] sm:$0xff]  }
0x2ffb   : > { %v7273_v32 = vpop.f32.mrf.mxu1 }
0x2ffd   : > { %v8926_v48 = vpop.f32.mrf.mxu1 }
0x2fff   : > { %v7276_v34 = vpop.f32.mrf.mxu1 }
0x3001   : > { %v8927_v21 = vpop.f32.mrf.mxu1 }
0x3005   : > { %v9522_v57 = vpop.eup %9521 }
0x3006   : > { %v7108_v37 = vadd.f32 1.0, %v9522_v57  ;;  %v9524_v59 = vpop.eup %9523 }
0x3008   : > { %v7109_v42 = vmul.f32 %v7108_v37, %v7105_v38 }
0x300a   : > { %v7110_v54 = vpack.c.bf16 %v7109_v42, %v7109_v42 }
0x300c   : > { %8917 = vmatmul.mubr.msk.bf16.vlgmr.msra.gmra.mxu0 %vm2719_vm1, %v7110_v54 }
0x300d   : > { %8936 = vmatprep.mubr.msk.bf16.mxu0 %vm10406_vm0, %v10405_v5  ;;  %8929 = vmatpush3.bf16.msra.mxu0 %v9407_v56 }
0x300e   : > { %8930 = vmatprep.subr.bf16.mxu0 %v10405_v5 }
0x3011   : > { %8931 = vmatpush3.bf16.msra.mxu0 %v9408_v58 }
0x3012   : > { %8932 = vmatprep.subr.bf16.mxu0 %v10405_v5 }
0x3015   : > { %8933 = vmatpush3.bf16.msra.mxu0 %v9409_v20 }
0x3016   : > { %8934 = vmatprep.subr.bf16.mxu0 %v10405_v5 }
0x3019   : > { %8935 = vmatpush3.bf16.msra.mxu0 %v9410_v60 }
0x30cc   : > { %v7166_v49 = vpop.f32.mrf.mxu0 }
0x30cd   : > { %v7167_v51 = vadd.f32 %v8212_v26, %v7166_v49 }
0x30ce   : > { %v8918_v24 = vpop.f32.mrf.mxu0 }
0x30cf   : > { %v7178_v35 = vmul.f32 %v8216_v47, %v7167_v51  ;;  %v8235_v51 = vld [vmem:[#allocation2] ss:$0 sm:$0xff] }
0x30d0   : > { %v7169_v36 = vpop.f32.mrf.mxu0 }
0x30d1   : > { %v11848_v53 = vadd.f32 %v8217_v52, %v7178_v35 }
0x30d2   : > { %v8919_v55 = vpop.f32.mrf.mxu0 }
0x30d3   : > { %v7214_v27 = vmul.f32 %v9524_v59, %v11848_v53 }
0x30d5   : > { %7217 = vperm.xlu0 %9326, %v7214_v27  }
0x3150   : > { %v7218_v62 = vpop.permute.xlu0 %7217 }
0x3151   : > { %v7226_v63 = vmul.f32 %v8218_v61, %v7218_v62 }
0x3153   : > { %v7274_v1 = vadd.f32 %v7273_v32, %v7226_v63  ;;  %v8231_v32 = vld [vmem:[#allocation24] ss:$0 sm:$0xff] }
0x3155   : > { %v7285_v11 = vadd.f32 %v8222_v0, %v7274_v1 }
0x3157   : > { %v7287_v2 = vmul.f32 0.70710677, %v7285_v11  ;;  %v7286_v16 = vmul.f32 0.5, %v7285_v11 }
0x3159   : > { %9525 = verf.f32 %v7287_v2 }
0x3166   : > { %v9526_v3 = vpop.eup %9525 }
0x3167   : > { %v7289_v4 = vadd.f32 1.0, %v9526_v3 }
0x3169   : > { %v7290_v17 = vmul.f32 %v7289_v4, %v7286_v16 }
0x316b   : > { %v7291_v39 = vpack.c.bf16 %v7290_v17, %v7290_v17 }
0x316d   : > { %8937 = vmatmul.mubr.msk.bf16.vlgmr.msra.gmra.mxu0 %vm3652_vm6, %v7291_v39 }
0x322d   : > { %v7359_v40 = vpop.f32.mrf.mxu0 }
0x322e   : > { %v7360_v29 = vadd.f32 %v8223_v6, %v7359_v40 }
0x322f   : > { %v8938_v8 = vpop.f32.mrf.mxu0 }
0x3230   : > { %v7365_v9 = vsel %vm2719_vm1, %v7360_v29, 0.0 }
0x3231   : > { %7366 = vadd.xlane.f32.xlu1 %v7365_v9  ;;  %v7362_v10 = vpop.f32.mrf.mxu0 }
0x3233   : > { %v8939_v12 = vpop.f32.mrf.mxu0 }
0x32ba   : > { %v7367_v13 = vpop.xlane.xlu1 %7366 }
0x32bb   : > { %v7368_v41 = vmul.f32 0.03125, %v7367_v13 }
0x32bd   : > { %v7369_v15 = vsub.f32 %v7360_v29, %v7368_v41 }
0x32bf   : > { %v7370_v18 = vmul.f32 %v7369_v15, %v7369_v15 }
0x32c1   : > { %v7371_v45 = vsel %vm2719_vm1, %v7370_v18, 0.0 }
0x32c2   : > { %7372 = vadd.xlane.f32.xlu1 %v7371_v45 }
0x334b   : > { %v7373_v44 = vpop.xlane.xlu1 %7372 }
0x334c   : > { %v7374_v46 = vmul.f32 0.03125, %v7373_v44 }
0x334e   : > { %v7375_v50 = vadd.f32 1e-05, %v7374_v46 }
0x3350   : > { %9527 = vrsqrt.f32 %v7375_v50 }
0x335d   : > { %v9528_v22 = vpop.eup %9527 }
0x335e   : > { %v7377_v33 = vmul.f32 %v9528_v22, %v7369_v15 }
0x3360   : > { %v7384_v28 = vmul.f32 %v8229_v23, %v7377_v33 }
0x3362   : > { %v7391_v30 = vadd.f32 %v8230_v25, %v7384_v28 }
0x3364   : > { %v7392_v7 = vpack.c.bf16 %v7391_v30, %v7391_v30 }
0x3366   : > { %8945 = vmatmul.mubr.msk.bf16.vlgmr.msra.gmra.mxu1 %vm2719_vm1, %v7392_v7 }
0x3367   : > { %8952 = vmatprep.mubr.msk.bf16.mxu1 %vm10406_vm0, %v10405_v5  ;;  %8949 = vmatpush3.bf16.msra.mxu1 %v9413_v31 }
0x3368   : > { %8950 = vmatprep.subr.bf16.mxu1 %v10405_v5 }
0x336b   : > { %8951 = vmatpush3.bf16.msra.mxu1 %v9414_v14 }
0x3426   : > { %v7448_v48 = vpop.f32.mrf.mxu1 }
0x3427   : > { %v7449_v34 = vadd.f32 %v8231_v32, %v7448_v48 }
0x3428   : > { %v8946_v21 = vpop.f32.mrf.mxu1 }
0x3429   : > { %v7455_v57 = vmul.f32 0.70710677, %v7449_v34  ;;  %v7454_v54 = vmul.f32 0.5, %v7449_v34 }
0x342a   : > { %v7451_v38 = vpop.f32.mrf.mxu1 }
0x342b   : > { %9529 = verf.f32 %v7455_v57 }
0x342c   : > { %v8947_v37 = vpop.f32.mrf.mxu1 }
0x3438   : > { %v9530_v42 = vpop.eup %9529 }
0x3439   : > { %v7457_v47 = vadd.f32 1.0, %v9530_v42 }
0x343b   : > { %v7458_v26 = vmul.f32 %v7457_v47, %v7454_v54 }
0x343d   : > { %v7459_v49 = vpack.c.bf16 %v7458_v26, %v7458_v26 }
0x343f   : > { %8953 = vmatmul.mubr.msk.bf16.vlgmr.msra.gmra.mxu1 %vm2719_vm1, %v7459_v49 }
0x34ff   : > { %v7515_v5 = vpop.f32.mrf.mxu1 }
0x3500   : > { %v7516_v52 = vadd.f32 %v8235_v51, %v7515_v5 }
0x3501   : > { %v8954_v24 = vpop.f32.mrf.mxu1 }
0x3502   : > { %v7521_v35 = vsub.f32 0.0, %v7516_v52 }
0x3503   : > { %v7518_v59 = vpop.f32.mrf.mxu1 }
0x3504   : > { %v7522_v36 = vmul.f32 1.442695, %v7521_v35 }
0x3505   : > { %v8955_v55 = vpop.f32.mrf.mxu1 }
0x3506   : > { %9531 = vpow2.f32 %v7522_v36 }
0x3513   : > { %v9532_v27 = vpop.eup %9531 }
0x3514   : > { %v7524_v56 = vadd.f32 1.0, %v9532_v27 }
0x3516   : > { %9533 = vrcp.f32 %v7524_v56 }
0x3523   : > { %v9534_v58 = vpop.eup %9533 }
0x3524   : > { %7528 = vrot.lane.b32.xlu1 %v9534_v58, %s10418_s3 }
0x3596   : > { %v7529_v20 = vpop.permute.xlu1 %7528 }
0x3597   : > { %v7532_v60 = vsel %vm7531_vm7, %v11848_v53, %v7529_v20 }
0x3598   : > { %7534 = vst.msk [vmem:[%s2651_s7] sm:$0xff] %vm7533_vm8, %v7532_v60 }
0x3599 PF: > { %s181_s29 = sadd.s32 1, %s10299_s29  }
0x359a   : > { %p178_p2 = scmp.ge.s32.totalorder %s181_s29, 4  }
0x359c   :  { %180 = sbr.rel (!%p178_p2) target bundleno = 158 (0x9e), region = 557 }
0x35a1   :  { %7554 = vsyncpa [#allocation5], 1 }
0x35a2   :  { %7556 = vsyncpa [#allocation5 + $0x1], 1 }
0x35a3   :  { %7557 = vsyncpa [#allocation7], 1 }
0x35a4   :  { %7558 = vsyncpa [#allocation10], 1 }
0x35a5   :  { %7559 = vsyncpa [#allocation13], 1 }
0x35a6   :  { %7560 = vsyncpa [#allocation16], 1 }
0x35a7   :  { %7561 = vsyncpa [#allocation19], 1 }
0x35a8   :  { %7562 = vsyncpa [#allocation22], 1 }
0x35a9   :  { %7563 = vsyncpa [#allocation25], 1 }
0x35aa   :  { %7564 = vsyncpa [#allocation28], 1 }
0x35ab   :  { %7565 = vsyncpa [#allocation31], 1 }
0x35ac   :  { %7566 = vsyncpa [#allocation34], 1 }
0x35ad   :  { %7567 = vsyncpa [#allocation37], 1 }
0x35ae   :  { %7568 = vsyncpa [#allocation40], 1 }
0x35af   :  { %7569 = vsyncpa [#allocation43], 1 }

</bundles_post_ra>
